<compile_context>
chip_gen: v6e
topology: v6e:2x2x1
jax: 0.10.0
libtpu: 0.0.40
codegen_flags: <defaults>
</compile_context>

<pallas_src>
import numpy as np
import jax
import jax.numpy as jnp
from jax import lax
from jax.experimental import pallas as pl
from jax.experimental.pallas import tpu as pltpu

HIDDEN = 400          # logical hidden size of the reference module
HPAD = 512            # padded hidden size (multiple of 128); pad region is zero
N_MAX = 8             # max nodes per (sub)graph after padding
CHUNK = 8             # samples per grid step
NG = 2 * CHUNK        # graphs per step (upstream + downstream)
M = NG * N_MAX        # stacked node rows per step (= 128)
QAG_W = 128           # lane-dense combined Q/A/G output width
ALPHA = 0.2           # LeakyReLU slope in GraphAttentionLayer
NEG_BIG = -9e15       # masking constant used by the reference pyGAT layer


# ------------------------------- Pallas kernel --------------------------------

def _critic_kernel(ego_ref, x_ref, rowinfo_ref, colinfo_ref, use_ref,
                   w0_ref, b0_ref, w1_ref, b1_ref, w2_ref, b2_ref, w3_ref, b3_ref,
                   uw1_ref, ua1d_ref, ua1s_ref, uw2_ref, ua2d_ref, ua2s_ref,
                   dw1_ref, da1d_ref, da1s_ref, dw2_ref, da2d_ref, da2s_ref,
                   qag_ref, reg_ref):
    m = x_ref.shape[0]            # stacked node rows in this step
    half = m // 2                 # first half = upstream graphs, second = downstream
    ng = use_ref.shape[0]         # graphs in this step
    nb = ng // 2                  # samples in this step

    # ---- block-diagonal structural masks (shared by both GAT layers) ----
    ri_ = rowinfo_ref[...]                         # (8, M) row-oriented metadata
    ci_ = colinfo_ref[...]                         # (M, 8) column-oriented metadata
    validj = ri_[0:1, :]                           # (1, M) 1.0 for real nodes
    gid_j = ri_[1:2, :]                            # graph id of column j
    lid_j = ri_[2:3, :]                            # local node index of column j
    gid_i = ci_[:, 0:1]                            # (M, 1) graph id of row i
    lid_i = ci_[:, 1:2]

    same_g = gid_i == gid_j                                        # (M, M)
    star = ((lid_i == 0.0) | (lid_j == 0.0)) & (lid_i != lid_j)    # star adjacency
    validj_b = validj > 0.0
    adjm = same_g & star & validj_b
    colmask = jnp.where(same_g & validj_b, 1.0, 0.0)

    row_is_u = lax.broadcasted_iota(jnp.int32, (m, 1), 0) < half
    col_is_u = lax.broadcasted_iota(jnp.int32, (1, m), 1) < half

    x = x_ref[...]                                                 # (M, F), ghost rows are 0

    def gat_layer(h, wu_ref, wd_ref, ud_ref, us_ref, dd_ref, ds_ref, apply_elu):
        # per-direction linear transform, restacked into one [M, HPAD] slab
        wh_u = jnp.dot(h[:half, :], wu_ref[...], preferred_element_type=jnp.float32)
        wh_d = jnp.dot(h[half:, :], wd_ref[...], preferred_element_type=jnp.float32)
        wh = jnp.concatenate([wh_u, wh_d], axis=0)                 # (M, HPAD)
        # e[i,j] = a_dst . Wh_i + a_src . Wh_j (only same-graph entries matter)
        er_u = jnp.sum(wh * ud_ref[...], axis=-1, keepdims=True)   # VPU mul + lane reduce
        er_d = jnp.sum(wh * dd_ref[...], axis=-1, keepdims=True)
        e_row = jnp.where(row_is_u, er_u, er_d)                    # (M, 1)
        cv_u = lax.dot_general(us_ref[...], wh, (((1,), (1,)), ((), ())),
                               preferred_element_type=jnp.float32)  # (1, M)
        cv_d = lax.dot_general(ds_ref[...], wh, (((1,), (1,)), ((), ())),
                               preferred_element_type=jnp.float32)
        e_col = jnp.where(col_is_u, cv_u, cv_d)                    # (1, M)
        e = e_row + e_col
        e = jnp.where(e > 0, e, ALPHA * e)                         # LeakyReLU(0.2)
        logits = jnp.where(adjm, e, NEG_BIG)
        logits = logits - jnp.max(logits, axis=1, keepdims=True)
        p = jnp.exp(logits) * colmask               # ghost / cross-graph cols excluded
        denom = jnp.sum(p, axis=1, keepdims=True)
        att = p / jnp.where(denom > 0, denom, 1.0)
        hp = jnp.dot(att, wh, preferred_element_type=jnp.float32)  # (M, HPAD), one MXU matmul
        if apply_elu:                               # concat=True branch -> ELU
            # TODO(synk): exp(min(x,0))-1 instead of expm1 (expm1 lowering unverified).
            hp = jnp.where(hp > 0, hp, jnp.exp(jnp.minimum(hp, 0.0)) - 1.0)
        return hp

    h1 = gat_layer(x, uw1_ref, dw1_ref, ua1d_ref, ua1s_ref, da1d_ref, da1s_ref, True)
    h2 = gat_layer(h1, uw2_ref, dw2_ref, ua2d_ref, ua2s_ref, da2d_ref, da2s_ref, False)

    # ---- per-graph node sums via one selector matmul ----
    giota = lax.broadcasted_iota(jnp.int32, (ng, m), 0).astype(jnp.float32)
    sel = jnp.where(giota == gid_j, 1.0, 0.0) * validj             # (NG, M)
    s = jnp.dot(sel, h2, preferred_element_type=jnp.float32)       # (NG, HPAD)

    reg_ref[...] = s * s                           # host extracts singleton-graph rows

    s_use = s * use_ref[...]                       # singleton graphs zeroed before fc3
    tot = s_use[:nb, :] + s_use[nb:, :]            # (CHUNK, HPAD) = upstream + downstream
    av = jnp.sum(tot * w3_ref[...], axis=-1, keepdims=True) + b3_ref[...]   # (CHUNK, 1)

    # ---- ego critic: Q = fc2(relu(fc1(relu(fc0(ego))))), batched over chunk ----
    h = jnp.maximum(jnp.dot(ego_ref[...], w0_ref[...],
                            preferred_element_type=jnp.float32) + b0_ref[...], 0.0)
    h = jnp.maximum(jnp.dot(h, w1_ref[...],
                            preferred_element_type=jnp.float32) + b1_ref[...], 0.0)
    q = jnp.sum(h * w2_ref[...], axis=-1, keepdims=True) + b2_ref[...]      # (CHUNK, 1)

    # ---- single lane-dense combined output: col 0 = Q, col 1 = A, col 2 = G ----
    lane = lax.broadcasted_iota(jnp.int32, (nb, qag_ref.shape[1]), 1)
    qag_ref[...] = (jnp.where(lane == 0, q, 0.0)
                    + jnp.where(lane == 1, av, 0.0)
                    + jnp.where(lane == 2, q + av, 0.0))


# -------------------------------- wrapper --------------------------------------

def _critic_call(ego, feats, rowinfo, colinfo, use, p, num_chunks):
    E = ego.shape[1]
    F = feats.shape[1]

    def dspec(shape):
        return pl.BlockSpec(shape, lambda c: (c, 0))

    def wspec(shape):
        return pl.BlockSpec(shape, lambda c: (0, 0))

    in_specs = [
        dspec((CHUNK, E)),          # ego
        dspec((M, F)),              # stacked node features
        dspec((8, M)),              # row-oriented metadata (valid / gid / lidx)
        dspec((M, 8)),              # column-oriented metadata (gid / lidx)
        dspec((NG, 1)),             # per-graph "use" flag (n >= 2)
        # ego MLP + fc3 weights (resident: constant index maps)
        wspec((E, HPAD)), wspec((1, HPAD)),
        wspec((HPAD, HPAD)), wspec((1, HPAD)),
        wspec((1, HPAD)), wspec((1, 1)),
        wspec((1, HPAD)), wspec((1, 1)),
        # upstream GAT weights
        wspec((F, HPAD)), wspec((1, HPAD)), wspec((1, HPAD)),
        wspec((HPAD, HPAD)), wspec((1, HPAD)), wspec((1, HPAD)),
        # downstream GAT weights
        wspec((F, HPAD)), wspec((1, HPAD)), wspec((1, HPAD)),
        wspec((HPAD, HPAD)), wspec((1, HPAD)), wspec((1, HPAD)),
    ]
    out_specs = [
        dspec((CHUNK, QAG_W)),      # packed Q/A/G
        dspec((NG, HPAD)),          # per-graph node-sum squares (for reg)
    ]
    out_shape = (
        jax.ShapeDtypeStruct((num_chunks * CHUNK, QAG_W), jnp.float32),
        jax.ShapeDtypeStruct((num_chunks * NG, HPAD), jnp.float32),
    )
    grid_spec = pltpu.PrefetchScalarGridSpec(
        num_scalar_prefetch=0,
        grid=(num_chunks,),
        in_specs=in_specs,
        out_specs=out_specs)

    return pl.pallas_call(
        _critic_kernel,
        grid_spec=grid_spec,
        out_shape=out_shape,
        compiler_params=pltpu.CompilerParams(
            dimension_semantics=("parallel",),
            vmem_limit_bytes=40 * 1024 * 1024),
    )(ego, feats, rowinfo, colinfo, use,
      p["w0"], p["b0"], p["w1"], p["b1"], p["w2"], p["b2"], p["w3"], p["b3"],
      p["u_gat"]["w1"], p["u_gat"]["a1_dst"], p["u_gat"]["a1_src"],
      p["u_gat"]["w2"], p["u_gat"]["a2_dst"], p["u_gat"]["a2_src"],
      p["d_gat"]["w1"], p["d_gat"]["a1_dst"], p["d_gat"]["a1_src"],
      p["d_gat"]["w2"], p["d_gat"]["a2_dst"], p["d_gat"]["a2_src"])


# ------------------------ host glue (prepare_eg, padded) ------------------------
# TODO(synk): the data-dependent up/down row partition + star-adjacency metadata
# stays on host (as in the reference prepare_eg); it produces ONE padded batch so
# there is a single H2D transfer and a single kernel launch.

def prepare_inputs(x_np, a_np, fp_list):
    B = x_np.shape[0]
    state_dim = x_np.shape[1]
    E = state_dim + 1
    F = state_dim + 3
    num_chunks = max(1, (B + CHUNK - 1) // CHUNK)
    B_pad = num_chunks * CHUNK

    ego = np.zeros((B_pad, E), np.float32)
    ego[:B] = np.concatenate([x_np, a_np], axis=1).astype(np.float32)

    feats = np.zeros((num_chunks * M, F), np.float32)
    rowinfo = np.zeros((num_chunks * 8, M), np.float32)
    colinfo = np.zeros((num_chunks * M, 8), np.float32)
    use = np.zeros((num_chunks * NG, 1), np.float32)
    nvalid = np.zeros((B_pad, 2), np.int32)

    # structural graph-id / local-index vectors (identical for every chunk)
    gid_vec = np.repeat(np.arange(NG, dtype=np.float32), N_MAX)   # (M,)
    lid_vec = np.tile(np.arange(N_MAX, dtype=np.float32), NG)     # (M,)
    for c in range(num_chunks):
        rowinfo[c * 8 + 1, :] = gid_vec
        rowinfo[c * 8 + 2, :] = lid_vec
        colinfo[c * M:(c + 1) * M, 0] = gid_vec
        colinfo[c * M:(c + 1) * M, 1] = lid_vec

    for b, fp in enumerate(fp_list):
        fp = np.asarray(fp, np.float32)
        c, lb = divmod(b, CHUNK)
        for d, mask in enumerate((fp[:, -3] <= 0, fp[:, -3] >= 0)):
            sub = fp[mask]
            n = sub.shape[0]
            assert n <= N_MAX, f"graph with {n} nodes exceeds N_MAX={N_MAX}"
            nvalid[b, d] = n
            g = d * CHUNK + lb                     # direction-major graph slot
            r0 = c * M + g * N_MAX
            if n > 0:
                feats[r0:r0 + n, :] = sub[:, :F]
            rowinfo[c * 8 + 0, g * N_MAX:g * N_MAX + n] = 1.0
            use[c * NG + g, 0] = 1.0 if n >= 2 else 0.0
    return ego, feats, rowinfo, colinfo, use, nvalid, num_chunks


def critic_forward(x, a, fp_list, params):
    x_np = np.asarray(x, np.float32)
    a_np = np.asarray(a, np.float32)
    B = x_np.shape[0]
    ego, feats, rowinfo, colinfo, use, nvalid, num_chunks = prepare_inputs(
        x_np, a_np, fp_list)

    qag, reg_all = _critic_call(jnp.asarray(ego), jnp.asarray(feats),
                                jnp.asarray(rowinfo), jnp.asarray(colinfo),
                                jnp.asarray(use), params, num_chunks)
    Q = qag[:B, 0:1]
    A = qag[:B, 1:2]
    G = qag[:B, 2:3]

    # reg: squares of the GAT node-sum for every graph with < 2 nodes
    # (same ordering as the reference: per sample, upstream then downstream).
    reg_r = reg_all.reshape(num_chunks, 2, CHUNK, HPAD)
    regs = []
    for b in range(B):
        c, lb = divmod(b, CHUNK)
        for d in range(2):
            if int(nvalid[b, d]) < 2:
                regs.append(reg_r[c, d, lb, :HIDDEN])
    if regs:
        reg = jnp.concatenate(regs, axis=0).reshape(-1, 1)
    else:
        reg = jnp.zeros((1,), jnp.float32)   # matches the reference torch.zeros(1)
    return Q, A, G, reg


# ---------------------------------- params --------------------------------------

def init_params(key, state_dim, hidden=HIDDEN, hpad=HPAD):
    ks = jax.random.split(key, 10)
    E = state_dim + 1
    F = state_dim + 3

    def lin_mat(kw, kb, fan_in, fan_out, pad_in, pad_out):
        bound = 1.0 / np.sqrt(fan_in)
        w = jnp.zeros((pad_in, pad_out), jnp.float32)
        w = w.at[:fan_in, :fan_out].set(
            jax.random.uniform(kw, (fan_in, fan_out), jnp.float32, -bound, bound))
        bvec = jnp.zeros((1, pad_out), jnp.float32)
        bvec = bvec.at[0, :fan_out].set(
            jax.random.uniform(kb, (fan_out,), jnp.float32, -bound, bound))
        return w, bvec

    def lin_row(kw, kb, fan_in, pad_in):
        # fan_out == 1 linear layer stored as a (1, pad_in) row (VPU lane-reduce)
        bound = 1.0 / np.sqrt(fan_in)
        w = jnp.zeros((1, pad_in), jnp.float32)
        w = w.at[0, :fan_in].set(
            jax.random.uniform(kw, (fan_in,), jnp.float32, -bound, bound))
        b = jax.random.uniform(kb, (1, 1), jnp.float32, -bound, bound)
        return w, b

    w0, b0 = lin_mat(ks[0], ks[1], E, hidden, E, hpad)
    w1, b1 = lin_mat(ks[2], ks[3], hidden, hidden, hpad, hpad)
    w2, b2 = lin_row(ks[4], ks[5], hidden, hpad)
    w3, b3 = lin_row(ks[6], ks[7], hidden, hpad)

    def gat(k, in_f, pad_in):
        k1, k2 = jax.random.split(k)
        w = jnp.zeros((pad_in, hpad), jnp.float32)
        w = w.at[:in_f, :hidden].set(
            jax.random.uniform(k1, (in_f, hidden), jnp.float32, -0.1, 0.1))
        av = jax.random.uniform(k2, (2 * hidden,), jnp.float32, -0.1, 0.1)
        a_dst = jnp.zeros((1, hpad), jnp.float32).at[0, :hidden].set(av[:hidden])
        a_src = jnp.zeros((1, hpad), jnp.float32).at[0, :hidden].set(av[hidden:])
        return w, a_dst, a_src

    def gat_pair(k):
        ka, kb = jax.random.split(k)
        gw1, a1d, a1s = gat(ka, F, F)
        gw2, a2d, a2s = gat(kb, hidden, hpad)
        return {"w1": gw1, "a1_dst": a1d, "a1_src": a1s,
                "w2": gw2, "a2_dst": a2d, "a2_src": a2s}

    return {"w0": w0, "b0": b0, "w1": w1, "b1": b1, "w2": w2, "b2": b2,
            "w3": w3, "b3": b3,
            "u_gat": gat_pair(ks[8]), "d_gat": gat_pair(ks[9])}


# ----------------------------------- main ----------------------------------------

if __name__ == "__main__":
    key = jax.random.PRNGKey(0)
    state_dim = 5
    B = 2
    k_par, k_x, k_a, k_fp = jax.random.split(key, 4)

    params = init_params(k_par, state_dim)
    x = jax.random.normal(k_x, (B, state_dim), jnp.float32)
    a = jax.random.normal(k_a, (B, 1), jnp.float32)

    # fp: per-sample event tensors [n_events, state_dim + 6];
    # column -3 is the split indicator (<=0 -> upstream graph, >=0 -> downstream).
    fp_np = np.array(jax.random.normal(k_fp, (B, 8, state_dim + 6), jnp.float32))
    fp_np[0, :, -3] = np.array([-1.0, -2.0, 1.0, 2.0, -0.5, 0.7, -1.5, 3.0], np.float32)
    # sample 1 has exactly one upstream node -> exercises the `reg` branch
    fp_np[1, :, -3] = np.array([-1.0, 1.0, 2.0, 3.0, 0.5, 0.7, 1.5, 3.0], np.float32)
    fp_list = [fp_np[i] for i in range(B)]

    Q, A, G, reg = critic_forward(x, a, fp_list, params)
    jax.block_until_ready((Q, A, G, reg))

    assert Q.shape == (B, 1) and A.shape == (B, 1) and G.shape == (B, 1)
    assert np.all(np.isfinite(np.array(Q))) and np.all(np.isfinite(np.array(A)))
    assert np.all(np.isfinite(np.array(G))) and np.all(np.isfinite(np.array(reg)))
    print("KERNEL_OK")
</pallas_src>

<mosaic_0001>
module attributes {stable_mosaic.version = 11 : i64} {
  func.func @_critic_kernel(%arg0: i32, %arg1: memref<8x6xf32, #tpu.memory_space<vmem>>, %arg2: memref<128x8xf32, #tpu.memory_space<vmem>>, %arg3: memref<8x128xf32, #tpu.memory_space<vmem>>, %arg4: memref<128x8xf32, #tpu.memory_space<vmem>>, %arg5: memref<16x1xf32, #tpu.memory_space<vmem>>, %arg6: memref<6x512xf32, #tpu.memory_space<vmem>>, %arg7: memref<1x512xf32, #tpu.memory_space<vmem>>, %arg8: memref<512x512xf32, #tpu.memory_space<vmem>>, %arg9: memref<1x512xf32, #tpu.memory_space<vmem>>, %arg10: memref<1x512xf32, #tpu.memory_space<vmem>>, %arg11: memref<1x1xf32, #tpu.memory_space<vmem>>, %arg12: memref<1x512xf32, #tpu.memory_space<vmem>>, %arg13: memref<1x1xf32, #tpu.memory_space<vmem>>, %arg14: memref<8x512xf32, #tpu.memory_space<vmem>>, %arg15: memref<1x512xf32, #tpu.memory_space<vmem>>, %arg16: memref<1x512xf32, #tpu.memory_space<vmem>>, %arg17: memref<512x512xf32, #tpu.memory_space<vmem>>, %arg18: memref<1x512xf32, #tpu.memory_space<vmem>>, %arg19: memref<1x512xf32, #tpu.memory_space<vmem>>, %arg20: memref<8x512xf32, #tpu.memory_space<vmem>>, %arg21: memref<1x512xf32, #tpu.memory_space<vmem>>, %arg22: memref<1x512xf32, #tpu.memory_space<vmem>>, %arg23: memref<512x512xf32, #tpu.memory_space<vmem>>, %arg24: memref<1x512xf32, #tpu.memory_space<vmem>>, %arg25: memref<1x512xf32, #tpu.memory_space<vmem>>, %arg26: memref<8x128xf32, #tpu.memory_space<vmem>>, %arg27: memref<16x512xf32, #tpu.memory_space<vmem>>) attributes {dimension_semantics = [#tpu.dimension_semantics<parallel>], iteration_bounds = array<i64: 1>, scalar_prefetch = 0 : i64, scratch_operands = 0 : i64, tpu.core_type = #tpu.core_type<tc>, window_params = [{transform_indices = @transform_0, window_bounds = array<i64: 8, 6>}, {transform_indices = @transform_1, window_bounds = array<i64: 128, 8>}, {transform_indices = @transform_2, window_bounds = array<i64: 8, 128>}, {transform_indices = @transform_3, window_bounds = array<i64: 128, 8>}, {transform_indices = @transform_4, window_bounds = array<i64: 16, 1>}, {pipeline_mode = #tpu.pipeline_mode<synchronous>, transform_indices = @transform_5, window_bounds = array<i64: 6, 512>}, {pipeline_mode = #tpu.pipeline_mode<synchronous>, transform_indices = @transform_6, window_bounds = array<i64: 1, 512>}, {pipeline_mode = #tpu.pipeline_mode<synchronous>, transform_indices = @transform_7, window_bounds = array<i64: 512, 512>}, {pipeline_mode = #tpu.pipeline_mode<synchronous>, transform_indices = @transform_8, window_bounds = array<i64: 1, 512>}, {pipeline_mode = #tpu.pipeline_mode<synchronous>, transform_indices = @transform_9, window_bounds = array<i64: 1, 512>}, {pipeline_mode = #tpu.pipeline_mode<synchronous>, transform_indices = @transform_10, window_bounds = array<i64: 1, 1>}, {pipeline_mode = #tpu.pipeline_mode<synchronous>, transform_indices = @transform_11, window_bounds = array<i64: 1, 512>}, {pipeline_mode = #tpu.pipeline_mode<synchronous>, transform_indices = @transform_12, window_bounds = array<i64: 1, 1>}, {pipeline_mode = #tpu.pipeline_mode<synchronous>, transform_indices = @transform_13, window_bounds = array<i64: 8, 512>}, {pipeline_mode = #tpu.pipeline_mode<synchronous>, transform_indices = @transform_14, window_bounds = array<i64: 1, 512>}, {pipeline_mode = #tpu.pipeline_mode<synchronous>, transform_indices = @transform_15, window_bounds = array<i64: 1, 512>}, {pipeline_mode = #tpu.pipeline_mode<synchronous>, transform_indices = @transform_16, window_bounds = array<i64: 512, 512>}, {pipeline_mode = #tpu.pipeline_mode<synchronous>, transform_indices = @transform_17, window_bounds = array<i64: 1, 512>}, {pipeline_mode = #tpu.pipeline_mode<synchronous>, transform_indices = @transform_18, window_bounds = array<i64: 1, 512>}, {pipeline_mode = #tpu.pipeline_mode<synchronous>, transform_indices = @transform_19, window_bounds = array<i64: 8, 512>}, {pipeline_mode = #tpu.pipeline_mode<synchronous>, transform_indices = @transform_20, window_bounds = array<i64: 1, 512>}, {pipeline_mode = #tpu.pipeline_mode<synchronous>, transform_indices = @transform_21, window_bounds = array<i64: 1, 512>}, {pipeline_mode = #tpu.pipeline_mode<synchronous>, transform_indices = @transform_22, window_bounds = array<i64: 512, 512>}, {pipeline_mode = #tpu.pipeline_mode<synchronous>, transform_indices = @transform_23, window_bounds = array<i64: 1, 512>}, {pipeline_mode = #tpu.pipeline_mode<synchronous>, transform_indices = @transform_24, window_bounds = array<i64: 1, 512>}, {transform_indices = @transform_25, window_bounds = array<i64: 8, 128>}, {transform_indices = @transform_26, window_bounds = array<i64: 16, 512>}]} {
    %c0 = arith.constant 0 : index
    %c0_0 = arith.constant 0 : index
    %0 = vector.load %arg3[%c0, %c0_0] : memref<8x128xf32, #tpu.memory_space<vmem>>, vector<8x128xf32>
    %c0_1 = arith.constant 0 : index
    %c0_2 = arith.constant 0 : index
    %1 = vector.load %arg4[%c0_1, %c0_2] : memref<128x8xf32, #tpu.memory_space<vmem>>, vector<128x8xf32>
    %2 = vector.extract_strided_slice %0 {offsets = [0, 0], sizes = [1, 128], strides = [1, 1]} : vector<8x128xf32> to vector<1x128xf32>
    %3 = vector.extract_strided_slice %0 {offsets = [1, 0], sizes = [1, 128], strides = [1, 1]} : vector<8x128xf32> to vector<1x128xf32>
    %4 = vector.extract_strided_slice %0 {offsets = [2, 0], sizes = [1, 128], strides = [1, 1]} : vector<8x128xf32> to vector<1x128xf32>
    %5 = vector.extract_strided_slice %1 {offsets = [0, 0], sizes = [128, 1], strides = [1, 1]} : vector<128x8xf32> to vector<128x1xf32>
    %6 = vector.extract_strided_slice %1 {offsets = [0, 1], sizes = [128, 1], strides = [1, 1]} : vector<128x8xf32> to vector<128x1xf32>
    %7 = vector.broadcast %5 : vector<128x1xf32> to vector<128x128xf32>
    %8 = vector.broadcast %3 : vector<1x128xf32> to vector<128x128xf32>
    %9 = arith.cmpf oeq, %7, %8 : vector<128x128xf32>
    %cst = arith.constant 0.000000e+00 : f32
    %10 = vector.broadcast %cst : f32 to vector<128x1xf32>
    %11 = arith.cmpf oeq, %6, %10 : vector<128x1xf32>
    %cst_3 = arith.constant 0.000000e+00 : f32
    %12 = vector.broadcast %cst_3 : f32 to vector<1x128xf32>
    %13 = arith.cmpf oeq, %4, %12 : vector<1x128xf32>
    %14 = vector.broadcast %11 : vector<128x1xi1> to vector<128x128xi1>
    %15 = vector.broadcast %13 : vector<1x128xi1> to vector<128x128xi1>
    %16 = arith.ori %14, %15 : vector<128x128xi1>
    %17 = vector.broadcast %6 : vector<128x1xf32> to vector<128x128xf32>
    %18 = vector.broadcast %4 : vector<1x128xf32> to vector<128x128xf32>
    %19 = arith.cmpf one, %17, %18 : vector<128x128xf32>
    %20 = arith.andi %16, %19 : vector<128x128xi1>
    %cst_4 = arith.constant 0.000000e+00 : f32
    %21 = vector.broadcast %cst_4 : f32 to vector<1x128xf32>
    %22 = arith.cmpf ogt, %2, %21 : vector<1x128xf32>
    %23 = arith.andi %9, %20 : vector<128x128xi1>
    %24 = vector.broadcast %22 : vector<1x128xi1> to vector<128x128xi1>
    %25 = arith.andi %23, %24 : vector<128x128xi1>
    %26 = vector.broadcast %22 : vector<1x128xi1> to vector<128x128xi1>
    %27 = arith.andi %9, %26 : vector<128x128xi1>
    %cst_5 = arith.constant 1.000000e+00 : f32
    %cst_6 = arith.constant 0.000000e+00 : f32
    %28 = vector.broadcast %cst_5 : f32 to vector<128x128xf32>
    %29 = vector.broadcast %cst_6 : f32 to vector<128x128xf32>
    %30 = arith.select %27, %28, %29 : vector<128x128xi1>, vector<128x128xf32>
    %31 = tpu.iota {dimensions = array<i32: 0>} : vector<128x1xi32>
    %c64_i32 = arith.constant 64 : i32
    %32 = vector.broadcast %c64_i32 : i32 to vector<128x1xi32>
    %33 = arith.cmpi slt, %31, %32 : vector<128x1xi32>
    %34 = tpu.iota {dimensions = array<i32: 1>} : vector<1x128xi32>
    %c64_i32_7 = arith.constant 64 : i32
    %35 = vector.broadcast %c64_i32_7 : i32 to vector<1x128xi32>
    %36 = arith.cmpi slt, %34, %35 : vector<1x128xi32>
    %c0_8 = arith.constant 0 : index
    %c0_9 = arith.constant 0 : index
    %37 = vector.load %arg2[%c0_8, %c0_9] : memref<128x8xf32, #tpu.memory_space<vmem>>, vector<128x8xf32>
    %38 = vector.extract_strided_slice %37 {offsets = [0, 0], sizes = [64, 8], strides = [1, 1]} : vector<128x8xf32> to vector<64x8xf32>
    %c0_10 = arith.constant 0 : index
    %c0_11 = arith.constant 0 : index
    %39 = vector.load %arg14[%c0_10, %c0_11] : memref<8x512xf32, #tpu.memory_space<vmem>>, vector<8x512xf32>
    %cst_12 = arith.constant dense<0.000000e+00> : vector<64x512xf32>
    %40 = tpu.matmul %38, %39, %cst_12 {dimension_numbers = #tpu.dot_dimension_numbers<[1], [0], [0], [1], [0, 0, 1, 1], [], []>} : vector<64x8xf32>, vector<8x512xf32>, vector<64x512xf32> -> vector<64x512xf32>
    %41 = vector.extract_strided_slice %37 {offsets = [64, 0], sizes = [64, 8], strides = [1, 1]} : vector<128x8xf32> to vector<64x8xf32>
    %c0_13 = arith.constant 0 : index
    %c0_14 = arith.constant 0 : index
    %42 = vector.load %arg20[%c0_13, %c0_14] : memref<8x512xf32, #tpu.memory_space<vmem>>, vector<8x512xf32>
    %cst_15 = arith.constant dense<0.000000e+00> : vector<64x512xf32>
    %43 = tpu.matmul %41, %42, %cst_15 {dimension_numbers = #tpu.dot_dimension_numbers<[1], [0], [0], [1], [0, 0, 1, 1], [], []>} : vector<64x8xf32>, vector<8x512xf32>, vector<64x512xf32> -> vector<64x512xf32>
    %44 = tpu.concatenate %40, %43 in 0 : vector<64x512xf32>, vector<64x512xf32> -> vector<128x512xf32>
    %c0_16 = arith.constant 0 : index
    %c0_17 = arith.constant 0 : index
    %45 = vector.load %arg15[%c0_16, %c0_17] : memref<1x512xf32, #tpu.memory_space<vmem>>, vector<1x512xf32>
    %46 = vector.broadcast %45 : vector<1x512xf32> to vector<128x512xf32>
    %47 = arith.mulf %44, %46 : vector<128x512xf32>
    %cst_18 = arith.constant dense<0.000000e+00> : vector<128xf32>
    %48 = vector.multi_reduction <add>, %47, %cst_18 [1] : vector<128x512xf32> to vector<128xf32>
    %49 = vector.shape_cast %48 : vector<128xf32> to vector<128x1xf32>
    %c0_19 = arith.constant 0 : index
    %c0_20 = arith.constant 0 : index
    %50 = vector.load %arg21[%c0_19, %c0_20] : memref<1x512xf32, #tpu.memory_space<vmem>>, vector<1x512xf32>
    %51 = vector.broadcast %50 : vector<1x512xf32> to vector<128x512xf32>
    %52 = arith.mulf %44, %51 : vector<128x512xf32>
    %cst_21 = arith.constant dense<0.000000e+00> : vector<128xf32>
    %53 = vector.multi_reduction <add>, %52, %cst_21 [1] : vector<128x512xf32> to vector<128xf32>
    %54 = vector.shape_cast %53 : vector<128xf32> to vector<128x1xf32>
    %55 = arith.select %33, %49, %54 : vector<128x1xi1>, vector<128x1xf32>
    %c0_22 = arith.constant 0 : index
    %c0_23 = arith.constant 0 : index
    %56 = vector.load %arg16[%c0_22, %c0_23] : memref<1x512xf32, #tpu.memory_space<vmem>>, vector<1x512xf32>
    %cst_24 = arith.constant dense<0.000000e+00> : vector<1x128xf32>
    %57 = tpu.matmul %56, %44, %cst_24 {dimension_numbers = #tpu.dot_dimension_numbers<[1], [1], [0], [0], [0, 0, 1, 0], [], []>} : vector<1x512xf32>, vector<128x512xf32>, vector<1x128xf32> -> vector<1x128xf32>
    %c0_25 = arith.constant 0 : index
    %c0_26 = arith.constant 0 : index
    %58 = vector.load %arg22[%c0_25, %c0_26] : memref<1x512xf32, #tpu.memory_space<vmem>>, vector<1x512xf32>
    %cst_27 = arith.constant dense<0.000000e+00> : vector<1x128xf32>
    %59 = tpu.matmul %58, %44, %cst_27 {dimension_numbers = #tpu.dot_dimension_numbers<[1], [1], [0], [0], [0, 0, 1, 0], [], []>} : vector<1x512xf32>, vector<128x512xf32>, vector<1x128xf32> -> vector<1x128xf32>
    %60 = arith.select %36, %57, %59 : vector<1x128xi1>, vector<1x128xf32>
    %61 = vector.broadcast %55 : vector<128x1xf32> to vector<128x128xf32>
    %62 = vector.broadcast %60 : vector<1x128xf32> to vector<128x128xf32>
    %63 = arith.addf %61, %62 : vector<128x128xf32>
    %cst_28 = arith.constant 0.000000e+00 : f32
    %64 = vector.broadcast %cst_28 : f32 to vector<128x128xf32>
    %65 = arith.cmpf ogt, %63, %64 : vector<128x128xf32>
    %cst_29 = arith.constant 2.000000e-01 : f32
    %66 = vector.broadcast %cst_29 : f32 to vector<128x128xf32>
    %67 = arith.mulf %66, %63 : vector<128x128xf32>
    %68 = arith.select %65, %63, %67 : vector<128x128xi1>, vector<128x128xf32>
    %cst_30 = arith.constant -9.000000e+15 : f32
    %69 = vector.broadcast %cst_30 : f32 to vector<128x128xf32>
    %70 = arith.select %25, %68, %69 : vector<128x128xi1>, vector<128x128xf32>
    %cst_31 = arith.constant dense<0xFF800000> : vector<128xf32>
    %71 = vector.multi_reduction <maximumf>, %70, %cst_31 [1] : vector<128x128xf32> to vector<128xf32>
    %72 = vector.shape_cast %71 : vector<128xf32> to vector<128x1xf32>
    %73 = vector.broadcast %72 : vector<128x1xf32> to vector<128x128xf32>
    %74 = arith.subf %70, %73 : vector<128x128xf32>
    %75 = math.exp %74 : vector<128x128xf32>
    %76 = arith.mulf %75, %30 : vector<128x128xf32>
    %cst_32 = arith.constant dense<0.000000e+00> : vector<128xf32>
    %77 = vector.multi_reduction <add>, %76, %cst_32 [1] : vector<128x128xf32> to vector<128xf32>
    %78 = vector.shape_cast %77 : vector<128xf32> to vector<128x1xf32>
    %cst_33 = arith.constant 0.000000e+00 : f32
    %79 = vector.broadcast %cst_33 : f32 to vector<128x1xf32>
    %80 = arith.cmpf ogt, %78, %79 : vector<128x1xf32>
    %cst_34 = arith.constant 1.000000e+00 : f32
    %81 = vector.broadcast %cst_34 : f32 to vector<128x1xf32>
    %82 = arith.select %80, %78, %81 : vector<128x1xi1>, vector<128x1xf32>
    %83 = vector.broadcast %82 : vector<128x1xf32> to vector<128x128xf32>
    %84 = arith.divf %76, %83 : vector<128x128xf32>
    %cst_35 = arith.constant dense<0.000000e+00> : vector<128x512xf32>
    %85 = tpu.matmul %84, %44, %cst_35 {dimension_numbers = #tpu.dot_dimension_numbers<[1], [0], [0], [1], [0, 0, 1, 1], [], []>} : vector<128x128xf32>, vector<128x512xf32>, vector<128x512xf32> -> vector<128x512xf32>
    %cst_36 = arith.constant 0.000000e+00 : f32
    %86 = vector.broadcast %cst_36 : f32 to vector<128x512xf32>
    %87 = arith.cmpf ogt, %85, %86 : vector<128x512xf32>
    %cst_37 = arith.constant 0.000000e+00 : f32
    %88 = vector.broadcast %cst_37 : f32 to vector<128x512xf32>
    %89 = arith.minimumf %85, %88 : vector<128x512xf32>
    %90 = math.exp %89 : vector<128x512xf32>
    %cst_38 = arith.constant 1.000000e+00 : f32
    %91 = vector.broadcast %cst_38 : f32 to vector<128x512xf32>
    %92 = arith.subf %90, %91 : vector<128x512xf32>
    %93 = arith.select %87, %85, %92 : vector<128x512xi1>, vector<128x512xf32>
    %94 = vector.extract_strided_slice %93 {offsets = [0, 0], sizes = [64, 512], strides = [1, 1]} : vector<128x512xf32> to vector<64x512xf32>
    %c0_39 = arith.constant 0 : index
    %c0_40 = arith.constant 0 : index
    %95 = vector.load %arg17[%c0_39, %c0_40] : memref<512x512xf32, #tpu.memory_space<vmem>>, vector<512x512xf32>
    %cst_41 = arith.constant dense<0.000000e+00> : vector<64x512xf32>
    %96 = tpu.matmul %94, %95, %cst_41 {dimension_numbers = #tpu.dot_dimension_numbers<[1], [0], [0], [1], [0, 0, 1, 1], [], []>} : vector<64x512xf32>, vector<512x512xf32>, vector<64x512xf32> -> vector<64x512xf32>
    %97 = vector.extract_strided_slice %93 {offsets = [64, 0], sizes = [64, 512], strides = [1, 1]} : vector<128x512xf32> to vector<64x512xf32>
    %c0_42 = arith.constant 0 : index
    %c0_43 = arith.constant 0 : index
    %98 = vector.load %arg23[%c0_42, %c0_43] : memref<512x512xf32, #tpu.memory_space<vmem>>, vector<512x512xf32>
    %cst_44 = arith.constant dense<0.000000e+00> : vector<64x512xf32>
    %99 = tpu.matmul %97, %98, %cst_44 {dimension_numbers = #tpu.dot_dimension_numbers<[1], [0], [0], [1], [0, 0, 1, 1], [], []>} : vector<64x512xf32>, vector<512x512xf32>, vector<64x512xf32> -> vector<64x512xf32>
    %100 = tpu.concatenate %96, %99 in 0 : vector<64x512xf32>, vector<64x512xf32> -> vector<128x512xf32>
    %c0_45 = arith.constant 0 : index
    %c0_46 = arith.constant 0 : index
    %101 = vector.load %arg18[%c0_45, %c0_46] : memref<1x512xf32, #tpu.memory_space<vmem>>, vector<1x512xf32>
    %102 = vector.broadcast %101 : vector<1x512xf32> to vector<128x512xf32>
    %103 = arith.mulf %100, %102 : vector<128x512xf32>
    %cst_47 = arith.constant dense<0.000000e+00> : vector<128xf32>
    %104 = vector.multi_reduction <add>, %103, %cst_47 [1] : vector<128x512xf32> to vector<128xf32>
    %105 = vector.shape_cast %104 : vector<128xf32> to vector<128x1xf32>
    %c0_48 = arith.constant 0 : index
    %c0_49 = arith.constant 0 : index
    %106 = vector.load %arg24[%c0_48, %c0_49] : memref<1x512xf32, #tpu.memory_space<vmem>>, vector<1x512xf32>
    %107 = vector.broadcast %106 : vector<1x512xf32> to vector<128x512xf32>
    %108 = arith.mulf %100, %107 : vector<128x512xf32>
    %cst_50 = arith.constant dense<0.000000e+00> : vector<128xf32>
    %109 = vector.multi_reduction <add>, %108, %cst_50 [1] : vector<128x512xf32> to vector<128xf32>
    %110 = vector.shape_cast %109 : vector<128xf32> to vector<128x1xf32>
    %111 = arith.select %33, %105, %110 : vector<128x1xi1>, vector<128x1xf32>
    %c0_51 = arith.constant 0 : index
    %c0_52 = arith.constant 0 : index
    %112 = vector.load %arg19[%c0_51, %c0_52] : memref<1x512xf32, #tpu.memory_space<vmem>>, vector<1x512xf32>
    %cst_53 = arith.constant dense<0.000000e+00> : vector<1x128xf32>
    %113 = tpu.matmul %112, %100, %cst_53 {dimension_numbers = #tpu.dot_dimension_numbers<[1], [1], [0], [0], [0, 0, 1, 0], [], []>} : vector<1x512xf32>, vector<128x512xf32>, vector<1x128xf32> -> vector<1x128xf32>
    %c0_54 = arith.constant 0 : index
    %c0_55 = arith.constant 0 : index
    %114 = vector.load %arg25[%c0_54, %c0_55] : memref<1x512xf32, #tpu.memory_space<vmem>>, vector<1x512xf32>
    %cst_56 = arith.constant dense<0.000000e+00> : vector<1x128xf32>
    %115 = tpu.matmul %114, %100, %cst_56 {dimension_numbers = #tpu.dot_dimension_numbers<[1], [1], [0], [0], [0, 0, 1, 0], [], []>} : vector<1x512xf32>, vector<128x512xf32>, vector<1x128xf32> -> vector<1x128xf32>
    %116 = arith.select %36, %113, %115 : vector<1x128xi1>, vector<1x128xf32>
    %117 = vector.broadcast %111 : vector<128x1xf32> to vector<128x128xf32>
    %118 = vector.broadcast %116 : vector<1x128xf32> to vector<128x128xf32>
    %119 = arith.addf %117, %118 : vector<128x128xf32>
    %cst_57 = arith.constant 0.000000e+00 : f32
    %120 = vector.broadcast %cst_57 : f32 to vector<128x128xf32>
    %121 = arith.cmpf ogt, %119, %120 : vector<128x128xf32>
    %cst_58 = arith.constant 2.000000e-01 : f32
    %122 = vector.broadcast %cst_58 : f32 to vector<128x128xf32>
    %123 = arith.mulf %122, %119 : vector<128x128xf32>
    %124 = arith.select %121, %119, %123 : vector<128x128xi1>, vector<128x128xf32>
    %cst_59 = arith.constant -9.000000e+15 : f32
    %125 = vector.broadcast %cst_59 : f32 to vector<128x128xf32>
    %126 = arith.select %25, %124, %125 : vector<128x128xi1>, vector<128x128xf32>
    %cst_60 = arith.constant dense<0xFF800000> : vector<128xf32>
    %127 = vector.multi_reduction <maximumf>, %126, %cst_60 [1] : vector<128x128xf32> to vector<128xf32>
    %128 = vector.shape_cast %127 : vector<128xf32> to vector<128x1xf32>
    %129 = vector.broadcast %128 : vector<128x1xf32> to vector<128x128xf32>
    %130 = arith.subf %126, %129 : vector<128x128xf32>
    %131 = math.exp %130 : vector<128x128xf32>
    %132 = arith.mulf %131, %30 : vector<128x128xf32>
    %cst_61 = arith.constant dense<0.000000e+00> : vector<128xf32>
    %133 = vector.multi_reduction <add>, %132, %cst_61 [1] : vector<128x128xf32> to vector<128xf32>
    %134 = vector.shape_cast %133 : vector<128xf32> to vector<128x1xf32>
    %cst_62 = arith.constant 0.000000e+00 : f32
    %135 = vector.broadcast %cst_62 : f32 to vector<128x1xf32>
    %136 = arith.cmpf ogt, %134, %135 : vector<128x1xf32>
    %cst_63 = arith.constant 1.000000e+00 : f32
    %137 = vector.broadcast %cst_63 : f32 to vector<128x1xf32>
    %138 = arith.select %136, %134, %137 : vector<128x1xi1>, vector<128x1xf32>
    %139 = vector.broadcast %138 : vector<128x1xf32> to vector<128x128xf32>
    %140 = arith.divf %132, %139 : vector<128x128xf32>
    %cst_64 = arith.constant dense<0.000000e+00> : vector<128x512xf32>
    %141 = tpu.matmul %140, %100, %cst_64 {dimension_numbers = #tpu.dot_dimension_numbers<[1], [0], [0], [1], [0, 0, 1, 1], [], []>} : vector<128x128xf32>, vector<128x512xf32>, vector<128x512xf32> -> vector<128x512xf32>
    %142 = tpu.iota {dimensions = array<i32: 0>} : vector<16x128xi32>
    %143 = arith.sitofp %142 : vector<16x128xi32> to vector<16x128xf32>
    %144 = vector.broadcast %3 : vector<1x128xf32> to vector<16x128xf32>
    %145 = arith.cmpf oeq, %143, %144 : vector<16x128xf32>
    %cst_65 = arith.constant 1.000000e+00 : f32
    %cst_66 = arith.constant 0.000000e+00 : f32
    %146 = vector.broadcast %cst_65 : f32 to vector<16x128xf32>
    %147 = vector.broadcast %cst_66 : f32 to vector<16x128xf32>
    %148 = arith.select %145, %146, %147 : vector<16x128xi1>, vector<16x128xf32>
    %149 = vector.broadcast %2 : vector<1x128xf32> to vector<16x128xf32>
    %150 = arith.mulf %148, %149 : vector<16x128xf32>
    %cst_67 = arith.constant dense<0.000000e+00> : vector<16x512xf32>
    %151 = tpu.matmul %150, %141, %cst_67 {dimension_numbers = #tpu.dot_dimension_numbers<[1], [0], [0], [1], [0, 0, 1, 1], [], []>} : vector<16x128xf32>, vector<128x512xf32>, vector<16x512xf32> -> vector<16x512xf32>
    %152 = arith.mulf %151, %151 : vector<16x512xf32>
    %c0_68 = arith.constant 0 : index
    %c0_69 = arith.constant 0 : index
    %153 = vector.load %arg27[%c0_68, %c0_69] : memref<16x512xf32, #tpu.memory_space<vmem>>, vector<16x512xf32>
    tpu.vector_store %arg27[%c0_68, %c0_69], %152 {strides = array<i32>} : memref<16x512xf32, #tpu.memory_space<vmem>>, vector<16x512xf32>,
    %c0_70 = arith.constant 0 : index
    %c0_71 = arith.constant 0 : index
    %154 = vector.load %arg5[%c0_70, %c0_71] : memref<16x1xf32, #tpu.memory_space<vmem>>, vector<16x1xf32>
    %155 = vector.broadcast %154 : vector<16x1xf32> to vector<16x512xf32>
    %156 = arith.mulf %151, %155 : vector<16x512xf32>
    %157 = vector.extract_strided_slice %156 {offsets = [0, 0], sizes = [8, 512], strides = [1, 1]} : vector<16x512xf32> to vector<8x512xf32>
    %158 = vector.extract_strided_slice %156 {offsets = [8, 0], sizes = [8, 512], strides = [1, 1]} : vector<16x512xf32> to vector<8x512xf32>
    %159 = arith.addf %157, %158 : vector<8x512xf32>
    %c0_72 = arith.constant 0 : index
    %c0_73 = arith.constant 0 : index
    %160 = vector.load %arg12[%c0_72, %c0_73] : memref<1x512xf32, #tpu.memory_space<vmem>>, vector<1x512xf32>
    %161 = vector.broadcast %160 : vector<1x512xf32> to vector<8x512xf32>
    %162 = arith.mulf %159, %161 : vector<8x512xf32>
    %cst_74 = arith.constant dense<0.000000e+00> : vector<8xf32>
    %163 = vector.multi_reduction <add>, %162, %cst_74 [1] : vector<8x512xf32> to vector<8xf32>
    %164 = vector.shape_cast %163 : vector<8xf32> to vector<8x1xf32>
    %c0_75 = arith.constant 0 : index
    %c0_76 = arith.constant 0 : index
    %165 = vector.load %arg13[%c0_75, %c0_76] : memref<1x1xf32, #tpu.memory_space<vmem>>, vector<1x1xf32>
    %166 = vector.broadcast %165 : vector<1x1xf32> to vector<8x1xf32>
    %167 = arith.addf %164, %166 : vector<8x1xf32>
    %c0_77 = arith.constant 0 : index
    %c0_78 = arith.constant 0 : index
    %168 = vector.load %arg1[%c0_77, %c0_78] : memref<8x6xf32, #tpu.memory_space<vmem>>, vector<8x6xf32>
    %c0_79 = arith.constant 0 : index
    %c0_80 = arith.constant 0 : index
    %169 = vector.load %arg6[%c0_79, %c0_80] : memref<6x512xf32, #tpu.memory_space<vmem>>, vector<6x512xf32>
    %cst_81 = arith.constant dense<0.000000e+00> : vector<8x512xf32>
    %170 = tpu.matmul %168, %169, %cst_81 {dimension_numbers = #tpu.dot_dimension_numbers<[1], [0], [0], [1], [0, 0, 1, 1], [], []>} : vector<8x6xf32>, vector<6x512xf32>, vector<8x512xf32> -> vector<8x512xf32>
    %c0_82 = arith.constant 0 : index
    %c0_83 = arith.constant 0 : index
    %171 = vector.load %arg7[%c0_82, %c0_83] : memref<1x512xf32, #tpu.memory_space<vmem>>, vector<1x512xf32>
    %172 = vector.broadcast %171 : vector<1x512xf32> to vector<8x512xf32>
    %173 = arith.addf %170, %172 : vector<8x512xf32>
    %cst_84 = arith.constant 0.000000e+00 : f32
    %174 = vector.broadcast %cst_84 : f32 to vector<8x512xf32>
    %175 = arith.maximumf %173, %174 : vector<8x512xf32>
    %c0_85 = arith.constant 0 : index
    %c0_86 = arith.constant 0 : index
    %176 = vector.load %arg8[%c0_85, %c0_86] : memref<512x512xf32, #tpu.memory_space<vmem>>, vector<512x512xf32>
    %cst_87 = arith.constant dense<0.000000e+00> : vector<8x512xf32>
    %177 = tpu.matmul %175, %176, %cst_87 {dimension_numbers = #tpu.dot_dimension_numbers<[1], [0], [0], [1], [0, 0, 1, 1], [], []>} : vector<8x512xf32>, vector<512x512xf32>, vector<8x512xf32> -> vector<8x512xf32>
    %c0_88 = arith.constant 0 : index
    %c0_89 = arith.constant 0 : index
    %178 = vector.load %arg9[%c0_88, %c0_89] : memref<1x512xf32, #tpu.memory_space<vmem>>, vector<1x512xf32>
    %179 = vector.broadcast %178 : vector<1x512xf32> to vector<8x512xf32>
    %180 = arith.addf %177, %179 : vector<8x512xf32>
    %cst_90 = arith.constant 0.000000e+00 : f32
    %181 = vector.broadcast %cst_90 : f32 to vector<8x512xf32>
    %182 = arith.maximumf %180, %181 : vector<8x512xf32>
    %c0_91 = arith.constant 0 : index
    %c0_92 = arith.constant 0 : index
    %183 = vector.load %arg10[%c0_91, %c0_92] : memref<1x512xf32, #tpu.memory_space<vmem>>, vector<1x512xf32>
    %184 = vector.broadcast %183 : vector<1x512xf32> to vector<8x512xf32>
    %185 = arith.mulf %182, %184 : vector<8x512xf32>
    %cst_93 = arith.constant dense<0.000000e+00> : vector<8xf32>
    %186 = vector.multi_reduction <add>, %185, %cst_93 [1] : vector<8x512xf32> to vector<8xf32>
    %187 = vector.shape_cast %186 : vector<8xf32> to vector<8x1xf32>
    %c0_94 = arith.constant 0 : index
    %c0_95 = arith.constant 0 : index
    %188 = vector.load %arg11[%c0_94, %c0_95] : memref<1x1xf32, #tpu.memory_space<vmem>>, vector<1x1xf32>
    %189 = vector.broadcast %188 : vector<1x1xf32> to vector<8x1xf32>
    %190 = arith.addf %187, %189 : vector<8x1xf32>
    %191 = tpu.iota {dimensions = array<i32: 1>} : vector<8x128xi32>
    %c0_i32 = arith.constant 0 : i32
    %192 = vector.broadcast %c0_i32 : i32 to vector<8x128xi32>
    %193 = arith.cmpi eq, %191, %192 : vector<8x128xi32>
    %cst_96 = arith.constant 0.000000e+00 : f32
    %194 = vector.shape_cast %190 : vector<8x1xf32> to vector<8x1xf32>
    %195 = vector.broadcast %194 : vector<8x1xf32> to vector<8x128xf32>
    %196 = vector.broadcast %cst_96 : f32 to vector<8x128xf32>
    %197 = arith.select %193, %195, %196 : vector<8x128xi1>, vector<8x128xf32>
    %c1_i32 = arith.constant 1 : i32
    %198 = vector.broadcast %c1_i32 : i32 to vector<8x128xi32>
    %199 = arith.cmpi eq, %191, %198 : vector<8x128xi32>
    %cst_97 = arith.constant 0.000000e+00 : f32
    %200 = vector.shape_cast %167 : vector<8x1xf32> to vector<8x1xf32>
    %201 = vector.broadcast %200 : vector<8x1xf32> to vector<8x128xf32>
    %202 = vector.broadcast %cst_97 : f32 to vector<8x128xf32>
    %203 = arith.select %199, %201, %202 : vector<8x128xi1>, vector<8x128xf32>
    %204 = arith.addf %197, %203 : vector<8x128xf32>
    %c2_i32 = arith.constant 2 : i32
    %205 = vector.broadcast %c2_i32 : i32 to vector<8x128xi32>
    %206 = arith.cmpi eq, %191, %205 : vector<8x128xi32>
    %207 = arith.addf %190, %167 : vector<8x1xf32>
    %cst_98 = arith.constant 0.000000e+00 : f32
    %208 = vector.shape_cast %207 : vector<8x1xf32> to vector<8x1xf32>
    %209 = vector.broadcast %208 : vector<8x1xf32> to vector<8x128xf32>
    %210 = vector.broadcast %cst_98 : f32 to vector<8x128xf32>
    %211 = arith.select %206, %209, %210 : vector<8x128xi1>, vector<8x128xf32>
    %212 = arith.addf %204, %211 : vector<8x128xf32>
    %c0_99 = arith.constant 0 : index
    %c0_100 = arith.constant 0 : index
    %213 = vector.load %arg26[%c0_99, %c0_100] : memref<8x128xf32, #tpu.memory_space<vmem>>, vector<8x128xf32>
    tpu.vector_store %arg26[%c0_99, %c0_100], %212 {strides = array<i32>} : memref<8x128xf32, #tpu.memory_space<vmem>>, vector<8x128xf32>,
    return
  }
  func.func @transform_0(%arg0: i32) -> (i32, i32) {
    %c0_i32 = arith.constant 0 : i32
    %c0_i32_0 = arith.constant 0 : i32
    return %arg0, %c0_i32 : i32, i32
  }
  func.func @transform_1(%arg0: i32) -> (i32, i32) {
    %c0_i32 = arith.constant 0 : i32
    %c0_i32_0 = arith.constant 0 : i32
    return %arg0, %c0_i32 : i32, i32
  }
  func.func @transform_2(%arg0: i32) -> (i32, i32) {
    %c0_i32 = arith.constant 0 : i32
    %c0_i32_0 = arith.constant 0 : i32
    return %arg0, %c0_i32 : i32, i32
  }
  func.func @transform_3(%arg0: i32) -> (i32, i32) {
    %c0_i32 = arith.constant 0 : i32
    %c0_i32_0 = arith.constant 0 : i32
    return %arg0, %c0_i32 : i32, i32
  }
  func.func @transform_4(%arg0: i32) -> (i32, i32) {
    %c0_i32 = arith.constant 0 : i32
    %c0_i32_0 = arith.constant 0 : i32
    return %arg0, %c0_i32 : i32, i32
  }
  func.func @transform_5(%arg0: i32) -> (i32, i32) {
    %c0_i32 = arith.constant 0 : i32
    %c0_i32_0 = arith.constant 0 : i32
    %c0_i32_1 = arith.constant 0 : i32
    return %c0_i32, %c0_i32_0 : i32, i32
  }
  func.func @transform_6(%arg0: i32) -> (i32, i32) {
    %c0_i32 = arith.constant 0 : i32
    %c0_i32_0 = arith.constant 0 : i32
    %c0_i32_1 = arith.constant 0 : i32
    return %c0_i32, %c0_i32_0 : i32, i32
  }
  func.func @transform_7(%arg0: i32) -> (i32, i32) {
    %c0_i32 = arith.constant 0 : i32
    %c0_i32_0 = arith.constant 0 : i32
    %c0_i32_1 = arith.constant 0 : i32
    return %c0_i32, %c0_i32_0 : i32, i32
  }
  func.func @transform_8(%arg0: i32) -> (i32, i32) {
    %c0_i32 = arith.constant 0 : i32
    %c0_i32_0 = arith.constant 0 : i32
    %c0_i32_1 = arith.constant 0 : i32
    return %c0_i32, %c0_i32_0 : i32, i32
  }
  func.func @transform_9(%arg0: i32) -> (i32, i32) {
    %c0_i32 = arith.constant 0 : i32
    %c0_i32_0 = arith.constant 0 : i32
    %c0_i32_1 = arith.constant 0 : i32
    return %c0_i32, %c0_i32_0 : i32, i32
  }
  func.func @transform_10(%arg0: i32) -> (i32, i32) {
    %c0_i32 = arith.constant 0 : i32
    %c0_i32_0 = arith.constant 0 : i32
    %c0_i32_1 = arith.constant 0 : i32
    return %c0_i32, %c0_i32_0 : i32, i32
  }
  func.func @transform_11(%arg0: i32) -> (i32, i32) {
    %c0_i32 = arith.constant 0 : i32
    %c0_i32_0 = arith.constant 0 : i32
    %c0_i32_1 = arith.constant 0 : i32
    return %c0_i32, %c0_i32_0 : i32, i32
  }
  func.func @transform_12(%arg0: i32) -> (i32, i32) {
    %c0_i32 = arith.constant 0 : i32
    %c0_i32_0 = arith.constant 0 : i32
    %c0_i32_1 = arith.constant 0 : i32
    return %c0_i32, %c0_i32_0 : i32, i32
  }
  func.func @transform_13(%arg0: i32) -> (i32, i32) {
    %c0_i32 = arith.constant 0 : i32
    %c0_i32_0 = arith.constant 0 : i32
    %c0_i32_1 = arith.constant 0 : i32
    return %c0_i32, %c0_i32_0 : i32, i32
  }
  func.func @transform_14(%arg0: i32) -> (i32, i32) {
    %c0_i32 = arith.constant 0 : i32
    %c0_i32_0 = arith.constant 0 : i32
    %c0_i32_1 = arith.constant 0 : i32
    return %c0_i32, %c0_i32_0 : i32, i32
  }
  func.func @transform_15(%arg0: i32) -> (i32, i32) {
    %c0_i32 = arith.constant 0 : i32
    %c0_i32_0 = arith.constant 0 : i32
    %c0_i32_1 = arith.constant 0 : i32
    return %c0_i32, %c0_i32_0 : i32, i32
  }
  func.func @transform_16(%arg0: i32) -> (i32, i32) {
    %c0_i32 = arith.constant 0 : i32
    %c0_i32_0 = arith.constant 0 : i32
    %c0_i32_1 = arith.constant 0 : i32
    return %c0_i32, %c0_i32_0 : i32, i32
  }
  func.func @transform_17(%arg0: i32) -> (i32, i32) {
    %c0_i32 = arith.constant 0 : i32
    %c0_i32_0 = arith.constant 0 : i32
    %c0_i32_1 = arith.constant 0 : i32
    return %c0_i32, %c0_i32_0 : i32, i32
  }
  func.func @transform_18(%arg0: i32) -> (i32, i32) {
    %c0_i32 = arith.constant 0 : i32
    %c0_i32_0 = arith.constant 0 : i32
    %c0_i32_1 = arith.constant 0 : i32
    return %c0_i32, %c0_i32_0 : i32, i32
  }
  func.func @transform_19(%arg0: i32) -> (i32, i32) {
    %c0_i32 = arith.constant 0 : i32
    %c0_i32_0 = arith.constant 0 : i32
    %c0_i32_1 = arith.constant 0 : i32
    return %c0_i32, %c0_i32_0 : i32, i32
  }
  func.func @transform_20(%arg0: i32) -> (i32, i32) {
    %c0_i32 = arith.constant 0 : i32
    %c0_i32_0 = arith.constant 0 : i32
    %c0_i32_1 = arith.constant 0 : i32
    return %c0_i32, %c0_i32_0 : i32, i32
  }
  func.func @transform_21(%arg0: i32) -> (i32, i32) {
    %c0_i32 = arith.constant 0 : i32
    %c0_i32_0 = arith.constant 0 : i32
    %c0_i32_1 = arith.constant 0 : i32
    return %c0_i32, %c0_i32_0 : i32, i32
  }
  func.func @transform_22(%arg0: i32) -> (i32, i32) {
    %c0_i32 = arith.constant 0 : i32
    %c0_i32_0 = arith.constant 0 : i32
    %c0_i32_1 = arith.constant 0 : i32
    return %c0_i32, %c0_i32_0 : i32, i32
  }
  func.func @transform_23(%arg0: i32) -> (i32, i32) {
    %c0_i32 = arith.constant 0 : i32
    %c0_i32_0 = arith.constant 0 : i32
    %c0_i32_1 = arith.constant 0 : i32
    return %c0_i32, %c0_i32_0 : i32, i32
  }
  func.func @transform_24(%arg0: i32) -> (i32, i32) {
    %c0_i32 = arith.constant 0 : i32
    %c0_i32_0 = arith.constant 0 : i32
    %c0_i32_1 = arith.constant 0 : i32
    return %c0_i32, %c0_i32_0 : i32, i32
  }
  func.func @transform_25(%arg0: i32) -> (i32, i32) {
    %c0_i32 = arith.constant 0 : i32
    %c0_i32_0 = arith.constant 0 : i32
    return %arg0, %c0_i32 : i32, i32
  }
  func.func @transform_26(%arg0: i32) -> (i32, i32) {
    %c0_i32 = arith.constant 0 : i32
    %c0_i32_0 = arith.constant 0 : i32
    return %arg0, %c0_i32 : i32, i32
  }
}

</mosaic_0001>

<bundles_post_ra>
// kernel: tpu_custom_call.1
= control target key start
LH: loop header
LB: loop body
LE: loop exit
PB: predicated region body
PF: predicated region fallthrough
CT: control target
= control target key end

     0   :  { %s10631_s0 = inlined_call_operand.vmem [shape: f32[8,6], index: 0, kind: input, shape index: {}]   ;;  %s10632_s1 = inlined_call_operand.vmem [shape: f32[128,8], index: 1, kind: input, shape index: {}]   ;;  %s10633_s2 = inlined_call_operand.vmem [shape: f32[8,128], index: 2, kind: input, shape index: {}]   ;;  %s10634_s3 = inlined_call_operand.vmem [shape: f32[128,8], index: 3, kind: input, shape index: {}]   ;;  %s10635_s4 = inlined_call_operand.vmem [shape: f32[16,1], index: 4, kind: input, shape index: {}]   ;;  %s10636_s5 = inlined_call_operand.vmem [shape: f32[6,512], index: 5, kind: input, shape index: {}]   ;;  %s10637_s6 = inlined_call_operand.vmem [shape: f32[1,512], index: 6, kind: input, shape index: {}]   ;;  %s10638_s7 = inlined_call_operand.hbm [shape: f32[512,512], index: 7, kind: input, shape index: {}]   ;;  %s10639_s8 = inlined_call_operand.vmem [shape: f32[1,512], index: 8, kind: input, shape index: {}]   ;;  %s10640_s9 = inlined_call_operand.vmem [shape: f32[1,512], index: 9, kind: input, shape index: {}]   ;;  %s10641_s10 = inlined_call_operand.<no memory space> [shape: f32[1,1], index: 10, kind: input, shape index: {}]   ;;  %s10642_s11 = inlined_call_operand.vmem [shape: f32[1,512], index: 11, kind: input, shape index: {}]   ;;  %s10643_s13 = inlined_call_operand.vmem [shape: f32[8,512], index: 13, kind: input, shape index: {}]   ;;  %s10644_s14 = inlined_call_operand.vmem [shape: f32[1,512], index: 14, kind: input, shape index: {}]   ;;  %s10645_s15 = inlined_call_operand.vmem [shape: f32[1,512], index: 15, kind: input, shape index: {}]   ;;  %s10646_s16 = inlined_call_operand.hbm [shape: f32[512,512], index: 16, kind: input, shape index: {}]   ;;  %s10647_s17 = inlined_call_operand.vmem [shape: f32[1,512], index: 17, kind: input, shape index: {}]   ;;  %s10648_s18 = inlined_call_operand.vmem [shape: f32[1,512], index: 18, kind: input, shape index: {}]   ;;  %s10649_s19 = inlined_call_operand.vmem [shape: f32[8,512], index: 19, kind: input, shape index: {}]   ;;  %s10650_s20 = inlined_call_operand.vmem [shape: f32[1,512], index: 20, kind: input, shape index: {}]   ;;  %s10651_s21 = inlined_call_operand.vmem [shape: f32[1,512], index: 21, kind: input, shape index: {}]   ;;  %s10652_s22 = inlined_call_operand.hbm [shape: f32[512,512], index: 22, kind: input, shape index: {}]   ;;  %s10653_s23 = inlined_call_operand.vmem [shape: f32[1,512], index: 23, kind: input, shape index: {}]   ;;  %s10654_s24 = inlined_call_operand.vmem [shape: f32[1,512], index: 24, kind: input, shape index: {}]   ;;  %s10655_s25 = inlined_call_operand.hbm [shape: f32[8,128], index: 25, kind: output, shape index: {0}]   ;;  %s10656_s26 = inlined_call_operand.hbm [shape: f32[16,512], index: 26, kind: output, shape index: {1}]   ;;  %s10657_s12 = inlined_call_operand.<no memory space> [shape: f32[1,1], index: 12, kind: input, shape index: {}]  }
   0x1   :  { %10853 = sst [smem:[#allocation76_spill]] %s10631_s0  ;;  %v34_v1 = vstv %s10657_s12 }
   0x2   :  { %10854 = sst [smem:[#allocation77_spill]] %s10632_s1  ;;  %35 = vst [vmem:[#allocation3] sm:$0x1] %v34_v1 }
   0x3   :  { %10855 = sst [smem:[#allocation78_spill]] %s10633_s2 }
   0x4   :  { %10856 = sst [smem:[#allocation79_spill]] %s10634_s3 }
   0x5   :  { %10857 = sst [smem:[#allocation80_spill]] %s10635_s4 }
   0x6   :  { %10858 = sst [smem:[#allocation81_spill]] %s10636_s5 }
   0x7   :  { %10859 = sst [smem:[#allocation82_spill]] %s10637_s6 }
   0x8   :  { %10860 = sst [smem:[#allocation83_spill]] %s10638_s7 }
   0x9   :  { %10861 = sst [smem:[#allocation84_spill]] %s10639_s8 }
   0xa   :  { %10862 = sst [smem:[#allocation85_spill]] %s10640_s9 }
   0xb   :  { %10863 = sst [smem:[#allocation86_spill]] %s10641_s10 }
   0xc   :  { %s10864_s7 = sld [smem:[#allocation86_spill]] }
  0x12   :  { %v32_v0 = vstv %s10864_s7 }
  0x13   :  { %33 = vst [vmem:[#allocation2] sm:$0x1] %v32_v0 }
  0x14   :  { %36 = vsyncpa [#allocation5], 0 }
  0x15   :  { %37 = vsyncpa [#allocation8], 0 }
  0x16   :  { %38 = vsyncpa [#allocation6], 0 }
  0x17   :  { %39 = vsyncpa [#allocation12], 0  ;;  %s7021_s4 = smov [#allocation7]   ;;  %s7022_s0 = smov [#allocation4]  }
  0x18   :  { %s87_s29 = sshll.u32 %s7021_s4, 4  ;;  %s59_s9 = sshll.u32 %s7022_s0, 4  ;;  %s88_s29 = int_to_ptr.vmem [resolvable:$true] %s87_s29  ;;  %s60_s9 = int_to_ptr.vmem [resolvable:$true] %s59_s9 }
  0x19   :  { %s6921_s30 = scalar_lea.vmem %s88_s29, 32768  ;;  %p6926_p1 = scmp.lt.s32.totalorder %s88_s29, %s88_s29 }
  0x1a   :  { %p6922_p0 = scmp.ne.s32.totalorder %s88_s29, %s6921_s30  ;;  %p6927_p2 = scmp.lt.s32.totalorder %s6921_s30, %s6921_s30 }
  0x1c   :  { %p6928_p3 = por %p6927_p2, %p6926_p1 }
  0x1e   :  { %p6929_p4 = pnand %p6928_p3, %p6922_p0 }
  0x20   :  { %6932 = shalt.err (!%p6929_p4)
}
  0x21   :  { %s7023_s12 = smov 512   ;;  %s7024_s2 = smov 32  }
  0x22   :  { %93 = dma.hbm_to_vmem [thread:$0]  %s10646_s16, 32768, %s88_s29, [#allocation8], %s7023_s12, %s7023_s12, %s7024_s2  }
  0x23   :  { %s6941_s6 = scalar_lea.vmem %s60_s9, 32768  ;;  %p6946_p6 = scmp.lt.s32.totalorder %s60_s9, %s60_s9 }
  0x24   :  { %p6942_p5 = scmp.ne.s32.totalorder %s60_s9, %s6941_s6  ;;  %p6947_p7 = scmp.lt.s32.totalorder %s6941_s6, %s6941_s6 }
  0x26   :  { %p6948_p8 = por %p6947_p7, %p6946_p6 }
  0x28   :  { %p6949_p9 = pnand %p6948_p8, %p6942_p5 }
  0x2a   :  { %6952 = shalt.err (!%p6949_p9)
}
  0x2b   :  { %s10865_s3 = sld [smem:[#allocation83_spill]]  ;;  %s7025_s7 = smov [#allocation9]  }
  0x2c   :  { %s109_s28 = sshll.u32 %s7025_s7, 4  ;;  %s110_s28 = int_to_ptr.vmem [resolvable:$true] %s109_s28 }
  0x2d   :  { %s6961_s8 = scalar_lea.vmem %s110_s28, 32768  ;;  %p6966_p11 = scmp.lt.s32.totalorder %s110_s28, %s110_s28 }
  0x2e   :  { %p6962_p10 = scmp.ne.s32.totalorder %s110_s28, %s6961_s8  ;;  %p6967_p12 = scmp.lt.s32.totalorder %s6961_s8, %s6961_s8 }
  0x30   :  { %p6968_p13 = por %p6967_p12, %p6966_p11 }
  0x31   :  { %65 = dma.hbm_to_vmem [thread:$0]  %s10865_s3, 32768, %s60_s9, [#allocation5], %s7023_s12, %s7023_s12, %s7024_s2  }
  0x32   :  { %p6969_p0 = pnand %p6968_p13, %p6962_p10 }
  0x34   :  { %6972 = shalt.err (!%p6969_p0)
}
  0x35   :  { %115 = dma.hbm_to_vmem [thread:$0]  %s10652_s22, 32768, %s110_s28, [#allocation8], %s7023_s12, %s7023_s12, %s7024_s2  }
  0x36   :  { %7013 = dma.done.wait [#allocation5], 32768  }
  0x37   :  { %7014 = vsyncadd [#allocation5], 4294934528 }
  0x38   :  { %7015 = dma.done.wait [#allocation8], 65536  }
  0x39   :  { %7016 = vsyncadd [#allocation8], 4294901760  ;;  %v10664_v2 = vmov 0.0   ;;  %v10667_v3 = vmov 0   ;;  %v589_v4 = vld [vmem:[%s10643_s13 + $0x8] sm:$0xff]  ;;  %v591_v5 = vld [vmem:[%s10643_s13 + $0x18] sm:$0xff]  ;;  %v10663_v41 = vlaneseq }
  0x3a   :  { %681 = vmatprep.mubr.f32.mxu0 %v10664_v2  ;;  %794 = vmatprep.mubr.f32.mxu1 %v10664_v2  ;;  %v588_v6 = vld [vmem:[%s10643_s13] sm:$0xff]  ;;  %vm592_vm0 = vcmask 64512   ;;  %v590_v7 = vld [vmem:[%s10643_s13 + $0x10] sm:$0xff]  ;;  %s10866_s3 = sld [smem:[#allocation77_spill]]  ;;  %v844_v10 = vld [vmem:[%s10649_s19 + $0x8] sm:$0xff]  ;;  %v10666_v30 = vmov 1  }
  0x3b   :  { %6651 = vset.pattern.permute.xlu0 %v10667_v3  ;;  %6650 = vset.pattern.permute.xlu1 %v10667_v3  ;;  %v846_v11 = vld [vmem:[%s10649_s19 + $0x18] sm:$0xff]  ;;  %v843_v12 = vld [vmem:[%s10649_s19] sm:$0xff]  ;;  %v845_v13 = vld [vmem:[%s10649_s19 + $0x10] sm:$0xff]  ;;  %s10867_s1 = sld [smem:[#allocation79_spill]]  ;;  %v7387_v42 = vshrl.u32 %v10663_v41, 7  ;;  %s7029_s19 = smov [#allocation11]  }
  0x3c   :  { %647 = vmatprep.subr.mxu0 %v589_v4  ;;  %760 = vmatprep.subr.mxu1 %v591_v5  ;;  %v1097_v46 = vld [vmem:[%s10644_s14] sm:$0xf]  ;;  %s10961_s22 = sld [smem:[#allocation78_spill]]  ;;  %s6519_s27 = sshll.u32 %s7029_s19, 4  ;;  %s6520_s27 = int_to_ptr.vmem [resolvable:$true] %s6519_s27 }
  0x3d   :  { %648 = vmatpush1.msra.mxu0 %v588_v6  ;;  %761 = vmatpush1.msra.mxu1 %v590_v7  ;;  %10875 = vst [vmem:[#allocation24_spill] sm:$0xff] %v7387_v42  ;;  %v7390_v43 = vsub.s32 0, %v7387_v42  ;;  %v7393_v44 = vsub.s32 1, %v7387_v42  ;;  %v7396_v45 = vsub.s32 3, %v7387_v42  ;;  %v7404_v47 = vld [vmem:[%s10645_s15] sm:$0xf]  ;;  %p6978_p2 = scmp.lt.s32.totalorder %s6520_s27, %s6520_s27 }
  0x3e   :  { %901 = vmatprep.subr.mxu0 %v844_v10  ;;  %1014 = vmatprep.subr.mxu1 %v846_v11  ;;  %10879 = vst [vmem:[#allocation28_spill] sm:$0xff] %v7404_v47  ;;  %v7407_v48 = vsub.s32 2, %v7387_v42  ;;  %s11199_s6 = sld [smem:[#allocation80_spill]]  ;;  %s6973_s7 = scalar_lea.vmem %s6520_s27, 1024 }
  0x3f   :  { %10876 = vst [vmem:[#allocation25_spill] sm:$0xff] %v7390_v43  ;;  %10877 = vst [vmem:[#allocation26_spill] sm:$0xff] %v7393_v44  ;;  %v1454_v49 = vrot.slane %v7404_v47, %v7393_v44  ;;  %v1462_v50 = vrot.slane %v7404_v47, %v7396_v45  ;;  %v7414_v51 = vrot.slane %v1097_v46, %v7390_v43  ;;  %s11206_s13 = sld [smem:[#allocation81_spill]]  ;;  %p6974_p1 = scmp.ne.s32.totalorder %s6520_s27, %s6973_s7 }
  0x40   :  { %v572_v8 = vld [vmem:[%s10866_s3] sm:$0xff]  ;;  %v573_v9 = vld [vmem:[%s10866_s3 + $0x8] sm:$0xff]  ;;  %v574_v14 = vld [vmem:[%s10866_s3 + $0x10] sm:$0xff]  ;;  %10878 = vst [vmem:[#allocation27_spill] sm:$0xff] %v7396_v45  ;;  %v7417_v52 = vrot.slane %v1097_v46, %v7393_v44  ;;  %v7424_v55 = vrot.slane %v1097_v46, %v7407_v48  ;;  %v7433_v59 = vrot.slane %v1097_v46, %v7396_v45  ;;  %s11212_s5 = sld [smem:[#allocation84_spill]]  ;;  %p6979_p3 = scmp.lt.s32.totalorder %s6973_s7, %s6973_s7 }
  0x41   :  { %6536 = vmatmul.mubr.msk.f32.vlgmr.msra.gmra.mxu0 %vm592_vm0, %v572_v8  ;;  %6544 = vmatmul.mubr.msk.f32.vlgmr.msra.gmra.mxu1 %vm592_vm0, %v572_v8  ;;  %v7238_v15 = vld [vmem:[%s10867_s1 + $0x10] sm:$0xff]  ;;  %v7244_v16 = vld [vmem:[%s10867_s1] sm:$0xff]  ;;  %v7249_v17 = vld [vmem:[%s10867_s1 + $0x18] sm:$0xff]  ;;  %10880 = vst [vmem:[#allocation29_spill] sm:$0xff] %v7407_v48 }
  0x42   :  { %687 = vmatprep.mubr.f32.mxu0 %v10664_v2  ;;  %800 = vmatprep.mubr.f32.mxu1 %v10664_v2  ;;  %10868 = vst [vmem:[#allocation17_spill] sm:$0xff] %v7238_v15  ;;  %10869 = vst [vmem:[#allocation18_spill] sm:$0xff] %v7244_v16  ;;  %v575_v18 = vld [vmem:[%s10866_s3 + $0x18] sm:$0xff]  ;;  %v7263_v19 = vld [vmem:[%s10867_s1 + $0x8] sm:$0xff]  ;;  %vm246_vm1 = vcmp.eq.f32.partialorder %v7244_v16, 0.0  ;;  %p6980_p4 = por %p6979_p3, %p6978_p2 }
  0x43   :  { %902 = vmatpush1.msra.mxu0 %v843_v12  ;;  %1015 = vmatpush1.msra.mxu1 %v845_v13  ;;  %10870 = vst [vmem:[#allocation19_spill] sm:$0xff] %v7249_v17  ;;  %10871 = vst [vmem:[#allocation20_spill] sm:$0xff] %v7263_v19  ;;  %v7268_v20 = vld [vmem:[%s10867_s1 + $0x28] sm:$0xff]  ;;  %v134_v21 = vld [vmem:[%s10867_s1 + $0x20] sm:$0xff]  ;;  %v263_v28 = vsel %vm246_vm1, 1, %v10667_v3  ;;  %vm247_vm2 = vcmp.eq.f32.partialorder %v7263_v19, 0.0 }
  0x44   :  { %158 = vperm.xlu0 %6651, %v7238_v15   ;;  %148 = vperm.xlu1 %6650, %v7244_v16   ;;  %10872 = vst [vmem:[#allocation21_spill] sm:$0xff] %v7268_v20  ;;  %v576_v22 = vld [vmem:[%s10866_s3 + $0x20] sm:$0xff]  ;;  %v7285_v23 = vld [vmem:[%s10867_s1 + $0x30] sm:$0xff]  ;;  %v7292_v24 = vld [vmem:[%s10867_s1 + $0x38] sm:$0xff]  ;;  %v264_v31 = vsel %vm247_vm2, 1, %v10667_v3  ;;  %vm250_vm3 = vcmp.eq.f32.partialorder %v134_v21, 0.0  ;;  %p6981_p5 = pnand %p6980_p4, %p6974_p1 }
  0x45   :  { %6537 = vmatmul.mubr.msk.f32.gmra.mxu0 %vm592_vm0, %v573_v9  ;;  %6545 = vmatmul.mubr.msk.f32.gmra.mxu1 %vm592_vm0, %v573_v9  ;;  %10873 = vst [vmem:[#allocation22_spill] sm:$0xff] %v7285_v23  ;;  %v577_v25 = vld [vmem:[%s10866_s3 + $0x28] sm:$0xff]  ;;  %v7303_v26 = vld [vmem:[%s10867_s1 + $0x40] sm:$0xff]  ;;  %v578_v27 = vld [vmem:[%s10866_s3 + $0x30] sm:$0xff]  ;;  %v267_v34 = vsel %vm250_vm3, 1, %v10667_v3  ;;  %vm252_vm4 = vcmp.eq.f32.partialorder %v7285_v23, 0.0 }
  0x46   :  { %693 = vmatprep.mubr.f32.mxu0 %v10664_v2  ;;  %806 = vmatprep.mubr.f32.mxu1 %v10664_v2  ;;  %10874 = vst [vmem:[#allocation23_spill] sm:$0xff] %v7303_v26  ;;  %v579_v29 = vld [vmem:[%s10866_s3 + $0x38] sm:$0xff]  ;;  %v580_v32 = vld [vmem:[%s10866_s3 + $0x40] sm:$0xff]  ;;  %v581_v33 = vld [vmem:[%s10866_s3 + $0x48] sm:$0xff]  ;;  %vm253_vm5 = vcmp.eq.f32.partialorder %v7292_v24, 0.0 }
  0x47   :  { %v582_v35 = vld [vmem:[%s10866_s3 + $0x50] sm:$0xff]  ;;  %v583_v36 = vld [vmem:[%s10866_s3 + $0x58] sm:$0xff]  ;;  %v584_v37 = vld [vmem:[%s10866_s3 + $0x60] sm:$0xff] }
  0x48   :  { %163 = vperm.xlu0 %6651, %v7249_v17   ;;  %153 = vperm.xlu1 %6650, %v7263_v19   ;;  %v585_v38 = vld [vmem:[%s10866_s3 + $0x68] sm:$0xff]  ;;  %v586_v39 = vld [vmem:[%s10866_s3 + $0x70] sm:$0xff]  ;;  %v587_v40 = vld [vmem:[%s10866_s3 + $0x78] sm:$0xff] }
  0x49   :  { %6538 = vmatmul.mubr.msk.f32.gmra.mxu0 %vm592_vm0, %v574_v14  ;;  %6546 = vmatmul.mubr.msk.f32.gmra.mxu1 %vm592_vm0, %v574_v14 }
  0x4a   :  { %699 = vmatprep.mubr.f32.mxu0 %v10664_v2  ;;  %812 = vmatprep.mubr.f32.mxu1 %v10664_v2 }
  0x4c   :  { %173 = vperm.xlu0 %6651, %v7268_v20   ;;  %168 = vperm.xlu1 %6650, %v134_v21  }
  0x4d   :  { %6539 = vmatmul.mubr.msk.f32.gmra.mxu0 %vm592_vm0, %v575_v18  ;;  %6547 = vmatmul.mubr.msk.f32.gmra.mxu1 %vm592_vm0, %v575_v18 }
  0x4e   :  { %705 = vmatprep.mubr.f32.mxu0 %v10664_v2  ;;  %818 = vmatprep.mubr.f32.mxu1 %v10664_v2 }
  0x50   :  { %178 = vperm.xlu0 %6651, %v7285_v23   ;;  %183 = vperm.xlu1 %6650, %v7292_v24  }
  0x51   :  { %6540 = vmatmul.mubr.msk.f32.gmra.mxu0 %vm592_vm0, %v576_v22  ;;  %6548 = vmatmul.mubr.msk.f32.gmra.mxu1 %vm592_vm0, %v576_v22 }
  0x52   :  { %711 = vmatprep.mubr.f32.mxu0 %v10664_v2  ;;  %824 = vmatprep.mubr.f32.mxu1 %v10664_v2 }
  0x54   :  { %188 = vperm.xlu0 %6651, %v7303_v26  }
  0x55   :  { %6541 = vmatmul.mubr.msk.f32.gmra.mxu0 %vm592_vm0, %v577_v25  ;;  %6549 = vmatmul.mubr.msk.f32.gmra.mxu1 %vm592_vm0, %v577_v25 }
  0x56   :  { %717 = vmatprep.mubr.f32.mxu0 %v10664_v2  ;;  %830 = vmatprep.mubr.f32.mxu1 %v10664_v2 }
  0x58   :  { %6652 = vset.pattern.permute.xlu0 %v10666_v30 }
  0x59   :  { %6542 = vmatmul.mubr.msk.f32.gmra.mxu0 %vm592_vm0, %v578_v27  ;;  %6550 = vmatmul.mubr.msk.f32.gmra.mxu1 %vm592_vm0, %v578_v27 }
  0x5a   :  { %723 = vmatprep.mubr.f32.mxu0 %v10664_v2  ;;  %836 = vmatprep.mubr.f32.mxu1 %v10664_v2 }
  0x5b   :  { %280 = vperm.xlu0 %6652, %v263_v28  }
  0x5d   :  { %6543 = vmatmul.mubr.msk.f32.gmra.mxu0 %vm592_vm0, %v579_v29  ;;  %6551 = vmatmul.mubr.msk.f32.gmra.mxu1 %vm592_vm0, %v579_v29 }
  0x5e   :  { %935 = vmatprep.mubr.f32.mxu0 %v10664_v2  ;;  %1048 = vmatprep.mubr.f32.mxu1 %v10664_v2 }
  0x5f   :  { %283 = vperm.xlu0 %6652, %v264_v31  }
  0x61   :  { %6552 = vmatmul.mubr.msk.f32.vlgmr.msra.gmra.mxu0 %vm592_vm0, %v580_v32  ;;  %6560 = vmatmul.mubr.msk.f32.vlgmr.msra.gmra.mxu1 %vm592_vm0, %v580_v32 }
  0x62   :  { %941 = vmatprep.mubr.f32.mxu0 %v10664_v2  ;;  %1054 = vmatprep.mubr.f32.mxu1 %v10664_v2 }
  0x63   :  { %378 = vperm.xlu0 %6652, %v7249_v17  }
  0x65   :  { %6553 = vmatmul.mubr.msk.f32.gmra.mxu0 %vm592_vm0, %v581_v33  ;;  %6561 = vmatmul.mubr.msk.f32.gmra.mxu1 %vm592_vm0, %v581_v33 }
  0x66   :  { %947 = vmatprep.mubr.f32.mxu0 %v10664_v2  ;;  %1060 = vmatprep.mubr.f32.mxu1 %v10664_v2 }
  0x67   :  { %292 = vperm.xlu0 %6652, %v267_v34  }
  0x69   :  { %6554 = vmatmul.mubr.msk.f32.gmra.mxu0 %vm592_vm0, %v582_v35  ;;  %6562 = vmatmul.mubr.msk.f32.gmra.mxu1 %vm592_vm0, %v582_v35 }
  0x6a   :  { %953 = vmatprep.mubr.f32.mxu0 %v10664_v2  ;;  %1066 = vmatprep.mubr.f32.mxu1 %v10664_v2 }
  0x6b   :  { %382 = vperm.xlu0 %6652, %v134_v21  }
  0x6d   :  { %6555 = vmatmul.mubr.msk.f32.gmra.mxu0 %vm592_vm0, %v583_v36  ;;  %6563 = vmatmul.mubr.msk.f32.gmra.mxu1 %vm592_vm0, %v583_v36 }
  0x6e   :  { %959 = vmatprep.mubr.f32.mxu0 %v10664_v2  ;;  %1072 = vmatprep.mubr.f32.mxu1 %v10664_v2 }
  0x71   :  { %6556 = vmatmul.mubr.msk.f32.gmra.mxu0 %vm592_vm0, %v584_v37  ;;  %6564 = vmatmul.mubr.msk.f32.gmra.mxu1 %vm592_vm0, %v584_v37 }
  0x72   :  { %965 = vmatprep.mubr.f32.mxu0 %v10664_v2  ;;  %1078 = vmatprep.mubr.f32.mxu1 %v10664_v2 }
  0x75   :  { %6557 = vmatmul.mubr.msk.f32.gmra.mxu0 %vm592_vm0, %v585_v38  ;;  %6565 = vmatmul.mubr.msk.f32.gmra.mxu1 %vm592_vm0, %v585_v38 }
  0x76   :  { %971 = vmatprep.mubr.f32.mxu0 %v10664_v2  ;;  %1084 = vmatprep.mubr.f32.mxu1 %v10664_v2 }
  0x79   :  { %6558 = vmatmul.mubr.msk.f32.gmra.mxu0 %vm592_vm0, %v586_v39  ;;  %6566 = vmatmul.mubr.msk.f32.gmra.mxu1 %vm592_vm0, %v586_v39 }
  0x7a   :  { %977 = vmatprep.mubr.f32.mxu0 %v10664_v2  ;;  %1090 = vmatprep.mubr.f32.mxu1 %v10664_v2 }
  0x7d   :  { %6559 = vmatmul.mubr.msk.f32.gmra.mxu0 %vm592_vm0, %v587_v40  ;;  %6567 = vmatmul.mubr.msk.f32.gmra.mxu1 %vm592_vm0, %v587_v40 }
  0x7e   :  { %1531 = vmatprep.mubr.f32.mxu0 %v1454_v49  ;;  %1601 = vmatprep.mubr.f32.mxu1 %v1462_v50 }
 0x101   :  { %v7419_v53 = vpop.f32.mrf.mxu0  ;;  %v7421_v54 = vpop.f32.mrf.mxu1 }
 0x102   :  { %10881 = vst [vmem:[#allocation30_spill] sm:$0xff] %v7419_v53  ;;  %10882 = vst [vmem:[#allocation31_spill] sm:$0xff] %v7421_v54  ;;  %v1119_v58 = vmul.f32 %v7414_v51, %v7419_v53  ;;  %v1121_v63 = vmul.f32 %v7424_v55, %v7421_v54 }
 0x103   :  { %v7426_v56 = vpop.f32.mrf.mxu0  ;;  %v7428_v57 = vpop.f32.mrf.mxu1 }
 0x104   :  { %10883 = vst [vmem:[#allocation32_spill] sm:$0xff] %v7426_v56  ;;  %10884 = vst [vmem:[#allocation33_spill] sm:$0xff] %v7428_v57  ;;  %v1120_v60 = vmul.f32 %v7417_v52, %v7426_v56  ;;  %v1122_v6 = vmul.f32 %v7433_v59, %v7428_v57 }
 0x105   :  { %v7437_v61 = vpop.f32.mrf.mxu0  ;;  %v7439_v62 = vpop.f32.mrf.mxu1 }
 0x106   :  { %10885 = vst [vmem:[#allocation34_spill] sm:$0xff] %v7437_v61  ;;  %10886 = vst [vmem:[#allocation35_spill] sm:$0xff] %v7439_v62  ;;  %v1183_v0 = vadd.f32 %v1120_v60, %v1119_v58  ;;  %v1123_v5 = vmul.f32 %v7414_v51, %v7437_v61  ;;  %v1125_v12 = vmul.f32 %v7424_v55, %v7439_v62 }
 0x107   :  { %v7443_v1 = vpop.f32.mrf.mxu0  ;;  %v7445_v4 = vpop.f32.mrf.mxu1 }
 0x108   :  { %10887 = vst [vmem:[#allocation36_spill] sm:$0xff] %v7443_v1  ;;  %10888 = vst [vmem:[#allocation37_spill] sm:$0xff] %v7445_v4  ;;  %v1184_v7 = vadd.f32 %v1183_v0, %v1121_v63  ;;  %v1124_v8 = vmul.f32 %v7417_v52, %v7443_v1  ;;  %v1126_v22 = vmul.f32 %v7433_v59, %v7445_v4 }
 0x109   :  { %v7453_v9 = vpop.f32.mrf.mxu0  ;;  %v7455_v10 = vpop.f32.mrf.mxu1 }
 0x10a   :  { %10889 = vst [vmem:[#allocation38_spill] sm:$0xff] %v7453_v9  ;;  %10890 = vst [vmem:[#allocation39_spill] sm:$0xff] %v7455_v10  ;;  %v1185_v11 = vadd.f32 %v1184_v7, %v1122_v6  ;;  %v1188_v13 = vadd.f32 %v1124_v8, %v1123_v5  ;;  %v1127_v21 = vmul.f32 %v7414_v51, %v7453_v9 }
 0x10b   :  { %v7459_v14 = vpop.f32.mrf.mxu0  ;;  %v7461_v18 = vpop.f32.mrf.mxu1  ;;  %v1129_v32 = vmul.f32 %v7424_v55, %v7455_v10 }
 0x10c   :  { %10891 = vst [vmem:[#allocation40_spill] sm:$0xff] %v7459_v14  ;;  %10892 = vst [vmem:[#allocation41_spill] sm:$0xff] %v7461_v18  ;;  %1186 = vadd.xlane.f32.xlu0 %v1185_v11  ;;  %v1189_v25 = vadd.f32 %v1188_v13, %v1125_v12  ;;  %v1128_v27 = vmul.f32 %v7417_v52, %v7459_v14  ;;  %v1130_v37 = vmul.f32 %v7433_v59, %v7461_v18 }
 0x10d   :  { %v7469_v28 = vpop.f32.mrf.mxu0  ;;  %v7471_v29 = vpop.f32.mrf.mxu1 }
 0x10e   :  { %10893 = vst [vmem:[#allocation42_spill] sm:$0xff] %v7469_v28  ;;  %10894 = vst [vmem:[#allocation43_spill] sm:$0xff] %v7471_v29  ;;  %v1190_v31 = vadd.f32 %v1189_v25, %v1126_v22  ;;  %v1193_v33 = vadd.f32 %v1128_v27, %v1127_v21  ;;  %v1131_v36 = vmul.f32 %v7414_v51, %v7469_v28 }
 0x10f   :  { %v7475_v34 = vpop.f32.mrf.mxu0  ;;  %v7477_v35 = vpop.f32.mrf.mxu1  ;;  %v1133_v50 = vmul.f32 %v7424_v55, %v7471_v29  ;;  %v10912_v23 = vld [vmem:[#allocation37_spill] sm:$0xff] }
 0x110   :  { %10895 = vst [vmem:[#allocation44_spill] sm:$0xff] %v7475_v34  ;;  %10896 = vst [vmem:[#allocation45_spill] sm:$0xff] %v7477_v35  ;;  %1191 = vadd.xlane.f32.xlu1 %v1190_v31  ;;  %v1194_v38 = vadd.f32 %v1193_v33, %v1129_v32  ;;  %v1132_v39 = vmul.f32 %v7417_v52, %v7475_v34  ;;  %v1134_v5 = vmul.f32 %v7433_v59, %v7477_v35 }
 0x111   :  { %v7485_v40 = vpop.f32.mrf.mxu0  ;;  %v7487_v46 = vpop.f32.mrf.mxu1 }
 0x112   :  { %10897 = vst [vmem:[#allocation46_spill] sm:$0xff] %v7487_v46  ;;  %v1195_v49 = vadd.f32 %v1194_v38, %v1130_v37  ;;  %v1198_v58 = vadd.f32 %v1132_v39, %v1131_v36  ;;  %v1135_v0 = vmul.f32 %v7414_v51, %v7485_v40  ;;  %v1137_v13 = vmul.f32 %v7424_v55, %v7487_v46 }
 0x113   :  { %v7491_v60 = vpop.f32.mrf.mxu0  ;;  %v7493_v63 = vpop.f32.mrf.mxu1 }
 0x114   :  { %1196 = vadd.xlane.f32.xlu1 %v1195_v49  ;;  %v1199_v6 = vadd.f32 %v1198_v58, %v1133_v50  ;;  %v1136_v7 = vmul.f32 %v7417_v52, %v7491_v60  ;;  %v1138_v31 = vmul.f32 %v7433_v59, %v7493_v63 }
 0x115   :  { %v7501_v8 = vpop.f32.mrf.mxu0  ;;  %v7503_v11 = vpop.f32.mrf.mxu1 }
 0x116   :  { %v1200_v12 = vadd.f32 %v1199_v6, %v1134_v5  ;;  %v1203_v21 = vadd.f32 %v1136_v7, %v1135_v0  ;;  %v1139_v27 = vmul.f32 %v7414_v51, %v7501_v8  ;;  %v1141_v39 = vmul.f32 %v7424_v55, %v7503_v11  ;;  %v1263_v7 = vld [vmem:[%s10650_s20] sm:$0xf]  ;;  %s11208_s20 = sld [smem:[#allocation82_spill]] }
 0x117   :  { %v7507_v22 = vpop.f32.mrf.mxu0  ;;  %v7509_v25 = vpop.f32.mrf.mxu1  ;;  %v7565_v17 = vrot.slane %v1263_v7, %v7407_v48 }
 0x118   :  { %1201 = vadd.xlane.f32.xlu0 %v1200_v12  ;;  %v1204_v32 = vadd.f32 %v1203_v21, %v1137_v13  ;;  %v1140_v33 = vmul.f32 %v7417_v52, %v7507_v22  ;;  %v1142_v5 = vmul.f32 %v7433_v59, %v7509_v25 }
 0x119   :  { %v7517_v36 = vpop.f32.mrf.mxu0  ;;  %v7519_v37 = vpop.f32.mrf.mxu1 }
 0x11a   :  { %v1205_v38 = vadd.f32 %v1204_v32, %v1138_v31  ;;  %v1208_v49 = vadd.f32 %v1140_v33, %v1139_v27  ;;  %v1143_v0 = vmul.f32 %v7414_v51, %v7517_v36  ;;  %v1145_v31 = vmul.f32 %v7424_v55, %v7519_v37 }
 0x11b   :  { %v7523_v50 = vpop.f32.mrf.mxu0  ;;  %v7525_v58 = vpop.f32.mrf.mxu1 }
 0x11c   :  { %1206 = vadd.xlane.f32.xlu1 %v1205_v38  ;;  %v1209_v6 = vadd.f32 %v1208_v49, %v1141_v39  ;;  %v1144_v12 = vmul.f32 %v7417_v52, %v7523_v50  ;;  %v7547_v39 = vrot.slane %v1263_v7, %v7390_v43  ;;  %v7550_v49 = vrot.slane %v1263_v7, %v7393_v44 }
 0x11d   :  { %v7536_v13 = vpop.f32.mrf.mxu0  ;;  %v7538_v21 = vpop.f32.mrf.mxu1 }
 0x11e   :  { %v1210_v27 = vadd.f32 %v1209_v6, %v1142_v5  ;;  %v1213_v32 = vadd.f32 %v1144_v12, %v1143_v0  ;;  %v1147_v41 = vmul.f32 %v7414_v51, %v7536_v13  ;;  %v1146_v5 = vmul.f32 %v7433_v59, %v7525_v58 }
 0x11f   :  { %v7542_v33 = vpop.f32.mrf.mxu0  ;;  %v7544_v38 = vpop.f32.mrf.mxu1  ;;  %v1149_v3 = vmul.f32 %v7424_v55, %v7538_v21 }
 0x120   :  { %1211 = vadd.xlane.f32.xlu1 %v1210_v27  ;;  %v1214_v6 = vadd.f32 %v1213_v32, %v1145_v31  ;;  %v1148_v0 = vmul.f32 %v7417_v52, %v7542_v33  ;;  %v7572_v31 = vrot.slane %v1263_v7, %v7396_v45  ;;  %v1150_v32 = vmul.f32 %v7433_v59, %v7544_v38 }
 0x121   :  { %v7558_v12 = vpop.f32.mrf.mxu0  ;;  %v7560_v2 = vpop.f32.mrf.mxu1 }
 0x122   :  { %v1215_v30 = vadd.f32 %v1214_v6, %v1146_v5  ;;  %v1218_v42 = vadd.f32 %v1148_v0, %v1147_v41  ;;  %v1317_v52 = vmul.f32 %v7547_v39, %v7558_v12  ;;  %v1319_v7 = vmul.f32 %v7565_v17, %v7560_v2 }
 0x123   :  { %v7567_v51 = vpop.f32.mrf.mxu0  ;;  %v7569_v27 = vpop.f32.mrf.mxu1 }
 0x124   :  { %1216 = vadd.xlane.f32.xlu0 %v1215_v30  ;;  %v1219_v5 = vadd.f32 %v1218_v42, %v1149_v3  ;;  %v1318_v41 = vmul.f32 %v7550_v49, %v7567_v51  ;;  %v1320_v3 = vmul.f32 %v7572_v31, %v7569_v27 }
 0x125   :  { %v7580_v55 = vpop.f32.mrf.mxu0  ;;  %v7582_v6 = vpop.f32.mrf.mxu1 }
 0x126   :  { %v1220_v0 = vadd.f32 %v1219_v5, %v1150_v32  ;;  %v1389_v19 = vadd.f32 %v1318_v41, %v1317_v52  ;;  %v1321_v30 = vmul.f32 %v7547_v39, %v7580_v55  ;;  %v1323_v41 = vmul.f32 %v7565_v17, %v7582_v6 }
 0x127   :  { %v7586_v15 = vpop.f32.mrf.mxu0  ;;  %v7588_v16 = vpop.f32.mrf.mxu1 }
 0x128   :  { %1221 = vadd.xlane.f32.xlu1 %v1220_v0  ;;  %v1390_v42 = vadd.f32 %v1389_v19, %v1319_v7  ;;  %v1322_v59 = vmul.f32 %v7550_v49, %v7586_v15  ;;  %v1324_v19 = vmul.f32 %v7572_v31, %v7588_v16 }
 0x129   :  { %v7596_v32 = vpop.f32.mrf.mxu0  ;;  %v7598_v5 = vpop.f32.mrf.mxu1 }
 0x12a   :  { %v1391_v52 = vadd.f32 %v1390_v42, %v1320_v3  ;;  %v1394_v45 = vadd.f32 %v1322_v59, %v1321_v30  ;;  %v1325_v0 = vmul.f32 %v7547_v39, %v7596_v32  ;;  %v1327_v59 = vmul.f32 %v7565_v17, %v7598_v5 }
 0x12b   :  { %v7602_v44 = vpop.f32.mrf.mxu0  ;;  %v7604_v54 = vpop.f32.mrf.mxu1 }
 0x12c   :  { %1392 = vadd.xlane.f32.xlu0 %v1391_v52  ;;  %v1395_v7 = vadd.f32 %v1394_v45, %v1323_v41  ;;  %v1326_v53 = vmul.f32 %v7550_v49, %v7602_v44  ;;  %v1328_v45 = vmul.f32 %v7572_v31, %v7604_v54 }
 0x12d   :  { %v7612_v3 = vpop.f32.mrf.mxu0  ;;  %v7614_v42 = vpop.f32.mrf.mxu1 }
 0x12e   :  { %v1396_v30 = vadd.f32 %v1395_v7, %v1324_v19  ;;  %v1399_v48 = vadd.f32 %v1326_v53, %v1325_v0  ;;  %v1329_v52 = vmul.f32 %v7547_v39, %v7612_v3  ;;  %v1331_v0 = vmul.f32 %v7565_v17, %v7614_v42 }
 0x12f   :  { %v7618_v47 = vpop.f32.mrf.mxu0  ;;  %v7620_v43 = vpop.f32.mrf.mxu1 }
 0x130   :  { %1397 = vadd.xlane.f32.xlu0 %v1396_v30  ;;  %v1400_v41 = vadd.f32 %v1399_v48, %v1327_v59  ;;  %v1330_v57 = vmul.f32 %v7550_v49, %v7618_v47  ;;  %v1332_v48 = vmul.f32 %v7572_v31, %v7620_v43 }
 0x131   :  { %v7628_v19 = vpop.f32.mrf.mxu0  ;;  %v7630_v7 = vpop.f32.mrf.mxu1 }
 0x132   :  { %v1401_v53 = vadd.f32 %v1400_v41, %v1328_v45  ;;  %v1404_v56 = vadd.f32 %v1330_v57, %v1329_v52  ;;  %v1333_v30 = vmul.f32 %v7547_v39, %v7628_v19  ;;  %v1335_v52 = vmul.f32 %v7565_v17, %v7630_v7 }
 0x133   :  { %v7634_v62 = vpop.f32.mrf.mxu0  ;;  %v7636_v61 = vpop.f32.mrf.mxu1 }
 0x134   :  { %1402 = vadd.xlane.f32.xlu1 %v1401_v53  ;;  %v1405_v59 = vadd.f32 %v1404_v56, %v1331_v0  ;;  %v1334_v4 = vmul.f32 %v7550_v49, %v7634_v62  ;;  %v1336_v0 = vmul.f32 %v7572_v31, %v7636_v61 }
 0x135   :  { %v7644_v45 = vpop.f32.mrf.mxu0  ;;  %v7646_v41 = vpop.f32.mrf.mxu1 }
 0x136   :  { %v1406_v57 = vadd.f32 %v1405_v59, %v1332_v48  ;;  %v1409_v1 = vadd.f32 %v1334_v4, %v1333_v30  ;;  %v1337_v53 = vmul.f32 %v7547_v39, %v7644_v45  ;;  %v1339_v4 = vmul.f32 %v7565_v17, %v7646_v41 }
 0x137   :  { %v7650_v10 = vpop.f32.mrf.mxu0  ;;  %v7652_v9 = vpop.f32.mrf.mxu1 }
 0x138   :  { %1407 = vadd.xlane.f32.xlu1 %v1406_v57  ;;  %v1338_v56 = vmul.f32 %v7550_v49, %v7650_v10  ;;  %v1410_v18 = vadd.f32 %v1409_v1, %v1335_v52  ;;  %v1340_v1 = vmul.f32 %v7572_v31, %v7652_v9 }
 0x139   :  { %v7660_v48 = vpop.f32.mrf.mxu0  ;;  %v7662_v59 = vpop.f32.mrf.mxu1 }
 0x13a   :  { %v1414_v30 = vadd.f32 %v1338_v56, %v1337_v53  ;;  %v7666_v14 = vadd.f32 %v1410_v18, %v1336_v0  ;;  %v1341_v28 = vmul.f32 %v7547_v39, %v7660_v48  ;;  %v1343_v53 = vmul.f32 %v7565_v17, %v7662_v59 }
 0x13b   :  { %v7668_v29 = vpop.f32.mrf.mxu0  ;;  %v7670_v57 = vpop.f32.mrf.mxu1 }
 0x13c   :  { %10898 = vst [vmem:[#allocation47_spill] sm:$0xff] %v7666_v14  ;;  %v1415_v52 = vadd.f32 %v1414_v30, %v1339_v4  ;;  %v1342_v35 = vmul.f32 %v7550_v49, %v7668_v29  ;;  %v1344_v4 = vmul.f32 %v7572_v31, %v7670_v57 }
 0x13d   :  { %v7678_v34 = vpop.f32.mrf.mxu0  ;;  %v7680_v46 = vpop.f32.mrf.mxu1 }
 0x13e   :  { %v7682_v18 = vadd.f32 %v1415_v52, %v1340_v1  ;;  %v1419_v56 = vadd.f32 %v1342_v35, %v1341_v28  ;;  %v1345_v30 = vmul.f32 %v7547_v39, %v7678_v34  ;;  %v1347_v35 = vmul.f32 %v7565_v17, %v7680_v46  ;;  %v7719_v17 = vld [vmem:[%s10867_s1 + $0x50] sm:$0xff] }
 0x13f   :  { %v7686_v0 = vpop.f32.mrf.mxu0  ;;  %v7688_v14 = vpop.f32.mrf.mxu1  ;;  %10899 = vst [vmem:[#allocation48_spill] sm:$0xff] %v7719_v17 }
 0x140   :  { %1467 = vmatprep.subr.mxu0 %v7686_v0  ;;  %1537 = vmatprep.subr.mxu1 %v7688_v14  ;;  %v1420_v1 = vadd.f32 %v1419_v56, %v1343_v53  ;;  %v1346_v52 = vmul.f32 %v7550_v49, %v7686_v0  ;;  %v1348_v53 = vmul.f32 %v7572_v31, %v7688_v14  ;;  %v10900_v31 = vmov 0  }
 0x141   :  { %1468 = vmatpush1.xpose.msra.mxu0 %v7678_v34  ;;  %1538 = vmatpush1.xpose.msra.mxu1 %v7680_v46 }
 0x142   :  { %1469 = vmatprep.subr.mxu0 %v7668_v29  ;;  %1539 = vmatprep.subr.mxu1 %v7670_v57  ;;  %v7702_v28 = vadd.f32 %v1420_v1, %v1344_v4  ;;  %v1424_v39 = vadd.f32 %v1346_v52, %v1345_v30  ;;  %v269_v4 = vsel %vm252_vm4, 1, %v10900_v31  ;;  %v270_v30 = vsel %vm253_vm5, 1, %v10900_v31  ;;  %v7746_v1 = vld [vmem:[%s10867_s1 + $0x48] sm:$0xff] }
 0x143   :  { %10901 = vst [vmem:[#allocation49_spill] sm:$0xff] %v7746_v1  ;;  %v10903_v52 = vld [vmem:[#allocation44_spill] sm:$0xff]  ;;  %v10916_v31 = vld [vmem:[#allocation33_spill] sm:$0xff] }
 0x144   :  { %v1425_v56 = vadd.f32 %v1424_v39, %v1347_v35  ;;  %v10904_v35 = vld [vmem:[#allocation45_spill] sm:$0xff]  ;;  %v10905_v39 = vld [vmem:[#allocation42_spill] sm:$0xff] }
 0x145   :  { %1470 = vmatpush1.xpose.msra.mxu0 %v7660_v48  ;;  %1540 = vmatpush1.xpose.msra.mxu1 %v7662_v59 }
 0x146   :  { %1471 = vmatprep.subr.mxu0 %v7650_v10  ;;  %1541 = vmatprep.subr.mxu1 %v7652_v9  ;;  %v7713_v49 = vadd.f32 %v1425_v56, %v1348_v53  ;;  %v10906_v53 = vld [vmem:[#allocation43_spill] sm:$0xff]  ;;  %v10907_v56 = vld [vmem:[#allocation40_spill] sm:$0xff] }
 0x147   :  { %386 = vperm.xlu0 %6652, %v7268_v20   ;;  %v10915_v20 = vld [vmem:[#allocation32_spill] sm:$0xff] }
 0x149   :  { %1472 = vmatpush1.xpose.msra.mxu0 %v7644_v45  ;;  %1542 = vmatpush1.xpose.msra.mxu1 %v7646_v41 }
 0x14a   :  { %198 = vperm.xlu1 %6650, %v7719_v17   ;;  %1473 = vmatprep.subr.mxu0 %v7634_v62 }
 0x14b   :  { %1543 = vmatprep.subr.mxu1 %v7636_v61  ;;  %298 = vperm.xlu0 %6652, %v269_v4   ;;  %v10908_v4 = vld [vmem:[#allocation41_spill] sm:$0xff] }
 0x14d   :  { %1474 = vmatpush1.xpose.msra.mxu0 %v7628_v19  ;;  %1544 = vmatpush1.xpose.msra.mxu1 %v7630_v7 }
 0x14e   :  { %1475 = vmatprep.subr.mxu0 %v7618_v47  ;;  %1545 = vmatprep.subr.mxu1 %v7620_v43 }
 0x14f   :  { %301 = vperm.xlu0 %6652, %v270_v30   ;;  %v10909_v30 = vld [vmem:[#allocation38_spill] sm:$0xff] }
 0x151   :  { %1476 = vmatpush1.xpose.msra.mxu0 %v7612_v3  ;;  %1546 = vmatpush1.xpose.msra.mxu1 %v7614_v42 }
 0x152   :  { %1477 = vmatprep.subr.mxu0 %v7602_v44  ;;  %1547 = vmatprep.subr.mxu1 %v7604_v54 }
 0x153   :  { %394 = vperm.xlu0 %6652, %v7292_v24   ;;  %v10902_v24 = vld [vmem:[#allocation46_spill] sm:$0xff] }
 0x155   :  { %1478 = vmatpush1.xpose.msra.mxu0 %v7596_v32  ;;  %1548 = vmatpush1.xpose.msra.mxu1 %v7598_v5 }
 0x156   :  { %1479 = vmatprep.subr.mxu0 %v7586_v15  ;;  %1549 = vmatprep.subr.mxu1 %v7588_v16 }
 0x157   :  { %398 = vperm.xlu0 %6652, %v7303_v26   ;;  %v10914_v26 = vld [vmem:[#allocation35_spill] sm:$0xff] }
 0x159   :  { %1480 = vmatpush1.xpose.msra.mxu0 %v7580_v55  ;;  %1550 = vmatpush1.xpose.msra.mxu1 %v7582_v6 }
 0x15a   :  { %1481 = vmatprep.subr.mxu0 %v7567_v51  ;;  %1551 = vmatprep.subr.mxu1 %v7569_v27 }
 0x15b   :  { %402 = vperm.xlu0 %6652, %v7746_v1   ;;  %v10911_v1 = vld [vmem:[#allocation36_spill] sm:$0xff] }
 0x15d   :  { %1482 = vmatpush1.xpose.msra.mxu0 %v7558_v12  ;;  %1552 = vmatpush1.xpose.msra.mxu1 %v7560_v2 }
 0x15e   :  { %1483 = vmatprep.subr.mxu0 %v7542_v33  ;;  %1553 = vmatprep.subr.mxu1 %v7544_v38 }
 0x15f   :  { %406 = vperm.xlu0 %6652, %v7719_v17   ;;  %v10910_v17 = vld [vmem:[#allocation39_spill] sm:$0xff] }
 0x161   :  { %1484 = vmatpush1.xpose.msra.mxu0 %v7536_v13  ;;  %1554 = vmatpush1.xpose.msra.mxu1 %v7538_v21 }
 0x162   :  { %1485 = vmatprep.subr.mxu0 %v7523_v50  ;;  %1555 = vmatprep.subr.mxu1 %v7525_v58 }
 0x165   :  { %1486 = vmatpush1.xpose.msra.mxu0 %v7517_v36  ;;  %1556 = vmatpush1.xpose.msra.mxu1 %v7519_v37 }
 0x166   :  { %1487 = vmatprep.subr.mxu0 %v7507_v22  ;;  %1557 = vmatprep.subr.mxu1 %v7509_v25 }
 0x169   :  { %1488 = vmatpush1.xpose.msra.mxu0 %v7501_v8  ;;  %1558 = vmatpush1.xpose.msra.mxu1 %v7503_v11 }
 0x16a   :  { %1489 = vmatprep.subr.mxu0 %v7491_v60  ;;  %1559 = vmatprep.subr.mxu1 %v7493_v63 }
 0x16d   :  { %1490 = vmatpush1.xpose.msra.mxu0 %v7485_v40  ;;  %1560 = vmatpush1.xpose.msra.mxu1 %v10902_v24 }
 0x16e   :  { %1417 = vadd.xlane.f32.xlu1 %v7682_v18  ;;  %1491 = vmatprep.subr.mxu0 %v10903_v52  ;;  %v10913_v18 = vld [vmem:[#allocation34_spill] sm:$0xff] }
 0x16f   :  { %1561 = vmatprep.subr.mxu1 %v10904_v35 }
 0x171   :  { %1492 = vmatpush1.xpose.msra.mxu0 %v10905_v39  ;;  %1562 = vmatpush1.xpose.msra.mxu1 %v10906_v53  ;;  %v10920_v53 = vld [vmem:[#allocation29_spill] sm:$0xff] }
 0x172   :  { %1493 = vmatprep.subr.mxu0 %v10907_v56  ;;  %1563 = vmatprep.subr.mxu1 %v10908_v4  ;;  %v7790_v4 = vld [vmem:[%s10867_s1 + $0x60] sm:$0xff] }
 0x173   :  { %10917 = vst [vmem:[#allocation46_spill] sm:$0xff] %v7790_v4  ;;  %v10919_v56 = vld [vmem:[#allocation28_spill] sm:$0xff] }
 0x175   :  { %1494 = vmatpush1.xpose.msra.mxu0 %v10909_v30  ;;  %1564 = vmatpush1.xpose.msra.mxu1 %v10910_v17  ;;  %v10918_v30 = vld [vmem:[#allocation25_spill] sm:$0xff] }
 0x176   :  { %1495 = vmatprep.subr.mxu0 %v10911_v1  ;;  %1565 = vmatprep.subr.mxu1 %v10912_v23  ;;  %v1450_v17 = vrot.slane %v10919_v56, %v10918_v30  ;;  %v1458_v1 = vrot.slane %v10919_v56, %v10920_v53  ;;  %v10921_v23 = vld [vmem:[#allocation30_spill] sm:$0xff]  ;;  %v10925_v53 = vld [vmem:[#allocation27_spill] sm:$0xff] }
 0x177   :  { %v10924_v56 = vld [vmem:[#allocation26_spill] sm:$0xff] }
 0x179   :  { %1496 = vmatpush1.xpose.msra.mxu0 %v10913_v18  ;;  %1566 = vmatpush1.xpose.msra.mxu1 %v10914_v26  ;;  %v10922_v18 = vld [vmem:[#allocation31_spill] sm:$0xff] }
 0x17a   :  { %1497 = vmatprep.subr.mxu0 %v10915_v20  ;;  %1567 = vmatprep.subr.mxu1 %v10916_v31  ;;  %v7801_v20 = vld [vmem:[%s10651_s21] sm:$0xf] }
 0x17b   :  { %v10923_v31 = vld [vmem:[#allocation47_spill] sm:$0xff] }
 0x17d   :  { %1498 = vmatpush1.xpose.msra.mxu0 %v10921_v23  ;;  %1568 = vmatpush1.xpose.msra.mxu1 %v10922_v18  ;;  %v1616_v23 = vrot.slane %v7801_v20, %v10924_v56  ;;  %v1624_v18 = vrot.slane %v7801_v20, %v10925_v53  ;;  %v10934_v53 = vld [vmem:[#allocation37_spill] sm:$0xff] }
 0x17e   :  { %1412 = vadd.xlane.f32.xlu0 %v10923_v31  ;;  %1629 = vmatprep.subr.mxu0 %v7686_v0  ;;  %v10926_v31 = vmov 1   ;;  %v10935_v56 = vld [vmem:[#allocation17_spill] sm:$0xff] }
 0x17f   :  { %1699 = vmatprep.subr.mxu1 %v7688_v14  ;;  %208 = vperm.xlu1 %6650, %v7790_v4   ;;  %vm248_vm6 = vcmp.eq.f32.partialorder %v10935_v56, 0.0  ;;  %v10936_v4 = vld [vmem:[#allocation20_spill] sm:$0xff] }
 0x180   :  { %1532 = vmatmul.mubr.f32.vlgmr.msra.gmra.mxu0 %v1450_v17  ;;  %1602 = vmatmul.mubr.f32.vlgmr.msra.gmra.mxu1 %v1458_v1  ;;  %v10930_v17 = vld [vmem:[#allocation18_spill] sm:$0xff] }
 0x181   :  { %1630 = vmatpush1.xpose.msra.mxu0 %v7678_v34  ;;  %1700 = vmatpush1.xpose.msra.mxu1 %v7680_v46  ;;  %v10931_v1 = vld [vmem:[#allocation38_spill] sm:$0xff] }
 0x182   :  { %1422 = vadd.xlane.f32.xlu0 %v7702_v28  ;;  %1631 = vmatprep.subr.mxu0 %v7668_v29  ;;  %v10928_v28 = vld [vmem:[#allocation40_spill] sm:$0xff] }
 0x183   :  { %1701 = vmatprep.subr.mxu1 %v7670_v57  ;;  %6653 = vset.pattern.permute.xlu1 %v10926_v31  ;;  %v10933_v31 = vld [vmem:[#allocation36_spill] sm:$0xff] }
 0x184   :  { %1693 = vmatprep.mubr.f32.mxu0 %v1616_v23  ;;  %1763 = vmatprep.mubr.f32.mxu1 %v1624_v18  ;;  %v10927_v23 = vld [vmem:[#allocation43_spill] sm:$0xff] }
 0x185   :  { %1632 = vmatpush1.xpose.msra.mxu0 %v7660_v48  ;;  %1702 = vmatpush1.xpose.msra.mxu1 %v7662_v59  ;;  %v10932_v18 = vld [vmem:[#allocation39_spill] sm:$0xff] }
 0x186   :  { %1633 = vmatprep.subr.mxu0 %v7650_v10  ;;  %1703 = vmatprep.subr.mxu1 %v7652_v9 }
 0x189   :  { %1634 = vmatpush1.xpose.msra.mxu0 %v7644_v45  ;;  %1704 = vmatpush1.xpose.msra.mxu1 %v7646_v41 }
 0x18a   :  { %1635 = vmatprep.subr.mxu0 %v7634_v62  ;;  %1705 = vmatprep.subr.mxu1 %v7636_v61 }
 0x18d   :  { %1636 = vmatpush1.xpose.msra.mxu0 %v7628_v19  ;;  %1706 = vmatpush1.xpose.msra.mxu1 %v7630_v7 }
 0x18e   :  { %1637 = vmatprep.subr.mxu0 %v7618_v47  ;;  %1707 = vmatprep.subr.mxu1 %v7620_v43 }
 0x191   :  { %1638 = vmatpush1.xpose.msra.mxu0 %v7612_v3  ;;  %1708 = vmatpush1.xpose.msra.mxu1 %v7614_v42 }
 0x192   :  { %1639 = vmatprep.subr.mxu0 %v7602_v44  ;;  %1709 = vmatprep.subr.mxu1 %v7604_v54 }
 0x195   :  { %1640 = vmatpush1.xpose.msra.mxu0 %v7596_v32  ;;  %1710 = vmatpush1.xpose.msra.mxu1 %v7598_v5 }
 0x196   :  { %1641 = vmatprep.subr.mxu0 %v7586_v15  ;;  %1711 = vmatprep.subr.mxu1 %v7588_v16 }
 0x199   :  { %1642 = vmatpush1.xpose.msra.mxu0 %v7580_v55  ;;  %1712 = vmatpush1.xpose.msra.mxu1 %v7582_v6 }
 0x19a   :  { %1643 = vmatprep.subr.mxu0 %v7567_v51  ;;  %1713 = vmatprep.subr.mxu1 %v7569_v27 }
 0x19d   :  { %1644 = vmatpush1.xpose.msra.mxu0 %v7558_v12  ;;  %1714 = vmatpush1.xpose.msra.mxu1 %v7560_v2 }
 0x19e   :  { %1645 = vmatprep.subr.mxu0 %v7542_v33  ;;  %1715 = vmatprep.subr.mxu1 %v7544_v38 }
 0x1a1   :  { %1646 = vmatpush1.xpose.msra.mxu0 %v7536_v13  ;;  %1716 = vmatpush1.xpose.msra.mxu1 %v7538_v21 }
 0x1a2   :  { %1647 = vmatprep.subr.mxu0 %v7523_v50  ;;  %1717 = vmatprep.subr.mxu1 %v7525_v58 }
 0x1a3   :  { %1427 = vadd.xlane.f32.xlu1 %v7713_v49  ;;  %v10929_v49 = vld [vmem:[#allocation41_spill] sm:$0xff] }
 0x1a5   :  { %1648 = vmatpush1.xpose.msra.mxu0 %v7517_v36  ;;  %1718 = vmatpush1.xpose.msra.mxu1 %v7519_v37 }
 0x1a6   :  { %1649 = vmatprep.subr.mxu0 %v7507_v22  ;;  %1719 = vmatprep.subr.mxu1 %v7509_v25 }
 0x1a9   :  { %1650 = vmatpush1.xpose.msra.mxu0 %v7501_v8  ;;  %1720 = vmatpush1.xpose.msra.mxu1 %v7503_v11 }
 0x1aa   :  { %1651 = vmatprep.subr.mxu0 %v7491_v60  ;;  %1721 = vmatprep.subr.mxu1 %v7493_v63 }
 0x1ad   :  { %1652 = vmatpush1.xpose.msra.mxu0 %v7485_v40  ;;  %1722 = vmatpush1.xpose.msra.mxu1 %v10902_v24 }
 0x1ae   :  { %1653 = vmatprep.subr.mxu0 %v10903_v52  ;;  %1723 = vmatprep.subr.mxu1 %v10904_v35 }
 0x1b1   :  { %1654 = vmatpush1.xpose.msra.mxu0 %v10905_v39  ;;  %1724 = vmatpush1.xpose.msra.mxu1 %v10927_v23  ;;  %v10937_v39 = vld [vmem:[#allocation34_spill] sm:$0xff]  ;;  %v10939_v23 = vld [vmem:[#allocation32_spill] sm:$0xff] }
 0x1b2   :  { %1655 = vmatprep.subr.mxu0 %v10928_v28  ;;  %1725 = vmatprep.subr.mxu1 %v10929_v49  ;;  %v10938_v28 = vmov 0  }
 0x1b3   :  { %v265_v49 = vsel %vm248_vm6, 1, %v10938_v28 }
 0x1b4   :  { %366 = vperm.xlu1 %6653, %v10930_v17   ;;  %v10940_v17 = vld [vmem:[#allocation33_spill] sm:$0xff] }
 0x1b5   :  { %1656 = vmatpush1.xpose.msra.mxu0 %v10931_v1  ;;  %1726 = vmatpush1.xpose.msra.mxu1 %v10932_v18  ;;  %v10941_v18 = vld [vmem:[#allocation29_spill] sm:$0xff]  ;;  %v10942_v1 = vld [vmem:[#allocation30_spill] sm:$0xff] }
 0x1b6   :  { %1657 = vmatprep.subr.mxu0 %v10933_v31  ;;  %1727 = vmatprep.subr.mxu1 %v10934_v53  ;;  %v1612_v31 = vrot.slane %v7801_v20, %v10918_v30  ;;  %v1620_v53 = vrot.slane %v7801_v20, %v10941_v18 }
 0x1b8   :  { %370 = vperm.xlu1 %6653, %v10936_v4   ;;  %v10943_v4 = vld [vmem:[#allocation31_spill] sm:$0xff] }
 0x1b9   :  { %1658 = vmatpush1.xpose.msra.mxu0 %v10937_v39  ;;  %1728 = vmatpush1.xpose.msra.mxu1 %v10914_v26  ;;  %v10944_v26 = vld [vmem:[#allocation19_spill] sm:$0xff] }
 0x1ba   :  { %1659 = vmatprep.subr.mxu0 %v10939_v23  ;;  %1729 = vmatprep.subr.mxu1 %v10940_v17  ;;  %vm249_vm7 = vcmp.eq.f32.partialorder %v10944_v26, 0.0  ;;  %v10945_v26 = vld [vmem:[#allocation21_spill] sm:$0xff] }
 0x1bb   :  { %v266_v20 = vsel %vm249_vm7, 1, %v10938_v28  ;;  %vm251_vm8 = vcmp.eq.f32.partialorder %v10945_v26, 0.0  ;;  %v129_v26 = vld [vmem:[%s10961_s22] sm:$0xff] }
 0x1bc   :  { %286 = vperm.xlu1 %6653, %v265_v49   ;;  %vm262_vm0 = vcmp.eq.f32.partialorder %v129_v26, 0.0  ;;  %vm465_vm3 = vcmp.gt.f32.partialorder %v129_v26, 0.0 }
 0x1bd   :  { %1660 = vmatpush1.xpose.msra.mxu0 %v10942_v1  ;;  %1730 = vmatpush1.xpose.msra.mxu1 %v10943_v4 }
 0x1be   :  { %2046 = vmatprep.subr.mxu0 %v7686_v0  ;;  %2207 = vmatprep.subr.mxu1 %v7688_v14  ;;  %v268_v14 = vsel %vm251_vm8, 1, %v10938_v28 }
 0x1c0   :  { %1694 = vmatmul.mubr.f32.vlgmr.msra.gmra.mxu0 %v1612_v31  ;;  %1764 = vmatmul.mubr.f32.vlgmr.msra.gmra.mxu1 %v1620_v53 }
 0x1c1   :  { %374 = vperm.xlu1 %6653, %v10935_v56   ;;  %2047 = vmatpush1.msra.mxu0 %v7678_v34  ;;  %v10953_v34 = vld [vmem:[#allocation41_spill] sm:$0xff] }
 0x1c2   :  { %2208 = vmatpush1.msra.mxu1 %v7680_v46  ;;  %2048 = vmatprep.subr.mxu0 %v7668_v29  ;;  %v10955_v46 = vld [vmem:[#allocation39_spill] sm:$0xff] }
 0x1c3   :  { %2209 = vmatprep.subr.mxu1 %v7670_v57  ;;  %2049 = vmatpush1.msra.mxu0 %v7660_v48 }
 0x1c4   :  { %2210 = vmatpush1.msra.mxu1 %v7662_v59  ;;  %2050 = vmatprep.subr.mxu0 %v7650_v10  ;;  %v10952_v10 = vld [vmem:[#allocation40_spill] sm:$0xff] }
 0x1c5   :  { %2211 = vmatprep.subr.mxu1 %v7652_v9  ;;  %289 = vperm.xlu1 %6653, %v266_v20   ;;  %v10951_v9 = vld [vmem:[#allocation43_spill] sm:$0xff] }
 0x1c6   :  { %2051 = vmatpush1.msra.mxu0 %v7644_v45  ;;  %2212 = vmatpush1.msra.mxu1 %v7646_v41 }
 0x1c7   :  { %2052 = vmatprep.subr.mxu0 %v7634_v62  ;;  %2213 = vmatprep.subr.mxu1 %v7636_v61  ;;  %v10946_v61 = vld [vmem:[#allocation23_spill] sm:$0xff]  ;;  %v10950_v62 = vld [vmem:[#allocation42_spill] sm:$0xff] }
 0x1c8   :  { %2053 = vmatpush1.msra.mxu0 %v7628_v19  ;;  %2214 = vmatpush1.msra.mxu1 %v7630_v7  ;;  %vm254_vm9 = vcmp.eq.f32.partialorder %v10946_v61, 0.0 }
 0x1c9   :  { %2054 = vmatprep.subr.mxu0 %v7618_v47  ;;  %2215 = vmatprep.subr.mxu1 %v7620_v43  ;;  %v10947_v43 = vld [vmem:[#allocation22_spill] sm:$0xff] }
 0x1ca   :  { %295 = vperm.xlu1 %6653, %v268_v14   ;;  %2055 = vmatpush1.msra.mxu0 %v7612_v3  ;;  %v7940_v47 = vld [vmem:[%s10867_s1 + $0x58] sm:$0xff] }
 0x1cb   :  { %2216 = vmatpush1.msra.mxu1 %v7614_v42  ;;  %2056 = vmatprep.subr.mxu0 %v7602_v44  ;;  %v271_v44 = vsel %vm254_vm9, 1, %v10938_v28  ;;  %vm257_vm12 = vcmp.eq.f32.partialorder %v7940_v47, 0.0 }
 0x1cc   :  { %2217 = vmatprep.subr.mxu1 %v7604_v54  ;;  %2057 = vmatpush1.msra.mxu0 %v7596_v32  ;;  %v274_v29 = vsel %vm257_vm12, 1, %v10938_v28 }
 0x1cd   :  { %2218 = vmatpush1.msra.mxu1 %v7598_v5  ;;  %2058 = vmatprep.subr.mxu0 %v7586_v15  ;;  %v10948_v15 = vld [vmem:[#allocation49_spill] sm:$0xff] }
 0x1ce   :  { %2219 = vmatprep.subr.mxu1 %v7588_v16  ;;  %390 = vperm.xlu1 %6653, %v10947_v43   ;;  %vm255_vm10 = vcmp.eq.f32.partialorder %v10948_v15, 0.0  ;;  %v343_v43 = vsel %vm262_vm0, 1, %v10938_v28 }
 0x1cf   :  { %2059 = vmatpush1.msra.mxu0 %v7580_v55  ;;  %2220 = vmatpush1.msra.mxu1 %v7582_v6  ;;  %v272_v16 = vsel %vm255_vm10, 1, %v10938_v28 }
 0x1d0   :  { %2060 = vmatprep.subr.mxu0 %v7567_v51  ;;  %2221 = vmatprep.subr.mxu1 %v7569_v27 }
 0x1d1   :  { %2061 = vmatpush1.msra.mxu0 %v7558_v12  ;;  %2222 = vmatpush1.msra.mxu1 %v7560_v2  ;;  %v10949_v2 = vld [vmem:[#allocation48_spill] sm:$0xff] }
 0x1d2   :  { %2062 = vmatprep.subr.mxu0 %v7542_v33  ;;  %2223 = vmatprep.subr.mxu1 %v7544_v38  ;;  %vm256_vm11 = vcmp.eq.f32.partialorder %v10949_v2, 0.0  ;;  %v7994_v38 = vpop.permute.xlu0 %158 }
 0x1d3   :  { %304 = vperm.xlu1 %6653, %v271_v44   ;;  %2063 = vmatpush1.msra.mxu0 %v7536_v13  ;;  %v273_v54 = vsel %vm256_vm11, 1, %v10938_v28  ;;  %v7988_v13 = vpop.permute.xlu1 %148 }
 0x1d4   :  { %2224 = vmatpush1.msra.mxu1 %v7538_v21  ;;  %2064 = vmatprep.subr.mxu0 %v7523_v50  ;;  %v7983_v50 = vld [vmem:[%s10867_s1 + $0x70] sm:$0xff] }
 0x1d5   :  { %2225 = vmatprep.subr.mxu1 %v7525_v58  ;;  %2065 = vmatpush1.msra.mxu0 %v7517_v36  ;;  %v7975_v36 = vld [vmem:[%s10867_s1 + $0x68] sm:$0xff]  ;;  %vm260_vm15 = vcmp.eq.f32.partialorder %v7983_v50, 0.0 }
 0x1d6   :  { %2226 = vmatpush1.msra.mxu1 %v7519_v37  ;;  %2066 = vmatprep.subr.mxu0 %v7507_v22  ;;  %v10960_v22 = vmov 0.0   ;;  %vm259_vm14 = vcmp.eq.f32.partialorder %v7975_v36, 0.0  ;;  %v277_v58 = vsel %vm260_vm15, 1, %v10938_v28  ;;  %v7998_v51 = vpop.permute.xlu0 %163 }
 0x1d7   :  { %2227 = vmatprep.subr.mxu1 %v7509_v25  ;;  %307 = vperm.xlu1 %6653, %v272_v16   ;;  %v276_v37 = vsel %vm259_vm14, 1, %v10938_v28  ;;  %v7990_v21 = vpop.permute.xlu1 %153  ;;  %v347_v16 = vrot.slane %v343_v43, %v10941_v18 }
 0x1d8   :  { %2067 = vmatpush1.msra.mxu0 %v7501_v8  ;;  %2228 = vmatpush1.msra.mxu1 %v7503_v11  ;;  %v10958_v8 = vld [vmem:[#allocation35_spill] sm:$0xff]  ;;  %v10959_v11 = vld [vmem:[#allocation46_spill] sm:$0xff] }
 0x1d9   :  { %2068 = vmatprep.subr.mxu0 %v7491_v60  ;;  %2229 = vmatprep.subr.mxu1 %v7493_v63  ;;  %v10956_v60 = vld [vmem:[#allocation36_spill] sm:$0xff]  ;;  %v10957_v63 = vld [vmem:[#allocation37_spill] sm:$0xff]  ;;  %vm258_vm13 = vcmp.eq.f32.partialorder %v10959_v11, 0.0  ;;  %vm8050_vm1 = vcmp.eq.s32.totalorder %v347_v16, 1 }
 0x1da   :  { %2069 = vmatpush1.msra.mxu0 %v7485_v40  ;;  %2230 = vmatpush1.msra.mxu1 %v10902_v24  ;;  %v10954_v40 = vld [vmem:[#allocation38_spill] sm:$0xff]  ;;  %v275_v25 = vsel %vm258_vm13, 1, %v10938_v28  ;;  %v8002_v55 = vpop.permute.xlu0 %173 }
 0x1db   :  { %2070 = vmatprep.subr.mxu0 %v10903_v52  ;;  %2231 = vmatprep.subr.mxu1 %v10904_v35  ;;  %v7992_v33 = vpop.permute.xlu1 %168 }
 0x1dc   :  { %310 = vperm.xlu1 %6653, %v273_v54   ;;  %2071 = vmatpush1.msra.mxu0 %v10950_v62  ;;  %v8048_v62 = vrot.slane %v129_v26, %v10941_v18 }
 0x1dd   :  { %2232 = vmatpush1.msra.mxu1 %v10951_v9  ;;  %2072 = vmatprep.subr.mxu0 %v10952_v10  ;;  %v10962_v9 = vmov 0  ;;  %v10964_v10 = vld [vmem:[#allocation26_spill] sm:$0xff] }
 0x1de   :  { %2233 = vmatprep.subr.mxu1 %v10953_v34  ;;  %2073 = vmatpush1.msra.mxu0 %v10954_v40  ;;  %v8006_v32 = vpop.permute.xlu0 %178  ;;  %v10963_v9 = vsel %vm8050_vm1, 4294967295, %v10962_v9 }
 0x1df   :  { %2234 = vmatpush1.msra.mxu1 %v10955_v46  ;;  %2074 = vmatprep.subr.mxu0 %v10956_v60  ;;  %v7996_v12 = vpop.permute.xlu1 %183  ;;  %v482_v46 = vsel %vm465_vm3, 1, %v10938_v28  ;;  %v10966_v60 = vlaneseq }
 0x1e0   :  { %2235 = vmatprep.subr.mxu1 %v10957_v63  ;;  %313 = vperm.xlu1 %6653, %v274_v29   ;;  %v8055_v29 = vrot.slane %v129_v26, %v10964_v10  ;;  %v10981_v26 = vmov 0 }
 0x1e1   :  { %2075 = vmatpush1.msra.mxu0 %v10937_v39  ;;  %2236 = vmatpush1.msra.mxu1 %v10958_v8  ;;  %v8067_v63 = vand.u32 127, %v10966_v60  ;;  %v486_v8 = vrot.slane %v482_v46, %v10918_v30 }
 0x1e2   :  { %2076 = vmatprep.subr.mxu0 %v10939_v23  ;;  %2237 = vmatprep.subr.mxu1 %v10940_v17  ;;  %v8010_v3 = vpop.permute.xlu0 %188  ;;  %10965 = vst [vmem:[#allocation44_spill] sm:$0xff] %v8055_v29  ;;  %vm10733_vm12 = vcmp.eq.f32.partialorder %v7992_v33, %v8055_v29 }
 0x1e3   :  { %2077 = vmatpush1.msra.mxu0 %v10942_v1  ;;  %2238 = vmatpush1.msra.mxu1 %v10943_v4  ;;  %v8000_v27 = vpop.xlane.xlu1 %1191  ;;  %10967 = vst [vmem:[#allocation45_spill] sm:$0xff] %v8067_v63  ;;  %vm10731_vm0 = vcmp.lt.s32.totalorder %v8067_v63, 64 }
 0x1e4   :  { %410 = vperm.xlu1 %6653, %v7940_v47   ;;  %2110 = vmatprep.mubr.f32.mxu0 %v10960_v22 }
 0x1e5   :  { %2271 = vmatprep.mubr.f32.mxu1 %v10960_v22 }
 0x1e6   :  { %v281_v45 = vpop.permute.xlu0 %280 }
 0x1e7   :  { %v8004_v6 = vpop.xlane.xlu1 %1196  ;;  %vm327_vm4 = vcmp.eq.s32.totalorder %v281_v45, 1 }
 0x1e8   :  { %316 = vperm.xlu1 %6653, %v275_v25   ;;  %vm349_vm8 = vmor %vm327_vm4, %vm8050_vm1 }
 0x1ea   :  { %v284_v0 = vpop.permute.xlu0 %283 }
 0x1eb   :  { %v8008_v5 = vpop.xlane.xlu1 %1206  ;;  %vm328_vm5 = vcmp.eq.s32.totalorder %v284_v0, 1 }
 0x1ec   :  { %414 = vperm.xlu1 %6653, %v10959_v11   ;;  %vm350_vm10 = vmor %vm328_vm5, %vm8050_vm1  ;;  %vm10732_vm5 = vcmp.eq.f32.partialorder %v7990_v21, %v8055_v29 }
 0x1ee   :  { %v8020_v52 = vpop.permute.xlu0 %378 }
 0x1ef   :  { %v8012_v42 = vpop.xlane.xlu1 %1211 }
 0x1f0   :  { %319 = vperm.xlu1 %6653, %v276_v37  }
 0x1f2   :  { %v293_v39 = vpop.permute.xlu0 %292 }
 0x1f3   :  { %v8014_v19 = vpop.xlane.xlu1 %1221  ;;  %vm331_vm2 = vcmp.eq.s32.totalorder %v293_v39, 1  ;;  %v10972_v39 = vmov 0 }
 0x1f4   :  { %418 = vperm.xlu1 %6653, %v7975_v36   ;;  %vm353_vm6 = vmor %vm331_vm2, %vm8050_vm1  ;;  %vm10734_vm2 = vcmp.eq.f32.partialorder %v7988_v13, %v8055_v29 }
 0x1f6   :  { %v383_v56 = vpop.permute.xlu0 %382 }
 0x1f7   :  { %v8016_v59 = vpop.xlane.xlu1 %1402  ;;  %vm437_vm7 = vcmp.ne.f32.partialorder %v383_v56, %v8048_v62 }
 0x1f8   :  { %322 = vperm.xlu1 %6653, %v277_v58   ;;  %vm453_vm13 = vmand %vm353_vm6, %vm437_vm7 }
 0x1f9   :  { %vm8089_vm4 = vmand %vm10733_vm12, %vm453_vm13  ;;  %vm10737_vm13 = vcmp.eq.f32.partialorder %v7994_v38, %v8055_v29 }
 0x1fa   :  { %v8030_v1 = vpop.xlane.xlu0 %1186  ;;  %v10973_v39 = vsel %vm8089_vm4, 4294967295, %v10972_v39 }
 0x1fb   :  { %v8018_v24 = vpop.xlane.xlu1 %1407  ;;  %10974 = vst [vmem:[#allocation25_spill] sm:$0xff] %v10973_v39 }
 0x1fe   :  { %v8032_v31 = vpop.xlane.xlu0 %1201 }
 0x1ff   :  { %v8022_v35 = vpop.permute.xlu1 %198 }
 0x202   :  { %v8034_v4 = vpop.xlane.xlu0 %1216 }
 0x203   :  { %v8024_v53 = vpop.xlane.xlu1 %1417 }
 0x206   :  { %v8039_v14 = vpop.xlane.xlu0 %1392 }
 0x207   :  { %v8026_v23 = vpop.permute.xlu1 %208 }
 0x20a   :  { %v8042_v44 = vpop.xlane.xlu0 %1397 }
 0x20e   :  { %v8045_v2 = vpop.permute.xlu0 %386 }
 0x212   :  { %v8060_v34 = vpop.permute.xlu0 %298 }
 0x216   :  { %v302_v45 = vpop.permute.xlu0 %301 }
 0x217   :  { %vm334_vm6 = vcmp.eq.s32.totalorder %v302_v45, 1 }
 0x22c   :  { %v8028_v49 = vpop.xlane.xlu1 %1427 }
 0x230   :  { %v367_v17 = vpop.permute.xlu1 %366 }
 0x231   :  { %vm433_vm9 = vcmp.ne.f32.partialorder %v367_v17, %v8048_v62 }
 0x232   :  { %vm8075_vm14 = vmand %vm349_vm8, %vm433_vm9  ;;  %vm8104_vm8 = vcmp.eq.s32.totalorder %v486_v8, 1 }
 0x233   :  { %vm8100_vm7 = vmand %vm10734_vm2, %vm8075_vm14 }
 0x234   :  { %v371_v20 = vpop.permute.xlu1 %370  ;;  %vm8133_vm14 = vmor %vm334_vm6, %vm8050_vm1 }
 0x235   :  { %vm434_vm11 = vcmp.ne.f32.partialorder %v371_v20, %v8048_v62 }
 0x236   :  { %vm8079_vm15 = vmand %vm350_vm10, %vm434_vm11 }
 0x237   :  { %vm8115_vm9 = vmand %vm10732_vm5, %vm8079_vm15 }
 0x238   :  { %v287_v61 = vpop.permute.xlu1 %286  ;;  %v10982_v26 = vsel %vm8115_vm9, 4294967295, %v10981_v26 }
 0x239   :  { %vm329_vm3 = vcmp.eq.s32.totalorder %v287_v61, 1  ;;  %10983 = vst [vmem:[#allocation18_spill] sm:$0xff] %v10982_v26 }
 0x23a   :  { %vm8121_vm10 = vmor %vm329_vm3, %vm8050_vm1 }
 0x23c   :  { %v375_v54 = vpop.permute.xlu1 %374 }
 0x23d   :  { %vm435_vm11 = vcmp.ne.f32.partialorder %v375_v54, %v8048_v62 }
 0x23e   :  { %vm8165_vm3 = vmand %vm8121_vm10, %vm435_vm11 }
 0x240   :  { %v1533_v7 = vpop.f32.mrf.mxu0  ;;  %v1603_v41 = vpop.f32.mrf.mxu1 }
 0x241   :  { %v290_v40 = vpop.permute.xlu1 %289 }
 0x242   :  { %v1535_v48 = vpop.f32.mrf.mxu0  ;;  %v1605_v57 = vpop.f32.mrf.mxu1  ;;  %vm330_vm15 = vcmp.eq.s32.totalorder %v290_v40, 1 }
 0x243   :  { %v1604_v48 = vadd.f32 %v1603_v41, %v1533_v7  ;;  %v10975_v7 = vmov 0  ;;  %v10978_v41 = vmov 0  ;;  %vm8175_vm6 = vmor %vm330_vm15, %vm8050_vm1 }
 0x244   :  { %v10976_v7 = vsel %vm8100_vm7, 4294967295, %v10975_v7  ;;  %v10979_v41 = vsel %vm8104_vm8, 4294967295, %v10978_v41  ;;  %vm8191_vm15 = vmand %vm10737_vm13, %vm8165_vm3 }
 0x245   :  { %v296_v57 = vpop.permute.xlu1 %295  ;;  %10977 = vst [vmem:[#allocation28_spill] sm:$0xff] %v10976_v7  ;;  %10980 = vst [vmem:[#allocation47_spill] sm:$0xff] %v10979_v41 }
 0x280   :  { %v1695_v37 = vpop.f32.mrf.mxu0  ;;  %v1765_v58 = vpop.f32.mrf.mxu1 }
 0x281   :  { %v1766_v0 = vadd.f32 %v1765_v58, %v1695_v37  ;;  %v395_v37 = vpop.permute.xlu0 %394 }
 0x282   :  { %v1697_v56 = vpop.f32.mrf.mxu0  ;;  %v1767_v17 = vpop.f32.mrf.mxu1 }
 0x283   :  { %v1769_v20 = vsel %vm10731_vm0, %v1604_v48, %v1766_v0  ;;  %vm332_vm0 = vcmp.eq.s32.totalorder %v296_v57, 1  ;;  %v10994_v48 = vmov 0 }
 0x284   :  { %v8127_v43 = vrot.slane %v1769_v20, %v10918_v30  ;;  %vm8182_vm10 = vmor %vm332_vm0, %vm8050_vm1  ;;  %v10995_v48 = vsel %vm8191_vm15, 4294967295, %v10994_v48  ;;  %vm10738_vm0 = vcmp.eq.f32.partialorder %v7998_v51, %v8055_v29 }
 0x285   :  { %10996 = vst [vmem:[#allocation17_spill] sm:$0xff] %v10995_v48  ;;  %vm10997_vm1 = vmand %vm8115_vm9, %vm8104_vm8 }
 0x286   :  { %v1775_v46 = vadd.f32 %v8127_v43, %v8000_v27  ;;  %v1774_v60 = vadd.f32 %v8127_v43, %v8030_v1  ;;  %v1778_v40 = vadd.f32 %v8127_v43, %v8008_v5  ;;  %v1776_v8 = vadd.f32 %v8127_v43, %v8004_v6 }
 0x287   :  { %v1779_v5 = vadd.f32 %v8127_v43, %v8012_v42  ;;  %v1777_v6 = vadd.f32 %v8127_v43, %v8032_v31  ;;  %v1781_v61 = vadd.f32 %v8127_v43, %v8014_v19 }
 0x288   :  { %vm1791_vm2 = vcmp.gt.f32.partialorder %v1775_v46, 0.0  ;;  %v1807_v54 = vmul.f32 0.2, %v1775_v46  ;;  %vm1790_vm12 = vcmp.gt.f32.partialorder %v1774_v60, 0.0  ;;  %v1806_v11 = vmul.f32 0.2, %v1774_v60 }
 0x289   :  { %vm1794_vm11 = vcmp.gt.f32.partialorder %v1778_v40, 0.0  ;;  %v1810_v42 = vmul.f32 0.2, %v1778_v40  ;;  %vm1792_vm5 = vcmp.gt.f32.partialorder %v1776_v8, 0.0  ;;  %v1808_v31 = vmul.f32 0.2, %v1776_v8 }
 0x28a   :  { %v1823_v58 = vsel %vm1791_vm2, %v1775_v46, %v1807_v54  ;;  %v1822_v45 = vsel %vm1790_vm12, %v1774_v60, %v1806_v11  ;;  %vm10998_vm12 = vmand %vm8100_vm7, %vm8104_vm8  ;;  %vm10999_vm2 = vcmp.ne.f32.partialorder %v8020_v52, %v8048_v62  ;;  %v1811_v20 = vmul.f32 0.2, %v1779_v5  ;;  %v8312_v11 = vld [vmem:[%s10867_s1 + $0x78] sm:$0xff]  ;;  %s11207_s1 = sld [smem:[#allocation76_spill]] }
 0x28b   :  { %v8202_v57 = vsel %vm10997_vm1, %v1823_v58, -9e+15  ;;  %v8209_v0 = vsel %vm10998_vm12, %v1822_v45, -9e+15  ;;  %vm452_vm3 = vmand %vm8175_vm6, %vm10999_vm2  ;;  %v1826_v56 = vsel %vm1794_vm11, %v1778_v40, %v1810_v42  ;;  %v1824_v17 = vsel %vm1792_vm5, %v1776_v8, %v1808_v31  ;;  %v391_v42 = vpop.permute.xlu1 %390 }
 0x28c   :  { %1856 = vmax.xlane.f32.xlu1 %v8202_v57  ;;  %1854 = vmax.xlane.f32.xlu0 %v8209_v0  ;;  %vm11000_vm1 = vcmp.ne.f32.partialorder %v8045_v2, %v8048_v62  ;;  %vm440_vm12 = vcmp.ne.f32.partialorder %v395_v37, %v8048_v62  ;;  %vm10739_vm6 = vmand %vm8191_vm15, %vm8104_vm8  ;;  %vm1795_vm2 = vcmp.gt.f32.partialorder %v1779_v5, 0.0  ;;  %vm1793_vm11 = vcmp.gt.f32.partialorder %v1777_v6, 0.0 }
 0x28d   :  { %vm454_vm13 = vmand %vm8182_vm10, %vm11000_vm1  ;;  %v1809_v52 = vmul.f32 0.2, %v1777_v6  ;;  %vm10744_vm5 = vcmp.eq.f32.partialorder %v8002_v55, %v8055_v29  ;;  %v11001_v2 = vmov 0  ;;  %v8251_v46 = vsel %vm10739_vm6, %v1824_v17, -9e+15 }
 0x28e   :  { %vm8235_vm10 = vmand %vm10738_vm0, %vm452_vm3  ;;  %v11005_v60 = vmov 0  ;;  %v1827_v40 = vsel %vm1795_vm2, %v1779_v5, %v1811_v20  ;;  %v1813_v27 = vmul.f32 0.2, %v1781_v61  ;;  %vm1797_vm6 = vcmp.gt.f32.partialorder %v1781_v61, 0.0 }
 0x28f   :  { %v11002_v2 = vsel %vm8235_vm10, 4294967295, %v11001_v2  ;;  %vm11004_vm1 = vmand %vm8089_vm4, %vm8104_vm8  ;;  %v1825_v8 = vsel %vm1793_vm11, %v1777_v6, %v1809_v52  ;;  %v11008_v6 = vmov 0  ;;  %v1780_v31 = vadd.f32 %v8127_v43, %v8034_v4  ;;  %v305_v45 = vpop.permute.xlu1 %304  ;;  %v399_v52 = vpop.permute.xlu0 %398 }
 0x290   :  { %11003 = vst [vmem:[#allocation20_spill] sm:$0xff] %v11002_v2  ;;  %v8244_v19 = vsel %vm11004_vm1, %v1826_v56, -9e+15  ;;  %vm8256_vm3 = vmand %vm10744_vm5, %vm454_vm13  ;;  %1858 = vmax.xlane.f32.xlu0 %v8251_v46  ;;  %vm10743_vm13 = vcmp.eq.f32.partialorder %v7996_v12, %v8055_v29  ;;  %v1829_v1 = vsel %vm1797_vm6, %v1781_v61, %v1813_v27  ;;  %vm333_vm6 = vcmp.eq.s32.totalorder %v8060_v34, 1 }
 0x291   :  { %v11006_v60 = vsel %vm8256_vm3, 4294967295, %v11005_v60  ;;  %vm456_vm0 = vmand %vm8133_vm14, %vm440_vm12  ;;  %1862 = vmax.xlane.f32.xlu1 %v8244_v19  ;;  %vm11011_vm11 = vnez %v10963_v9  ;;  %v1812_v37 = vmul.f32 0.2, %v1780_v31  ;;  %v11012_v34 = vmov 0 }
 0x292   :  { %11007 = vst [vmem:[#allocation34_spill] sm:$0xff] %v11006_v60  ;;  %vm10742_vm1 = vmand %vm8235_vm10, %vm8104_vm8 }
 0x293   :  { %vm10741_vm14 = vmand %vm8256_vm3, %vm8104_vm8  ;;  %v8286_v5 = vsel %vm10742_vm1, %v1825_v8, -9e+15  ;;  %v8346_v56 = vpop.permute.xlu1 %307  ;;  %v8361_v8 = vpop.permute.xlu0 %402 }
 0x294   :  { %v8279_v16 = vsel %vm10741_vm14, %v1827_v40, -9e+15  ;;  %vm8291_vm12 = vmand %vm10743_vm13, %vm456_vm0  ;;  %1860 = vmax.xlane.f32.xlu0 %v8286_v5  ;;  %vm261_vm0 = vcmp.eq.f32.partialorder %v8312_v11, 0.0  ;;  %vm439_vm14 = vcmp.ne.f32.partialorder %v391_v42, %v8048_v62  ;;  %vm1796_vm13 = vcmp.gt.f32.partialorder %v1780_v31, 0.0 }
 0x295   :  { %v11009_v6 = vsel %vm8291_vm12, 4294967295, %v11008_v6  ;;  %1864 = vmax.xlane.f32.xlu1 %v8279_v16  ;;  %vm10740_vm2 = vmand %vm8291_vm12, %vm8104_vm8  ;;  %v278_v25 = vsel %vm261_vm0, 1, %v10938_v28  ;;  %vm10746_vm0 = vcmp.eq.f32.partialorder %v8006_v32, %v8055_v29  ;;  %v1828_v58 = vsel %vm1796_vm13, %v1780_v31, %v1812_v37 }
 0x296   :  { %11010 = vst [vmem:[#allocation32_spill] sm:$0xff] %v11009_v6  ;;  %v8306_v54 = vsel %vm10740_vm2, %v1829_v1, -9e+15  ;;  %vm355_vm2 = vmor %vm333_vm6, %vm11011_vm11  ;;  %vm442_vm15 = vcmp.ne.f32.partialorder %v8361_v8, %v8048_v62  ;;  %v11039_v8 = vmov 0 }
 0x297   :  { %vm455_vm1 = vmand %vm355_vm2, %vm439_vm14  ;;  %v8351_v17 = vpop.permute.xlu1 %310  ;;  %vm441_vm14 = vcmp.ne.f32.partialorder %v399_v52, %v8048_v62 }
 0x298   :  { %vm8329_vm5 = vmand %vm10746_vm0, %vm455_vm1  ;;  %vm335_vm1 = vcmp.eq.s32.totalorder %v305_v45, 1  ;;  %vm10756_vm0 = vcmp.eq.f32.partialorder %v8010_v3, %v8055_v29 }
 0x299   :  { %1868 = vmax.xlane.f32.xlu1 %v8306_v54  ;;  %v11013_v34 = vsel %vm8329_vm5, 4294967295, %v11012_v34  ;;  %vm10745_vm6 = vmand %vm8329_vm5, %vm8104_vm8  ;;  %vm336_vm5 = vcmp.eq.s32.totalorder %v8346_v56, 1 }
 0x29a   :  { %11014 = vst [vmem:[#allocation33_spill] sm:$0xff] %v11013_v34  ;;  %v8342_v4 = vsel %vm10745_vm6, %v1828_v58, -9e+15  ;;  %vm357_vm13 = vmor %vm335_vm1, %vm11011_vm11 }
 0x29b   :  { %v8354_v20 = vpop.permute.xlu1 %313  ;;  %vm457_vm2 = vmand %vm357_vm13, %vm441_vm14  ;;  %vm11020_vm14 = vcmp.eq.f32.partialorder %v7994_v38, %v8055_v29 }
 0x29c   :  { %vm8379_vm12 = vmand %vm10756_vm0, %vm457_vm2  ;;  %vm11030_vm0 = vcmp.eq.f32.partialorder %v7990_v21, %v8055_v29  ;;  %v11035_v21 = vmov 0  ;;  %vm338_vm10 = vcmp.eq.s32.totalorder %v8354_v20, 1  ;;  %v1783_v20 = vadd.f32 %v8127_v43, %v8042_v44 }
 0x29d   :  { %vm10755_vm1 = vmand %vm8379_vm12, %vm8104_vm8 }
 0x29e   :  { %vm506_vm2 = vmand %vm11020_vm14, %vm8104_vm8  ;;  %vm11024_vm14 = vcmp.eq.f32.partialorder %v7998_v51, %v8055_v29 }
 0x29f   :  { %v8357_v61 = vpop.permute.xlu1 %410 }
 0x2a0   :  { %vm444_vm9 = vcmp.ne.f32.partialorder %v8357_v61, %v8048_v62 }
 0x2a3   :  { %v8359_v40 = vpop.permute.xlu1 %316 }
 0x2aa   :  { %325 = vperm.xlu1 %6653, %v278_v25   ;;  %422 = vperm.xlu0 %6652, %v7983_v50  }
 0x2ae   :  { %6655 = vset.pattern.permute.xlu1 %v10938_v28 }
 0x2c9   :  { %1866 = vmax.xlane.f32.xlu0 %v8342_v4 }
 0x2df   :  { %426 = vperm.xlu0 %6652, %v8312_v11  }
 0x2e3   :  { %6654 = vset.pattern.permute.xlu0 %v10938_v28  ;;  %v8363_v28 = vpop.permute.xlu1 %414 }
 0x2e4   :  { %193 = vperm.xlu0 %6654, %v10948_v15   ;;  %v1782_v15 = vadd.f32 %v8127_v43, %v8039_v14  ;;  %v11015_v14 = vmov 0 }
 0x2e5   :  { %v11016_v14 = vsel %vm8379_vm12, 4294967295, %v11015_v14 }
 0x2e6   :  { %vm1798_vm6 = vcmp.gt.f32.partialorder %v1782_v15, 0.0  ;;  %11017 = vst [vmem:[#allocation30_spill] sm:$0xff] %v11016_v14 }
 0x2e8   :  { %203 = vperm.xlu0 %6654, %v7940_v47   ;;  %v8369_v47 = vpop.permute.xlu0 %406 }
 0x2ec   :  { %213 = vperm.xlu0 %6654, %v7975_v36   ;;  %v8371_v36 = vpop.permute.xlu1 %319  ;;  %v8383_v27 = vpop.xlane.xlu0 %1412 }
 0x2f0   :  { %218 = vperm.xlu0 %6654, %v7983_v50   ;;  %v1814_v50 = vmul.f32 0.2, %v1782_v15  ;;  %v8385_v1 = vpop.permute.xlu1 %418  ;;  %v8399_v31 = vpop.xlane.xlu0 %1422 }
 0x2f2   :  { %v1830_v25 = vsel %vm1798_vm6, %v1782_v15, %v1814_v50  ;;  %vm11018_vm6 = vcmp.eq.f32.partialorder %v7988_v13, %v8055_v29 }
 0x2f3   :  { %v8396_v42 = vsel %vm10755_vm1, %v1830_v25, -9e+15  ;;  %vm504_vm13 = vmand %vm11018_vm6, %vm8104_vm8  ;;  %vm11022_vm6 = vcmp.eq.f32.partialorder %v7992_v33, %v8055_v29  ;;  %vm337_vm1 = vcmp.eq.s32.totalorder %v8351_v17, 1 }
 0x2f4   :  { %v8401_v37 = vpop.permute.xlu1 %322  ;;  %vm359_vm3 = vmor %vm337_vm1, %vm11011_vm11 }
 0x2f5   :  { %vm358_vm1 = vmor %vm336_vm5, %vm11011_vm11  ;;  %vm10765_vm5 = vcmp.eq.f32.partialorder %v8022_v35, %v8055_v29 }
 0x2f6   :  { %vm458_vm7 = vmand %vm358_vm1, %vm442_vm15  ;;  %vm1799_vm1 = vcmp.gt.f32.partialorder %v1783_v20, 0.0 }
 0x30f   :  { %1870 = vmax.xlane.f32.xlu0 %v8396_v42 }
 0x315   :  { %v1857_v58 = vpop.xlane.xlu1 %1856  ;;  %v1855_v45 = vpop.xlane.xlu0 %1854 }
 0x316   :  { %v1886_v52 = vsub.f32 %v8209_v0, %v1855_v45  ;;  %v8412_v0 = vsel %vm504_vm13, 1.0, %v10960_v22  ;;  %vm508_vm13 = vmand %vm11022_vm6, %vm8104_vm8  ;;  %vm11027_vm6 = vcmp.eq.f32.partialorder %v8002_v55, %v8055_v29 }
 0x317   :  { %11019 = vst [vmem:[#allocation31_spill] sm:$0xff] %v8412_v0 }
 0x318   :  { %v1902_v15 = vmul.f32 1.442695, %v1886_v52 }
 0x319   :  { %v1859_v6 = vpop.xlane.xlu0 %1858 }
 0x31a   :  { %v1863_v50 = vpop.xlane.xlu1 %1862  ;;  %v1888_v34 = vsub.f32 %v8251_v46, %v1859_v6  ;;  %6656 = vpow2.f32 %v1902_v15 }
 0x31b   :  { %v1890_v14 = vsub.f32 %v8244_v19, %v1863_v50 }
 0x31c   :  { %v1906_v25 = vmul.f32 1.442695, %v1888_v34  ;;  %v1887_v34 = vsub.f32 %v8202_v57, %v1857_v58 }
 0x31d   :  { %v1910_v60 = vmul.f32 1.442695, %v1890_v14  ;;  %v1861_v33 = vpop.xlane.xlu0 %1860 }
 0x31e   :  { %6658 = vpow2.f32 %v1906_v25  ;;  %v1865_v14 = vpop.xlane.xlu1 %1864  ;;  %v1904_v45 = vmul.f32 1.442695, %v1887_v34  ;;  %v1889_v52 = vsub.f32 %v8286_v5, %v1861_v33 }
 0x31f   :  { %6660 = vpow2.f32 %v1910_v60  ;;  %v8424_v60 = vsel %vm506_vm2, 1.0, %v10960_v22  ;;  %v1891_v15 = vsub.f32 %v8279_v16, %v1865_v14  ;;  %vm8455_vm2 = vmand %vm11024_vm14, %vm8104_vm8  ;;  %v1784_v14 = vadd.f32 %v8127_v43, %v8016_v59 }
 0x320   :  { %11021 = vst [vmem:[#allocation19_spill] sm:$0xff] %v8424_v60  ;;  %6662 = vpow2.f32 %v1904_v45  ;;  %v1908_v50 = vmul.f32 1.442695, %v1889_v52  ;;  %vm505_vm14 = vmand %vm11030_vm0, %vm8104_vm8  ;;  %vm11034_vm0 = vcmp.eq.f32.partialorder %v7996_v12, %v8055_v29  ;;  %v8524_v17 = vsel %vm8455_vm2, 1.0, %v10960_v22 }
 0x321   :  { %vm8493_vm4 = vmand %vm11034_vm0, %vm8104_vm8  ;;  %11038 = vst [vmem:[#allocation22_spill] sm:$0xff] %v8524_v17  ;;  %v1787_v16 = vadd.f32 %v8127_v43, %v8024_v53 }
 0x322   :  { %6664 = vpow2.f32 %v1908_v50  ;;  %v11036_v21 = vsel %vm8493_vm4, 4294967295, %v11035_v21  ;;  %v1785_v50 = vadd.f32 %v8127_v43, %v8018_v24 }
 0x324   :  { %v1817_v55 = vmul.f32 0.2, %v1785_v50 }
 0x325   :  { %v8446_v25 = vpop.permute.xlu0 %422 }
 0x327   :  { %v6657_v39 = vpop.eup %6656 }
 0x328   :  { %v8420_v19 = vmul.f32 %v6657_v39, %v8412_v0  ;;  %v8436_v39 = vsel %vm508_vm13, 1.0, %v10960_v22  ;;  %vm8464_vm13 = vmand %vm11027_vm6, %vm8104_vm8  ;;  %vm11031_vm6 = vcmp.eq.f32.partialorder %v8006_v32, %v8055_v29  ;;  %v8499_v32 = vsel %vm505_vm14, 1.0, %v10960_v22 }
 0x329   :  { %11023 = vst [vmem:[#allocation21_spill] sm:$0xff] %v8436_v39  ;;  %vm8481_vm12 = vmand %vm11031_vm6, %vm8104_vm8  ;;  %vm443_vm6 = vcmp.ne.f32.partialorder %v8369_v47, %v8048_v62  ;;  %v8557_v34 = vsel %vm8464_vm13, 1.0, %v10960_v22 }
 0x32a   :  { %1950 = vadd.xlane.f32.xlu1 %v8420_v19  ;;  %11037 = vst [vmem:[#allocation23_spill] sm:$0xff] %v8499_v32  ;;  %vm459_vm0 = vmand %vm359_vm3, %vm443_vm6  ;;  %vm340_vm3 = vcmp.eq.s32.totalorder %v8371_v36, 1  ;;  %v8562_v33 = vsel %vm8481_vm12, 1.0, %v10960_v22  ;;  %vm445_vm12 = vcmp.ne.f32.partialorder %v8363_v28, %v8048_v62 }
 0x32b   :  { %v6659_v46 = vpop.eup %6658  ;;  %vm360_vm14 = vmor %vm338_vm10, %vm11011_vm11  ;;  %vm339_vm10 = vcmp.eq.s32.totalorder %v8359_v40, 1  ;;  %11047 = vst [vmem:[#allocation42_spill] sm:$0xff] %v8557_v34 }
 0x32c   :  { %v8432_v13 = vmul.f32 %v6659_v46, %v8424_v60  ;;  %v6661_v38 = vpop.eup %6660  ;;  %v1869_v46 = vpop.xlane.xlu1 %1868  ;;  %vm8535_vm15 = vmand %vm10765_vm5, %vm459_vm0  ;;  %11048 = vst [vmem:[#allocation43_spill] sm:$0xff] %v8562_v33  ;;  %vm11056_vm5 = vnez %v11036_v21 }
 0x32d   :  { %v8439_v6 = vmul.f32 %v6661_v38, %v8436_v39  ;;  %v1912_v38 = vmul.f32 1.442695, %v1891_v15  ;;  %v1893_v39 = vsub.f32 %v8306_v54, %v1869_v46  ;;  %v6663_v54 = vpop.eup %6662  ;;  %v11040_v8 = vsel %vm8535_vm15, 4294967295, %v11039_v8  ;;  %vm8540_vm2 = vmand %vm360_vm14, %vm444_vm9 }
 0x32e   :  { %1954 = vadd.xlane.f32.xlu0 %v8432_v13  ;;  %11041 = vst [vmem:[#allocation49_spill] sm:$0xff] %v11040_v8  ;;  %v1815_v15 = vmul.f32 0.2, %v1783_v20  ;;  %vm8585_vm13 = vmor %vm340_vm3, %vm11011_vm11  ;;  %vm446_vm14 = vcmp.ne.f32.partialorder %v8385_v1, %v8048_v62  ;;  %v11060_v1 = vmov 0  ;;  %v2806_v8 = vld [vmem:[#allocation7 + $0x1b0] sm:$0xff] }
 0x32f   :  { %6666 = vpow2.f32 %v1912_v38  ;;  %v1916_v58 = vmul.f32 1.442695, %v1893_v39  ;;  %v6665_v56 = vpop.eup %6664  ;;  %v11044_v39 = vmov 0  ;;  %v11053_v38 = vmov 0 }
 0x330   :  { %v8530_v61 = vmul.f32 %v6665_v56, %v8524_v17 }
 0x332   :  { %1958 = vadd.xlane.f32.xlu0 %v8439_v6 }
 0x33b   :  { %223 = vperm.xlu1 %6655, %v8312_v11  }
 0x33c   :  { %v6667_v47 = vpop.eup %6666 }
 0x33d   :  { %v8590_v46 = vmul.f32 %v6667_v47, %v8557_v34  ;;  %v1819_v47 = vmul.f32 0.2, %v1787_v16 }
 0x352   :  { %v1867_v60 = vpop.xlane.xlu0 %1866 }
 0x353   :  { %v1892_v11 = vsub.f32 %v8342_v4, %v1867_v60  ;;  %v8506_v4 = vmul.f32 %v6663_v54, %v8499_v32  ;;  %v1831_v54 = vsel %vm1799_vm1, %v1783_v20, %v1815_v15  ;;  %vm10771_vm1 = vcmp.eq.f32.partialorder %v8026_v23, %v8055_v29 }
 0x354   :  { %v11063_v20 = vmov 0  ;;  %v1788_v60 = vadd.f32 %v8127_v43, %v8399_v31  ;;  %v11067_v31 = vmov 0 }
 0x355   :  { %v1914_v57 = vmul.f32 1.442695, %v1892_v11  ;;  %v8618_v11 = vsel %vm11056_vm5, 1.0, %v10960_v22 }
 0x356   :  { %11057 = vst [vmem:[#allocation41_spill] sm:$0xff] %v8618_v11 }
 0x357   :  { %6668 = vpow2.f32 %v1914_v57  ;;  %v1816_v57 = vmul.f32 0.2, %v1784_v14 }
 0x358   :  { %6670 = vpow2.f32 %v1916_v58  ;;  %v1786_v58 = vadd.f32 %v8127_v43, %v8383_v27 }
 0x35a   :  { %v8474_v51 = vpop.permute.xlu0 %426  ;;  %v1818_v21 = vmul.f32 0.2, %v1786_v58 }
 0x35f   :  { %v8508_v12 = vpop.permute.xlu0 %193  ;;  %1952 = vadd.xlane.f32.xlu1 %v8506_v4 }
 0x360   :  { %vm10767_vm4 = vcmp.eq.f32.partialorder %v8508_v12, %v8055_v29 }
 0x361   :  { %vm8549_vm6 = vmand %vm10767_vm4, %vm458_vm7 }
 0x362   :  { %v11045_v39 = vsel %vm8549_vm6, 4294967295, %v11044_v39  ;;  %vm8568_vm7 = vmor %vm339_vm10, %vm11011_vm11 }
 0x363   :  { %v8544_v44 = vpop.permute.xlu0 %203  ;;  %11046 = vst [vmem:[#allocation48_spill] sm:$0xff] %v11045_v39  ;;  %1956 = vadd.xlane.f32.xlu1 %v8530_v61  ;;  %vm10768_vm10 = vmand %vm8549_vm6, %vm8104_vm8  ;;  %v2934_v39 = vld [vmem:[#allocation7 + $0x5b0] sm:$0xff] }
 0x364   :  { %v6669_v40 = vpop.eup %6668  ;;  %vm10766_vm9 = vcmp.eq.f32.partialorder %v8544_v44, %v8055_v29  ;;  %vm462_vm4 = vmand %vm8585_vm13, %vm446_vm14  ;;  %v8648_v28 = vsel %vm10768_vm10, %v1831_v54, -9e+15  ;;  %vm447_vm10 = vcmp.ne.f32.partialorder %v8446_v25, %v8048_v62 }
 0x365   :  { %v8575_v52 = vmul.f32 %v6669_v40, %v8562_v33  ;;  %v6671_v24 = vpop.eup %6670  ;;  %vm8610_vm3 = vmand %vm10766_vm9, %vm8540_vm2  ;;  %vm1800_vm9 = vcmp.gt.f32.partialorder %v1784_v14, 0.0 }
 0x366   :  { %v11054_v38 = vsel %vm8610_vm3, 4294967295, %v11053_v38  ;;  %vm8629_vm2 = vmand %vm8568_vm7, %vm445_vm12  ;;  %v8641_v53 = vmul.f32 %v6671_v24, %v8618_v11  ;;  %vm1801_vm7 = vcmp.gt.f32.partialorder %v1785_v50, 0.0  ;;  %vm341_vm12 = vcmp.eq.s32.totalorder %v8401_v37, 1 }
 0x367   :  { %1962 = vadd.xlane.f32.xlu0 %v8575_v52  ;;  %v8599_v36 = vpop.permute.xlu0 %213  ;;  %11055 = vst [vmem:[#allocation40_spill] sm:$0xff] %v11054_v38  ;;  %1960 = vadd.xlane.f32.xlu1 %v8590_v46  ;;  %vm10770_vm13 = vmand %vm8610_vm3, %vm8104_vm8  ;;  %v1832_v37 = vsel %vm1800_vm9, %v1784_v14, %v1816_v57  ;;  %v1833_v56 = vsel %vm1801_vm7, %v1785_v50, %v1817_v55  ;;  %vm1803_vm7 = vcmp.gt.f32.partialorder %v1787_v16, 0.0  ;;  %v1820_v50 = vmul.f32 0.2, %v1788_v60  ;;  %v2938_v38 = vld [vmem:[#allocation7 + $0x5d0] sm:$0xff] }
 0x368   :  { %vm10769_vm5 = vcmp.eq.f32.partialorder %v8599_v36, %v8055_v29  ;;  %vm8675_vm0 = vmand %vm10771_vm1, %vm8629_vm2  ;;  %v8688_v25 = vsel %vm10770_vm13, %v1833_v56, -9e+15  ;;  %v1835_v45 = vsel %vm1803_vm7, %v1787_v16, %v1819_v47 }
 0x369   :  { %vm8663_vm14 = vmand %vm10769_vm5, %vm462_vm4  ;;  %v11064_v20 = vsel %vm8675_vm0, 4294967295, %v11063_v20  ;;  %vm1802_vm4 = vcmp.gt.f32.partialorder %v1786_v58, 0.0 }
 0x36a   :  { %v11061_v1 = vsel %vm8663_vm14, 4294967295, %v11060_v1  ;;  %11065 = vst [vmem:[#allocation39_spill] sm:$0xff] %v11064_v20  ;;  %vm363_vm5 = vmor %vm341_vm12, %vm11011_vm11  ;;  %v1834_v14 = vsel %vm1802_vm4, %v1786_v58, %v1818_v21  ;;  %v326_v21 = vpop.permute.xlu1 %325  ;;  %v2810_v20 = vld [vmem:[#allocation7 + $0x1d0] sm:$0xff] }
 0x36b   :  { %1872 = vmax.xlane.f32.xlu0 %v8648_v28  ;;  %v8652_v27 = vpop.permute.xlu0 %218  ;;  %11062 = vst [vmem:[#allocation38_spill] sm:$0xff] %v11061_v1  ;;  %1964 = vadd.xlane.f32.xlu1 %v8641_v53  ;;  %vm11066_vm2 = vmand %vm8535_vm15, %vm8104_vm8  ;;  %vm342_vm7 = vcmp.eq.s32.totalorder %v326_v21, 1 }
 0x36c   :  { %vm10775_vm9 = vcmp.eq.f32.partialorder %v8652_v27, %v8055_v29  ;;  %v8697_v40 = vsel %vm11066_vm2, %v1832_v37, -9e+15  ;;  %vm10773_vm12 = vmand %vm8663_vm14, %vm8104_vm8 }
 0x36d   :  { %vm463_vm13 = vmand %vm363_vm5, %vm447_vm10  ;;  %v8721_v15 = vsel %vm10773_vm12, %v1835_v45, -9e+15  ;;  %vm1804_vm10 = vcmp.gt.f32.partialorder %v1788_v60, 0.0 }
 0x36e   :  { %vm8708_vm1 = vmand %vm10775_vm9, %vm463_vm13  ;;  %v1836_v24 = vsel %vm1804_vm10, %v1788_v60, %v1820_v50  ;;  %vm11070_vm13 = vcmp.eq.f32.partialorder %v8010_v3, %v8055_v29 }
 0x36f   :  { %1876 = vmax.xlane.f32.xlu0 %v8688_v25  ;;  %1874 = vmax.xlane.f32.xlu1 %v8697_v40  ;;  %v11068_v31 = vsel %vm8708_vm1, 4294967295, %v11067_v31  ;;  %vm10774_vm2 = vmand %vm8675_vm0, %vm8104_vm8 }
 0x370   :  { %11069 = vst [vmem:[#allocation36_spill] sm:$0xff] %v11068_v31  ;;  %v8728_v59 = vsel %vm10774_vm2, %v1834_v14, -9e+15  ;;  %vm10772_vm5 = vmand %vm8708_vm1, %vm8104_vm8 }
 0x371   :  { %v8741_v57 = vsel %vm10772_vm5, %v1836_v24, -9e+15  ;;  %vm512_vm4 = vmand %vm11070_vm13, %vm8104_vm8  ;;  %vm448_vm5 = vcmp.ne.f32.partialorder %v8474_v51, %v8048_v62 }
 0x372   :  { %v8751_v55 = vsel %vm512_vm4, 1.0, %v10960_v22  ;;  %vm364_vm13 = vmor %vm342_vm7, %vm11011_vm11 }
 0x373   :  { %1880 = vmax.xlane.f32.xlu0 %v8721_v15  ;;  %1878 = vmax.xlane.f32.xlu1 %v8728_v59  ;;  %11071 = vst [vmem:[#allocation37_spill] sm:$0xff] %v8751_v55  ;;  %vm464_vm4 = vmand %vm364_vm13, %vm448_vm5 }
 0x377   :  { %1882 = vmax.xlane.f32.xlu1 %v8741_v57 }
 0x398   :  { %v1871_v58 = vpop.xlane.xlu0 %1870 }
 0x399   :  { %v1894_v16 = vsub.f32 %v8396_v42, %v1871_v58  ;;  %v1789_v42 = vadd.f32 %v8127_v43, %v8028_v49  ;;  %v11072_v49 = vmov 0 }
 0x39b   :  { %v1918_v5 = vmul.f32 1.442695, %v1894_v16  ;;  %v1821_v60 = vmul.f32 0.2, %v1789_v42  ;;  %vm1805_vm2 = vcmp.gt.f32.partialorder %v1789_v42, 0.0 }
 0x39d   :  { %6672 = vpow2.f32 %v1918_v5  ;;  %v1837_v62 = vsel %vm1805_vm2, %v1789_v42, %v1821_v60 }
 0x3aa   :  { %v6673_v54 = vpop.eup %6672 }
 0x3ab   :  { %v8754_v37 = vmul.f32 %v6673_v54, %v8751_v55 }
 0x3ad   :  { %1966 = vadd.xlane.f32.xlu1 %v8754_v37 }
 0x3b3   :  { %v1951_v56 = vpop.xlane.xlu1 %1950 }
 0x3b4   :  { %vm1982_vm10 = vcmp.gt.f32.partialorder %v1951_v56, 0.0 }
 0x3b5   :  { %v1998_v3 = vsel %vm1982_vm10, %v1951_v56, 1.0 }
 0x3b6   :  { %6674 = vrcp.f32 %v1998_v3 }
 0x3b7   :  { %v8763_v47 = vpop.permute.xlu1 %223  ;;  %v1955_v14 = vpop.xlane.xlu0 %1954 }
 0x3b8   :  { %vm245_vm12 = vcmp.eq.f32.partialorder %v8763_v47, %v8055_v29  ;;  %vm1984_vm2 = vcmp.gt.f32.partialorder %v1955_v14, 0.0  ;;  %v2765_v47 = vld [vmem:[#allocation7 + $0x68] sm:$0xff] }
 0x3b9   :  { %vm8770_vm9 = vmand %vm245_vm12, %vm464_vm4  ;;  %v2000_v50 = vsel %vm1984_vm2, %v1955_v14, 1.0 }
 0x3ba   :  { %v11073_v49 = vsel %vm8770_vm9, 4294967295, %v11072_v49  ;;  %vm10851_vm11 = vmand %vm8770_vm9, %vm8104_vm8 }
 0x3bb   :  { %11074 = vst [vmem:[#allocation35_spill] sm:$0xff] %v11073_v49  ;;  %v8783_v9 = vsel %vm10851_vm11, %v1837_v62, -9e+15  ;;  %v1959_v58 = vpop.xlane.xlu0 %1958 }
 0x3bc   :  { %1884 = vmax.xlane.f32.xlu0 %v8783_v9  ;;  %vm1986_vm10 = vcmp.gt.f32.partialorder %v1959_v58, 0.0 }
 0x3bd   :  { %v2002_v21 = vsel %vm1986_vm10, %v1959_v58, 1.0  ;;  %vm11077_vm10 = vcmp.eq.f32.partialorder %v8544_v44, %v8055_v29 }
 0x3c3   :  { %v6675_v43 = vpop.eup %6674 }
 0x3c4   :  { %v2015_v51 = vmul.f32 %v6675_v43, %v8420_v19 }
 0x3c6   :  { %2111 = vmatmul.mubr.f32.vlgmr.msra.gmra.mxu0 %v2015_v51  ;;  %2272 = vmatmul.mubr.f32.vlgmr.msra.gmra.mxu1 %v2015_v51 }
 0x3c7   :  { %2116 = vmatprep.mubr.f32.mxu0 %v10960_v22  ;;  %2277 = vmatprep.mubr.f32.mxu1 %v10960_v22 }
 0x3e8   :  { %v1953_v45 = vpop.xlane.xlu1 %1952 }
 0x3e9   :  { %vm1983_vm5 = vcmp.gt.f32.partialorder %v1953_v45, 0.0 }
 0x3ea   :  { %v1999_v24 = vsel %vm1983_vm5, %v1953_v45, 1.0  ;;  %vm11075_vm5 = vcmp.eq.f32.partialorder %v8508_v12, %v8055_v29 }
 0x3eb   :  { %6676 = vrcp.f32 %v1999_v24 }
 0x3ec   :  { %v1957_v16 = vpop.xlane.xlu1 %1956  ;;  %6678 = vrcp.f32 %v2000_v50 }
 0x3ed   :  { %vm1985_vm7 = vcmp.gt.f32.partialorder %v1957_v16, 0.0 }
 0x3ee   :  { %v2001_v5 = vsel %vm1985_vm7, %v1957_v16, 1.0  ;;  %vm513_vm7 = vmand %vm11075_vm5, %vm8104_vm8  ;;  %vm11080_vm5 = vcmp.eq.f32.partialorder %v8599_v36, %v8055_v29 }
 0x3ef   :  { %6680 = vrcp.f32 %v2001_v5 }
 0x3f0   :  { %v1963_v19 = vpop.xlane.xlu0 %1962  ;;  %v1961_v54 = vpop.xlane.xlu1 %1960  ;;  %6682 = vrcp.f32 %v2002_v21 }
 0x3f1   :  { %vm1987_vm13 = vcmp.gt.f32.partialorder %v1961_v54, 0.0  ;;  %vm1988_vm4 = vcmp.gt.f32.partialorder %v1963_v19, 0.0 }
 0x3f2   :  { %v2003_v60 = vsel %vm1987_vm13, %v1961_v54, 1.0  ;;  %v2004_v14 = vsel %vm1988_vm4, %v1963_v19, 1.0  ;;  %vm515_vm13 = vmand %vm11077_vm10, %vm8104_vm8  ;;  %vm11078_vm4 = vcmp.eq.f32.partialorder %v8022_v35, %v8055_v29  ;;  %vm11082_vm10 = vcmp.eq.f32.partialorder %v8026_v23, %v8055_v29 }
 0x3f4   :  { %v1873_v56 = vpop.xlane.xlu0 %1872  ;;  %v1965_v42 = vpop.xlane.xlu1 %1964 }
 0x3f5   :  { %v1895_v3 = vsub.f32 %v8648_v28, %v1873_v56  ;;  %vm1989_vm2 = vcmp.gt.f32.partialorder %v1965_v42, 0.0 }
 0x3f6   :  { %v2005_v21 = vsel %vm1989_vm2, %v1965_v42, 1.0  ;;  %vm514_vm2 = vmand %vm11078_vm4, %vm8104_vm8  ;;  %vm11085_vm4 = vcmp.eq.f32.partialorder %v8652_v27, %v8055_v29 }
 0x3f7   :  { %v1920_v62 = vmul.f32 1.442695, %v1895_v3  ;;  %v8839_v35 = vsel %vm514_vm2, 1.0, %v10960_v22  ;;  %vm518_vm2 = vmand %vm11085_vm4, %vm8104_vm8 }
 0x3f8   :  { %v1877_v43 = vpop.xlane.xlu0 %1876  ;;  %v6677_v51 = vpop.eup %6676  ;;  %11081 = vst [vmem:[#allocation51_spill] sm:$0xff] %v8839_v35 }
 0x3f9   :  { %6684 = vpow2.f32 %v1920_v62  ;;  %v1875_v45 = vpop.xlane.xlu1 %1874  ;;  %v1897_v50 = vsub.f32 %v8688_v25, %v1877_v43  ;;  %v2017_v58 = vmul.f32 %v6677_v51, %v8506_v4  ;;  %v6679_v16 = vpop.eup %6678 }
 0x3fa   :  { %6686 = vrcp.f32 %v2003_v60  ;;  %v1896_v24 = vsub.f32 %v8697_v40, %v1875_v45  ;;  %v2019_v4 = vmul.f32 %v6679_v16, %v8432_v13  ;;  %v8831_v45 = vsel %vm515_vm13, 1.0, %v10960_v22  ;;  %vm516_vm13 = vmand %vm11082_vm10, %vm8104_vm8 }
 0x3fb   :  { %v1924_v5 = vmul.f32 1.442695, %v1897_v50  ;;  %6688 = vrcp.f32 %v2004_v14  ;;  %2117 = vmatmul.mubr.f32.gmra.mxu0 %v2017_v58  ;;  %2278 = vmatmul.mubr.f32.gmra.mxu1 %v2017_v58  ;;  %11079 = vst [vmem:[#allocation50_spill] sm:$0xff] %v8831_v45 }
 0x3fc   :  { %v1922_v28 = vmul.f32 1.442695, %v1896_v24  ;;  %v1881_v54 = vpop.xlane.xlu0 %1880  ;;  %2122 = vmatprep.mubr.f32.mxu0 %v10960_v22  ;;  %2283 = vmatprep.mubr.f32.mxu1 %v10960_v22  ;;  %v6681_v40 = vpop.eup %6680 }
 0x3fd   :  { %6690 = vpow2.f32 %v1924_v5  ;;  %v1879_v19 = vpop.xlane.xlu1 %1878  ;;  %v1899_v56 = vsub.f32 %v8721_v15, %v1881_v54  ;;  %v2021_v62 = vmul.f32 %v6681_v40, %v8530_v61  ;;  %v8811_v61 = vsel %vm513_vm7, 1.0, %v10960_v22  ;;  %vm517_vm7 = vmand %vm11080_vm5, %vm8104_vm8  ;;  %v2941_v40 = vld [vmem:[#allocation7 + $0x5e8] sm:$0xff] }
 0x3fe   :  { %6692 = vpow2.f32 %v1922_v28  ;;  %v1898_v25 = vsub.f32 %v8728_v59, %v1879_v19  ;;  %v6683_v59 = vpop.eup %6682  ;;  %11076 = vst [vmem:[#allocation46_spill] sm:$0xff] %v8811_v61  ;;  %v8858_v23 = vsel %vm517_vm7, 1.0, %v10960_v22  ;;  %v8861_v28 = vsel %vm516_vm13, 1.0, %v10960_v22  ;;  %3121 = vmatprep.subr.mxu1 %v2941_v40  ;;  %v2921_v40 = vld [vmem:[#allocation7 + $0x548] sm:$0xff]  ;;  %vm519_vm7 = vmand %vm245_vm12, %vm8104_vm8 }
 0x3ff   :  { %v1928_v3 = vmul.f32 1.442695, %v1899_v56  ;;  %6694 = vrcp.f32 %v2005_v21  ;;  %2123 = vmatmul.mubr.f32.gmra.mxu0 %v2019_v4  ;;  %2284 = vmatmul.mubr.f32.gmra.mxu1 %v2019_v4  ;;  %11083 = vst [vmem:[#allocation52_spill] sm:$0xff] %v8858_v23  ;;  %11084 = vst [vmem:[#allocation53_spill] sm:$0xff] %v8861_v28  ;;  %v8880_v56 = vsel %vm518_vm2, 1.0, %v10960_v22 }
 0x400   :  { %v1926_v60 = vmul.f32 1.442695, %v1898_v25  ;;  %2128 = vmatprep.mubr.f32.mxu0 %v10960_v22  ;;  %2289 = vmatprep.mubr.f32.mxu1 %v10960_v22  ;;  %11086 = vst [vmem:[#allocation54_spill] sm:$0xff] %v8880_v56 }
 0x401   :  { %6696 = vpow2.f32 %v1928_v3  ;;  %v1883_v42 = vpop.xlane.xlu1 %1882  ;;  %v2812_v3 = vld [vmem:[#allocation7 + $0x1e0] sm:$0xff] }
 0x402   :  { %6698 = vpow2.f32 %v1926_v60  ;;  %v1900_v15 = vsub.f32 %v8741_v57, %v1883_v42  ;;  %v2023_v57 = vmul.f32 %v6683_v59, %v8439_v6  ;;  %v2940_v60 = vld [vmem:[#allocation7 + $0x5e0] sm:$0xff]  ;;  %v2809_v42 = vld [vmem:[#allocation7 + $0x1c8] sm:$0xff] }
 0x403   :  { %2129 = vmatmul.mubr.f32.gmra.mxu0 %v2021_v62  ;;  %2290 = vmatmul.mubr.f32.gmra.mxu1 %v2021_v62  ;;  %v2808_v62 = vld [vmem:[#allocation7 + $0x1c0] sm:$0xff] }
 0x404   :  { %v1930_v13 = vmul.f32 1.442695, %v1900_v15  ;;  %2134 = vmatprep.mubr.f32.mxu0 %v10960_v22  ;;  %2295 = vmatprep.mubr.f32.mxu1 %v10960_v22  ;;  %v2937_v15 = vld [vmem:[#allocation7 + $0x5c8] sm:$0xff]  ;;  %v2936_v59 = vld [vmem:[#allocation7 + $0x5c0] sm:$0xff] }
 0x405   :  { %3122 = vmatpush1.msra.mxu1 %v2940_v60  ;;  %v2789_v60 = vld [vmem:[#allocation7 + $0x128] sm:$0xff] }
 0x406   :  { %v6685_v43 = vpop.eup %6684  ;;  %6700 = vpow2.f32 %v1930_v13  ;;  %3123 = vmatprep.subr.mxu1 %v2937_v15  ;;  %v2805_v13 = vld [vmem:[#allocation7 + $0x1a8] sm:$0xff]  ;;  %v2788_v15 = vld [vmem:[#allocation7 + $0x120] sm:$0xff] }
 0x407   :  { %v6687_v51 = vpop.eup %6686  ;;  %v8819_v12 = vmul.f32 %v6685_v43, %v8811_v61  ;;  %2135 = vmatmul.mubr.f32.gmra.mxu0 %v2023_v57  ;;  %2296 = vmatmul.mubr.f32.gmra.mxu1 %v2023_v57  ;;  %v2933_v43 = vld [vmem:[#allocation7 + $0x5a8] sm:$0xff]  ;;  %v2804_v57 = vld [vmem:[#allocation7 + $0x1a0] sm:$0xff] }
 0x408   :  { %v6689_v6 = vpop.eup %6688  ;;  %2140 = vmatprep.mubr.f32.mxu0 %v10960_v22  ;;  %2301 = vmatprep.mubr.f32.mxu1 %v10960_v22  ;;  %v2025_v44 = vmul.f32 %v6687_v51, %v8590_v46  ;;  %v2932_v51 = vld [vmem:[#allocation7 + $0x5a0] sm:$0xff] }
 0x409   :  { %1968 = vadd.xlane.f32.xlu0 %v8819_v12  ;;  %v2027_v16 = vmul.f32 %v6689_v6, %v8575_v52  ;;  %3124 = vmatpush1.msra.mxu1 %v2936_v59  ;;  %v2785_v59 = vld [vmem:[#allocation7 + $0x108] sm:$0xff] }
 0x40a   :  { %v6691_v14 = vpop.eup %6690  ;;  %3125 = vmatprep.subr.mxu1 %v2933_v43  ;;  %v2784_v43 = vld [vmem:[#allocation7 + $0x100] sm:$0xff] }
 0x40b   :  { %v6693_v50 = vpop.eup %6692  ;;  %v8842_v24 = vmul.f32 %v6691_v14, %v8831_v45  ;;  %2141 = vmatmul.mubr.f32.gmra.mxu0 %v2025_v44  ;;  %2302 = vmatmul.mubr.f32.gmra.mxu1 %v2025_v44 }
 0x40c   :  { %v8850_v46 = vmul.f32 %v6693_v50, %v8839_v35  ;;  %v6695_v58 = vpop.eup %6694  ;;  %2146 = vmatprep.mubr.f32.mxu0 %v10960_v22  ;;  %2307 = vmatprep.mubr.f32.mxu1 %v10960_v22  ;;  %v2801_v50 = vld [vmem:[#allocation7 + $0x188] sm:$0xff] }
 0x40d   :  { %1972 = vadd.xlane.f32.xlu0 %v8842_v24  ;;  %v2029_v21 = vmul.f32 %v6695_v58, %v8641_v53  ;;  %v2813_v53 = vld [vmem:[#allocation7 + $0x1e8] sm:$0xff]  ;;  %3126 = vmatpush1.msra.mxu1 %v2932_v51 }
 0x40e   :  { %v6697_v36 = vpop.eup %6696  ;;  %1970 = vadd.xlane.f32.xlu1 %v8850_v46  ;;  %3008 = vmatprep.subr.mxu0 %v2813_v53  ;;  %v2929_v58 = vld [vmem:[#allocation7 + $0x588] sm:$0xff]  ;;  %v2924_v53 = vld [vmem:[#allocation7 + $0x560] sm:$0xff] }
 0x40f   :  { %v6699_v5 = vpop.eup %6698  ;;  %v8864_v54 = vmul.f32 %v6697_v36, %v8858_v23  ;;  %2147 = vmatmul.mubr.f32.gmra.mxu0 %v2027_v16  ;;  %2308 = vmatmul.mubr.f32.gmra.mxu1 %v2027_v16  ;;  %v2800_v16 = vld [vmem:[#allocation7 + $0x180] sm:$0xff]  ;;  %v2781_v51 = vld [vmem:[#allocation7 + $0xe8] sm:$0xff] }
 0x410   :  { %v8872_v52 = vmul.f32 %v6699_v5, %v8861_v28  ;;  %2152 = vmatprep.mubr.f32.mxu0 %v10960_v22  ;;  %2313 = vmatprep.mubr.f32.mxu1 %v10960_v22  ;;  %v2928_v5 = vld [vmem:[#allocation7 + $0x580] sm:$0xff] }
 0x411   :  { %1976 = vadd.xlane.f32.xlu0 %v8864_v54  ;;  %3009 = vmatpush1.msra.mxu0 %v2812_v3  ;;  %v2920_v3 = vld [vmem:[#allocation7 + $0x540] sm:$0xff] }
 0x412   :  { %1974 = vadd.xlane.f32.xlu1 %v8872_v52  ;;  %3010 = vmatprep.subr.mxu0 %v2809_v42  ;;  %v2917_v42 = vld [vmem:[#allocation7 + $0x528] sm:$0xff] }
 0x413   :  { %v6701_v19 = vpop.eup %6700  ;;  %2153 = vmatmul.mubr.f32.gmra.mxu0 %v2029_v21  ;;  %2314 = vmatmul.mubr.f32.gmra.mxu1 %v2029_v21  ;;  %v2797_v21 = vld [vmem:[#allocation7 + $0x168] sm:$0xff] }
 0x414   :  { %v8883_v27 = vmul.f32 %v6701_v19, %v8880_v56  ;;  %2158 = vmatprep.mubr.f32.mxu0 %v10960_v22  ;;  %2319 = vmatprep.mubr.f32.mxu1 %v10960_v22  ;;  %v2925_v19 = vld [vmem:[#allocation7 + $0x568] sm:$0xff] }
 0x415   :  { %3011 = vmatpush1.msra.mxu0 %v2808_v62  ;;  %3127 = vmatprep.subr.mxu1 %v2929_v58  ;;  %v2916_v62 = vld [vmem:[#allocation7 + $0x520] sm:$0xff]  ;;  %v2905_v58 = vld [vmem:[#allocation7 + $0x4c8] sm:$0xff] }
 0x416   :  { %1978 = vadd.xlane.f32.xlu1 %v8883_v27  ;;  %3012 = vmatprep.subr.mxu0 %v2805_v13  ;;  %v2913_v13 = vld [vmem:[#allocation7 + $0x508] sm:$0xff] }
 0x417   :  { %3013 = vmatpush1.msra.mxu0 %v2804_v57  ;;  %3128 = vmatpush1.msra.mxu1 %v2928_v5  ;;  %v2912_v57 = vld [vmem:[#allocation7 + $0x500] sm:$0xff]  ;;  %v2773_v5 = vld [vmem:[#allocation7 + $0xa8] sm:$0xff] }
 0x418   :  { %3014 = vmatprep.subr.mxu0 %v2801_v50  ;;  %3129 = vmatprep.subr.mxu1 %v2925_v19  ;;  %v2777_v50 = vld [vmem:[#allocation7 + $0xc8] sm:$0xff]  ;;  %v2772_v19 = vld [vmem:[#allocation7 + $0xa0] sm:$0xff] }
 0x419   :  { %3015 = vmatpush1.msra.mxu0 %v2800_v16  ;;  %3130 = vmatpush1.msra.mxu1 %v2924_v53  ;;  %v2904_v16 = vld [vmem:[#allocation7 + $0x4c0] sm:$0xff]  ;;  %v2897_v53 = vld [vmem:[#allocation7 + $0x488] sm:$0xff] }
 0x41a   :  { %3016 = vmatprep.subr.mxu0 %v2797_v21  ;;  %3131 = vmatprep.subr.mxu1 %v2921_v40  ;;  %v2901_v21 = vld [vmem:[#allocation7 + $0x4a8] sm:$0xff]  ;;  %v2896_v40 = vld [vmem:[#allocation7 + $0x480] sm:$0xff] }
 0x41b   :  { %3132 = vmatpush1.msra.mxu1 %v2920_v3  ;;  %v8898_v3 = vsel %vm519_vm7, 1.0, %v10960_v22 }
 0x41c   :  { %3133 = vmatprep.subr.mxu1 %v2917_v42  ;;  %11087 = vst [vmem:[#allocation55_spill] sm:$0xff] %v8898_v3  ;;  %v2893_v42 = vld [vmem:[#allocation7 + $0x468] sm:$0xff] }
 0x41d   :  { %3134 = vmatpush1.msra.mxu1 %v2916_v62  ;;  %v2892_v62 = vld [vmem:[#allocation7 + $0x460] sm:$0xff] }
 0x41e   :  { %3135 = vmatprep.subr.mxu1 %v2913_v13  ;;  %v2889_v13 = vld [vmem:[#allocation7 + $0x448] sm:$0xff] }
 0x41f   :  { %3136 = vmatpush1.msra.mxu1 %v2912_v57  ;;  %v2888_v57 = vld [vmem:[#allocation7 + $0x440] sm:$0xff] }
 0x436   :  { %v1967_v25 = vpop.xlane.xlu1 %1966 }
 0x437   :  { %vm1990_vm5 = vcmp.gt.f32.partialorder %v1967_v25, 0.0 }
 0x438   :  { %v2006_v4 = vsel %vm1990_vm5, %v1967_v25, 1.0 }
 0x439   :  { %6702 = vrcp.f32 %v2006_v4  ;;  %v2796_v4 = vld [vmem:[#allocation7 + $0x160] sm:$0xff] }
 0x43a   :  { %3017 = vmatpush1.msra.mxu0 %v2796_v4  ;;  %v2769_v4 = vld [vmem:[#allocation7 + $0x88] sm:$0xff] }
 0x445   :  { %v1885_v14 = vpop.xlane.xlu0 %1884 }
 0x446   :  { %v6703_v6 = vpop.eup %6702  ;;  %v1901_v36 = vsub.f32 %v8783_v9, %v1885_v14  ;;  %v2792_v9 = vld [vmem:[#allocation7 + $0x140] sm:$0xff] }
 0x447   :  { %v2031_v44 = vmul.f32 %v6703_v6, %v8754_v37  ;;  %v2793_v37 = vld [vmem:[#allocation7 + $0x148] sm:$0xff]  ;;  %v2780_v14 = vld [vmem:[#allocation7 + $0xe0] sm:$0xff] }
 0x448   :  { %v1932_v25 = vmul.f32 1.442695, %v1901_v36  ;;  %3018 = vmatprep.subr.mxu0 %v2793_v37  ;;  %v2909_v6 = vld [vmem:[#allocation7 + $0x4e8] sm:$0xff]  ;;  %v2776_v36 = vld [vmem:[#allocation7 + $0xc0] sm:$0xff] }
 0x449   :  { %2159 = vmatmul.mubr.f32.gmra.mxu0 %v2031_v44  ;;  %2320 = vmatmul.mubr.f32.gmra.mxu1 %v2031_v44  ;;  %v2908_v44 = vld [vmem:[#allocation7 + $0x4e0] sm:$0xff] }
 0x44a   :  { %2164 = vmatprep.mubr.f32.mxu0 %v10960_v22  ;;  %2325 = vmatprep.mubr.f32.mxu1 %v10960_v22  ;;  %6704 = vpow2.f32 %v1932_v25  ;;  %v2900_v25 = vld [vmem:[#allocation7 + $0x4a0] sm:$0xff] }
 0x44b   :  { %3019 = vmatpush1.msra.mxu0 %v2792_v9  ;;  %3137 = vmatprep.subr.mxu1 %v2909_v6  ;;  %v2768_v37 = vld [vmem:[#allocation7 + $0x80] sm:$0xff]  ;;  %v2885_v6 = vld [vmem:[#allocation7 + $0x428] sm:$0xff] }
 0x44c   :  { %3020 = vmatprep.subr.mxu0 %v2789_v60  ;;  %3138 = vmatpush1.msra.mxu1 %v2908_v44  ;;  %v2884_v44 = vld [vmem:[#allocation7 + $0x420] sm:$0xff] }
 0x44d   :  { %3021 = vmatpush1.msra.mxu0 %v2788_v15  ;;  %3139 = vmatprep.subr.mxu1 %v2905_v58  ;;  %v2764_v15 = vld [vmem:[#allocation7 + $0x60] sm:$0xff]  ;;  %v2881_v58 = vld [vmem:[#allocation7 + $0x408] sm:$0xff] }
 0x44e   :  { %3022 = vmatprep.subr.mxu0 %v2785_v59  ;;  %3140 = vmatpush1.msra.mxu1 %v2904_v16  ;;  %v2761_v59 = vld [vmem:[#allocation7 + $0x48] sm:$0xff]  ;;  %v2880_v16 = vld [vmem:[#allocation7 + $0x400] sm:$0xff] }
 0x44f   :  { %3023 = vmatpush1.msra.mxu0 %v2784_v43  ;;  %3141 = vmatprep.subr.mxu1 %v2901_v21  ;;  %v2760_v43 = vld [vmem:[#allocation7 + $0x40] sm:$0xff]  ;;  %v3005_v21 = vld [vmem:[#allocation7 + $0x7e8] sm:$0xff] }
 0x450   :  { %3024 = vmatprep.subr.mxu0 %v2781_v51  ;;  %3142 = vmatpush1.msra.mxu1 %v2900_v25  ;;  %v2757_v51 = vld [vmem:[#allocation7 + $0x28] sm:$0xff]  ;;  %v3004_v25 = vld [vmem:[#allocation7 + $0x7e0] sm:$0xff] }
 0x451   :  { %3025 = vmatpush1.msra.mxu0 %v2780_v14  ;;  %3143 = vmatprep.subr.mxu1 %v2897_v53  ;;  %v2756_v14 = vld [vmem:[#allocation7 + $0x20] sm:$0xff]  ;;  %v3001_v53 = vld [vmem:[#allocation7 + $0x7c8] sm:$0xff] }
 0x452   :  { %3026 = vmatprep.subr.mxu0 %v2777_v50  ;;  %3144 = vmatpush1.msra.mxu1 %v2896_v40  ;;  %v2753_v50 = vld [vmem:[#allocation7 + $0x8] sm:$0xff]  ;;  %v3000_v40 = vld [vmem:[#allocation7 + $0x7c0] sm:$0xff] }
 0x453   :  { %3027 = vmatpush1.msra.mxu0 %v2776_v36  ;;  %3145 = vmatprep.subr.mxu1 %v2893_v42  ;;  %v2752_v36 = vld [vmem:[#allocation7] sm:$0xff] }
 0x454   :  { %3028 = vmatprep.subr.mxu0 %v2773_v5  ;;  %3146 = vmatpush1.msra.mxu1 %v2892_v62  ;;  %v2877_v5 = vld [vmem:[#allocation7 + $0x3e8] sm:$0xff]  ;;  %v2868_v42 = vld [vmem:[#allocation7 + $0x3a0] sm:$0xff] }
 0x455   :  { %3029 = vmatpush1.msra.mxu0 %v2772_v19  ;;  %3147 = vmatprep.subr.mxu1 %v2889_v13  ;;  %v2876_v19 = vld [vmem:[#allocation7 + $0x3e0] sm:$0xff]  ;;  %v2865_v62 = vld [vmem:[#allocation7 + $0x388] sm:$0xff] }
 0x456   :  { %3030 = vmatprep.subr.mxu0 %v2769_v4  ;;  %3148 = vmatpush1.msra.mxu1 %v2888_v57  ;;  %v2873_v4 = vld [vmem:[#allocation7 + $0x3c8] sm:$0xff]  ;;  %v2864_v13 = vld [vmem:[#allocation7 + $0x380] sm:$0xff] }
 0x457   :  { %v6705_v9 = vpop.eup %6704  ;;  %3031 = vmatpush1.msra.mxu0 %v2768_v37  ;;  %3149 = vmatprep.subr.mxu1 %v2885_v6  ;;  %v2872_v37 = vld [vmem:[#allocation7 + $0x3c0] sm:$0xff]  ;;  %v2861_v57 = vld [vmem:[#allocation7 + $0x368] sm:$0xff] }
 0x458   :  { %v8901_v60 = vmul.f32 %v6705_v9, %v8898_v3  ;;  %3032 = vmatprep.subr.mxu0 %v2765_v47  ;;  %3150 = vmatpush1.msra.mxu1 %v2884_v44  ;;  %v2869_v9 = vld [vmem:[#allocation7 + $0x3a8] sm:$0xff]  ;;  %v2860_v6 = vld [vmem:[#allocation7 + $0x360] sm:$0xff] }
 0x459   :  { %3033 = vmatpush1.msra.mxu0 %v2764_v15  ;;  %3151 = vmatprep.subr.mxu1 %v2881_v58  ;;  %v2997_v47 = vld [vmem:[#allocation7 + $0x7a8] sm:$0xff]  ;;  %v2996_v15 = vld [vmem:[#allocation7 + $0x7a0] sm:$0xff] }
 0x45a   :  { %1980 = vadd.xlane.f32.xlu0 %v8901_v60  ;;  %3034 = vmatprep.subr.mxu0 %v2761_v59  ;;  %v2993_v59 = vld [vmem:[#allocation7 + $0x788] sm:$0xff]  ;;  %v2856_v58 = vld [vmem:[#allocation7 + $0x340] sm:$0xff] }
 0x45b   :  { %3035 = vmatpush1.msra.mxu0 %v2760_v43  ;;  %3152 = vmatpush1.msra.mxu1 %v2880_v16  ;;  %v2992_v43 = vld [vmem:[#allocation7 + $0x780] sm:$0xff]  ;;  %v2857_v44 = vld [vmem:[#allocation7 + $0x348] sm:$0xff] }
 0x45c   :  { %3036 = vmatprep.subr.mxu0 %v2757_v51  ;;  %3153 = vmatprep.subr.mxu1 %v3005_v21  ;;  %v2989_v51 = vld [vmem:[#allocation7 + $0x768] sm:$0xff]  ;;  %v2852_v21 = vld [vmem:[#allocation7 + $0x320] sm:$0xff] }
 0x45d   :  { %3037 = vmatpush1.msra.mxu0 %v2756_v14  ;;  %3154 = vmatpush2.msra.mxu1 %v3004_v25  ;;  %v2988_v14 = vld [vmem:[#allocation7 + $0x760] sm:$0xff]  ;;  %v2853_v16 = vld [vmem:[#allocation7 + $0x328] sm:$0xff] }
 0x45e   :  { %3038 = vmatprep.subr.mxu0 %v2753_v50  ;;  %3155 = vmatprep.subr.mxu1 %v3001_v53  ;;  %v2985_v50 = vld [vmem:[#allocation7 + $0x748] sm:$0xff]  ;;  %v2848_v53 = vld [vmem:[#allocation7 + $0x300] sm:$0xff] }
 0x45f   :  { %3039 = vmatpush1.msra.mxu0 %v2752_v36  ;;  %3156 = vmatpush2.msra.mxu1 %v3000_v40  ;;  %v2984_v36 = vld [vmem:[#allocation7 + $0x740] sm:$0xff]  ;;  %v2849_v25 = vld [vmem:[#allocation7 + $0x308] sm:$0xff] }
 0x460   :  { %3040 = vmatprep.subr.mxu0 %v2877_v5  ;;  %3157 = vmatprep.subr.mxu1 %v2997_v47  ;;  %v2981_v5 = vld [vmem:[#allocation7 + $0x728] sm:$0xff]  ;;  %v2844_v47 = vld [vmem:[#allocation7 + $0x2e0] sm:$0xff] }
 0x461   :  { %3041 = vmatpush2.msra.mxu0 %v2876_v19  ;;  %3158 = vmatpush2.msra.mxu1 %v2996_v15  ;;  %v2980_v19 = vld [vmem:[#allocation7 + $0x720] sm:$0xff]  ;;  %v2845_v40 = vld [vmem:[#allocation7 + $0x2e8] sm:$0xff] }
 0x462   :  { %3042 = vmatprep.subr.mxu0 %v2873_v4  ;;  %3159 = vmatprep.subr.mxu1 %v2993_v59  ;;  %v2977_v4 = vld [vmem:[#allocation7 + $0x708] sm:$0xff]  ;;  %v2840_v59 = vld [vmem:[#allocation7 + $0x2c0] sm:$0xff] }
 0x463   :  { %3043 = vmatpush2.msra.mxu0 %v2872_v37  ;;  %3160 = vmatpush2.msra.mxu1 %v2992_v43  ;;  %v2976_v37 = vld [vmem:[#allocation7 + $0x700] sm:$0xff]  ;;  %v2841_v15 = vld [vmem:[#allocation7 + $0x2c8] sm:$0xff] }
 0x464   :  { %3044 = vmatprep.subr.mxu0 %v2869_v9  ;;  %3161 = vmatprep.subr.mxu1 %v2989_v51  ;;  %v2973_v9 = vld [vmem:[#allocation7 + $0x6e8] sm:$0xff]  ;;  %v2836_v51 = vld [vmem:[#allocation7 + $0x2a0] sm:$0xff] }
 0x465   :  { %3045 = vmatpush2.msra.mxu0 %v2868_v42  ;;  %3162 = vmatpush2.msra.mxu1 %v2988_v14  ;;  %v2972_v42 = vld [vmem:[#allocation7 + $0x6e0] sm:$0xff]  ;;  %v2837_v43 = vld [vmem:[#allocation7 + $0x2a8] sm:$0xff] }
 0x466   :  { %3046 = vmatprep.subr.mxu0 %v2865_v62  ;;  %3163 = vmatprep.subr.mxu1 %v2985_v50  ;;  %v2969_v62 = vld [vmem:[#allocation7 + $0x6c8] sm:$0xff]  ;;  %v2832_v50 = vld [vmem:[#allocation7 + $0x280] sm:$0xff] }
 0x467   :  { %3047 = vmatpush2.msra.mxu0 %v2864_v13  ;;  %3164 = vmatpush2.msra.mxu1 %v2984_v36  ;;  %v2968_v13 = vld [vmem:[#allocation7 + $0x6c0] sm:$0xff]  ;;  %v2833_v14 = vld [vmem:[#allocation7 + $0x288] sm:$0xff] }
 0x468   :  { %3048 = vmatprep.subr.mxu0 %v2861_v57  ;;  %3165 = vmatprep.subr.mxu1 %v2981_v5  ;;  %v2965_v57 = vld [vmem:[#allocation7 + $0x6a8] sm:$0xff]  ;;  %v2828_v5 = vld [vmem:[#allocation7 + $0x260] sm:$0xff] }
 0x469   :  { %3049 = vmatpush2.msra.mxu0 %v2860_v6  ;;  %3166 = vmatpush2.msra.mxu1 %v2980_v19  ;;  %v2964_v6 = vld [vmem:[#allocation7 + $0x6a0] sm:$0xff]  ;;  %v2829_v36 = vld [vmem:[#allocation7 + $0x268] sm:$0xff] }
 0x46a   :  { %3050 = vmatprep.subr.mxu0 %v2857_v44  ;;  %3167 = vmatprep.subr.mxu1 %v2977_v4  ;;  %v2961_v44 = vld [vmem:[#allocation7 + $0x688] sm:$0xff]  ;;  %v2824_v4 = vld [vmem:[#allocation7 + $0x240] sm:$0xff] }
 0x46b   :  { %3051 = vmatpush2.msra.mxu0 %v2856_v58  ;;  %3168 = vmatpush2.msra.mxu1 %v2976_v37  ;;  %v2960_v58 = vld [vmem:[#allocation7 + $0x680] sm:$0xff]  ;;  %v2825_v19 = vld [vmem:[#allocation7 + $0x248] sm:$0xff] }
 0x46c   :  { %3052 = vmatprep.subr.mxu0 %v2853_v16  ;;  %3169 = vmatprep.subr.mxu1 %v2973_v9  ;;  %v2957_v16 = vld [vmem:[#allocation7 + $0x668] sm:$0xff]  ;;  %v2820_v9 = vld [vmem:[#allocation7 + $0x220] sm:$0xff] }
 0x46d   :  { %3053 = vmatpush2.msra.mxu0 %v2852_v21  ;;  %3170 = vmatpush2.msra.mxu1 %v2972_v42  ;;  %v2956_v21 = vld [vmem:[#allocation7 + $0x660] sm:$0xff]  ;;  %v2821_v37 = vld [vmem:[#allocation7 + $0x228] sm:$0xff] }
 0x46e   :  { %3054 = vmatprep.subr.mxu0 %v2849_v25  ;;  %3171 = vmatprep.subr.mxu1 %v2969_v62  ;;  %v2953_v25 = vld [vmem:[#allocation7 + $0x648] sm:$0xff]  ;;  %v2816_v62 = vld [vmem:[#allocation7 + $0x200] sm:$0xff] }
 0x46f   :  { %3055 = vmatpush2.msra.mxu0 %v2848_v53  ;;  %3172 = vmatpush2.msra.mxu1 %v2968_v13  ;;  %v2952_v53 = vld [vmem:[#allocation7 + $0x640] sm:$0xff]  ;;  %v2817_v42 = vld [vmem:[#allocation7 + $0x208] sm:$0xff]  ;;  %v2815_v13 = vld [vmem:[#allocation7 + $0x1f8] sm:$0xff] }
 0x470   :  { %3056 = vmatprep.subr.mxu0 %v2845_v40  ;;  %3173 = vmatprep.subr.mxu1 %v2965_v57  ;;  %v2949_v40 = vld [vmem:[#allocation7 + $0x628] sm:$0xff] }
 0x471   :  { %3057 = vmatpush2.msra.mxu0 %v2844_v47  ;;  %3174 = vmatpush2.msra.mxu1 %v2964_v6  ;;  %v2948_v47 = vld [vmem:[#allocation7 + $0x620] sm:$0xff] }
 0x472   :  { %3058 = vmatprep.subr.mxu0 %v2841_v15  ;;  %3175 = vmatprep.subr.mxu1 %v2961_v44  ;;  %v2945_v15 = vld [vmem:[#allocation7 + $0x608] sm:$0xff] }
 0x473   :  { %3059 = vmatpush2.msra.mxu0 %v2840_v59  ;;  %3176 = vmatpush2.msra.mxu1 %v2960_v58  ;;  %v2944_v59 = vld [vmem:[#allocation7 + $0x600] sm:$0xff] }
 0x474   :  { %3060 = vmatprep.subr.mxu0 %v2837_v43  ;;  %3177 = vmatprep.subr.mxu1 %v2957_v16  ;;  %v2943_v43 = vld [vmem:[#allocation7 + $0x5f8] sm:$0xff] }
 0x475   :  { %3061 = vmatpush2.msra.mxu0 %v2836_v51  ;;  %3178 = vmatpush2.msra.mxu1 %v2956_v21 }
 0x476   :  { %3062 = vmatprep.subr.mxu0 %v2833_v14  ;;  %3179 = vmatprep.subr.mxu1 %v2953_v25 }
 0x477   :  { %3063 = vmatpush2.msra.mxu0 %v2832_v50  ;;  %3180 = vmatpush2.msra.mxu1 %v2952_v53 }
 0x478   :  { %3064 = vmatprep.subr.mxu0 %v2829_v36  ;;  %3181 = vmatprep.subr.mxu1 %v2949_v40 }
 0x479   :  { %3065 = vmatpush2.msra.mxu0 %v2828_v5  ;;  %3182 = vmatpush2.msra.mxu1 %v2948_v47 }
 0x47a   :  { %3066 = vmatprep.subr.mxu0 %v2825_v19  ;;  %3183 = vmatprep.subr.mxu1 %v2945_v15 }
 0x47b   :  { %3067 = vmatpush2.msra.mxu0 %v2824_v4  ;;  %3184 = vmatpush2.msra.mxu1 %v2944_v59 }
 0x47c   :  { %3068 = vmatprep.subr.mxu0 %v2821_v37  ;;  %3347 = vmatprep.subr.mxu1 %v2943_v43 }
 0x47d   :  { %3069 = vmatpush2.msra.mxu0 %v2820_v9 }
 0x47e   :  { %3070 = vmatprep.subr.mxu0 %v2817_v42 }
 0x47f   :  { %3071 = vmatpush2.msra.mxu0 %v2816_v62 }
 0x480   :  { %3234 = vmatprep.subr.mxu0 %v2815_v13 }
 0x486   :  { %v8924_v62 = vpop.f32.mrf.mxu1 }
 0x488   :  { %v8928_v59 = vpop.f32.mrf.mxu1 }
 0x492   :  { %v1969_v57 = vpop.xlane.xlu0 %1968 }
 0x493   :  { %vm1991_vm12 = vcmp.gt.f32.partialorder %v1969_v57, 0.0 }
 0x494   :  { %v2007_v51 = vsel %vm1991_vm12, %v1969_v57, 1.0 }
 0x495   :  { %6706 = vrcp.f32 %v2007_v51 }
 0x496   :  { %v1973_v6 = vpop.xlane.xlu0 %1972 }
 0x497   :  { %v1971_v14 = vpop.xlane.xlu1 %1970  ;;  %vm1993_vm10 = vcmp.gt.f32.partialorder %v1973_v6, 0.0 }
 0x498   :  { %vm1992_vm13 = vcmp.gt.f32.partialorder %v1971_v14, 0.0  ;;  %v2009_v50 = vsel %vm1993_vm10, %v1973_v6, 1.0  ;;  %vm2370_vm10 = vcmp.gt.f32.partialorder %v8924_v62, 0.0 }
 0x499   :  { %v2008_v44 = vsel %vm1992_vm13, %v1971_v14, 1.0 }
 0x49a   :  { %6708 = vrcp.f32 %v2008_v44  ;;  %v1977_v36 = vpop.xlane.xlu0 %1976 }
 0x49b   :  { %v1975_v58 = vpop.xlane.xlu1 %1974  ;;  %6710 = vrcp.f32 %v2009_v50  ;;  %vm1995_vm2 = vcmp.gt.f32.partialorder %v1977_v36, 0.0 }
 0x49c   :  { %vm1994_vm4 = vcmp.gt.f32.partialorder %v1975_v58, 0.0  ;;  %v2011_v21 = vsel %vm1995_vm2, %v1977_v36, 1.0 }
 0x49d   :  { %v2010_v16 = vsel %vm1994_vm4, %v1975_v58, 1.0  ;;  %v2435_v58 = vmin.f32 %v8928_v59, 0.0  ;;  %vm2371_vm4 = vcmp.gt.f32.partialorder %v8928_v59, 0.0 }
 0x49e   :  { %6712 = vrcp.f32 %v2010_v16 }
 0x49f   :  { %v1979_v5 = vpop.xlane.xlu1 %1978  ;;  %6714 = vrcp.f32 %v2011_v21  ;;  %v2434_v21 = vmin.f32 %v8924_v62, 0.0 }
 0x4a0   :  { %vm1996_vm5 = vcmp.gt.f32.partialorder %v1979_v5, 0.0 }
 0x4a1   :  { %v2012_v4 = vsel %vm1996_vm5, %v1979_v5, 1.0 }
 0x4a2   :  { %v6707_v19 = vpop.eup %6706  ;;  %6716 = vrcp.f32 %v2012_v4  ;;  %v2502_v4 = vmul.f32 1.442695, %v2435_v58 }
 0x4a3   :  { %v2033_v25 = vmul.f32 %v6707_v19, %v8819_v12 }
 0x4a5   :  { %2165 = vmatmul.mubr.f32.gmra.mxu0 %v2033_v25  ;;  %2326 = vmatmul.mubr.f32.gmra.mxu1 %v2033_v25 }
 0x4a6   :  { %2170 = vmatprep.mubr.f32.mxu0 %v10960_v22  ;;  %2331 = vmatprep.mubr.f32.mxu1 %v10960_v22 }
 0x4a7   :  { %v6709_v53 = vpop.eup %6708 }
 0x4a8   :  { %v2035_v37 = vmul.f32 %v6709_v53, %v8850_v46  ;;  %v6711_v40 = vpop.eup %6710 }
 0x4a9   :  { %v2037_v12 = vmul.f32 %v6711_v40, %v8842_v24 }
 0x4aa   :  { %2171 = vmatmul.mubr.f32.gmra.mxu0 %v2035_v37  ;;  %2332 = vmatmul.mubr.f32.gmra.mxu1 %v2035_v37 }
 0x4ab   :  { %2176 = vmatprep.mubr.f32.mxu0 %v10960_v22  ;;  %2337 = vmatprep.mubr.f32.mxu1 %v10960_v22  ;;  %v6713_v9 = vpop.eup %6712 }
 0x4ac   :  { %v2039_v47 = vmul.f32 %v6713_v9, %v8872_v52  ;;  %v6715_v42 = vpop.eup %6714  ;;  %v8922_v52 = vpop.f32.mrf.mxu0  ;;  %v2500_v9 = vmul.f32 1.442695, %v2434_v21 }
 0x4ad   :  { %v2041_v46 = vmul.f32 %v6715_v42, %v8864_v54  ;;  %v2432_v16 = vmin.f32 %v8922_v52, 0.0  ;;  %vm2368_vm12 = vcmp.gt.f32.partialorder %v8922_v52, 0.0 }
 0x4ae   :  { %2177 = vmatmul.mubr.f32.gmra.mxu0 %v2037_v12  ;;  %2338 = vmatmul.mubr.f32.gmra.mxu1 %v2037_v12  ;;  %v8926_v54 = vpop.f32.mrf.mxu0 }
 0x4af   :  { %2182 = vmatprep.mubr.f32.mxu0 %v10960_v22  ;;  %2343 = vmatprep.mubr.f32.mxu1 %v10960_v22  ;;  %v6717_v15 = vpop.eup %6716  ;;  %v2433_v50 = vmin.f32 %v8926_v54, 0.0  ;;  %v2496_v37 = vmul.f32 1.442695, %v2432_v16  ;;  %vm2369_vm13 = vcmp.gt.f32.partialorder %v8926_v54, 0.0 }
 0x4b0   :  { %v2043_v24 = vmul.f32 %v6717_v15, %v8883_v27 }
 0x4b1   :  { %v2498_v19 = vmul.f32 1.442695, %v2433_v50 }
 0x4b2   :  { %2183 = vmatmul.mubr.f32.gmra.mxu0 %v2039_v47  ;;  %2344 = vmatmul.mubr.f32.gmra.mxu1 %v2039_v47 }
 0x4b3   :  { %2188 = vmatprep.mubr.f32.mxu0 %v10960_v22  ;;  %2349 = vmatprep.mubr.f32.mxu1 %v10960_v22  ;;  %6718 = vpow2.f32 %v2498_v19 }
 0x4b4   :  { %6720 = vpow2.f32 %v2502_v4 }
 0x4b5   :  { %6722 = vpow2.f32 %v2496_v37 }
 0x4b6   :  { %2189 = vmatmul.mubr.f32.gmra.mxu0 %v2041_v46  ;;  %2350 = vmatmul.mubr.f32.gmra.mxu1 %v2041_v46  ;;  %6724 = vpow2.f32 %v2500_v9 }
 0x4b7   :  { %2194 = vmatprep.mubr.f32.mxu0 %v10960_v22  ;;  %2355 = vmatprep.mubr.f32.mxu1 %v10960_v22 }
 0x4ba   :  { %2195 = vmatmul.mubr.f32.gmra.mxu0 %v2043_v24  ;;  %2356 = vmatmul.mubr.f32.gmra.mxu1 %v2043_v24 }
 0x4bb   :  { %2200 = vmatprep.mubr.f32.mxu0 %v10960_v22  ;;  %2361 = vmatprep.mubr.f32.mxu1 %v10960_v22  ;;  %v8930_v13 = vpop.f32.mrf.mxu0  ;;  %v8932_v43 = vpop.f32.mrf.mxu1 }
 0x4bc   :  { %v2436_v42 = vmin.f32 %v8930_v13, 0.0  ;;  %v2438_v15 = vmin.f32 %v8932_v43, 0.0 }
 0x4bd   :  { %v8934_v57 = vpop.f32.mrf.mxu0  ;;  %v8936_v27 = vpop.f32.mrf.mxu1 }
 0x4be   :  { %v2437_v25 = vmin.f32 %v8934_v57, 0.0  ;;  %v2439_v40 = vmin.f32 %v8936_v27, 0.0  ;;  %v2508_v4 = vmul.f32 1.442695, %v2438_v15  ;;  %vm2373_vm2 = vcmp.gt.f32.partialorder %v8934_v57, 0.0 }
 0x4bf   :  { %v8938_v51 = vpop.f32.mrf.mxu0  ;;  %v8940_v6 = vpop.f32.mrf.mxu1  ;;  %vm2375_vm5 = vcmp.gt.f32.partialorder %v8936_v27, 0.0 }
 0x4c0   :  { %v2506_v47 = vmul.f32 1.442695, %v2437_v25  ;;  %v2510_v24 = vmul.f32 1.442695, %v2439_v40  ;;  %v2504_v25 = vmul.f32 1.442695, %v2436_v42  ;;  %v6719_v23 = vpop.eup %6718 }
 0x4c1   :  { %v8942_v14 = vpop.f32.mrf.mxu0  ;;  %v8944_v44 = vpop.f32.mrf.mxu1  ;;  %v2440_v40 = vmin.f32 %v8938_v51, 0.0  ;;  %v2442_v9 = vmin.f32 %v8940_v6, 0.0 }
 0x4c2   :  { %v2441_v16 = vmin.f32 %v8942_v14, 0.0  ;;  %6726 = vpow2.f32 %v2506_v47  ;;  %v2443_v21 = vmin.f32 %v8944_v44, 0.0  ;;  %v6721_v45 = vpop.eup %6720 }
 0x4c3   :  { %v8948_v36 = vpop.f32.mrf.mxu0  ;;  %v8951_v5 = vpop.f32.mrf.mxu1  ;;  %v6571_v11 = vadd.f32 -1.0, %v6721_v45 }
 0x4c4   :  { %v2514_v3 = vmul.f32 1.442695, %v2441_v16  ;;  %v2518_v56 = vmul.f32 1.442695, %v2443_v21  ;;  %v2444_v16 = vmin.f32 %v8948_v36, 0.0  ;;  %v2446_v21 = vmin.f32 %v8951_v5, 0.0  ;;  %v6723_v61 = vpop.eup %6722 }
 0x4c5   :  { %v8955_v53 = vpop.f32.mrf.mxu0  ;;  %v8958_v12 = vpop.f32.mrf.mxu1  ;;  %v6568_v33 = vadd.f32 -1.0, %v6723_v61 }
 0x4c6   :  { %v2445_v47 = vmin.f32 %v8955_v53, 0.0  ;;  %v2524_v34 = vmul.f32 1.442695, %v2446_v21  ;;  %v9004_v21 = vsel %vm2371_vm4, %v8928_v59, %v6571_v11  ;;  %v2814_v59 = vld [vmem:[#allocation7 + $0x1f0] sm:$0xff]  ;;  %vm2376_vm4 = vcmp.gt.f32.partialorder %v8938_v51, 0.0 }
 0x4c7   :  { %v8961_v46 = vpop.f32.mrf.mxu0  ;;  %v8964_v50 = vpop.f32.mrf.mxu1  ;;  %v9016_v11 = vsel %vm2368_vm12, %v8922_v52, %v6568_v33  ;;  %vm2374_vm12 = vcmp.gt.f32.partialorder %v8932_v43, 0.0 }
 0x4c8   :  { %v2522_v28 = vmul.f32 1.442695, %v2445_v47  ;;  %v6569_v47 = vadd.f32 -1.0, %v6719_v23  ;;  %v2450_v23 = vmin.f32 %v8964_v50, 0.0 }
 0x4c9   :  { %v8968_v29 = vpop.f32.mrf.mxu0  ;;  %v8970_v37 = vpop.f32.mrf.mxu1 }
 0x4ca   :  { %v2449_v55 = vmin.f32 %v8968_v29, 0.0  ;;  %v2532_v31 = vmul.f32 1.442695, %v2450_v23 }
 0x4cb   :  { %v8976_v42 = vpop.f32.mrf.mxu0  ;;  %v8978_v15 = vpop.f32.mrf.mxu1 }
 0x4cc   :  { %v2530_v49 = vmul.f32 1.442695, %v2449_v55  ;;  %v2452_v33 = vmin.f32 %v8976_v42, 0.0  ;;  %v2454_v52 = vmin.f32 %v8978_v15, 0.0 }
 0x4cd   :  { %v8982_v35 = vpop.f32.mrf.mxu0 }
 0x4ce   :  { %v2453_v61 = vmin.f32 %v8982_v35, 0.0  ;;  %v2540_v48 = vmul.f32 1.442695, %v2454_v52 }
 0x4d0   :  { %v2538_v1 = vmul.f32 1.442695, %v2453_v61 }
 0x4e3   :  { %v1981_v58 = vpop.xlane.xlu0 %1980 }
 0x4e4   :  { %vm1997_vm7 = vcmp.gt.f32.partialorder %v1981_v58, 0.0 }
 0x4e5   :  { %v2013_v19 = vsel %vm1997_vm7, %v1981_v58, 1.0  ;;  %v2447_v58 = vmin.f32 %v8958_v12, 0.0  ;;  %vm2372_vm7 = vcmp.gt.f32.partialorder %v8930_v13, 0.0 }
 0x4e6   :  { %6728 = vrcp.f32 %v2013_v19  ;;  %v2516_v19 = vmul.f32 1.442695, %v2442_v9  ;;  %v2520_v9 = vmul.f32 1.442695, %v2444_v16 }
 0x4e7   :  { %6730 = vpow2.f32 %v2510_v24  ;;  %v2512_v24 = vmul.f32 1.442695, %v2440_v40  ;;  %v6725_v40 = vpop.eup %6724 }
 0x4e8   :  { %6732 = vpow2.f32 %v2504_v25  ;;  %v2526_v25 = vmul.f32 1.442695, %v2447_v58  ;;  %v6570_v0 = vadd.f32 -1.0, %v6725_v40 }
 0x4e9   :  { %6734 = vpow2.f32 %v2508_v4  ;;  %v8984_v4 = vpop.f32.mrf.mxu1 }
 0x4ea   :  { %6736 = vpow2.f32 %v2514_v3  ;;  %v6727_v3 = vpop.eup %6726 }
 0x4eb   :  { %6738 = vpow2.f32 %v2518_v56  ;;  %v2451_v56 = vmin.f32 %v8970_v37, 0.0  ;;  %v8992_v17 = vpop.f32.mrf.mxu1 }
 0x4ec   :  { %6740 = vpow2.f32 %v2512_v24  ;;  %v8990_v24 = vpop.f32.mrf.mxu0 }
 0x4ed   :  { %6742 = vpow2.f32 %v2516_v19  ;;  %v2448_v19 = vmin.f32 %v8961_v46, 0.0  ;;  %v2534_v45 = vmul.f32 1.442695, %v2451_v56  ;;  %v9009_v40 = vpop.f32.mrf.mxu1  ;;  %v6573_v56 = vadd.f32 -1.0, %v6727_v3 }
 0x4ee   :  { %6744 = vpow2.f32 %v2522_v28  ;;  %v9001_v28 = vsel %vm2369_vm13, %v8926_v54, %v6569_v47  ;;  %v2942_v47 = vld [vmem:[#allocation7 + $0x5f0] sm:$0xff]  ;;  %vm2379_vm13 = vcmp.gt.f32.partialorder %v8944_v44, 0.0 }
 0x4ef   :  { %6746 = vpow2.f32 %v2526_v25  ;;  %v9007_v25 = vpop.f32.mrf.mxu0  ;;  %v2528_v54 = vmul.f32 1.442695, %v2448_v19  ;;  %v9031_v23 = vpop.f32.mrf.mxu1 }
 0x4f0   :  { %6748 = vpow2.f32 %v2520_v9 }
 0x4f1   :  { %6750 = vpow2.f32 %v2524_v34  ;;  %v9021_v34 = vsel %vm2370_vm10, %v8924_v62, %v6570_v0  ;;  %v2939_v0 = vld [vmem:[#allocation7 + $0x5d8] sm:$0xff]  ;;  %v9029_v19 = vpop.f32.mrf.mxu0  ;;  %vm2377_vm10 = vcmp.gt.f32.partialorder %v8942_v14, 0.0 }
 0x4f2   :  { %6752 = vpow2.f32 %v2530_v49 }
 0x4f3   :  { %v6729_v58 = vpop.eup %6728  ;;  %6754 = vpow2.f32 %v2534_v45  ;;  %v9036_v45 = vsel %vm2373_vm2, %v8934_v57, %v6573_v56  ;;  %v2807_v57 = vld [vmem:[#allocation7 + $0x1b8] sm:$0xff]  ;;  %v9051_v26 = vpop.f32.mrf.mxu0  ;;  %vm2378_vm2 = vcmp.gt.f32.partialorder %v8940_v6, 0.0 }
 0x4f4   :  { %v6731_v32 = vpop.eup %6730  ;;  %v2045_v16 = vmul.f32 %v6729_v58, %v8901_v60  ;;  %v2455_v60 = vmin.f32 %v8984_v4, 0.0  ;;  %6756 = vpow2.f32 %v2528_v54  ;;  %v2935_v56 = vld [vmem:[#allocation7 + $0x5b8] sm:$0xff]  ;;  %v2536_v54 = vmul.f32 1.442695, %v2452_v33 }
 0x4f5   :  { %v6733_v55 = vpop.eup %6732  ;;  %v6575_v9 = vadd.f32 -1.0, %v6731_v32  ;;  %v2811_v32 = vld [vmem:[#allocation7 + $0x1d8] sm:$0xff]  ;;  %6758 = vpow2.f32 %v2532_v31  ;;  %v9053_v31 = vpop.f32.mrf.mxu1  ;;  %v2458_v33 = vmin.f32 %v8992_v17, 0.0 }
 0x4f6   :  { %2201 = vmatmul.mubr.f32.gmra.mxu0 %v2045_v16  ;;  %2362 = vmatmul.mubr.f32.gmra.mxu1 %v2045_v16  ;;  %v6735_v58 = vpop.eup %6734  ;;  %v6572_v49 = vadd.f32 -1.0, %v6733_v55  ;;  %v2542_v62 = vmul.f32 1.442695, %v2455_v60  ;;  %v2457_v60 = vmin.f32 %v9007_v25, 0.0  ;;  %6760 = vpow2.f32 %v2538_v1 }
 0x4f7   :  { %3072 = vmatprep.mubr.f32.mxu0 %v9001_v28  ;;  %3185 = vmatprep.mubr.f32.mxu1 %v9004_v21  ;;  %v6737_v16 = vpop.eup %6736  ;;  %v9041_v61 = vsel %vm2375_vm5, %v8936_v27, %v6575_v9  ;;  %v6574_v55 = vadd.f32 -1.0, %v6735_v58  ;;  %vm2381_vm5 = vcmp.gt.f32.partialorder %v8955_v53, 0.0  ;;  %v2548_v41 = vmul.f32 1.442695, %v2458_v33 }
 0x4f8   :  { %v6739_v3 = vpop.eup %6738  ;;  %v6577_v27 = vadd.f32 -1.0, %v6737_v16  ;;  %6762 = vpow2.f32 %v2542_v62  ;;  %v9058_v1 = vsel %vm2372_vm7, %v8930_v13, %v6572_v49  ;;  %v2931_v16 = vld [vmem:[#allocation7 + $0x598] sm:$0xff]  ;;  %v2546_v52 = vmul.f32 1.442695, %v2457_v60  ;;  %v2802_v49 = vld [vmem:[#allocation7 + $0x190] sm:$0xff] }
 0x4f9   :  { %v6579_v9 = vadd.f32 -1.0, %v6739_v3  ;;  %v2456_v3 = vmin.f32 %v8990_v24, 0.0  ;;  %v2930_v62 = vld [vmem:[#allocation7 + $0x590] sm:$0xff]  ;;  %6764 = vpow2.f32 %v2536_v54  ;;  %vm2383_vm7 = vcmp.gt.f32.partialorder %v8958_v12, 0.0 }
 0x4fa   :  { %3073 = vmatmul.mubr.f32.vlgmr.msra.gmra.mxu0 %v9016_v11  ;;  %3186 = vmatmul.mubr.f32.vlgmr.msra.gmra.mxu1 %v9021_v34  ;;  %v9072_v13 = vsel %vm2377_vm10, %v8942_v14, %v6577_v27  ;;  %v2799_v14 = vld [vmem:[#allocation7 + $0x178] sm:$0xff]  ;;  %6766 = vpow2.f32 %v2540_v48  ;;  %v2462_v33 = vmin.f32 %v9031_v23, 0.0  ;;  %vm2382_vm10 = vcmp.gt.f32.partialorder %v8951_v5, 0.0 }
 0x4fb   :  { %3235 = vmatpush1.msra.mxu0 %v2814_v59  ;;  %3348 = vmatpush1.msra.mxu1 %v2942_v47  ;;  %v2459_v59 = vmin.f32 %v9009_v40, 0.0  ;;  %v6741_v47 = vpop.eup %6740  ;;  %v2544_v27 = vmul.f32 1.442695, %v2456_v3  ;;  %6768 = vpow2.f32 %v2546_v52  ;;  %v2460_v3 = vmin.f32 %v9029_v19, 0.0 }
 0x4fc   :  { %3078 = vmatprep.mubr.f32.mxu0 %v9036_v45  ;;  %3191 = vmatprep.mubr.f32.mxu1 %v9041_v61  ;;  %v6743_v58 = vpop.eup %6742 }
 0x4fd   :  { %3236 = vmatprep.subr.mxu0 %v2811_v32  ;;  %3349 = vmatprep.subr.mxu1 %v2939_v0  ;;  %v6745_v2 = vpop.eup %6744  ;;  %v2550_v0 = vmul.f32 1.442695, %v2459_v59  ;;  %v6578_v60 = vadd.f32 -1.0, %v6743_v58  ;;  %v2927_v59 = vld [vmem:[#allocation7 + $0x578] sm:$0xff]  ;;  %v2926_v58 = vld [vmem:[#allocation7 + $0x570] sm:$0xff] }
 0x4fe   :  { %3237 = vmatpush1.msra.mxu0 %v2810_v20  ;;  %3350 = vmatpush1.msra.mxu1 %v2938_v38  ;;  %v9063_v38 = vsel %vm2374_vm12, %v8932_v43, %v6574_v55  ;;  %v2803_v20 = vld [vmem:[#allocation7 + $0x198] sm:$0xff]  ;;  %v6747_v32 = vpop.eup %6746  ;;  %v9077_v43 = vsel %vm2379_vm13, %v8944_v44, %v6579_v9  ;;  %v6576_v55 = vadd.f32 -1.0, %v6741_v47  ;;  %v6581_v44 = vadd.f32 -1.0, %v6745_v2  ;;  %v2798_v9 = vld [vmem:[#allocation7 + $0x170] sm:$0xff] }
 0x4ff   :  { %3238 = vmatprep.subr.mxu0 %v2807_v57  ;;  %3351 = vmatprep.subr.mxu1 %v2935_v56  ;;  %v6749_v57 = vpop.eup %6748  ;;  %v6583_v56 = vadd.f32 -1.0, %v6747_v32  ;;  %6770 = vpow2.f32 %v2550_v0  ;;  %v9095_v2 = vsel %vm2378_vm2, %v8940_v6, %v6578_v60  ;;  %vm2380_vm12 = vcmp.gt.f32.partialorder %v8948_v36, 0.0 }
 0x500   :  { %3079 = vmatmul.mubr.f32.gmra.mxu0 %v9058_v1  ;;  %3192 = vmatmul.mubr.f32.gmra.mxu1 %v9063_v38  ;;  %v6751_v47 = vpop.eup %6750  ;;  %v9090_v48 = vsel %vm2376_vm4, %v8938_v51, %v6576_v55  ;;  %v9104_v51 = vsel %vm2381_vm5, %v8955_v53, %v6581_v44  ;;  %v6580_v55 = vadd.f32 -1.0, %v6749_v57  ;;  %6772 = vpow2.f32 %v2544_v27  ;;  %v2790_v57 = vld [vmem:[#allocation7 + $0x130] sm:$0xff] }
 0x501   :  { %3239 = vmatpush1.msra.mxu0 %v2806_v8  ;;  %3352 = vmatpush1.msra.mxu1 %v2934_v39  ;;  %v2461_v8 = vmin.f32 %v9051_v26, 0.0  ;;  %v2463_v39 = vmin.f32 %v9053_v31, 0.0  ;;  %v6753_v54 = vpop.eup %6752  ;;  %v9109_v6 = vsel %vm2383_vm7, %v8958_v12, %v6583_v56  ;;  %v6582_v60 = vadd.f32 -1.0, %v6751_v47  ;;  %v2918_v56 = vld [vmem:[#allocation7 + $0x530] sm:$0xff] }
 0x502   :  { %3084 = vmatprep.mubr.f32.mxu0 %v9072_v13  ;;  %3197 = vmatprep.mubr.f32.mxu1 %v9077_v43  ;;  %v6755_v32 = vpop.eup %6754  ;;  %6774 = vpow2.f32 %v2548_v41  ;;  %v6585_v53 = vadd.f32 -1.0, %v6753_v54  ;;  %v2552_v12 = vmul.f32 1.442695, %v2460_v3  ;;  %v2556_v27 = vmul.f32 1.442695, %v2462_v33  ;;  %v2787_v54 = vld [vmem:[#allocation7 + $0x118] sm:$0xff] }
 0x503   :  { %3240 = vmatprep.subr.mxu0 %v2803_v20  ;;  %3353 = vmatprep.subr.mxu1 %v2931_v16  ;;  %v2795_v20 = vld [vmem:[#allocation7 + $0x158] sm:$0xff]  ;;  %v2554_v52 = vmul.f32 1.442695, %v2461_v8  ;;  %v2558_v0 = vmul.f32 1.442695, %v2463_v39  ;;  %v9116_v41 = vsel %vm2380_vm12, %v8948_v36, %v6580_v55  ;;  %vm2385_vm13 = vcmp.gt.f32.partialorder %v8968_v29, 0.0 }
 0x504   :  { %3241 = vmatpush1.msra.mxu0 %v2802_v49  ;;  %3354 = vmatpush1.msra.mxu1 %v2930_v62  ;;  %v2923_v16 = vld [vmem:[#allocation7 + $0x558] sm:$0xff]  ;;  %v2794_v49 = vld [vmem:[#allocation7 + $0x150] sm:$0xff]  ;;  %vm2387_vm4 = vcmp.gt.f32.partialorder %v8970_v37, 0.0  ;;  %vm2384_vm2 = vcmp.gt.f32.partialorder %v8961_v46, 0.0  ;;  %vm2386_vm5 = vcmp.gt.f32.partialorder %v8964_v50, 0.0  ;;  %vm2389_vm7 = vcmp.gt.f32.partialorder %v8982_v35, 0.0 }
 0x505   :  { %3242 = vmatprep.subr.mxu0 %v2799_v14  ;;  %3355 = vmatprep.subr.mxu1 %v2927_v59  ;;  %v2922_v62 = vld [vmem:[#allocation7 + $0x550] sm:$0xff]  ;;  %v2791_v8 = vld [vmem:[#allocation7 + $0x138] sm:$0xff]  ;;  %v6757_v14 = vpop.eup %6756  ;;  %v6587_v59 = vadd.f32 -1.0, %v6755_v32  ;;  %6776 = vpow2.f32 %v2554_v52  ;;  %vm2391_vm12 = vcmp.gt.f32.partialorder %v8984_v4, 0.0 }
 0x506   :  { %3085 = vmatmul.mubr.f32.gmra.mxu0 %v9090_v48  ;;  %3198 = vmatmul.mubr.f32.gmra.mxu1 %v9095_v2  ;;  %v2919_v39 = vld [vmem:[#allocation7 + $0x538] sm:$0xff]  ;;  %v6759_v44 = vpop.eup %6758  ;;  %6778 = vpow2.f32 %v2558_v0  ;;  %v2914_v32 = vld [vmem:[#allocation7 + $0x510] sm:$0xff]  ;;  %v6584_v3 = vadd.f32 -1.0, %v6757_v14 }
 0x507   :  { %3243 = vmatpush1.msra.mxu0 %v2798_v9  ;;  %3356 = vmatpush1.msra.mxu1 %v2926_v58  ;;  %v6761_v47 = vpop.eup %6760  ;;  %v9119_v9 = vsel %vm2382_vm10, %v8951_v5, %v6582_v60  ;;  %v9129_v36 = vsel %vm2387_vm4, %v8970_v37, %v6587_v59  ;;  %v2786_v5 = vld [vmem:[#allocation7 + $0x110] sm:$0xff]  ;;  %v6586_v33 = vadd.f32 -1.0, %v6759_v44  ;;  %6780 = vpow2.f32 %v2552_v12  ;;  %v2783_v52 = vld [vmem:[#allocation7 + $0xf8] sm:$0xff] }
 0x508   :  { %3090 = vmatprep.mubr.f32.mxu0 %v9104_v51  ;;  %3203 = vmatprep.mubr.f32.mxu1 %v9109_v6  ;;  %v6763_v58 = vpop.eup %6762  ;;  %v2911_v0 = vld [vmem:[#allocation7 + $0x4f8] sm:$0xff]  ;;  %6782 = vpow2.f32 %v2556_v27  ;;  %v2782_v37 = vld [vmem:[#allocation7 + $0xf0] sm:$0xff]  ;;  %vm2388_vm10 = vcmp.gt.f32.partialorder %v8976_v42, 0.0  ;;  %vm2393_vm4 = vcmp.gt.f32.partialorder %v9007_v25, 0.0 }
 0x509   :  { %3244 = vmatprep.subr.mxu0 %v2795_v20  ;;  %3357 = vmatprep.subr.mxu1 %v2923_v16  ;;  %v2915_v20 = vld [vmem:[#allocation7 + $0x518] sm:$0xff]  ;;  %v9126_v16 = vsel %vm2385_vm13, %v8968_v29, %v6585_v53  ;;  %v6589_v29 = vadd.f32 -1.0, %v6761_v47  ;;  %v2910_v60 = vld [vmem:[#allocation7 + $0x4f0] sm:$0xff]  ;;  %v9139_v14 = vsel %vm2386_vm5, %v8964_v50, %v6586_v33  ;;  %vm2390_vm13 = vcmp.gt.f32.partialorder %v8978_v15, 0.0 }
 0x50a   :  { %3245 = vmatpush1.msra.mxu0 %v2794_v49  ;;  %3358 = vmatpush1.msra.mxu1 %v2922_v62  ;;  %v6765_v49 = vpop.eup %6764  ;;  %v6591_v62 = vadd.f32 -1.0, %v6763_v58  ;;  %v2779_v59 = vld [vmem:[#allocation7 + $0xd8] sm:$0xff]  ;;  %v2778_v50 = vld [vmem:[#allocation7 + $0xd0] sm:$0xff]  ;;  %vm2392_vm5 = vcmp.gt.f32.partialorder %v8990_v24, 0.0 }
 0x50b   :  { %3246 = vmatprep.subr.mxu0 %v2791_v8  ;;  %3359 = vmatprep.subr.mxu1 %v2919_v39  ;;  %v6767_v55 = vpop.eup %6766  ;;  %v9136_v39 = vsel %vm2384_vm2, %v8961_v46, %v6584_v3  ;;  %v2907_v44 = vld [vmem:[#allocation7 + $0x4d8] sm:$0xff]  ;;  %v9146_v12 = vsel %vm2389_vm7, %v8982_v35, %v6589_v29  ;;  %vm2395_vm2 = vcmp.gt.f32.partialorder %v9009_v40, 0.0  ;;  %vm2394_vm7 = vcmp.gt.f32.partialorder %v8992_v17, 0.0 }
 0x50c   :  { %3091 = vmatmul.mubr.f32.gmra.mxu0 %v9116_v41  ;;  %3204 = vmatmul.mubr.f32.gmra.mxu1 %v9119_v9  ;;  %v6769_v8 = vpop.eup %6768  ;;  %v9149_v46 = vsel %vm2391_vm12, %v8984_v4, %v6591_v62  ;;  %v6590_v47 = vadd.f32 -1.0, %v6767_v55  ;;  %v2775_v27 = vld [vmem:[#allocation7 + $0xb8] sm:$0xff]  ;;  %v2774_v4 = vld [vmem:[#allocation7 + $0xb0] sm:$0xff]  ;;  %vm2397_vm12 = vcmp.gt.f32.partialorder %v9051_v26, 0.0 }
 0x50d   :  { %3247 = vmatpush1.msra.mxu0 %v2790_v57  ;;  %3360 = vmatpush1.msra.mxu1 %v2918_v56  ;;  %v6771_v53 = vpop.eup %6770  ;;  %v2906_v57 = vld [vmem:[#allocation7 + $0x4d0] sm:$0xff]  ;;  %v6588_v56 = vadd.f32 -1.0, %v6765_v49  ;;  %v2903_v58 = vld [vmem:[#allocation7 + $0x4b8] sm:$0xff] }
 0x50e   :  { %3096 = vmatprep.mubr.f32.mxu0 %v9126_v16  ;;  %3209 = vmatprep.mubr.f32.mxu1 %v9129_v36  ;;  %v2771_v49 = vld [vmem:[#allocation7 + $0x98] sm:$0xff]  ;;  %v2898_v55 = vld [vmem:[#allocation7 + $0x490] sm:$0xff] }
 0x50f   :  { %3248 = vmatprep.subr.mxu0 %v2787_v54  ;;  %3361 = vmatprep.subr.mxu1 %v2915_v20  ;;  %v6773_v54 = vpop.eup %6772  ;;  %v6593_v20 = vadd.f32 -1.0, %v6769_v8  ;;  %v9156_v33 = vsel %vm2388_vm10, %v8976_v42, %v6588_v56  ;;  %v2899_v29 = vld [vmem:[#allocation7 + $0x498] sm:$0xff]  ;;  %vm2399_vm10 = vcmp.gt.f32.partialorder %v9053_v31, 0.0 }
 0x510   :  { %3249 = vmatpush1.msra.mxu0 %v2786_v5  ;;  %3362 = vmatpush1.msra.mxu1 %v2914_v32  ;;  %v6595_v5 = vadd.f32 -1.0, %v6771_v53  ;;  %v6775_v35 = vpop.eup %6774  ;;  %v2902_v32 = vld [vmem:[#allocation7 + $0x4b0] sm:$0xff]  ;;  %v2767_v8 = vld [vmem:[#allocation7 + $0x78] sm:$0xff] }
 0x511   :  { %3250 = vmatprep.subr.mxu0 %v2783_v52  ;;  %3363 = vmatprep.subr.mxu1 %v2911_v0  ;;  %v9159_v52 = vsel %vm2390_vm13, %v8978_v15, %v6590_v47  ;;  %v9166_v62 = vsel %vm2393_vm4, %v9007_v25, %v6593_v20  ;;  %v2770_v15 = vld [vmem:[#allocation7 + $0x90] sm:$0xff]  ;;  %v2895_v53 = vld [vmem:[#allocation7 + $0x478] sm:$0xff]  ;;  %vm2396_vm13 = vcmp.gt.f32.partialorder %v9029_v19, 0.0  ;;  %vm2398_vm4 = vcmp.gt.f32.partialorder %v9031_v23, 0.0 }
 0x512   :  { %3097 = vmatmul.mubr.f32.gmra.mxu0 %v9136_v39  ;;  %3210 = vmatmul.mubr.f32.gmra.mxu1 %v9139_v14  ;;  %v6777_v3 = vpop.eup %6776  ;;  %v9169_v42 = vsel %vm2395_vm2, %v9009_v40, %v6595_v5  ;;  %v2766_v40 = vld [vmem:[#allocation7 + $0x70] sm:$0xff] }
 0x513   :  { %3251 = vmatpush1.msra.mxu0 %v2782_v37  ;;  %3364 = vmatpush1.msra.mxu1 %v2910_v60  ;;  %v6779_v0 = vpop.eup %6778  ;;  %v6592_v37 = vadd.f32 -1.0, %v6773_v54  ;;  %v6594_v60 = vadd.f32 -1.0, %v6775_v35  ;;  %v2890_v20 = vld [vmem:[#allocation7 + $0x450] sm:$0xff] }
 0x514   :  { %3102 = vmatprep.mubr.f32.mxu0 %v9146_v12  ;;  %3215 = vmatprep.mubr.f32.mxu1 %v9149_v46 }
 0x515   :  { %3252 = vmatprep.subr.mxu0 %v2779_v59  ;;  %3365 = vmatprep.subr.mxu1 %v2907_v44  ;;  %v6781_v59 = vpop.eup %6780  ;;  %v6597_v44 = vadd.f32 -1.0, %v6777_v3  ;;  %v9176_v56 = vsel %vm2392_vm5, %v8990_v24, %v6592_v37  ;;  %v9179_v47 = vsel %vm2394_vm7, %v8992_v17, %v6594_v60  ;;  %v2762_v17 = vld [vmem:[#allocation7 + $0x50] sm:$0xff]  ;;  %v2879_v37 = vld [vmem:[#allocation7 + $0x3f8] sm:$0xff] }
 0x516   :  { %3253 = vmatpush1.msra.mxu0 %v2778_v50  ;;  %3366 = vmatpush1.msra.mxu1 %v2906_v57  ;;  %v6599_v50 = vadd.f32 -1.0, %v6779_v0  ;;  %v6783_v25 = vpop.eup %6782  ;;  %v2894_v57 = vld [vmem:[#allocation7 + $0x470] sm:$0xff]  ;;  %v6596_v5 = vadd.f32 -1.0, %v6781_v59  ;;  %v3007_v60 = vld [vmem:[#allocation7 + $0x7f8] sm:$0xff] }
 0x517   :  { %3254 = vmatprep.subr.mxu0 %v2775_v27  ;;  %3367 = vmatprep.subr.mxu1 %v2903_v58  ;;  %v2763_v27 = vld [vmem:[#allocation7 + $0x58] sm:$0xff]  ;;  %v9186_v54 = vsel %vm2397_vm12, %v9051_v26, %v6597_v44  ;;  %v6598_v35 = vadd.f32 -1.0, %v6783_v25  ;;  %v2758_v26 = vld [vmem:[#allocation7 + $0x30] sm:$0xff] }
 0x518   :  { %3103 = vmatmul.mubr.f32.gmra.mxu0 %v9156_v33  ;;  %3216 = vmatmul.mubr.f32.gmra.mxu1 %v9159_v52  ;;  %v2891_v58 = vld [vmem:[#allocation7 + $0x458] sm:$0xff]  ;;  %v9189_v24 = vsel %vm2399_vm10, %v9053_v31, %v6599_v50  ;;  %v2886_v31 = vld [vmem:[#allocation7 + $0x430] sm:$0xff]  ;;  %v9196_v3 = vsel %vm2396_vm13, %v9029_v19, %v6596_v5 }
 0x519   :  { %3255 = vmatpush1.msra.mxu0 %v2774_v4  ;;  %3368 = vmatpush1.msra.mxu1 %v2902_v32  ;;  %v2759_v4 = vld [vmem:[#allocation7 + $0x38] sm:$0xff]  ;;  %v9199_v0 = vsel %vm2398_vm4, %v9031_v23, %v6598_v35  ;;  %v2878_v19 = vld [vmem:[#allocation7 + $0x3f0] sm:$0xff] }
 0x51a   :  { %3108 = vmatprep.mubr.f32.mxu0 %v9166_v62  ;;  %3221 = vmatprep.mubr.f32.mxu1 %v9169_v42  ;;  %v2887_v32 = vld [vmem:[#allocation7 + $0x438] sm:$0xff]  ;;  %v3006_v23 = vld [vmem:[#allocation7 + $0x7f0] sm:$0xff] }
 0x51b   :  { %3256 = vmatprep.subr.mxu0 %v2771_v49  ;;  %3369 = vmatprep.subr.mxu1 %v2899_v29  ;;  %v2755_v49 = vld [vmem:[#allocation7 + $0x18] sm:$0xff]  ;;  %v2874_v59 = vld [vmem:[#allocation7 + $0x3d0] sm:$0xff] }
 0x51c   :  { %3257 = vmatpush1.msra.mxu0 %v2770_v15  ;;  %3370 = vmatpush1.msra.mxu1 %v2898_v55  ;;  %v2883_v29 = vld [vmem:[#allocation7 + $0x418] sm:$0xff]  ;;  %v2754_v15 = vld [vmem:[#allocation7 + $0x10] sm:$0xff] }
 0x51d   :  { %3258 = vmatprep.subr.mxu0 %v2767_v8  ;;  %3371 = vmatprep.subr.mxu1 %v2895_v53  ;;  %v2882_v55 = vld [vmem:[#allocation7 + $0x410] sm:$0xff]  ;;  %v2875_v8 = vld [vmem:[#allocation7 + $0x3d8] sm:$0xff] }
 0x51e   :  { %3109 = vmatmul.mubr.f32.gmra.mxu0 %v9176_v56  ;;  %3222 = vmatmul.mubr.f32.gmra.mxu1 %v9179_v47  ;;  %v3003_v53 = vld [vmem:[#allocation7 + $0x7d8] sm:$0xff]  ;;  %v3002_v44 = vld [vmem:[#allocation7 + $0x7d0] sm:$0xff] }
 0x51f   :  { %3259 = vmatpush1.msra.mxu0 %v2766_v40  ;;  %3372 = vmatpush1.msra.mxu1 %v2894_v57  ;;  %v2871_v50 = vld [vmem:[#allocation7 + $0x3b8] sm:$0xff]  ;;  %v2998_v40 = vld [vmem:[#allocation7 + $0x7b0] sm:$0xff] }
 0x520   :  { %3114 = vmatprep.mubr.f32.mxu0 %v9186_v54  ;;  %3227 = vmatprep.mubr.f32.mxu1 %v9189_v24  ;;  %v2999_v25 = vld [vmem:[#allocation7 + $0x7b8] sm:$0xff]  ;;  %v2862_v5 = vld [vmem:[#allocation7 + $0x370] sm:$0xff] }
 0x521   :  { %3260 = vmatprep.subr.mxu0 %v2763_v27  ;;  %3373 = vmatprep.subr.mxu1 %v2891_v58  ;;  %v2995_v57 = vld [vmem:[#allocation7 + $0x798] sm:$0xff]  ;;  %v2866_v27 = vld [vmem:[#allocation7 + $0x390] sm:$0xff] }
 0x522   :  { %3261 = vmatpush1.msra.mxu0 %v2762_v17  ;;  %3374 = vmatpush1.msra.mxu1 %v2890_v20  ;;  %v2994_v58 = vld [vmem:[#allocation7 + $0x790] sm:$0xff]  ;;  %v2863_v17 = vld [vmem:[#allocation7 + $0x378] sm:$0xff] }
 0x523   :  { %3262 = vmatprep.subr.mxu0 %v2759_v4  ;;  %3375 = vmatprep.subr.mxu1 %v2887_v32  ;;  %v2991_v20 = vld [vmem:[#allocation7 + $0x778] sm:$0xff]  ;;  %v2990_v35 = vld [vmem:[#allocation7 + $0x770] sm:$0xff] }
 0x524   :  { %3115 = vmatmul.mubr.f32.gmra.mxu0 %v9196_v3  ;;  %3228 = vmatmul.mubr.f32.gmra.mxu1 %v9199_v0  ;;  %v2859_v4 = vld [vmem:[#allocation7 + $0x358] sm:$0xff] }
 0x525   :  { %3263 = vmatpush1.msra.mxu0 %v2758_v26  ;;  %3376 = vmatpush1.msra.mxu1 %v2886_v31  ;;  %v2987_v32 = vld [vmem:[#allocation7 + $0x758] sm:$0xff]  ;;  %v2858_v26 = vld [vmem:[#allocation7 + $0x350] sm:$0xff] }
 0x526   :  { %3264 = vmatprep.subr.mxu0 %v2755_v49  ;;  %3298 = vmatprep.mubr.f32.mxu0 %v9001_v28  ;;  %v2870_v28 = vld [vmem:[#allocation7 + $0x3b0] sm:$0xff]  ;;  %v2855_v49 = vld [vmem:[#allocation7 + $0x338] sm:$0xff] }
 0x527   :  { %3377 = vmatprep.subr.mxu1 %v2883_v29  ;;  %3411 = vmatprep.mubr.f32.mxu1 %v9004_v21  ;;  %v2867_v21 = vld [vmem:[#allocation7 + $0x398] sm:$0xff]  ;;  %v2986_v31 = vld [vmem:[#allocation7 + $0x750] sm:$0xff] }
 0x528   :  { %3265 = vmatpush1.msra.mxu0 %v2754_v15  ;;  %3378 = vmatpush1.msra.mxu1 %v2882_v55  ;;  %v2983_v29 = vld [vmem:[#allocation7 + $0x738] sm:$0xff]  ;;  %v2854_v15 = vld [vmem:[#allocation7 + $0x330] sm:$0xff] }
 0x529   :  { %3266 = vmatprep.subr.mxu0 %v2879_v37  ;;  %3379 = vmatprep.subr.mxu1 %v3007_v60  ;;  %v2982_v55 = vld [vmem:[#allocation7 + $0x730] sm:$0xff]  ;;  %v2851_v37 = vld [vmem:[#allocation7 + $0x318] sm:$0xff] }
 0x52a   :  { %3267 = vmatpush2.msra.mxu0 %v2878_v19  ;;  %3380 = vmatpush2.msra.mxu1 %v3006_v23  ;;  %v2979_v60 = vld [vmem:[#allocation7 + $0x718] sm:$0xff]  ;;  %v2850_v19 = vld [vmem:[#allocation7 + $0x310] sm:$0xff] }
 0x52b   :  { %3268 = vmatprep.subr.mxu0 %v2875_v8  ;;  %3381 = vmatprep.subr.mxu1 %v3003_v53  ;;  %v2978_v23 = vld [vmem:[#allocation7 + $0x710] sm:$0xff]  ;;  %v2847_v8 = vld [vmem:[#allocation7 + $0x2f8] sm:$0xff] }
 0x52c   :  { %3269 = vmatpush2.msra.mxu0 %v2874_v59  ;;  %3382 = vmatpush2.msra.mxu1 %v3002_v44  ;;  %v2975_v53 = vld [vmem:[#allocation7 + $0x6f8] sm:$0xff]  ;;  %v2846_v59 = vld [vmem:[#allocation7 + $0x2f0] sm:$0xff] }
 0x52d   :  { %3270 = vmatprep.subr.mxu0 %v2871_v50  ;;  %3383 = vmatprep.subr.mxu1 %v2999_v25  ;;  %v2974_v44 = vld [vmem:[#allocation7 + $0x6f0] sm:$0xff]  ;;  %v2843_v50 = vld [vmem:[#allocation7 + $0x2d8] sm:$0xff] }
 0x52e   :  { %3271 = vmatpush2.msra.mxu0 %v2870_v28  ;;  %3384 = vmatpush2.msra.mxu1 %v2998_v40  ;;  %v2971_v25 = vld [vmem:[#allocation7 + $0x6d8] sm:$0xff]  ;;  %v2842_v28 = vld [vmem:[#allocation7 + $0x2d0] sm:$0xff] }
 0x52f   :  { %3272 = vmatprep.subr.mxu0 %v2867_v21  ;;  %3385 = vmatprep.subr.mxu1 %v2995_v57  ;;  %v2970_v40 = vld [vmem:[#allocation7 + $0x6d0] sm:$0xff]  ;;  %v2839_v21 = vld [vmem:[#allocation7 + $0x2b8] sm:$0xff] }
 0x530   :  { %3273 = vmatpush2.msra.mxu0 %v2866_v27  ;;  %3386 = vmatpush2.msra.mxu1 %v2994_v58  ;;  %v2967_v57 = vld [vmem:[#allocation7 + $0x6b8] sm:$0xff]  ;;  %v2838_v27 = vld [vmem:[#allocation7 + $0x2b0] sm:$0xff] }
 0x531   :  { %3274 = vmatprep.subr.mxu0 %v2863_v17  ;;  %3387 = vmatprep.subr.mxu1 %v2991_v20  ;;  %v2966_v58 = vld [vmem:[#allocation7 + $0x6b0] sm:$0xff]  ;;  %v2835_v17 = vld [vmem:[#allocation7 + $0x298] sm:$0xff] }
 0x532   :  { %3275 = vmatpush2.msra.mxu0 %v2862_v5  ;;  %3388 = vmatpush2.msra.mxu1 %v2990_v35  ;;  %v2963_v20 = vld [vmem:[#allocation7 + $0x698] sm:$0xff]  ;;  %v2834_v5 = vld [vmem:[#allocation7 + $0x290] sm:$0xff] }
 0x533   :  { %3276 = vmatprep.subr.mxu0 %v2859_v4  ;;  %3389 = vmatprep.subr.mxu1 %v2987_v32  ;;  %v2962_v35 = vld [vmem:[#allocation7 + $0x690] sm:$0xff]  ;;  %v2831_v4 = vld [vmem:[#allocation7 + $0x278] sm:$0xff] }
 0x534   :  { %3277 = vmatpush2.msra.mxu0 %v2858_v26  ;;  %3390 = vmatpush2.msra.mxu1 %v2986_v31  ;;  %v2959_v32 = vld [vmem:[#allocation7 + $0x678] sm:$0xff]  ;;  %v2830_v26 = vld [vmem:[#allocation7 + $0x270] sm:$0xff] }
 0x535   :  { %3278 = vmatprep.subr.mxu0 %v2855_v49  ;;  %3391 = vmatprep.subr.mxu1 %v2983_v29  ;;  %v2958_v31 = vld [vmem:[#allocation7 + $0x670] sm:$0xff]  ;;  %v2827_v49 = vld [vmem:[#allocation7 + $0x258] sm:$0xff] }
 0x536   :  { %3279 = vmatpush2.msra.mxu0 %v2854_v15  ;;  %3392 = vmatpush2.msra.mxu1 %v2982_v55  ;;  %v2955_v29 = vld [vmem:[#allocation7 + $0x658] sm:$0xff]  ;;  %v2826_v15 = vld [vmem:[#allocation7 + $0x250] sm:$0xff] }
 0x537   :  { %3280 = vmatprep.subr.mxu0 %v2851_v37  ;;  %3393 = vmatprep.subr.mxu1 %v2979_v60  ;;  %v2954_v55 = vld [vmem:[#allocation7 + $0x650] sm:$0xff]  ;;  %v2823_v37 = vld [vmem:[#allocation7 + $0x238] sm:$0xff] }
 0x538   :  { %3281 = vmatpush2.msra.mxu0 %v2850_v19  ;;  %3394 = vmatpush2.msra.mxu1 %v2978_v23  ;;  %v2951_v60 = vld [vmem:[#allocation7 + $0x638] sm:$0xff]  ;;  %v2822_v19 = vld [vmem:[#allocation7 + $0x230] sm:$0xff] }
 0x539   :  { %3282 = vmatprep.subr.mxu0 %v2847_v8  ;;  %3395 = vmatprep.subr.mxu1 %v2975_v53  ;;  %v2950_v23 = vld [vmem:[#allocation7 + $0x630] sm:$0xff]  ;;  %v2819_v8 = vld [vmem:[#allocation7 + $0x218] sm:$0xff] }
 0x53a   :  { %3283 = vmatpush2.msra.mxu0 %v2846_v59  ;;  %3396 = vmatpush2.msra.mxu1 %v2974_v44  ;;  %v2947_v53 = vld [vmem:[#allocation7 + $0x618] sm:$0xff]  ;;  %v2818_v59 = vld [vmem:[#allocation7 + $0x210] sm:$0xff] }
 0x53b   :  { %3284 = vmatprep.subr.mxu0 %v2843_v50  ;;  %3397 = vmatprep.subr.mxu1 %v2971_v25  ;;  %v2946_v44 = vld [vmem:[#allocation7 + $0x610] sm:$0xff]  ;;  %v3521_v50 = vld [vmem:[#allocation9 + $0x1e8] sm:$0xff] }
 0x53c   :  { %3285 = vmatpush2.msra.mxu0 %v2842_v28  ;;  %3398 = vmatpush2.msra.mxu1 %v2970_v40  ;;  %v3649_v25 = vld [vmem:[#allocation9 + $0x5e8] sm:$0xff]  ;;  %v3520_v28 = vld [vmem:[#allocation9 + $0x1e0] sm:$0xff] }
 0x53d   :  { %3286 = vmatprep.subr.mxu0 %v2839_v21  ;;  %3399 = vmatprep.subr.mxu1 %v2967_v57  ;;  %v3648_v40 = vld [vmem:[#allocation9 + $0x5e0] sm:$0xff]  ;;  %v3517_v21 = vld [vmem:[#allocation9 + $0x1c8] sm:$0xff] }
 0x53e   :  { %3287 = vmatpush2.msra.mxu0 %v2838_v27  ;;  %3400 = vmatpush2.msra.mxu1 %v2966_v58  ;;  %v3645_v57 = vld [vmem:[#allocation9 + $0x5c8] sm:$0xff]  ;;  %v3516_v27 = vld [vmem:[#allocation9 + $0x1c0] sm:$0xff] }
 0x53f   :  { %3288 = vmatprep.subr.mxu0 %v2835_v17  ;;  %3401 = vmatprep.subr.mxu1 %v2963_v20  ;;  %v3644_v58 = vld [vmem:[#allocation9 + $0x5c0] sm:$0xff]  ;;  %v3513_v17 = vld [vmem:[#allocation9 + $0x1a8] sm:$0xff] }
 0x540   :  { %3289 = vmatpush2.msra.mxu0 %v2834_v5  ;;  %3402 = vmatpush2.msra.mxu1 %v2962_v35  ;;  %v3640_v20 = vld [vmem:[#allocation9 + $0x5a0] sm:$0xff]  ;;  %v9211_v5 = vpop.f32.mrf.mxu0 }
 0x541   :  { %3290 = vmatprep.subr.mxu0 %v2831_v4  ;;  %3403 = vmatprep.subr.mxu1 %v2959_v32  ;;  %v3508_v35 = vld [vmem:[#allocation9 + $0x180] sm:$0xff]  ;;  %v9215_v32 = vpop.f32.mrf.mxu1  ;;  %vm2400_vm7 = vcmp.gt.f32.partialorder %v9211_v5, 0.0 }
 0x542   :  { %3291 = vmatpush2.msra.mxu0 %v2830_v26  ;;  %3404 = vmatpush2.msra.mxu1 %v2958_v31  ;;  %v3636_v4 = vld [vmem:[#allocation9 + $0x580] sm:$0xff]  ;;  %v9217_v26 = vpop.f32.mrf.mxu0  ;;  %vm2402_vm12 = vcmp.gt.f32.partialorder %v9215_v32, 0.0 }
 0x543   :  { %3292 = vmatprep.subr.mxu0 %v2827_v49  ;;  %3405 = vmatprep.subr.mxu1 %v2955_v29  ;;  %v9221_v31 = vpop.f32.mrf.mxu1  ;;  %v3501_v49 = vld [vmem:[#allocation9 + $0x148] sm:$0xff]  ;;  %vm2401_vm2 = vcmp.gt.f32.partialorder %v9217_v26, 0.0 }
 0x544   :  { %3293 = vmatpush2.msra.mxu0 %v2826_v15  ;;  %3406 = vmatpush2.msra.mxu1 %v2954_v55  ;;  %v3629_v29 = vld [vmem:[#allocation9 + $0x548] sm:$0xff]  ;;  %v3500_v15 = vld [vmem:[#allocation9 + $0x140] sm:$0xff]  ;;  %vm2403_vm5 = vcmp.gt.f32.partialorder %v9221_v31, 0.0 }
 0x545   :  { %3294 = vmatprep.subr.mxu0 %v2823_v37  ;;  %3407 = vmatprep.subr.mxu1 %v2951_v60  ;;  %v3628_v55 = vld [vmem:[#allocation9 + $0x540] sm:$0xff]  ;;  %v2465_v37 = vmin.f32 %v9217_v26, 0.0  ;;  %v3625_v60 = vld [vmem:[#allocation9 + $0x528] sm:$0xff] }
 0x546   :  { %3295 = vmatpush2.msra.mxu0 %v2822_v19  ;;  %3408 = vmatpush2.msra.mxu1 %v2950_v23  ;;  %v3493_v23 = vld [vmem:[#allocation9 + $0x108] sm:$0xff] }
 0x547   :  { %3296 = vmatprep.subr.mxu0 %v2819_v8  ;;  %3409 = vmatprep.subr.mxu1 %v2947_v53  ;;  %v2562_v19 = vmul.f32 1.442695, %v2465_v37  ;;  %v3621_v8 = vld [vmem:[#allocation9 + $0x508] sm:$0xff] }
 0x548   :  { %3297 = vmatpush2.msra.mxu0 %v2818_v59  ;;  %3410 = vmatpush2.msra.mxu1 %v2946_v44  ;;  %v3492_v59 = vld [vmem:[#allocation9 + $0x100] sm:$0xff]  ;;  %v3593_v37 = vld [vmem:[#allocation9 + $0x428] sm:$0xff] }
 0x549   :  { %3299 = vmatmul.mubr.f32.vlgmr.msra.gmra.mxu0 %v9016_v11  ;;  %3412 = vmatmul.mubr.f32.vlgmr.msra.gmra.mxu1 %v9021_v34  ;;  %v3641_v11 = vld [vmem:[#allocation9 + $0x5a8] sm:$0xff]  ;;  %v3512_v34 = vld [vmem:[#allocation9 + $0x1a0] sm:$0xff]  ;;  %6784 = vpow2.f32 %v2562_v19 }
 0x54a   :  { %3716 = vmatprep.subr.mxu0 %v3521_v50  ;;  %3829 = vmatprep.subr.mxu1 %v3649_v25  ;;  %v3620_v44 = vld [vmem:[#allocation9 + $0x500] sm:$0xff]  ;;  %v3613_v25 = vld [vmem:[#allocation9 + $0x4c8] sm:$0xff] }
 0x54b   :  { %3304 = vmatprep.mubr.f32.mxu0 %v9036_v45  ;;  %3417 = vmatprep.mubr.f32.mxu1 %v9041_v61  ;;  %v3509_v45 = vld [vmem:[#allocation9 + $0x188] sm:$0xff]  ;;  %v3488_v50 = vld [vmem:[#allocation9 + $0xe0] sm:$0xff] }
 0x54c   :  { %3717 = vmatpush1.msra.mxu0 %v3520_v28  ;;  %3830 = vmatpush1.msra.mxu1 %v3648_v40  ;;  %v3637_v61 = vld [vmem:[#allocation9 + $0x588] sm:$0xff]  ;;  %v3484_v28 = vld [vmem:[#allocation9 + $0xc0] sm:$0xff] }
 0x54d   :  { %3718 = vmatprep.subr.mxu0 %v3517_v21  ;;  %3831 = vmatprep.subr.mxu1 %v3645_v57  ;;  %v3612_v40 = vld [vmem:[#allocation9 + $0x4c0] sm:$0xff] }
 0x54e   :  { %3719 = vmatpush1.msra.mxu0 %v3516_v27  ;;  %3832 = vmatpush1.msra.mxu1 %v3644_v58 }
 0x54f   :  { %3305 = vmatmul.mubr.f32.gmra.mxu0 %v9058_v1  ;;  %3418 = vmatmul.mubr.f32.gmra.mxu1 %v9063_v38  ;;  %v3505_v1 = vld [vmem:[#allocation9 + $0x168] sm:$0xff] }
 0x550   :  { %3720 = vmatprep.subr.mxu0 %v3513_v17  ;;  %3833 = vmatprep.subr.mxu1 %v3641_v11  ;;  %v3633_v38 = vld [vmem:[#allocation9 + $0x568] sm:$0xff] }
 0x551   :  { %3310 = vmatprep.mubr.f32.mxu0 %v9072_v13  ;;  %3423 = vmatprep.mubr.f32.mxu1 %v9077_v43  ;;  %v3504_v13 = vld [vmem:[#allocation9 + $0x160] sm:$0xff]  ;;  %v3477_v17 = vld [vmem:[#allocation9 + $0x88] sm:$0xff] }
 0x552   :  { %3721 = vmatpush1.msra.mxu0 %v3512_v34  ;;  %3834 = vmatpush1.msra.mxu1 %v3640_v20  ;;  %v3632_v43 = vld [vmem:[#allocation9 + $0x560] sm:$0xff]  ;;  %v3605_v11 = vld [vmem:[#allocation9 + $0x488] sm:$0xff] }
 0x553   :  { %3722 = vmatprep.subr.mxu0 %v3509_v45  ;;  %3835 = vmatprep.subr.mxu1 %v3637_v61  ;;  %v3476_v45 = vld [vmem:[#allocation9 + $0x80] sm:$0xff] }
 0x554   :  { %3723 = vmatpush1.msra.mxu0 %v3508_v35  ;;  %3836 = vmatpush1.msra.mxu1 %v3636_v4  ;;  %v3604_v61 = vld [vmem:[#allocation9 + $0x480] sm:$0xff] }
 0x555   :  { %3311 = vmatmul.mubr.f32.gmra.mxu0 %v9090_v48  ;;  %3424 = vmatmul.mubr.f32.gmra.mxu1 %v9095_v2  ;;  %v2467_v48 = vmin.f32 %v9221_v31, 0.0  ;;  %v3497_v2 = vld [vmem:[#allocation9 + $0x128] sm:$0xff] }
 0x556   :  { %3724 = vmatprep.subr.mxu0 %v3505_v1  ;;  %3837 = vmatprep.subr.mxu1 %v3633_v38  ;;  %v6785_v1 = vpop.eup %6784 }
 0x557   :  { %3316 = vmatprep.mubr.f32.mxu0 %v9104_v51  ;;  %3429 = vmatprep.mubr.f32.mxu1 %v9109_v6  ;;  %v3496_v51 = vld [vmem:[#allocation9 + $0x120] sm:$0xff]  ;;  %v2566_v53 = vmul.f32 1.442695, %v2467_v48 }
 0x558   :  { %3725 = vmatpush1.msra.mxu0 %v3504_v13  ;;  %3838 = vmatpush1.msra.mxu1 %v3632_v43  ;;  %v3624_v6 = vld [vmem:[#allocation9 + $0x520] sm:$0xff]  ;;  %v3469_v13 = vld [vmem:[#allocation9 + $0x48] sm:$0xff] }
 0x559   :  { %3726 = vmatprep.subr.mxu0 %v3501_v49  ;;  %3839 = vmatprep.subr.mxu1 %v3629_v29  ;;  %6786 = vpow2.f32 %v2566_v53  ;;  %v3597_v43 = vld [vmem:[#allocation9 + $0x448] sm:$0xff]  ;;  %v3468_v49 = vld [vmem:[#allocation9 + $0x40] sm:$0xff] }
 0x55a   :  { %3727 = vmatpush1.msra.mxu0 %v3500_v15  ;;  %3840 = vmatpush1.msra.mxu1 %v3628_v55  ;;  %v3596_v29 = vld [vmem:[#allocation9 + $0x440] sm:$0xff] }
 0x55b   :  { %3317 = vmatmul.mubr.f32.gmra.mxu0 %v9116_v41  ;;  %3430 = vmatmul.mubr.f32.gmra.mxu1 %v9119_v9  ;;  %v3489_v41 = vld [vmem:[#allocation9 + $0xe8] sm:$0xff]  ;;  %v3584_v53 = vld [vmem:[#allocation9 + $0x3e0] sm:$0xff] }
 0x55c   :  { %3728 = vmatprep.subr.mxu0 %v3497_v2  ;;  %3841 = vmatprep.subr.mxu1 %v3625_v60  ;;  %v3617_v9 = vld [vmem:[#allocation9 + $0x4e8] sm:$0xff]  ;;  %v3464_v2 = vld [vmem:[#allocation9 + $0x20] sm:$0xff] }
 0x55d   :  { %3322 = vmatprep.mubr.f32.mxu0 %v9126_v16  ;;  %3435 = vmatprep.mubr.f32.mxu1 %v9129_v36  ;;  %v3616_v16 = vld [vmem:[#allocation9 + $0x4e0] sm:$0xff]  ;;  %v3485_v36 = vld [vmem:[#allocation9 + $0xc8] sm:$0xff] }
 0x55e   :  { %3729 = vmatpush1.msra.mxu0 %v3496_v51  ;;  %3842 = vmatpush1.msra.mxu1 %v3624_v6  ;;  %v3461_v51 = vld [vmem:[#allocation9 + $0x8] sm:$0xff] }
 0x55f   :  { %3730 = vmatprep.subr.mxu0 %v3493_v23  ;;  %3843 = vmatprep.subr.mxu1 %v3621_v8  ;;  %v3589_v6 = vld [vmem:[#allocation9 + $0x408] sm:$0xff]  ;;  %v3588_v23 = vld [vmem:[#allocation9 + $0x400] sm:$0xff] }
 0x560   :  { %3731 = vmatpush1.msra.mxu0 %v3492_v59  ;;  %3844 = vmatpush1.msra.mxu1 %v3620_v44  ;;  %v3585_v8 = vld [vmem:[#allocation9 + $0x3e8] sm:$0xff]  ;;  %v3712_v59 = vld [vmem:[#allocation9 + $0x7e0] sm:$0xff] }
 0x561   :  { %3323 = vmatmul.mubr.f32.gmra.mxu0 %v9136_v39  ;;  %3436 = vmatmul.mubr.f32.gmra.mxu1 %v9139_v14  ;;  %v3481_v39 = vld [vmem:[#allocation9 + $0xa8] sm:$0xff] }
 0x562   :  { %3732 = vmatprep.subr.mxu0 %v3489_v41  ;;  %3845 = vmatprep.subr.mxu1 %v3617_v9  ;;  %v3609_v14 = vld [vmem:[#allocation9 + $0x4a8] sm:$0xff] }
 0x563   :  { %3328 = vmatprep.mubr.f32.mxu0 %v9146_v12  ;;  %3441 = vmatprep.mubr.f32.mxu1 %v9149_v46  ;;  %v3480_v12 = vld [vmem:[#allocation9 + $0xa0] sm:$0xff]  ;;  %v3581_v41 = vld [vmem:[#allocation9 + $0x3c8] sm:$0xff] }
 0x564   :  { %3733 = vmatpush1.msra.mxu0 %v3488_v50  ;;  %3846 = vmatpush1.msra.mxu1 %v3616_v16  ;;  %v3608_v46 = vld [vmem:[#allocation9 + $0x4a0] sm:$0xff]  ;;  %v3709_v9 = vld [vmem:[#allocation9 + $0x7c8] sm:$0xff] }
 0x565   :  { %v9235_v21 = vpop.f32.mrf.mxu0  ;;  %v9237_v57 = vpop.f32.mrf.mxu1  ;;  %3734 = vmatprep.subr.mxu0 %v3485_v36  ;;  %3847 = vmatprep.subr.mxu1 %v3613_v25  ;;  %v3580_v16 = vld [vmem:[#allocation9 + $0x3c0] sm:$0xff]  ;;  %v3577_v25 = vld [vmem:[#allocation9 + $0x3a8] sm:$0xff] }
 0x566   :  { %3735 = vmatpush1.msra.mxu0 %v3484_v28  ;;  %3848 = vmatpush1.msra.mxu1 %v3612_v40  ;;  %v6787_v38 = vpop.eup %6786  ;;  %v3708_v36 = vld [vmem:[#allocation9 + $0x7c0] sm:$0xff]  ;;  %v3705_v28 = vld [vmem:[#allocation9 + $0x7a8] sm:$0xff]  ;;  %vm2404_vm4 = vcmp.gt.f32.partialorder %v9235_v21, 0.0 }
 0x567   :  { %v9239_v27 = vpop.f32.mrf.mxu0  ;;  %v9241_v58 = vpop.f32.mrf.mxu1  ;;  %3329 = vmatmul.mubr.f32.gmra.mxu0 %v9156_v33  ;;  %3442 = vmatmul.mubr.f32.gmra.mxu1 %v9159_v52  ;;  %v3473_v33 = vld [vmem:[#allocation9 + $0x68] sm:$0xff]  ;;  %v6603_v48 = vadd.f32 -1.0, %v6787_v38 }
 0x568   :  { %3736 = vmatprep.subr.mxu0 %v3481_v39  ;;  %3849 = vmatprep.subr.mxu1 %v3609_v14  ;;  %v3601_v52 = vld [vmem:[#allocation9 + $0x468] sm:$0xff]  ;;  %v2469_v40 = vmin.f32 %v9239_v27, 0.0  ;;  %v3576_v39 = vld [vmem:[#allocation9 + $0x3a0] sm:$0xff]  ;;  %vm2405_vm10 = vcmp.gt.f32.partialorder %v9239_v27, 0.0  ;;  %vm2407_vm13 = vcmp.gt.f32.partialorder %v9241_v58, 0.0 }
 0x569   :  { %3334 = vmatprep.mubr.f32.mxu0 %v9166_v62  ;;  %3447 = vmatprep.mubr.f32.mxu1 %v9169_v42  ;;  %v3472_v62 = vld [vmem:[#allocation9 + $0x60] sm:$0xff]  ;;  %v3697_v38 = vld [vmem:[#allocation9 + $0x768] sm:$0xff] }
 0x56a   :  { %v9245_v34 = vpop.f32.mrf.mxu0  ;;  %v9247_v20 = vpop.f32.mrf.mxu1  ;;  %3737 = vmatpush1.msra.mxu0 %v3480_v12  ;;  %3850 = vmatpush1.msra.mxu1 %v3608_v46  ;;  %v3600_v42 = vld [vmem:[#allocation9 + $0x460] sm:$0xff]  ;;  %v2471_v12 = vmin.f32 %v9241_v58, 0.0 }
 0x56b   :  { %3738 = vmatprep.subr.mxu0 %v3477_v17  ;;  %3851 = vmatprep.subr.mxu1 %v3605_v11  ;;  %v3704_v14 = vld [vmem:[#allocation9 + $0x7a0] sm:$0xff]  ;;  %v2466_v17 = vmin.f32 %v9215_v32, 0.0  ;;  %v3573_v11 = vld [vmem:[#allocation9 + $0x388] sm:$0xff] }
 0x56c   :  { %v9251_v35 = vpop.f32.mrf.mxu0  ;;  %3739 = vmatpush1.msra.mxu0 %v3476_v45  ;;  %3852 = vmatpush1.msra.mxu1 %v3604_v61  ;;  %v9253_v4 = vpop.f32.mrf.mxu1  ;;  %v3701_v45 = vld [vmem:[#allocation9 + $0x788] sm:$0xff] }
 0x56d   :  { %3335 = vmatmul.mubr.f32.gmra.mxu0 %v9176_v56  ;;  %3448 = vmatmul.mubr.f32.gmra.mxu1 %v9179_v47  ;;  %v6601_v56 = vadd.f32 -1.0, %v6785_v1  ;;  %v3465_v47 = vld [vmem:[#allocation9 + $0x28] sm:$0xff]  ;;  %v3700_v1 = vld [vmem:[#allocation9 + $0x780] sm:$0xff] }
 0x56e   :  { %3740 = vmatprep.subr.mxu0 %v3473_v33  ;;  %3853 = vmatprep.subr.mxu1 %v3601_v52  ;;  %v9259_v15 = vpop.f32.mrf.mxu0  ;;  %v9261_v55 = vpop.f32.mrf.mxu1  ;;  %v3572_v52 = vld [vmem:[#allocation9 + $0x380] sm:$0xff] }
 0x56f   :  { %3340 = vmatprep.mubr.f32.mxu0 %v9186_v54  ;;  %3453 = vmatprep.mubr.f32.mxu1 %v9189_v24  ;;  %v3592_v54 = vld [vmem:[#allocation9 + $0x420] sm:$0xff]  ;;  %v9269_v60 = vsel %vm2401_vm2, %v9217_v26, %v6601_v56  ;;  %v3713_v26 = vld [vmem:[#allocation9 + $0x7e8] sm:$0xff]  ;;  %v2574_v56 = vmul.f32 1.442695, %v2471_v12  ;;  %v2474_v12 = vmin.f32 %v9247_v20, 0.0  ;;  %vm2406_vm2 = vcmp.gt.f32.partialorder %v9237_v57, 0.0 }
 0x570   :  { %3741 = vmatpush1.msra.mxu0 %v3472_v62  ;;  %3854 = vmatpush1.msra.mxu1 %v3600_v42  ;;  %v9266_v24 = vpop.f32.mrf.mxu0  ;;  %v9272_v19 = vpop.f32.mrf.mxu1  ;;  %v2468_v62 = vmin.f32 %v9235_v21, 0.0  ;;  %v3569_v42 = vld [vmem:[#allocation9 + $0x368] sm:$0xff] }
 0x571   :  { %3742 = vmatprep.subr.mxu0 %v3469_v13  ;;  %3855 = vmatprep.subr.mxu1 %v3597_v43  ;;  %v2570_v13 = vmul.f32 1.442695, %v2469_v40  ;;  %v2473_v43 = vmin.f32 %v9251_v35, 0.0 }
 0x572   :  { %3743 = vmatpush1.msra.mxu0 %v3468_v49  ;;  %3856 = vmatpush1.msra.mxu1 %v3596_v29  ;;  %v9279_v44 = vpop.f32.mrf.mxu0  ;;  %v9281_v50 = vpop.f32.mrf.mxu1  ;;  %v3568_v49 = vld [vmem:[#allocation9 + $0x360] sm:$0xff] }
 0x573   :  { %3341 = vmatmul.mubr.f32.gmra.mxu0 %v9196_v3  ;;  %3454 = vmatmul.mubr.f32.gmra.mxu1 %v9199_v0  ;;  %v9276_v3 = vsel %vm2403_vm5, %v9221_v31, %v6603_v48  ;;  %v3460_v0 = vld [vmem:[#allocation9] sm:$0xff]  ;;  %v2464_v31 = vmin.f32 %v9211_v5, 0.0  ;;  %v2564_v48 = vmul.f32 1.442695, %v2466_v17  ;;  %vm2409_vm5 = vcmp.gt.f32.partialorder %v9251_v35, 0.0 }
 0x574   :  { %3744 = vmatprep.subr.mxu0 %v3465_v47  ;;  %3857 = vmatprep.subr.mxu1 %v3593_v37  ;;  %v9286_v46 = vpop.f32.mrf.mxu0  ;;  %v9289_v61 = vpop.f32.mrf.mxu1  ;;  %v3696_v29 = vld [vmem:[#allocation9 + $0x760] sm:$0xff]  ;;  %v2475_v47 = vmin.f32 %v9253_v4, 0.0 }
 0x575   :  { %3745 = vmatpush1.msra.mxu0 %v3464_v2  ;;  %3780 = vmatprep.mubr.f32.mxu0 %v9269_v60  ;;  %v2560_v33 = vmul.f32 1.442695, %v2464_v31  ;;  %v3565_v2 = vld [vmem:[#allocation9 + $0x348] sm:$0xff]  ;;  %v3560_v31 = vld [vmem:[#allocation9 + $0x320] sm:$0xff] }
 0x576   :  { %3858 = vmatpush1.msra.mxu1 %v3592_v54  ;;  %3893 = vmatprep.mubr.f32.mxu1 %v9276_v3  ;;  %v9294_v37 = vpop.f32.mrf.mxu0  ;;  %v3693_v54 = vld [vmem:[#allocation9 + $0x748] sm:$0xff] }
 0x577   :  { %3746 = vmatprep.subr.mxu0 %v3461_v51  ;;  %3859 = vmatprep.subr.mxu1 %v3589_v6  ;;  %v2470_v51 = vmin.f32 %v9237_v57, 0.0  ;;  %v9297_v6 = vpop.f32.mrf.mxu1  ;;  %6788 = vpow2.f32 %v2560_v33 }
 0x578   :  { %3747 = vmatpush1.msra.mxu0 %v3460_v0  ;;  %3860 = vmatpush1.msra.mxu1 %v3588_v23  ;;  %v3564_v0 = vld [vmem:[#allocation9 + $0x340] sm:$0xff]  ;;  %6790 = vpow2.f32 %v2570_v13 }
 0x579   :  { %3748 = vmatprep.subr.mxu0 %v3585_v8  ;;  %3861 = vmatprep.subr.mxu1 %v3713_v26  ;;  %v3692_v23 = vld [vmem:[#allocation9 + $0x740] sm:$0xff]  ;;  %v2568_v8 = vmul.f32 1.442695, %v2468_v62  ;;  %v2472_v26 = vmin.f32 %v9245_v34, 0.0  ;;  %6792 = vpow2.f32 %v2574_v56  ;;  %v2572_v40 = vmul.f32 1.442695, %v2470_v51  ;;  %v9305_v17 = vpop.f32.mrf.mxu1 }
 0x57a   :  { %3749 = vmatpush2.msra.mxu0 %v3584_v53  ;;  %3862 = vmatpush2.msra.mxu1 %v3712_v59  ;;  %v3561_v53 = vld [vmem:[#allocation9 + $0x328] sm:$0xff]  ;;  %6794 = vpow2.f32 %v2564_v48  ;;  %v3552_v13 = vld [vmem:[#allocation9 + $0x2e0] sm:$0xff] }
 0x57b   :  { %3750 = vmatprep.subr.mxu0 %v3581_v41  ;;  %3863 = vmatprep.subr.mxu1 %v3709_v9  ;;  %v3689_v59 = vld [vmem:[#allocation9 + $0x728] sm:$0xff]  ;;  %v2578_v41 = vmul.f32 1.442695, %v2473_v43  ;;  %v2477_v9 = vmin.f32 %v9266_v24, 0.0  ;;  %6796 = vpow2.f32 %v2568_v8  ;;  %v2576_v33 = vmul.f32 1.442695, %v2472_v26  ;;  %v9313_v51 = vpop.f32.mrf.mxu1 }
 0x57c   :  { %3751 = vmatpush2.msra.mxu0 %v3580_v16  ;;  %3864 = vmatpush2.msra.mxu1 %v3708_v36  ;;  %v3688_v16 = vld [vmem:[#allocation9 + $0x720] sm:$0xff]  ;;  %v2582_v36 = vmul.f32 1.442695, %v2475_v47  ;;  %v3681_v62 = vld [vmem:[#allocation9 + $0x6e8] sm:$0xff]  ;;  %v2580_v47 = vmul.f32 1.442695, %v2474_v12 }
 0x57d   :  { %3752 = vmatprep.subr.mxu0 %v3577_v25  ;;  %3865 = vmatprep.subr.mxu1 %v3705_v28  ;;  %v2479_v25 = vmin.f32 %v9272_v19, 0.0  ;;  %v9302_v28 = vpop.f32.mrf.mxu0  ;;  %6798 = vpow2.f32 %v2578_v41  ;;  %v3680_v43 = vld [vmem:[#allocation9 + $0x6e0] sm:$0xff]  ;;  %v3549_v48 = vld [vmem:[#allocation9 + $0x2c8] sm:$0xff]  ;;  %v2480_v26 = vmin.f32 %v9279_v44, 0.0 }
 0x57e   :  { %3753 = vmatpush2.msra.mxu0 %v3576_v39  ;;  %3866 = vmatpush2.msra.mxu1 %v3704_v14  ;;  %v3557_v39 = vld [vmem:[#allocation9 + $0x308] sm:$0xff]  ;;  %6800 = vpow2.f32 %v2582_v36 }
 0x57f   :  { %3754 = vmatprep.subr.mxu0 %v3573_v11  ;;  %3867 = vmatprep.subr.mxu1 %v3701_v45  ;;  %v3685_v14 = vld [vmem:[#allocation9 + $0x708] sm:$0xff]  ;;  %v3556_v11 = vld [vmem:[#allocation9 + $0x300] sm:$0xff]  ;;  %v9310_v56 = vpop.f32.mrf.mxu0  ;;  %6802 = vpow2.f32 %v2572_v40 }
 0x580   :  { %3755 = vmatpush2.msra.mxu0 %v3572_v52  ;;  %3868 = vmatpush2.msra.mxu1 %v3700_v1  ;;  %v3684_v45 = vld [vmem:[#allocation9 + $0x700] sm:$0xff]  ;;  %v2476_v52 = vmin.f32 %v9259_v15, 0.0  ;;  %v3553_v1 = vld [vmem:[#allocation9 + $0x2e8] sm:$0xff]  ;;  %6804 = vpow2.f32 %v2576_v33 }
 0x581   :  { %3756 = vmatprep.subr.mxu0 %v3569_v42  ;;  %3869 = vmatprep.subr.mxu1 %v3697_v38  ;;  %v2586_v42 = vmul.f32 1.442695, %v2477_v9  ;;  %v2481_v38 = vmin.f32 %v9286_v46, 0.0  ;;  %v2485_v9 = vmin.f32 %v9302_v28, 0.0  ;;  %v9318_v40 = vpop.f32.mrf.mxu0  ;;  %v3669_v12 = vld [vmem:[#allocation9 + $0x688] sm:$0xff]  ;;  %v3540_v33 = vld [vmem:[#allocation9 + $0x280] sm:$0xff] }
 0x582   :  { %3757 = vmatpush2.msra.mxu0 %v3568_v49  ;;  %3870 = vmatpush2.msra.mxu1 %v3696_v29  ;;  %v2590_v49 = vmul.f32 1.442695, %v2479_v25  ;;  %v2483_v29 = vmin.f32 %v9289_v61, 0.0  ;;  %v2584_v8 = vmul.f32 1.442695, %v2476_v52  ;;  %v2487_v25 = vmin.f32 %v9305_v17, 0.0 }
 0x583   :  { %3758 = vmatprep.subr.mxu0 %v3565_v2  ;;  %3871 = vmatprep.subr.mxu1 %v3693_v54  ;;  %v3677_v2 = vld [vmem:[#allocation9 + $0x6c8] sm:$0xff]  ;;  %v2478_v54 = vmin.f32 %v9261_v55, 0.0  ;;  %6806 = vpow2.f32 %v2586_v42  ;;  %v2594_v41 = vmul.f32 1.442695, %v2481_v38  ;;  %v3668_v52 = vld [vmem:[#allocation9 + $0x680] sm:$0xff] }
 0x584   :  { %3759 = vmatpush2.msra.mxu0 %v3564_v0  ;;  %3872 = vmatpush2.msra.mxu1 %v3692_v23  ;;  %v3548_v0 = vld [vmem:[#allocation9 + $0x2c0] sm:$0xff]  ;;  %6808 = vpow2.f32 %v2590_v49  ;;  %v2598_v36 = vmul.f32 1.442695, %v2483_v29  ;;  %v6789_v42 = vpop.eup %6788  ;;  %v3537_v38 = vld [vmem:[#allocation9 + $0x268] sm:$0xff]  ;;  %v2489_v49 = vmin.f32 %v9318_v40, 0.0 }
 0x585   :  { %3760 = vmatprep.subr.mxu0 %v3561_v53  ;;  %3873 = vmatprep.subr.mxu1 %v3689_v59  ;;  %v3676_v23 = vld [vmem:[#allocation9 + $0x6c0] sm:$0xff]  ;;  %v3545_v53 = vld [vmem:[#allocation9 + $0x2a8] sm:$0xff]  ;;  %6810 = vpow2.f32 %v2580_v47  ;;  %v6791_v29 = vpop.eup %6790 }
 0x586   :  { %3761 = vmatpush2.msra.mxu0 %v3560_v31  ;;  %3874 = vmatpush2.msra.mxu1 %v3688_v16  ;;  %v3673_v59 = vld [vmem:[#allocation9 + $0x6a8] sm:$0xff]  ;;  %v3544_v31 = vld [vmem:[#allocation9 + $0x2a0] sm:$0xff]  ;;  %6812 = vpow2.f32 %v2584_v8 }
 0x587   :  { %3762 = vmatprep.subr.mxu0 %v3557_v39  ;;  %3875 = vmatprep.subr.mxu1 %v3685_v14  ;;  %v3672_v16 = vld [vmem:[#allocation9 + $0x6a0] sm:$0xff]  ;;  %v2588_v39 = vmul.f32 1.442695, %v2478_v54  ;;  %v3541_v14 = vld [vmem:[#allocation9 + $0x288] sm:$0xff]  ;;  %6814 = vpow2.f32 %v2594_v41  ;;  %v6600_v41 = vadd.f32 -1.0, %v6789_v42 }
 0x588   :  { %3763 = vmatpush2.msra.mxu0 %v3556_v11  ;;  %3876 = vmatpush2.msra.mxu1 %v3684_v45  ;;  %v2482_v11 = vmin.f32 %v9281_v50, 0.0  ;;  %v9321_v45 = vpop.f32.mrf.mxu1  ;;  %v3536_v47 = vld [vmem:[#allocation9 + $0x260] sm:$0xff]  ;;  %6816 = vpow2.f32 %v2598_v36  ;;  %v3533_v8 = vld [vmem:[#allocation9 + $0x248] sm:$0xff] }
 0x589   :  { %3764 = vmatprep.subr.mxu0 %v3553_v1  ;;  %3877 = vmatprep.subr.mxu1 %v3681_v62  ;;  %v2592_v1 = vmul.f32 1.442695, %v2480_v26  ;;  %v2484_v62 = vmin.f32 %v9294_v37, 0.0  ;;  %v2491_v54 = vmin.f32 %v9321_v45, 0.0  ;;  %6818 = vpow2.f32 %v2588_v39  ;;  %v3661_v26 = vld [vmem:[#allocation9 + $0x648] sm:$0xff] }
 0x58a   :  { %3765 = vmatpush2.msra.mxu0 %v3552_v13  ;;  %3878 = vmatpush2.msra.mxu1 %v3680_v43  ;;  %v3665_v13 = vld [vmem:[#allocation9 + $0x668] sm:$0xff]  ;;  %v2602_v43 = vmul.f32 1.442695, %v2485_v9  ;;  %v3532_v9 = vld [vmem:[#allocation9 + $0x240] sm:$0xff] }
 0x58b   :  { %3766 = vmatprep.subr.mxu0 %v3549_v48  ;;  %3879 = vmatprep.subr.mxu1 %v3677_v2  ;;  %v3664_v48 = vld [vmem:[#allocation9 + $0x660] sm:$0xff]  ;;  %v2606_v2 = vmul.f32 1.442695, %v2487_v25  ;;  %6820 = vpow2.f32 %v2592_v1  ;;  %v3529_v25 = vld [vmem:[#allocation9 + $0x228] sm:$0xff]  ;;  %v2614_v42 = vmul.f32 1.442695, %v2491_v54 }
 0x58c   :  { %3767 = vmatpush2.msra.mxu0 %v3548_v0  ;;  %3880 = vmatpush2.msra.mxu1 %v3676_v23  ;;  %v6793_v0 = vpop.eup %6792  ;;  %v2596_v23 = vmul.f32 1.442695, %v2482_v11  ;;  %v3657_v39 = vld [vmem:[#allocation9 + $0x628] sm:$0xff]  ;;  %6822 = vpow2.f32 %v2602_v43  ;;  %v6605_v11 = vadd.f32 -1.0, %v6791_v29  ;;  %v3656_v1 = vld [vmem:[#allocation9 + $0x620] sm:$0xff] }
 0x58d   :  { %3768 = vmatprep.subr.mxu0 %v3545_v53  ;;  %3881 = vmatprep.subr.mxu1 %v3673_v59  ;;  %v2486_v53 = vmin.f32 %v9297_v6, 0.0  ;;  %v6795_v59 = vpop.eup %6794  ;;  %6824 = vpow2.f32 %v2606_v2  ;;  %v3524_v2 = vld [vmem:[#allocation9 + $0x200] sm:$0xff] }
 0x58e   :  { %3769 = vmatpush2.msra.mxu0 %v3544_v31  ;;  %3882 = vmatpush2.msra.mxu1 %v3672_v16  ;;  %v3660_v31 = vld [vmem:[#allocation9 + $0x640] sm:$0xff]  ;;  %v2600_v16 = vmul.f32 1.442695, %v2484_v62  ;;  %v6797_v36 = vpop.eup %6796  ;;  %v6607_v62 = vadd.f32 -1.0, %v6793_v0  ;;  %6826 = vpow2.f32 %v2596_v23 }
 0x58f   :  { %3770 = vmatprep.subr.mxu0 %v3541_v14  ;;  %3883 = vmatprep.subr.mxu1 %v3669_v12  ;;  %v2488_v14 = vmin.f32 %v9310_v56, 0.0  ;;  %v2610_v12 = vmul.f32 1.442695, %v2489_v49  ;;  %v2604_v43 = vmul.f32 1.442695, %v2486_v53  ;;  %v2490_v49 = vmin.f32 %v9313_v51, 0.0 }
 0x590   :  { %3771 = vmatpush2.msra.mxu0 %v3540_v33  ;;  %3884 = vmatpush2.msra.mxu1 %v3668_v52  ;;  %v6799_v33 = vpop.eup %6798  ;;  %v3528_v52 = vld [vmem:[#allocation9 + $0x220] sm:$0xff]  ;;  %6828 = vpow2.f32 %v2600_v16  ;;  %v6604_v53 = vadd.f32 -1.0, %v6797_v36 }
 0x591   :  { %3772 = vmatprep.subr.mxu0 %v3537_v38  ;;  %3885 = vmatprep.subr.mxu1 %v3665_v13  ;;  %v6801_v38 = vpop.eup %6800  ;;  %v6602_v13 = vadd.f32 -1.0, %v6795_v59  ;;  %v3652_v54 = vld [vmem:[#allocation9 + $0x600] sm:$0xff]  ;;  %v2608_v23 = vmul.f32 1.442695, %v2488_v14  ;;  %6830 = vpow2.f32 %v2610_v12  ;;  %v9342_v59 = vsel %vm2407_vm13, %v9241_v58, %v6607_v62  ;;  %v3522_v58 = vld [vmem:[#allocation9 + $0x1f0] sm:$0xff] }
 0x592   :  { %3773 = vmatpush2.msra.mxu0 %v3536_v47  ;;  %3886 = vmatpush2.msra.mxu1 %v3664_v48  ;;  %v3525_v47 = vld [vmem:[#allocation9 + $0x208] sm:$0xff]  ;;  %v6803_v29 = vpop.eup %6802  ;;  %6832 = vpow2.f32 %v2614_v42  ;;  %v3650_v12 = vld [vmem:[#allocation9 + $0x5f0] sm:$0xff]  ;;  %vm2413_vm13 = vcmp.gt.f32.partialorder %v9266_v24, 0.0 }
 0x593   :  { %3774 = vmatprep.subr.mxu0 %v3533_v8  ;;  %3887 = vmatprep.subr.mxu1 %v3661_v26  ;;  %v3653_v48 = vld [vmem:[#allocation9 + $0x608] sm:$0xff]  ;;  %v9334_v8 = vsel %vm2400_vm7, %v9211_v5, %v6600_v41  ;;  %v6805_v0 = vpop.eup %6804  ;;  %v9339_v26 = vsel %vm2405_vm10, %v9239_v27, %v6605_v11  ;;  %v6609_v41 = vadd.f32 -1.0, %v6799_v33  ;;  %v9347_v16 = vsel %vm2402_vm12, %v9215_v32, %v6602_v13 }
 0x594   :  { %3775 = vmatpush2.msra.mxu0 %v3532_v9  ;;  %3888 = vmatpush2.msra.mxu1 %v3660_v31  ;;  %v6807_v5 = vpop.eup %6806  ;;  %v6611_v9 = vadd.f32 -1.0, %v6801_v38  ;;  %6834 = vpow2.f32 %v2604_v43  ;;  %v2612_v27 = vmul.f32 1.442695, %v2490_v49  ;;  %v6606_v36 = vadd.f32 -1.0, %v6803_v29  ;;  %v3646_v49 = vld [vmem:[#allocation9 + $0x5d0] sm:$0xff] }
 0x595   :  { %3776 = vmatprep.subr.mxu0 %v3529_v25  ;;  %3889 = vmatprep.subr.mxu1 %v3657_v39  ;;  %v6809_v31 = vpop.eup %6808  ;;  %v3523_v25 = vld [vmem:[#allocation9 + $0x1f8] sm:$0xff]  ;;  %6836 = vpow2.f32 %v2608_v23  ;;  %v9356_v11 = vsel %vm2404_vm4, %v9235_v21, %v6604_v53  ;;  %vm2411_vm7 = vcmp.gt.f32.partialorder %v9253_v4, 0.0  ;;  %v6613_v42 = vadd.f32 -1.0, %v6807_v5 }
 0x596   :  { %3777 = vmatpush2.msra.mxu0 %v3528_v52  ;;  %3890 = vmatpush2.msra.mxu1 %v3656_v1  ;;  %v3651_v39 = vld [vmem:[#allocation9 + $0x5f8] sm:$0xff]  ;;  %v6811_v14 = vpop.eup %6810  ;;  %v9361_v52 = vsel %vm2409_vm5, %v9251_v35, %v6609_v41  ;;  %v9364_v1 = vsel %vm2411_vm7, %v9253_v4, %v6611_v9  ;;  %v6615_v62 = vadd.f32 -1.0, %v6809_v31  ;;  %6838 = vpow2.f32 %v2612_v27  ;;  %v3518_v4 = vld [vmem:[#allocation9 + $0x1d0] sm:$0xff] }
 0x597   :  { %3778 = vmatprep.subr.mxu0 %v3525_v47  ;;  %3891 = vmatprep.subr.mxu1 %v3653_v48  ;;  %v6813_v32 = vpop.eup %6812  ;;  %v9369_v21 = vsel %vm2406_vm2, %v9237_v57, %v6606_v36  ;;  %v6608_v13 = vadd.f32 -1.0, %v6805_v0  ;;  %v6610_v43 = vadd.f32 -1.0, %v6811_v14  ;;  %v3519_v35 = vld [vmem:[#allocation9 + $0x1d8] sm:$0xff]  ;;  %vm2408_vm12 = vcmp.gt.f32.partialorder %v9245_v34, 0.0 }
 0x598   :  { %3779 = vmatpush2.msra.mxu0 %v3524_v2  ;;  %3892 = vmatpush2.msra.mxu1 %v3652_v54  ;;  %v6815_v33 = vpop.eup %6814  ;;  %v3647_v47 = vld [vmem:[#allocation9 + $0x5d8] sm:$0xff]  ;;  %vm2410_vm10 = vcmp.gt.f32.partialorder %v9247_v20, 0.0  ;;  %vm2415_vm4 = vcmp.gt.f32.partialorder %v9272_v19, 0.0  ;;  %v9380_v2 = vsel %vm2413_vm13, %v9266_v24, %v6613_v42  ;;  %v6612_v9 = vadd.f32 -1.0, %v6813_v32 }
 0x599   :  { %3781 = vmatmul.mubr.f32.vlgmr.msra.gmra.mxu0 %v9334_v8  ;;  %3894 = vmatmul.mubr.f32.vlgmr.msra.gmra.mxu1 %v9347_v16  ;;  %v6817_v38 = vpop.eup %6816  ;;  %v9383_v54 = vsel %vm2415_vm4, %v9272_v19, %v6615_v62  ;;  %v6617_v0 = vadd.f32 -1.0, %v6815_v33  ;;  %v9386_v5 = vsel %vm2408_vm12, %v9245_v34, %v6608_v13  ;;  %v9389_v41 = vsel %vm2410_vm10, %v9247_v20, %v6610_v43  ;;  %v3515_v24 = vld [vmem:[#allocation9 + $0x1b8] sm:$0xff]  ;;  %v3514_v19 = vld [vmem:[#allocation9 + $0x1b0] sm:$0xff] }
 0x59a   :  { %3786 = vmatprep.mubr.f32.mxu0 %v9339_v26  ;;  %3899 = vmatprep.mubr.f32.mxu1 %v9342_v59  ;;  %v6819_v48 = vpop.eup %6818  ;;  %v6619_v23 = vadd.f32 -1.0, %v6817_v38  ;;  %v3643_v27 = vld [vmem:[#allocation9 + $0x5b8] sm:$0xff]  ;;  %vm2412_vm2 = vcmp.gt.f32.partialorder %v9259_v15, 0.0  ;;  %vm2414_vm5 = vcmp.gt.f32.partialorder %v9261_v55, 0.0  ;;  %vm2417_vm7 = vcmp.gt.f32.partialorder %v9286_v46, 0.0 }
 0x59b   :  { %3942 = vmatprep.subr.mxu0 %v3523_v25  ;;  %4055 = vmatprep.subr.mxu1 %v3651_v39  ;;  %v6821_v29 = vpop.eup %6820  ;;  %v6614_v31 = vadd.f32 -1.0, %v6819_v48  ;;  %v3642_v25 = vld [vmem:[#allocation9 + $0x5b0] sm:$0xff]  ;;  %vm2419_vm12 = vcmp.gt.f32.partialorder %v9289_v61, 0.0  ;;  %v9400_v20 = vsel %vm2417_vm7, %v9286_v46, %v6617_v0  ;;  %v9406_v33 = vsel %vm2412_vm2, %v9259_v15, %v6612_v9  ;;  %v3511_v46 = vld [vmem:[#allocation9 + $0x198] sm:$0xff] }
 0x59c   :  { %3943 = vmatpush1.msra.mxu0 %v3522_v58  ;;  %4056 = vmatpush1.msra.mxu1 %v3650_v12  ;;  %v6823_v57 = vpop.eup %6822  ;;  %v9403_v14 = vsel %vm2419_vm12, %v9289_v61, %v6619_v23  ;;  %v6616_v62 = vadd.f32 -1.0, %v6821_v29  ;;  %v3639_v13 = vld [vmem:[#allocation9 + $0x598] sm:$0xff]  ;;  %v3510_v61 = vld [vmem:[#allocation9 + $0x190] sm:$0xff]  ;;  %vm2416_vm10 = vcmp.gt.f32.partialorder %v9279_v44, 0.0  ;;  %vm2418_vm13 = vcmp.gt.f32.partialorder %v9281_v50, 0.0 }
 0x59d   :  { %3787 = vmatmul.mubr.f32.gmra.mxu0 %v9356_v11  ;;  %3900 = vmatmul.mubr.f32.gmra.mxu1 %v9369_v21  ;;  %v6825_v53 = vpop.eup %6824  ;;  %v6621_v58 = vadd.f32 -1.0, %v6823_v57  ;;  %v9409_v42 = vsel %vm2414_vm5, %v9261_v55, %v6614_v31  ;;  %vm2421_vm4 = vcmp.gt.f32.partialorder %v9302_v28, 0.0  ;;  %vm2423_vm2 = vcmp.gt.f32.partialorder %v9305_v17, 0.0  ;;  %v3507_v23 = vld [vmem:[#allocation9 + $0x178] sm:$0xff]  ;;  %v3634_v9 = vld [vmem:[#allocation9 + $0x570] sm:$0xff] }
 0x59e   :  { %3792 = vmatprep.mubr.f32.mxu0 %v9361_v52  ;;  %3905 = vmatprep.mubr.f32.mxu1 %v9364_v1  ;;  %v6827_v36 = vpop.eup %6826  ;;  %v6623_v12 = vadd.f32 -1.0, %v6825_v53  ;;  %vm2425_vm5 = vcmp.gt.f32.partialorder %v9318_v40, 0.0  ;;  %vm2427_vm7 = vcmp.gt.f32.partialorder %v9321_v45, 0.0  ;;  %vm2420_vm12 = vcmp.gt.f32.partialorder %v9294_v37, 0.0 }
 0x59f   :  { %3944 = vmatprep.subr.mxu0 %v3519_v35  ;;  %4057 = vmatprep.subr.mxu1 %v3647_v47  ;;  %v6829_v39 = vpop.eup %6828  ;;  %v6618_v38 = vadd.f32 -1.0, %v6827_v36  ;;  %v3638_v35 = vld [vmem:[#allocation9 + $0x590] sm:$0xff]  ;;  %v9420_v55 = vsel %vm2421_vm4, %v9302_v28, %v6621_v58  ;;  %v3635_v28 = vld [vmem:[#allocation9 + $0x578] sm:$0xff]  ;;  %vm2426_vm4 = vcmp.gt.f32.partialorder %v9313_v51, 0.0 }
 0x5a0   :  { %3945 = vmatpush1.msra.mxu0 %v3518_v4  ;;  %4058 = vmatpush1.msra.mxu1 %v3646_v49  ;;  %v6831_v34 = vpop.eup %6830  ;;  %v9423_v47 = vsel %vm2423_vm2, %v9305_v17, %v6623_v12  ;;  %v9426_v49 = vsel %vm2416_vm10, %v9279_v44, %v6616_v62  ;;  %v6620_v57 = vadd.f32 -1.0, %v6829_v39  ;;  %v3506_v17 = vld [vmem:[#allocation9 + $0x170] sm:$0xff]  ;;  %vm2422_vm10 = vcmp.gt.f32.partialorder %v9297_v6, 0.0  ;;  %v3623_v62 = vld [vmem:[#allocation9 + $0x518] sm:$0xff] }
 0x5a1   :  { %3793 = vmatmul.mubr.f32.gmra.mxu0 %v9386_v5  ;;  %3906 = vmatmul.mubr.f32.gmra.mxu1 %v9389_v41  ;;  %v6833_v32 = vpop.eup %6832  ;;  %v6625_v48 = vadd.f32 -1.0, %v6831_v34  ;;  %v9429_v29 = vsel %vm2418_vm13, %v9281_v50, %v6618_v38  ;;  %vm2424_vm13 = vcmp.gt.f32.partialorder %v9310_v56, 0.0  ;;  %v3498_v58 = vld [vmem:[#allocation9 + $0x130] sm:$0xff] }
 0x5a2   :  { %3798 = vmatprep.mubr.f32.mxu0 %v9380_v2  ;;  %3911 = vmatprep.mubr.f32.mxu1 %v9383_v54  ;;  %v6835_v43 = vpop.eup %6834  ;;  %v6627_v4 = vadd.f32 -1.0, %v6833_v32  ;;  %v9446_v31 = vsel %vm2420_vm12, %v9294_v37, %v6620_v57  ;;  %v3499_v37 = vld [vmem:[#allocation9 + $0x138] sm:$0xff]  ;;  %v3626_v12 = vld [vmem:[#allocation9 + $0x530] sm:$0xff] }
 0x5a3   :  { %3946 = vmatprep.subr.mxu0 %v3515_v24  ;;  %4059 = vmatprep.subr.mxu1 %v3643_v27  ;;  %v6837_v15 = vpop.eup %6836  ;;  %v6622_v0 = vadd.f32 -1.0, %v6835_v43  ;;  %v9440_v44 = vsel %vm2425_vm5, %v9318_v40, %v6625_v48  ;;  %v3502_v40 = vld [vmem:[#allocation9 + $0x150] sm:$0xff]  ;;  %v3495_v32 = vld [vmem:[#allocation9 + $0x118] sm:$0xff] }
 0x5a4   :  { %3947 = vmatpush1.msra.mxu0 %v3514_v19  ;;  %4060 = vmatpush1.msra.mxu1 %v3642_v25  ;;  %v6839_v53 = vpop.eup %6838  ;;  %v9443_v50 = vsel %vm2427_vm7, %v9321_v45, %v6627_v4  ;;  %v6624_v27 = vadd.f32 -1.0, %v6837_v15  ;;  %v3503_v19 = vld [vmem:[#allocation9 + $0x158] sm:$0xff]  ;;  %v3630_v45 = vld [vmem:[#allocation9 + $0x550] sm:$0xff] }
 0x5a5   :  { %3799 = vmatmul.mubr.f32.gmra.mxu0 %v9406_v33  ;;  %3912 = vmatmul.mubr.f32.gmra.mxu1 %v9409_v42  ;;  %v9449_v24 = vsel %vm2422_vm10, %v9297_v6, %v6622_v0  ;;  %v6626_v36 = vadd.f32 -1.0, %v6839_v53  ;;  %v3631_v25 = vld [vmem:[#allocation9 + $0x558] sm:$0xff]  ;;  %v3494_v38 = vld [vmem:[#allocation9 + $0x110] sm:$0xff] }
 0x5a6   :  { %3804 = vmatprep.mubr.f32.mxu0 %v9400_v20  ;;  %3917 = vmatprep.mubr.f32.mxu1 %v9403_v14  ;;  %v3627_v6 = vld [vmem:[#allocation9 + $0x538] sm:$0xff]  ;;  %v9458_v39 = vsel %vm2424_vm13, %v9310_v56, %v6624_v27  ;;  %v3618_v43 = vld [vmem:[#allocation9 + $0x4f0] sm:$0xff] }
 0x5a7   :  { %3948 = vmatprep.subr.mxu0 %v3511_v46  ;;  %4061 = vmatprep.subr.mxu1 %v3639_v13  ;;  %v9461_v34 = vsel %vm2426_vm4, %v9313_v51, %v6626_v36  ;;  %v3622_v46 = vld [vmem:[#allocation9 + $0x510] sm:$0xff]  ;;  %v3491_v56 = vld [vmem:[#allocation9 + $0xf8] sm:$0xff] }
 0x5a8   :  { %3949 = vmatpush1.msra.mxu0 %v3510_v61  ;;  %4062 = vmatpush1.msra.mxu1 %v3638_v35  ;;  %v3619_v13 = vld [vmem:[#allocation9 + $0x4f8] sm:$0xff]  ;;  %v3490_v51 = vld [vmem:[#allocation9 + $0xf0] sm:$0xff] }
 0x5a9   :  { %3805 = vmatmul.mubr.f32.gmra.mxu0 %v9426_v49  ;;  %3918 = vmatmul.mubr.f32.gmra.mxu1 %v9429_v29  ;;  %v3487_v61 = vld [vmem:[#allocation9 + $0xd8] sm:$0xff]  ;;  %v3486_v15 = vld [vmem:[#allocation9 + $0xd0] sm:$0xff] }
 0x5aa   :  { %3810 = vmatprep.mubr.f32.mxu0 %v9420_v55  ;;  %3923 = vmatprep.mubr.f32.mxu1 %v9423_v47  ;;  %v3615_v35 = vld [vmem:[#allocation9 + $0x4d8] sm:$0xff]  ;;  %v3614_v48 = vld [vmem:[#allocation9 + $0x4d0] sm:$0xff] }
 0x5ab   :  { %3950 = vmatprep.subr.mxu0 %v3507_v23  ;;  %4063 = vmatprep.subr.mxu1 %v3635_v28  ;;  %v3483_v4 = vld [vmem:[#allocation9 + $0xb8] sm:$0xff]  ;;  %v3482_v0 = vld [vmem:[#allocation9 + $0xb0] sm:$0xff] }
 0x5ac   :  { %3951 = vmatpush1.msra.mxu0 %v3506_v17  ;;  %4064 = vmatpush1.msra.mxu1 %v3634_v9  ;;  %v3611_v57 = vld [vmem:[#allocation9 + $0x4b8] sm:$0xff]  ;;  %v3610_v23 = vld [vmem:[#allocation9 + $0x4b0] sm:$0xff] }
 0x5ad   :  { %3811 = vmatmul.mubr.f32.gmra.mxu0 %v9446_v31  ;;  %3924 = vmatmul.mubr.f32.gmra.mxu1 %v9449_v24  ;;  %v3479_v28 = vld [vmem:[#allocation9 + $0x98] sm:$0xff]  ;;  %v3478_v17 = vld [vmem:[#allocation9 + $0x90] sm:$0xff] }
 0x5ae   :  { %3816 = vmatprep.mubr.f32.mxu0 %v9440_v44  ;;  %3929 = vmatprep.mubr.f32.mxu1 %v9443_v50  ;;  %v3607_v53 = vld [vmem:[#allocation9 + $0x498] sm:$0xff]  ;;  %v3606_v9 = vld [vmem:[#allocation9 + $0x490] sm:$0xff] }
 0x5af   :  { %3952 = vmatprep.subr.mxu0 %v3503_v19  ;;  %4065 = vmatprep.subr.mxu1 %v3631_v25  ;;  %v3475_v36 = vld [vmem:[#allocation9 + $0x78] sm:$0xff] }
 0x5b0   :  { %3953 = vmatpush1.msra.mxu0 %v3502_v40  ;;  %4066 = vmatpush1.msra.mxu1 %v3630_v45  ;;  %v3603_v19 = vld [vmem:[#allocation9 + $0x478] sm:$0xff]  ;;  %v3474_v40 = vld [vmem:[#allocation9 + $0x70] sm:$0xff] }
 0x5b1   :  { %3817 = vmatmul.mubr.f32.gmra.mxu0 %v9458_v39  ;;  %3930 = vmatmul.mubr.f32.gmra.mxu1 %v9461_v34  ;;  %v3602_v45 = vld [vmem:[#allocation9 + $0x470] sm:$0xff] }
 0x5b2   :  { %3954 = vmatprep.subr.mxu0 %v3499_v37  ;;  %4067 = vmatprep.subr.mxu1 %v3627_v6  ;;  %v3471_v37 = vld [vmem:[#allocation9 + $0x58] sm:$0xff] }
 0x5b3   :  { %3955 = vmatpush1.msra.mxu0 %v3498_v58  ;;  %4068 = vmatpush1.msra.mxu1 %v3626_v12  ;;  %v3599_v6 = vld [vmem:[#allocation9 + $0x458] sm:$0xff]  ;;  %v3470_v58 = vld [vmem:[#allocation9 + $0x50] sm:$0xff] }
 0x5b4   :  { %3956 = vmatprep.subr.mxu0 %v3495_v32  ;;  %4069 = vmatprep.subr.mxu1 %v3623_v62  ;;  %v3598_v12 = vld [vmem:[#allocation9 + $0x450] sm:$0xff]  ;;  %v3467_v62 = vld [vmem:[#allocation9 + $0x38] sm:$0xff] }
 0x5b5   :  { %3957 = vmatpush1.msra.mxu0 %v3494_v38  ;;  %4070 = vmatpush1.msra.mxu1 %v3622_v46  ;;  %v3595_v38 = vld [vmem:[#allocation9 + $0x438] sm:$0xff] }
 0x5b6   :  { %3958 = vmatprep.subr.mxu0 %v3491_v56  ;;  %4071 = vmatprep.subr.mxu1 %v3619_v13  ;;  %v9465_v27 = vpop.f32.mrf.mxu0  ;;  %v9467_v25 = vpop.f32.mrf.mxu1  ;;  %v3466_v56 = vld [vmem:[#allocation9 + $0x30] sm:$0xff] }
 0x5b7   :  { %3959 = vmatpush1.msra.mxu0 %v3490_v51  ;;  %4072 = vmatpush1.msra.mxu1 %v3618_v43  ;;  %v3594_v13 = vld [vmem:[#allocation9 + $0x430] sm:$0xff]  ;;  %v3463_v51 = vld [vmem:[#allocation9 + $0x18] sm:$0xff]  ;;  %vm2428_vm7 = vcmp.gt.f32.partialorder %v9465_v27, 0.0  ;;  %vm2430_vm12 = vcmp.gt.f32.partialorder %v9467_v25, 0.0 }
 0x5b8   :  { %3960 = vmatprep.subr.mxu0 %v3487_v61  ;;  %4073 = vmatprep.subr.mxu1 %v3615_v35  ;;  %v9469_v32 = vpop.f32.mrf.mxu0  ;;  %v9471_v46 = vpop.f32.mrf.mxu1  ;;  %v3591_v43 = vld [vmem:[#allocation9 + $0x418] sm:$0xff]  ;;  %v3462_v35 = vld [vmem:[#allocation9 + $0x10] sm:$0xff] }
 0x5b9   :  { %3961 = vmatpush1.msra.mxu0 %v3486_v15  ;;  %4074 = vmatpush1.msra.mxu1 %v3614_v48  ;;  %v2493_v61 = vmin.f32 %v9469_v32, 0.0  ;;  %v3590_v15 = vld [vmem:[#allocation9 + $0x410] sm:$0xff]  ;;  %v2495_v48 = vmin.f32 %v9471_v46, 0.0  ;;  %vm2429_vm2 = vcmp.gt.f32.partialorder %v9469_v32, 0.0  ;;  %vm2431_vm5 = vcmp.gt.f32.partialorder %v9471_v46, 0.0 }
 0x5ba   :  { %3962 = vmatprep.subr.mxu0 %v3483_v4  ;;  %4075 = vmatprep.subr.mxu1 %v3611_v57  ;;  %v3587_v4 = vld [vmem:[#allocation9 + $0x3f8] sm:$0xff] }
 0x5bb   :  { %3963 = vmatpush1.msra.mxu0 %v3482_v0  ;;  %4076 = vmatpush1.msra.mxu1 %v3610_v23  ;;  %v3715_v57 = vld [vmem:[#allocation9 + $0x7f8] sm:$0xff]  ;;  %v3586_v0 = vld [vmem:[#allocation9 + $0x3f0] sm:$0xff] }
 0x5bc   :  { %3964 = vmatprep.subr.mxu0 %v3479_v28  ;;  %4077 = vmatprep.subr.mxu1 %v3607_v53  ;;  %v3714_v23 = vld [vmem:[#allocation9 + $0x7f0] sm:$0xff]  ;;  %v3583_v28 = vld [vmem:[#allocation9 + $0x3d8] sm:$0xff] }
 0x5bd   :  { %3965 = vmatpush1.msra.mxu0 %v3478_v17  ;;  %4078 = vmatpush1.msra.mxu1 %v3606_v9  ;;  %v3711_v53 = vld [vmem:[#allocation9 + $0x7d8] sm:$0xff]  ;;  %v2492_v17 = vmin.f32 %v9465_v27, 0.0  ;;  %v2618_v9 = vmul.f32 1.442695, %v2493_v61  ;;  %v9477_v61 = vpop.f32.mrf.mxu0 }
 0x5be   :  { %3966 = vmatprep.subr.mxu0 %v3475_v36  ;;  %4079 = vmatprep.subr.mxu1 %v3603_v19  ;;  %v2494_v36 = vmin.f32 %v9467_v25, 0.0  ;;  %v3582_v19 = vld [vmem:[#allocation9 + $0x3d0] sm:$0xff] }
 0x5bf   :  { %3967 = vmatpush1.msra.mxu0 %v3474_v40  ;;  %4080 = vmatpush1.msra.mxu1 %v3602_v45  ;;  %v3710_v40 = vld [vmem:[#allocation9 + $0x7d0] sm:$0xff]  ;;  %v2622_v45 = vmul.f32 1.442695, %v2495_v48  ;;  %6840 = vpow2.f32 %v2618_v9  ;;  %v3699_v48 = vld [vmem:[#allocation9 + $0x778] sm:$0xff] }
 0x5c0   :  { %3968 = vmatprep.subr.mxu0 %v3471_v37  ;;  %4081 = vmatprep.subr.mxu1 %v3599_v6  ;;  %v3579_v37 = vld [vmem:[#allocation9 + $0x3b8] sm:$0xff] }
 0x5c1   :  { %3969 = vmatpush1.msra.mxu0 %v3470_v58  ;;  %4082 = vmatpush1.msra.mxu1 %v3598_v12  ;;  %v3707_v6 = vld [vmem:[#allocation9 + $0x7b8] sm:$0xff]  ;;  %v3578_v58 = vld [vmem:[#allocation9 + $0x3b0] sm:$0xff]  ;;  %6842 = vpow2.f32 %v2622_v45 }
 0x5c2   :  { %3970 = vmatprep.subr.mxu0 %v3467_v62  ;;  %4083 = vmatprep.subr.mxu1 %v3595_v38  ;;  %v3706_v12 = vld [vmem:[#allocation9 + $0x7b0] sm:$0xff]  ;;  %v2616_v62 = vmul.f32 1.442695, %v2492_v17  ;;  %v3575_v38 = vld [vmem:[#allocation9 + $0x398] sm:$0xff]  ;;  %v9481_v17 = vpop.f32.mrf.mxu0 }
 0x5c3   :  { %3971 = vmatpush1.msra.mxu0 %v3466_v56  ;;  %4084 = vmatpush1.msra.mxu1 %v3594_v13  ;;  %v3703_v56 = vld [vmem:[#allocation9 + $0x798] sm:$0xff]  ;;  %v2620_v13 = vmul.f32 1.442695, %v2494_v36  ;;  %v3690_v45 = vld [vmem:[#allocation9 + $0x730] sm:$0xff] }
 0x5c4   :  { %3972 = vmatprep.subr.mxu0 %v3463_v51  ;;  %4085 = vmatprep.subr.mxu1 %v3591_v43  ;;  %v3574_v51 = vld [vmem:[#allocation9 + $0x390] sm:$0xff]  ;;  %6844 = vpow2.f32 %v2616_v62  ;;  %v3563_v36 = vld [vmem:[#allocation9 + $0x338] sm:$0xff]  ;;  %v9485_v62 = vpop.f32.mrf.mxu0 }
 0x5c5   :  { %3973 = vmatpush1.msra.mxu0 %v3462_v35  ;;  %4086 = vmatpush1.msra.mxu1 %v3590_v15  ;;  %v3702_v43 = vld [vmem:[#allocation9 + $0x790] sm:$0xff]  ;;  %v9479_v35 = vpop.f32.mrf.mxu1  ;;  %v3571_v15 = vld [vmem:[#allocation9 + $0x378] sm:$0xff]  ;;  %6846 = vpow2.f32 %v2620_v13 }
 0x5c6   :  { %3974 = vmatprep.subr.mxu0 %v3587_v4  ;;  %4087 = vmatprep.subr.mxu1 %v3715_v57  ;;  %v3570_v4 = vld [vmem:[#allocation9 + $0x370] sm:$0xff]  ;;  %v3683_v13 = vld [vmem:[#allocation9 + $0x6f8] sm:$0xff] }
 0x5c7   :  { %3975 = vmatpush2.msra.mxu0 %v3586_v0  ;;  %4088 = vmatpush2.msra.mxu1 %v3714_v23  ;;  %v3698_v57 = vld [vmem:[#allocation9 + $0x770] sm:$0xff]  ;;  %v3567_v0 = vld [vmem:[#allocation9 + $0x358] sm:$0xff]  ;;  %v9483_v9 = vpop.f32.mrf.mxu1 }
 0x5c8   :  { %3976 = vmatprep.subr.mxu0 %v3583_v28  ;;  %4089 = vmatprep.subr.mxu1 %v3711_v53  ;;  %v3695_v23 = vld [vmem:[#allocation9 + $0x758] sm:$0xff]  ;;  %v3566_v28 = vld [vmem:[#allocation9 + $0x350] sm:$0xff] }
 0x5c9   :  { %3977 = vmatpush2.msra.mxu0 %v3582_v19  ;;  %4090 = vmatpush2.msra.mxu1 %v3710_v40  ;;  %v3694_v53 = vld [vmem:[#allocation9 + $0x750] sm:$0xff]  ;;  %v3691_v19 = vld [vmem:[#allocation9 + $0x738] sm:$0xff] }
 0x5ca   :  { %3978 = vmatprep.subr.mxu0 %v3579_v37  ;;  %4091 = vmatprep.subr.mxu1 %v3707_v6  ;;  %v3562_v40 = vld [vmem:[#allocation9 + $0x330] sm:$0xff]  ;;  %v3559_v37 = vld [vmem:[#allocation9 + $0x318] sm:$0xff] }
 0x5cb   :  { %3979 = vmatpush2.msra.mxu0 %v3578_v58  ;;  %4092 = vmatpush2.msra.mxu1 %v3706_v12  ;;  %v3687_v6 = vld [vmem:[#allocation9 + $0x718] sm:$0xff]  ;;  %v3558_v58 = vld [vmem:[#allocation9 + $0x310] sm:$0xff] }
 0x5cc   :  { %3980 = vmatprep.subr.mxu0 %v3575_v38  ;;  %4093 = vmatprep.subr.mxu1 %v3703_v56  ;;  %v3686_v12 = vld [vmem:[#allocation9 + $0x710] sm:$0xff]  ;;  %v9487_v38 = vpop.f32.mrf.mxu1  ;;  %v3555_v56 = vld [vmem:[#allocation9 + $0x2f8] sm:$0xff] }
 0x5cd   :  { %3981 = vmatpush2.msra.mxu0 %v3574_v51  ;;  %4094 = vmatpush2.msra.mxu1 %v3702_v43  ;;  %v3554_v51 = vld [vmem:[#allocation9 + $0x2f0] sm:$0xff] }
 0x5ce   :  { %3982 = vmatprep.subr.mxu0 %v3571_v15  ;;  %4095 = vmatprep.subr.mxu1 %v3699_v48  ;;  %v3682_v43 = vld [vmem:[#allocation9 + $0x6f0] sm:$0xff]  ;;  %v3551_v15 = vld [vmem:[#allocation9 + $0x2d8] sm:$0xff] }
 0x5cf   :  { %3983 = vmatpush2.msra.mxu0 %v3570_v4  ;;  %4096 = vmatpush2.msra.mxu1 %v3698_v57  ;;  %v3679_v48 = vld [vmem:[#allocation9 + $0x6d8] sm:$0xff]  ;;  %v6841_v4 = vpop.eup %6840  ;;  %v3550_v57 = vld [vmem:[#allocation9 + $0x2d0] sm:$0xff] }
 0x5d0   :  { %3984 = vmatprep.subr.mxu0 %v3567_v0  ;;  %4097 = vmatprep.subr.mxu1 %v3695_v23  ;;  %v3678_v0 = vld [vmem:[#allocation9 + $0x6d0] sm:$0xff]  ;;  %v6843_v23 = vpop.eup %6842 }
 0x5d1   :  { %3985 = vmatpush2.msra.mxu0 %v3566_v28  ;;  %4098 = vmatpush2.msra.mxu1 %v3694_v53  ;;  %v9489_v28 = vpop.f32.mrf.mxu0  ;;  %v9491_v53 = vpop.f32.mrf.mxu1  ;;  %v6631_v7 = vadd.f32 -1.0, %v6843_v23  ;;  %v3663_v23 = vld [vmem:[#allocation9 + $0x658] sm:$0xff] }
 0x5d2   :  { %3986 = vmatprep.subr.mxu0 %v3563_v36  ;;  %4099 = vmatprep.subr.mxu1 %v3691_v19  ;;  %v3547_v36 = vld [vmem:[#allocation9 + $0x2b8] sm:$0xff] }
 0x5d3   :  { %3987 = vmatpush2.msra.mxu0 %v3562_v40  ;;  %4100 = vmatpush2.msra.mxu1 %v3690_v45  ;;  %v3675_v19 = vld [vmem:[#allocation9 + $0x6b8] sm:$0xff]  ;;  %v3546_v40 = vld [vmem:[#allocation9 + $0x2b0] sm:$0xff] }
 0x5d4   :  { %3988 = vmatprep.subr.mxu0 %v3559_v37  ;;  %4101 = vmatprep.subr.mxu1 %v3687_v6  ;;  %v3674_v45 = vld [vmem:[#allocation9 + $0x6b0] sm:$0xff]  ;;  %v3543_v37 = vld [vmem:[#allocation9 + $0x298] sm:$0xff] }
 0x5d5   :  { %3989 = vmatpush2.msra.mxu0 %v3558_v58  ;;  %4102 = vmatpush2.msra.mxu1 %v3686_v12  ;;  %v3671_v6 = vld [vmem:[#allocation9 + $0x698] sm:$0xff]  ;;  %v6845_v58 = vpop.eup %6844  ;;  %v3542_v12 = vld [vmem:[#allocation9 + $0x290] sm:$0xff] }
 0x5d6   :  { %3990 = vmatprep.subr.mxu0 %v3555_v56  ;;  %4103 = vmatprep.subr.mxu1 %v3683_v13  ;;  %v3670_v56 = vld [vmem:[#allocation9 + $0x690] sm:$0xff]  ;;  %v6629_v13 = vadd.f32 -1.0, %v6841_v4  ;;  %v6847_v63 = vpop.eup %6846  ;;  %v3535_v4 = vld [vmem:[#allocation9 + $0x258] sm:$0xff] }
 0x5d7   :  { %3991 = vmatpush2.msra.mxu0 %v3554_v51  ;;  %4104 = vmatpush2.msra.mxu1 %v3682_v43  ;;  %v9493_v51 = vpop.f32.mrf.mxu0  ;;  %v9495_v43 = vpop.f32.mrf.mxu1 }
 0x5d8   :  { %3992 = vmatprep.subr.mxu0 %v3551_v15  ;;  %4105 = vmatprep.subr.mxu1 %v3679_v48  ;;  %v3539_v15 = vld [vmem:[#allocation9 + $0x278] sm:$0xff] }
 0x5d9   :  { %3993 = vmatpush2.msra.mxu0 %v3550_v57  ;;  %4106 = vmatpush2.msra.mxu1 %v3678_v0  ;;  %v3667_v48 = vld [vmem:[#allocation9 + $0x678] sm:$0xff]  ;;  %v3538_v57 = vld [vmem:[#allocation9 + $0x270] sm:$0xff] }
 0x5da   :  { %3994 = vmatprep.subr.mxu0 %v3547_v36  ;;  %4107 = vmatprep.subr.mxu1 %v3675_v19  ;;  %v3666_v0 = vld [vmem:[#allocation9 + $0x670] sm:$0xff]  ;;  %v9500_v36 = vsel %vm2429_vm2, %v9469_v32, %v6629_v13  ;;  %v9503_v19 = vsel %vm2431_vm5, %v9471_v46, %v6631_v7  ;;  %v3531_v7 = vld [vmem:[#allocation9 + $0x238] sm:$0xff] }
 0x5db   :  { %3995 = vmatpush2.msra.mxu0 %v3546_v40  ;;  %4108 = vmatpush2.msra.mxu1 %v3674_v45  ;;  %v6628_v40 = vadd.f32 -1.0, %v6845_v58  ;;  %v6630_v45 = vadd.f32 -1.0, %v6847_v63  ;;  %v3659_v63 = vld [vmem:[#allocation9 + $0x638] sm:$0xff]  ;;  %v3530_v58 = vld [vmem:[#allocation9 + $0x230] sm:$0xff] }
 0x5dc   :  { %3996 = vmatprep.subr.mxu0 %v3543_v37  ;;  %4109 = vmatprep.subr.mxu1 %v3671_v6  ;;  %v9505_v37 = vpop.f32.mrf.mxu0  ;;  %v9507_v6 = vpop.f32.mrf.mxu1 }
 0x5dd   :  { %3997 = vmatpush2.msra.mxu0 %v3542_v12  ;;  %4110 = vmatpush2.msra.mxu1 %v3670_v56  ;;  %v3534_v12 = vld [vmem:[#allocation9 + $0x250] sm:$0xff]  ;;  %v9514_v32 = vsel %vm2428_vm7, %v9465_v27, %v6628_v40  ;;  %v9517_v46 = vsel %vm2430_vm12, %v9467_v25, %v6630_v45 }
 0x5de   :  { %3998 = vmatprep.subr.mxu0 %v3539_v15  ;;  %4111 = vmatprep.subr.mxu1 %v3667_v48  ;;  %v3662_v56 = vld [vmem:[#allocation9 + $0x650] sm:$0xff]  ;;  %v9519_v13 = vpop.f32.mrf.mxu0  ;;  %v9521_v15 = vpop.f32.mrf.mxu1 }
 0x5df   :  { %3999 = vmatpush2.msra.mxu0 %v3538_v57  ;;  %4112 = vmatpush2.msra.mxu1 %v3666_v0  ;;  %v3658_v48 = vld [vmem:[#allocation9 + $0x630] sm:$0xff]  ;;  %v3527_v57 = vld [vmem:[#allocation9 + $0x218] sm:$0xff] }
 0x5e0   :  { %4000 = vmatprep.subr.mxu0 %v3535_v4  ;;  %4113 = vmatprep.subr.mxu1 %v3663_v23  ;;  %v3655_v0 = vld [vmem:[#allocation9 + $0x618] sm:$0xff]  ;;  %v3526_v27 = vld [vmem:[#allocation9 + $0x210] sm:$0xff]  ;;  %v9527_v4 = vpop.f32.mrf.mxu0  ;;  %v9529_v23 = vpop.f32.mrf.mxu1 }
 0x5e1   :  { %3822 = vmatprep.mubr.f32.mxu0 %v9500_v36  ;;  %3935 = vmatprep.mubr.f32.mxu1 %v9503_v19  ;;  %v3654_v25 = vld [vmem:[#allocation9 + $0x610] sm:$0xff] }
 0x5e2   :  { %4001 = vmatpush2.msra.mxu0 %v3534_v12  ;;  %4114 = vmatpush2.msra.mxu1 %v3662_v56  ;;  %v9537_v40 = vpop.f32.mrf.mxu1 }
 0x5e3   :  { %3823 = vmatmul.mubr.f32.gmra.mxu0 %v9514_v32  ;;  %3936 = vmatmul.mubr.f32.gmra.mxu1 %v9517_v46 }
 0x5e4   :  { %4002 = vmatprep.subr.mxu0 %v3531_v7  ;;  %4115 = vmatprep.subr.mxu1 %v3659_v63  ;;  %v9640_v63 = vadd.f32 %v9507_v6, %v9505_v37 }
 0x5e5   :  { %4003 = vmatpush2.msra.mxu0 %v3530_v58  ;;  %4006 = vmatprep.mubr.f32.mxu0 %v9269_v60  ;;  %v9535_v60 = vpop.f32.mrf.mxu0 }
 0x5e6   :  { %4116 = vmatpush2.msra.mxu1 %v3658_v48  ;;  %4119 = vmatprep.mubr.f32.mxu1 %v9276_v3  ;;  %v9648_v48 = vadd.f32 %v9495_v43, %v9493_v51  ;;  %v9662_v43 = vadd.f32 %v9529_v23, %v9527_v4 }
 0x5e7   :  { %4004 = vmatprep.subr.mxu0 %v3527_v57  ;;  %4117 = vmatprep.subr.mxu1 %v3655_v0  ;;  %v9543_v3 = vpop.f32.mrf.mxu0 }
 0x5e8   :  { %4005 = vmatpush2.msra.mxu0 %v3526_v27  ;;  %4118 = vmatpush2.msra.mxu1 %v3654_v25 }
 0x5e9   :  { %4007 = vmatmul.mubr.f32.vlgmr.msra.gmra.mxu0 %v9334_v8  ;;  %4120 = vmatmul.mubr.f32.vlgmr.msra.gmra.mxu1 %v9347_v16  ;;  %v9545_v8 = vpop.f32.mrf.mxu1 }
 0x5ea   :  { %4012 = vmatprep.mubr.f32.mxu0 %v9339_v26  ;;  %4125 = vmatprep.mubr.f32.mxu1 %v9342_v59  ;;  %v9551_v26 = vpop.f32.mrf.mxu0 }
 0x5eb   :  { %v9553_v59 = vpop.f32.mrf.mxu1 }
 0x5ec   :  { %v9559_v16 = vpop.f32.mrf.mxu0 }
 0x5ed   :  { %4013 = vmatmul.mubr.f32.gmra.mxu0 %v9356_v11  ;;  %4126 = vmatmul.mubr.f32.gmra.mxu1 %v9369_v21  ;;  %v9561_v11 = vpop.f32.mrf.mxu1 }
 0x5ee   :  { %4018 = vmatprep.mubr.f32.mxu0 %v9361_v52  ;;  %4131 = vmatprep.mubr.f32.mxu1 %v9364_v1  ;;  %v9567_v52 = vpop.f32.mrf.mxu0 }
 0x5ef   :  { %v9569_v1 = vpop.f32.mrf.mxu1 }
 0x5f0   :  { %v9575_v21 = vpop.f32.mrf.mxu0 }
 0x5f1   :  { %4019 = vmatmul.mubr.f32.gmra.mxu0 %v9386_v5  ;;  %4132 = vmatmul.mubr.f32.gmra.mxu1 %v9389_v41 }
 0x5f2   :  { %4024 = vmatprep.mubr.f32.mxu0 %v9380_v2  ;;  %4137 = vmatprep.mubr.f32.mxu1 %v9383_v54  ;;  %v9577_v2 = vpop.f32.mrf.mxu1  ;;  %v4168_v54 = vld [vmem:[%s10647_s17] sm:$0xf]  ;;  %v9586_v5 = vpop.f32.mrf.mxu0 }
 0x5f4   :  { %v9588_v41 = vpop.f32.mrf.mxu1 }
 0x5f5   :  { %4025 = vmatmul.mubr.f32.gmra.mxu0 %v9406_v33  ;;  %4138 = vmatmul.mubr.f32.gmra.mxu1 %v9409_v42  ;;  %v9601_v33 = vadd.f32 %v9479_v35, %v9477_v61  ;;  %v9604_v42 = vrot.slane %v4168_v54, %v10918_v30 }
 0x5f6   :  { %4030 = vmatprep.mubr.f32.mxu0 %v9400_v20  ;;  %4143 = vmatprep.mubr.f32.mxu1 %v9403_v14  ;;  %v9592_v20 = vadd.f32 %v9483_v9, %v9481_v17  ;;  %v9595_v14 = vrot.slane %v4168_v54, %v10964_v10  ;;  %v9628_v9 = vadd.f32 %v9487_v38, %v9485_v62 }
 0x5f7   :  { %v4198_v51 = vmul.f32 %v9604_v42, %v9648_v48 }
 0x5f8   :  { %v4199_v6 = vmul.f32 %v9595_v14, %v9640_v63 }
 0x5f9   :  { %4031 = vmatmul.mubr.f32.gmra.mxu0 %v9426_v49  ;;  %4144 = vmatmul.mubr.f32.gmra.mxu1 %v9429_v29  ;;  %v4191_v49 = vmul.f32 %v9595_v14, %v9592_v20  ;;  %v9613_v29 = vrot.slane %v4168_v54, %v10941_v18 }
 0x5fa   :  { %4036 = vmatprep.mubr.f32.mxu0 %v9420_v55  ;;  %4149 = vmatprep.mubr.f32.mxu1 %v9423_v47  ;;  %v9606_v55 = vpop.f32.mrf.mxu0  ;;  %v9608_v47 = vpop.f32.mrf.mxu1 }
 0x5fd   :  { %4037 = vmatmul.mubr.f32.gmra.mxu0 %v9446_v31  ;;  %4150 = vmatmul.mubr.f32.gmra.mxu1 %v9449_v24  ;;  %v4190_v31 = vmul.f32 %v9604_v42, %v9601_v33  ;;  %v9619_v24 = vadd.f32 %v9491_v53, %v9489_v28 }
 0x5fe   :  { %4042 = vmatprep.mubr.f32.mxu0 %v9440_v44  ;;  %4155 = vmatprep.mubr.f32.mxu1 %v9443_v50 }
 0x5ff   :  { %v4254_v45 = vadd.f32 %v4191_v49, %v4190_v31  ;;  %v4195_v12 = vmul.f32 %v9595_v14, %v9619_v24 }
 0x601   :  { %4043 = vmatmul.mubr.f32.gmra.mxu0 %v9458_v39  ;;  %4156 = vmatmul.mubr.f32.gmra.mxu1 %v9461_v34  ;;  %v11089_v34 = vld [vmem:[#allocation27_spill] sm:$0xff] }
 0x602   :  { %4048 = vmatprep.mubr.f32.mxu0 %v9500_v36  ;;  %4161 = vmatprep.mubr.f32.mxu1 %v9503_v19  ;;  %v9624_v61 = vrot.slane %v4168_v54, %v11089_v34 }
 0x605   :  { %4049 = vmatmul.mubr.f32.gmra.mxu0 %v9514_v32  ;;  %4162 = vmatmul.mubr.f32.gmra.mxu1 %v9517_v46  ;;  %v4194_v32 = vmul.f32 %v9604_v42, %v9628_v9 }
 0x607   :  { %v4259_v37 = vadd.f32 %v4195_v12, %v4194_v32 }
 0x609   :  { %v3300_v44 = vpop.f32.mrf.mxu0  ;;  %v3413_v50 = vpop.f32.mrf.mxu1 }
 0x60a   :  { %v9621_v39 = vadd.f32 %v3413_v50, %v3300_v44 }
 0x60b   :  { %v3302_v35 = vpop.f32.mrf.mxu0  ;;  %v3415_v17 = vpop.f32.mrf.mxu1 }
 0x60c   :  { %11088 = vst [vmem:[#allocation56_spill] sm:$0xff] %v9621_v39  ;;  %v9630_v36 = vadd.f32 %v3415_v17, %v3302_v35  ;;  %v4192_v19 = vmul.f32 %v9613_v29, %v9621_v39  ;;  %v9668_v17 = vadd.f32 %v9521_v15, %v9519_v13  ;;  %v9680_v13 = vadd.f32 %v9545_v8, %v9543_v3 }
 0x60e   :  { %11090 = vst [vmem:[#allocation57_spill] sm:$0xff] %v9630_v36  ;;  %v4193_v28 = vmul.f32 %v9624_v61, %v9630_v36  ;;  %v4255_v53 = vadd.f32 %v4254_v45, %v4192_v19  ;;  %v4207_v8 = vmul.f32 %v9595_v14, %v9680_v13 }
 0x60f   :  { %v3306_v56 = vpop.f32.mrf.mxu0  ;;  %v3419_v7 = vpop.f32.mrf.mxu1 }
 0x610   :  { %v9642_v62 = vadd.f32 %v3419_v7, %v3306_v56  ;;  %v4256_v38 = vadd.f32 %v4255_v53, %v4193_v28  ;;  %v4264_v28 = vadd.f32 %v4199_v6, %v4198_v51  ;;  %v4203_v53 = vmul.f32 %v9595_v14, %v9662_v43 }
 0x611   :  { %v3308_v46 = vpop.f32.mrf.mxu0  ;;  %v3421_v58 = vpop.f32.mrf.mxu1 }
 0x612   :  { %11091 = vst [vmem:[#allocation58_spill] sm:$0xff] %v9642_v62  ;;  %v9650_v57 = vadd.f32 %v3421_v58, %v3308_v46  ;;  %4257 = vadd.xlane.f32.xlu1 %v4256_v38  ;;  %v4196_v0 = vmul.f32 %v9613_v29, %v9642_v62  ;;  %v4202_v38 = vmul.f32 %v9604_v42, %v9668_v17  ;;  %v4334_v62 = vld [vmem:[%s10653_s23] sm:$0xf] }
 0x613   :  { %v9688_v58 = vadd.f32 %v9537_v40, %v9535_v60  ;;  %v9702_v40 = vadd.f32 %v9561_v11, %v9559_v16 }
 0x614   :  { %11092 = vst [vmem:[#allocation59_spill] sm:$0xff] %v9650_v57  ;;  %v4197_v27 = vmul.f32 %v9624_v61, %v9650_v57  ;;  %v4260_v25 = vadd.f32 %v4259_v37, %v4196_v0  ;;  %v4269_v3 = vadd.f32 %v4203_v53, %v4202_v38 }
 0x615   :  { %v3312_v54 = vpop.f32.mrf.mxu0  ;;  %v3425_v49 = vpop.f32.mrf.mxu1  ;;  %v4206_v60 = vmul.f32 %v9604_v42, %v9688_v58 }
 0x616   :  { %v9664_v44 = vadd.f32 %v3425_v49, %v3312_v54  ;;  %v4261_v50 = vadd.f32 %v4260_v25, %v4197_v27 }
 0x617   :  { %v3314_v31 = vpop.f32.mrf.mxu0  ;;  %v3427_v35 = vpop.f32.mrf.mxu1 }
 0x618   :  { %11093 = vst [vmem:[#allocation60_spill] sm:$0xff] %v9664_v44  ;;  %v9670_v19 = vadd.f32 %v3427_v35, %v3314_v31  ;;  %4262 = vadd.xlane.f32.xlu0 %v4261_v50  ;;  %v4200_v45 = vmul.f32 %v9613_v29, %v9664_v44  ;;  %v9708_v35 = vadd.f32 %v9553_v59, %v9551_v26 }
 0x619   :  { %v9720_v26 = vadd.f32 %v9577_v2, %v9575_v21 }
 0x61a   :  { %11094 = vst [vmem:[#allocation61_spill] sm:$0xff] %v9670_v19  ;;  %v4201_v4 = vmul.f32 %v9624_v61, %v9670_v19  ;;  %v4265_v23 = vadd.f32 %v4264_v28, %v4200_v45 }
 0x61b   :  { %v3318_v12 = vpop.f32.mrf.mxu0  ;;  %v3431_v56 = vpop.f32.mrf.mxu1  ;;  %v4215_v2 = vmul.f32 %v9595_v14, %v9720_v26 }
 0x61c   :  { %v9682_v15 = vadd.f32 %v3431_v56, %v3318_v12  ;;  %v4266_v7 = vadd.f32 %v4265_v23, %v4201_v4  ;;  %v4274_v4 = vadd.f32 %v4207_v8, %v4206_v60  ;;  %v4211_v23 = vmul.f32 %v9595_v14, %v9702_v40 }
 0x61d   :  { %v3320_v32 = vpop.f32.mrf.mxu0  ;;  %v3433_v46 = vpop.f32.mrf.mxu1 }
 0x61e   :  { %11095 = vst [vmem:[#allocation62_spill] sm:$0xff] %v9682_v15  ;;  %v9690_v0 = vadd.f32 %v3433_v46, %v3320_v32  ;;  %4267 = vadd.xlane.f32.xlu1 %v4266_v7  ;;  %v4204_v37 = vmul.f32 %v9613_v29, %v9682_v15  ;;  %v4210_v7 = vmul.f32 %v9604_v42, %v9708_v35 }
 0x61f   :  { %v9728_v46 = vadd.f32 %v9569_v1, %v9567_v52  ;;  %v9742_v1 = vadd.f32 %v9608_v47, %v9606_v55 }
 0x620   :  { %11096 = vst [vmem:[#allocation63_spill] sm:$0xff] %v9690_v0  ;;  %v4205_v6 = vmul.f32 %v9624_v61, %v9690_v0  ;;  %v4270_v27 = vadd.f32 %v4269_v3, %v4204_v37  ;;  %v4279_v21 = vadd.f32 %v4211_v23, %v4210_v7  ;;  %v9800_v0 = vrot.slane %v4334_v62, %v10918_v30 }
 0x621   :  { %v3324_v25 = vpop.f32.mrf.mxu0  ;;  %v3437_v54 = vpop.f32.mrf.mxu1  ;;  %v4214_v52 = vmul.f32 %v9604_v42, %v9728_v46  ;;  %v4219_v55 = vmul.f32 %v9595_v14, %v9742_v1 }
 0x622   :  { %v9704_v49 = vadd.f32 %v3437_v54, %v3324_v25  ;;  %v4271_v51 = vadd.f32 %v4270_v27, %v4205_v6 }
 0x623   :  { %v3326_v50 = vpop.f32.mrf.mxu0  ;;  %v3439_v31 = vpop.f32.mrf.mxu1 }
 0x624   :  { %11097 = vst [vmem:[#allocation64_spill] sm:$0xff] %v9704_v49  ;;  %v9710_v45 = vadd.f32 %v3439_v31, %v3326_v50  ;;  %4272 = vadd.xlane.f32.xlu0 %v4271_v51  ;;  %v4208_v28 = vmul.f32 %v9613_v29, %v9704_v49  ;;  %v9748_v31 = vadd.f32 %v9588_v41, %v9586_v5 }
 0x626   :  { %11098 = vst [vmem:[#allocation65_spill] sm:$0xff] %v9710_v45  ;;  %v4209_v16 = vmul.f32 %v9624_v61, %v9710_v45  ;;  %v4275_v11 = vadd.f32 %v4274_v4, %v4208_v28  ;;  %v4218_v5 = vmul.f32 %v9604_v42, %v9748_v31  ;;  %v9771_v42 = vld [vmem:[%s10648_s18] sm:$0xf] }
 0x627   :  { %v3330_v53 = vpop.f32.mrf.mxu0  ;;  %v3443_v12 = vpop.f32.mrf.mxu1 }
 0x628   :  { %v9722_v59 = vadd.f32 %v3443_v12, %v3330_v53  ;;  %v4276_v56 = vadd.f32 %v4275_v11, %v4209_v16  ;;  %v4284_v16 = vadd.f32 %v4215_v2, %v4214_v52 }
 0x629   :  { %v3332_v38 = vpop.f32.mrf.mxu0  ;;  %v3445_v32 = vpop.f32.mrf.mxu1 }
 0x62a   :  { %11099 = vst [vmem:[#allocation66_spill] sm:$0xff] %v9722_v59  ;;  %v9730_v37 = vadd.f32 %v3445_v32, %v3332_v38  ;;  %4277 = vadd.xlane.f32.xlu1 %v4276_v56  ;;  %v4212_v3 = vmul.f32 %v9613_v29, %v9722_v59  ;;  %v4289_v32 = vadd.f32 %v4219_v55, %v4218_v5 }
 0x62b   :  { %v4533_v5 = vrot.slane %v9771_v42, %v11089_v34 }
 0x62c   :  { %11100 = vst [vmem:[#allocation67_spill] sm:$0xff] %v9730_v37  ;;  %v4213_v8 = vmul.f32 %v9624_v61, %v9730_v37  ;;  %v4280_v6 = vadd.f32 %v4279_v21, %v4212_v3 }
 0x62d   :  { %v3336_v27 = vpop.f32.mrf.mxu0  ;;  %v3449_v25 = vpop.f32.mrf.mxu1  ;;  %4672 = vmatprep.mubr.f32.mxu1 %v4533_v5  ;;  %v9795_v5 = vrot.slane %v4334_v62, %v10964_v10 }
 0x62e   :  { %v9744_v54 = vadd.f32 %v3449_v25, %v3336_v27  ;;  %v4281_v60 = vadd.f32 %v4280_v6, %v4213_v8  ;;  %v4525_v8 = vrot.slane %v9771_v42, %v10964_v10 }
 0x62f   :  { %v3338_v51 = vpop.f32.mrf.mxu0  ;;  %v3451_v50 = vpop.f32.mrf.mxu1 }
 0x630   :  { %11101 = vst [vmem:[#allocation68_spill] sm:$0xff] %v9744_v54  ;;  %v9750_v28 = vadd.f32 %v3451_v50, %v3338_v51  ;;  %4282 = vadd.xlane.f32.xlu0 %v4281_v60  ;;  %v4216_v4 = vmul.f32 %v9613_v29, %v9744_v54  ;;  %4602 = vmatprep.mubr.f32.mxu0 %v4525_v8 }
 0x632   :  { %11102 = vst [vmem:[#allocation69_spill] sm:$0xff] %v9750_v28  ;;  %v4217_v47 = vmul.f32 %v9624_v61, %v9750_v28  ;;  %v4285_v11 = vadd.f32 %v4284_v16, %v4216_v4 }
 0x633   :  { %v3342_v23 = vpop.f32.mrf.mxu0  ;;  %v3455_v53 = vpop.f32.mrf.mxu1 }
 0x634   :  { %v9760_v41 = vadd.f32 %v3455_v53, %v3342_v23  ;;  %v4286_v12 = vadd.f32 %v4285_v11, %v4217_v47 }
 0x635   :  { %v3344_v56 = vpop.f32.mrf.mxu0  ;;  %v3457_v7 = vpop.f32.mrf.mxu1 }
 0x636   :  { %11103 = vst [vmem:[#allocation70_spill] sm:$0xff] %v9760_v41  ;;  %v9762_v38 = vadd.f32 %v3457_v7, %v3344_v56  ;;  %4287 = vadd.xlane.f32.xlu1 %v4286_v12  ;;  %v4220_v14 = vmul.f32 %v9613_v29, %v9760_v41 }
 0x638   :  { %11104 = vst [vmem:[#allocation71_spill] sm:$0xff] %v9762_v38  ;;  %v4221_v3 = vmul.f32 %v9624_v61, %v9762_v38  ;;  %v4290_v21 = vadd.f32 %v4289_v32, %v4220_v14 }
 0x63a   :  { %v4291_v2 = vadd.f32 %v4290_v21, %v4221_v3 }
 0x63c   :  { %4292 = vadd.xlane.f32.xlu0 %v4291_v2 }
 0x659   :  { %v3782_v6 = vpop.f32.mrf.mxu0  ;;  %v3895_v27 = vpop.f32.mrf.mxu1 }
 0x65a   :  { %v9797_v15 = vadd.f32 %v3895_v27, %v3782_v6 }
 0x65b   :  { %v3784_v25 = vpop.f32.mrf.mxu0  ;;  %v3897_v29 = vpop.f32.mrf.mxu1 }
 0x65c   :  { %v9792_v57 = vadd.f32 %v3897_v29, %v3784_v25  ;;  %v9812_v29 = vrot.slane %v4334_v62, %v10941_v18  ;;  %v4388_v6 = vmul.f32 %v9800_v0, %v9797_v15 }
 0x65d   :  { %v3788_v52 = vpop.f32.mrf.mxu0  ;;  %v3901_v60 = vpop.f32.mrf.mxu1 }
 0x65e   :  { %v4389_v37 = vmul.f32 %v9795_v5, %v9792_v57 }
 0x65f   :  { %v3790_v51 = vpop.f32.mrf.mxu0  ;;  %v3903_v61 = vpop.f32.mrf.mxu1 }
 0x660   :  { %v9816_v27 = vadd.f32 %v3903_v61, %v3790_v51  ;;  %v4460_v41 = vadd.f32 %v4389_v37, %v4388_v6 }
 0x661   :  { %v3794_v50 = vpop.f32.mrf.mxu0  ;;  %v3907_v4 = vpop.f32.mrf.mxu1 }
 0x662   :  { %11105 = vst [vmem:[#allocation72_spill] sm:$0xff] %v9816_v27 }
 0x663   :  { %v3796_v16 = vpop.f32.mrf.mxu0  ;;  %v3909_v55 = vpop.f32.mrf.mxu1 }
 0x664   :  { %v9829_v51 = vadd.f32 %v3909_v55, %v3796_v16 }
 0x665   :  { %v9775_v47 = vpop.f32.mrf.mxu0  ;;  %v9777_v11 = vpop.f32.mrf.mxu1 }
 0x666   :  { %11107 = vst [vmem:[#allocation74_spill] sm:$0xff] %v9829_v51 }
 0x667   :  { %v9779_v23 = vpop.f32.mrf.mxu0  ;;  %v9781_v53 = vpop.f32.mrf.mxu1 }
 0x668   :  { %v9857_v6 = vadd.f32 %v9781_v53, %v9779_v23 }
 0x669   :  { %v9785_v12 = vpop.f32.mrf.mxu0  ;;  %v9787_v56 = vpop.f32.mrf.mxu1 }
 0x66a   :  { %v9873_v23 = vadd.f32 %v9787_v56, %v9785_v12 }
 0x66b   :  { %v3808_v7 = vpop.f32.mrf.mxu0  ;;  %v3921_v14 = vpop.f32.mrf.mxu1 }
 0x66d   :  { %v3812_v32 = vpop.f32.mrf.mxu0  ;;  %v3925_v3 = vpop.f32.mrf.mxu1 }
 0x66e   :  { %v9847_v16 = vadd.f32 %v3925_v3, %v3812_v32 }
 0x66f   :  { %v3814_v21 = vpop.f32.mrf.mxu0  ;;  %v3927_v2 = vpop.f32.mrf.mxu1 }
 0x670   :  { %v9831_v61 = vadd.f32 %v3927_v2, %v3814_v21  ;;  %v4397_v2 = vmul.f32 %v9795_v5, %v9829_v51 }
 0x671   :  { %v3818_v8 = vpop.f32.mrf.mxu0  ;;  %v3931_v22 = vpop.f32.mrf.mxu1 }
 0x673   :  { %v3820_v39 = vpop.f32.mrf.mxu0  ;;  %v3933_v36 = vpop.f32.mrf.mxu1 }
 0x674   :  { %v9808_v25 = vadd.f32 %v3933_v36, %v3820_v39  ;;  %v9823_v39 = vrot.slane %v4334_v62, %v11089_v34  ;;  %v9825_v36 = vadd.f32 %v3901_v60, %v3788_v52  ;;  %v4393_v62 = vmul.f32 %v9795_v5, %v9816_v27 }
 0x676   :  { %11106 = vst [vmem:[#allocation73_spill] sm:$0xff] %v9825_v36 }
 0x6a3   :  { %v3937_v44 = vpop.f32.mrf.mxu1  ;;  %v3824_v19 = vpop.f32.mrf.mxu0 }
 0x6a4   :  { %v9806_v54 = vadd.f32 %v3937_v44, %v3824_v19  ;;  %v9827_v44 = vadd.f32 %v3931_v22, %v3818_v8  ;;  %v9840_v22 = vadd.f32 %v3907_v4, %v3794_v50  ;;  %v9853_v50 = vadd.f32 %v3921_v14, %v3808_v7 }
 0x6a5   :  { %v3826_v49 = vpop.f32.mrf.mxu0  ;;  %v3939_v45 = vpop.f32.mrf.mxu1  ;;  %v9868_v7 = vadd.f32 %v9777_v11, %v9775_v47  ;;  %v4401_v47 = vmul.f32 %v9795_v5, %v9857_v6 }
 0x6a6   :  { %v9802_v59 = vadd.f32 %v3939_v45, %v3826_v49  ;;  %11108 = vst [vmem:[#allocation75_spill] sm:$0xff] %v9840_v22 }
 0x6a8   :  { %4538 = vmatprep.subr.mxu0 %v9802_v59 }
 0x6a9   :  { %v4121_v28 = vpop.f32.mrf.mxu1  ;;  %v4008_v49 = vpop.f32.mrf.mxu0  ;;  %4539 = vmatpush1.xpose.msra.mxu0 %v9806_v54 }
 0x6aa   :  { %v9819_v45 = vadd.f32 %v4121_v28, %v4008_v49  ;;  %4540 = vmatprep.subr.mxu0 %v9808_v25 }
 0x6ab   :  { %v4010_v19 = vpop.f32.mrf.mxu0  ;;  %v4123_v18 = vpop.f32.mrf.mxu1 }
 0x6ac   :  { %v9833_v38 = vadd.f32 %v4123_v18, %v4010_v19  ;;  %v4390_v28 = vmul.f32 %v9812_v29, %v9819_v45  ;;  %v4392_v18 = vmul.f32 %v9800_v0, %v9825_v36 }
 0x6ad   :  { %v4127_v49 = vpop.f32.mrf.mxu1  ;;  %4541 = vmatpush1.xpose.msra.mxu0 %v9827_v44  ;;  %v4014_v52 = vpop.f32.mrf.mxu0 }
 0x6ae   :  { %4542 = vmatprep.subr.mxu0 %v9831_v61  ;;  %v4391_v37 = vmul.f32 %v9823_v39, %v9833_v38  ;;  %v4461_v60 = vadd.f32 %v4460_v41, %v4390_v28  ;;  %v9849_v55 = vadd.f32 %v4127_v49, %v4014_v52  ;;  %v4465_v3 = vadd.f32 %v4393_v62, %v4392_v18 }
 0x6af   :  { %v4129_v21 = vpop.f32.mrf.mxu1  ;;  %v4016_v4 = vpop.f32.mrf.mxu0  ;;  %v4396_v28 = vmul.f32 %v9800_v0, %v9840_v22 }
 0x6b0   :  { %v4462_v8 = vadd.f32 %v4461_v60, %v4391_v37  ;;  %v9859_v41 = vadd.f32 %v4129_v21, %v4016_v4  ;;  %v4394_v32 = vmul.f32 %v9812_v29, %v9849_v55  ;;  %v4400_v4 = vmul.f32 %v9800_v0, %v9868_v7 }
 0x6b1   :  { %v4133_v19 = vpop.f32.mrf.mxu1  ;;  %4543 = vmatpush1.xpose.msra.mxu0 %v9847_v16  ;;  %v4020_v14 = vpop.f32.mrf.mxu0  ;;  %v4470_v60 = vadd.f32 %v4397_v2, %v4396_v28 }
 0x6b2   :  { %4463 = vadd.xlane.f32.xlu1 %v4462_v8  ;;  %4544 = vmatprep.subr.mxu0 %v9853_v50  ;;  %v9875_v53 = vadd.f32 %v4133_v19, %v4020_v14  ;;  %v4395_v62 = vmul.f32 %v9823_v39, %v9859_v41  ;;  %v4466_v52 = vadd.f32 %v4465_v3, %v4394_v32 }
 0x6b3   :  { %v4135_v49 = vpop.f32.mrf.mxu1  ;;  %v4022_v37 = vpop.f32.mrf.mxu0  ;;  %v4405_v3 = vmul.f32 %v9795_v5, %v9853_v50 }
 0x6b4   :  { %v9881_v11 = vadd.f32 %v4135_v49, %v4022_v37  ;;  %v4467_v21 = vadd.f32 %v4466_v52, %v4395_v62  ;;  %v4398_v12 = vmul.f32 %v9812_v29, %v9875_v53  ;;  %v4475_v37 = vadd.f32 %v4401_v47, %v4400_v4 }
 0x6b5   :  { %v4139_v18 = vpop.f32.mrf.mxu1  ;;  %4545 = vmatpush1.xpose.msra.mxu0 %v9873_v23  ;;  %v4026_v56 = vpop.f32.mrf.mxu0 }
 0x6b6   :  { %4546 = vmatprep.subr.mxu0 %v9857_v6  ;;  %v9889_v8 = vadd.f32 %v4139_v18, %v4026_v56  ;;  %4468 = vadd.xlane.f32.xlu0 %v4467_v21  ;;  %v4399_v19 = vmul.f32 %v9823_v39, %v9881_v11  ;;  %v4471_v32 = vadd.f32 %v4470_v60, %v4398_v12 }
 0x6b7   :  { %v4141_v2 = vpop.f32.mrf.mxu1  ;;  %v4028_v28 = vpop.f32.mrf.mxu0  ;;  %v4404_v18 = vmul.f32 %v9800_v0, %v9873_v23 }
 0x6b8   :  { %v9895_v14 = vadd.f32 %v4141_v2, %v4028_v28  ;;  %v4472_v62 = vadd.f32 %v4471_v32, %v4399_v19  ;;  %v4402_v52 = vmul.f32 %v9812_v29, %v9889_v8  ;;  %v4409_v28 = vmul.f32 %v9795_v5, %v9831_v61 }
 0x6b9   :  { %v4145_v49 = vpop.f32.mrf.mxu1  ;;  %4547 = vmatpush1.xpose.msra.mxu0 %v9868_v7  ;;  %v4032_v21 = vpop.f32.mrf.mxu0  ;;  %v4480_v32 = vadd.f32 %v4405_v3, %v4404_v18 }
 0x6ba   :  { %4548 = vmatprep.subr.mxu0 %v9829_v51  ;;  %v9903_v60 = vadd.f32 %v4145_v49, %v4032_v21  ;;  %4473 = vadd.xlane.f32.xlu1 %v4472_v62  ;;  %v4403_v56 = vmul.f32 %v9823_v39, %v9895_v14  ;;  %v4476_v2 = vadd.f32 %v4475_v37, %v4402_v52 }
 0x6bb   :  { %v4147_v12 = vpop.f32.mrf.mxu1  ;;  %v4034_v19 = vpop.f32.mrf.mxu0  ;;  %v4408_v52 = vmul.f32 %v9800_v0, %v9847_v16 }
 0x6bc   :  { %v9909_v47 = vadd.f32 %v4147_v12, %v4034_v19  ;;  %v4477_v34 = vadd.f32 %v4476_v2, %v4403_v56  ;;  %v4406_v49 = vmul.f32 %v9812_v29, %v9903_v60  ;;  %v4413_v12 = vmul.f32 %v9795_v5, %v9808_v25 }
 0x6bd   :  { %v4151_v4 = vpop.f32.mrf.mxu1  ;;  %4549 = vmatpush1.xpose.msra.mxu0 %v9840_v22  ;;  %v4038_v62 = vpop.f32.mrf.mxu0 }
 0x6be   :  { %4550 = vmatprep.subr.mxu0 %v9816_v27  ;;  %v9917_v37 = vadd.f32 %v4151_v4, %v4038_v62  ;;  %4478 = vadd.xlane.f32.xlu0 %v4477_v34  ;;  %v4407_v18 = vmul.f32 %v9823_v39, %v9909_v47  ;;  %v4481_v21 = vadd.f32 %v4480_v32, %v4406_v49 }
 0x6bf   :  { %v4153_v3 = vpop.f32.mrf.mxu1  ;;  %v4040_v56 = vpop.f32.mrf.mxu0  ;;  %v4485_v62 = vadd.f32 %v4409_v28, %v4408_v52  ;;  %v4412_v34 = vmul.f32 %v9800_v0, %v9827_v44 }
 0x6c0   :  { %v9923_v2 = vadd.f32 %v4153_v3, %v4040_v56  ;;  %v4482_v22 = vadd.f32 %v4481_v21, %v4407_v18  ;;  %v4410_v4 = vmul.f32 %v9812_v29, %v9917_v37 }
 0x6c1   :  { %v4157_v19 = vpop.f32.mrf.mxu1  ;;  %4551 = vmatpush1.xpose.msra.mxu0 %v9825_v36  ;;  %v4044_v27 = vpop.f32.mrf.mxu0  ;;  %v4490_v56 = vadd.f32 %v4413_v12, %v4412_v34  ;;  %v4417_v36 = vmul.f32 %v9795_v5, %v9802_v59 }
 0x6c2   :  { %4552 = vmatprep.subr.mxu0 %v9792_v57  ;;  %v9931_v32 = vadd.f32 %v4157_v19, %v4044_v27  ;;  %4483 = vadd.xlane.f32.xlu1 %v4482_v22  ;;  %v4411_v3 = vmul.f32 %v9823_v39, %v9923_v2  ;;  %v4486_v18 = vadd.f32 %v4485_v62, %v4410_v4 }
 0x6c3   :  { %v4159_v49 = vpop.f32.mrf.mxu1  ;;  %v4046_v21 = vpop.f32.mrf.mxu0  ;;  %v4416_v19 = vmul.f32 %v9800_v0, %v9806_v54 }
 0x6c4   :  { %v9937_v28 = vadd.f32 %v4159_v49, %v4046_v21  ;;  %v4487_v51 = vadd.f32 %v4486_v18, %v4411_v3  ;;  %v4414_v27 = vmul.f32 %v9812_v29, %v9931_v32 }
 0x6c5   :  { %v4163_v52 = vpop.f32.mrf.mxu1  ;;  %4553 = vmatpush1.xpose.msra.mxu0 %v9797_v15  ;;  %v4050_v22 = vpop.f32.mrf.mxu0  ;;  %v4495_v21 = vadd.f32 %v4417_v36, %v4416_v19  ;;  %v11112_v19 = vld [vmem:[#allocation68_spill] sm:$0xff] }
 0x6c6   :  { %4554 = vmatprep.subr.mxu0 %v9742_v1  ;;  %v9945_v4 = vadd.f32 %v4163_v52, %v4050_v22  ;;  %4488 = vadd.xlane.f32.xlu0 %v4487_v51  ;;  %v4415_v5 = vmul.f32 %v9823_v39, %v9937_v28  ;;  %v4491_v62 = vadd.f32 %v4490_v56, %v4414_v27  ;;  %v11109_v52 = vld [vmem:[#allocation71_spill] sm:$0xff]  ;;  %v11110_v27 = vld [vmem:[#allocation70_spill] sm:$0xff]  ;;  %v11111_v22 = vld [vmem:[#allocation69_spill] sm:$0xff] }
 0x6c7   :  { %v4165_v12 = vpop.f32.mrf.mxu1  ;;  %v4052_v34 = vpop.f32.mrf.mxu0 }
 0x6c8   :  { %v9949_v49 = vadd.f32 %v4165_v12, %v4052_v34  ;;  %v4492_v3 = vadd.f32 %v4491_v62, %v4415_v5  ;;  %v4418_v18 = vmul.f32 %v9812_v29, %v9945_v4  ;;  %v9985_v29 = vld [vmem:[%s10654_s24] sm:$0xf]  ;;  %v11114_v5 = vld [vmem:[#allocation66_spill] sm:$0xff]  ;;  %v11115_v62 = vld [vmem:[#allocation65_spill] sm:$0xff] }
 0x6c9   :  { %4555 = vmatpush1.xpose.msra.mxu0 %v9748_v31  ;;  %v4687_v36 = vrot.slane %v9985_v29, %v10964_v10  ;;  %v11113_v12 = vld [vmem:[#allocation67_spill] sm:$0xff]  ;;  %v11116_v34 = vld [vmem:[#allocation64_spill] sm:$0xff]  ;;  %v11125_v10 = vld [vmem:[#allocation73_spill] sm:$0xff] }
 0x6ca   :  { %4556 = vmatprep.subr.mxu0 %v9720_v26  ;;  %4493 = vadd.xlane.f32.xlu1 %v4492_v3  ;;  %v4419_v0 = vmul.f32 %v9823_v39, %v9949_v49  ;;  %v4496_v51 = vadd.f32 %v4495_v21, %v4418_v18  ;;  %v4521_v39 = vrot.slane %v9771_v42, %v10918_v30  ;;  %v11117_v3 = vld [vmem:[#allocation63_spill] sm:$0xff]  ;;  %v11118_v18 = vld [vmem:[#allocation74_spill] sm:$0xff] }
 0x6cb   :  { %4608 = vmatprep.subr.mxu1 %v9949_v49  ;;  %v11119_v21 = vld [vmem:[#allocation62_spill] sm:$0xff] }
 0x6cc   :  { %4609 = vmatpush1.xpose.msra.mxu1 %v9945_v4  ;;  %v4497_v56 = vadd.f32 %v4496_v51, %v4419_v0  ;;  %v11120_v0 = vld [vmem:[#allocation61_spill] sm:$0xff]  ;;  %v11121_v51 = vld [vmem:[#allocation75_spill] sm:$0xff] }
 0x6cd   :  { %4610 = vmatprep.subr.mxu1 %v9937_v28  ;;  %4557 = vmatpush1.xpose.msra.mxu0 %v9728_v46 }
 0x6ce   :  { %4558 = vmatprep.subr.mxu0 %v9702_v40  ;;  %4498 = vadd.xlane.f32.xlu0 %v4497_v56  ;;  %v11122_v56 = vld [vmem:[#allocation72_spill] sm:$0xff] }
 0x6d0   :  { %4611 = vmatpush1.xpose.msra.mxu1 %v9931_v32 }
 0x6d1   :  { %4612 = vmatprep.subr.mxu1 %v9923_v2  ;;  %4559 = vmatpush1.xpose.msra.mxu0 %v9708_v35 }
 0x6d2   :  { %4560 = vmatprep.subr.mxu0 %v9680_v13 }
 0x6d4   :  { %4613 = vmatpush1.xpose.msra.mxu1 %v9917_v37 }
 0x6d5   :  { %4614 = vmatprep.subr.mxu1 %v9909_v47  ;;  %4561 = vmatpush1.xpose.msra.mxu0 %v9688_v58 }
 0x6d6   :  { %4562 = vmatprep.subr.mxu0 %v9662_v43 }
 0x6d8   :  { %4615 = vmatpush1.xpose.msra.mxu1 %v9903_v60 }
 0x6d9   :  { %4616 = vmatprep.subr.mxu1 %v9895_v14  ;;  %4563 = vmatpush1.xpose.msra.mxu0 %v9668_v17 }
 0x6da   :  { %4564 = vmatprep.subr.mxu0 %v9640_v63 }
 0x6dc   :  { %4617 = vmatpush1.xpose.msra.mxu1 %v9889_v8 }
 0x6dd   :  { %4618 = vmatprep.subr.mxu1 %v9881_v11  ;;  %4565 = vmatpush1.xpose.msra.mxu0 %v9648_v48 }
 0x6de   :  { %4566 = vmatprep.subr.mxu0 %v9619_v24 }
 0x6e0   :  { %4619 = vmatpush1.xpose.msra.mxu1 %v9875_v53 }
 0x6e1   :  { %4620 = vmatprep.subr.mxu1 %v9859_v41  ;;  %4567 = vmatpush1.xpose.msra.mxu0 %v9628_v9 }
 0x6e2   :  { %4568 = vmatprep.subr.mxu0 %v9592_v20 }
 0x6e4   :  { %4621 = vmatpush1.xpose.msra.mxu1 %v9849_v55 }
 0x6e5   :  { %4622 = vmatprep.subr.mxu1 %v9833_v38  ;;  %4569 = vmatpush1.xpose.msra.mxu0 %v9601_v33 }
 0x6e6   :  { %4700 = vmatprep.subr.mxu0 %v9802_v59 }
 0x6e8   :  { %4623 = vmatpush1.xpose.msra.mxu1 %v9819_v45  ;;  %4603 = vmatmul.mubr.f32.vlgmr.msra.gmra.mxu0 %v4521_v39  ;;  %v11123_v39 = vld [vmem:[#allocation60_spill] sm:$0xff] }
 0x6e9   :  { %4624 = vmatprep.subr.mxu1 %v11109_v52  ;;  %4701 = vmatpush1.xpose.msra.mxu0 %v9806_v54 }
 0x6ea   :  { %4702 = vmatprep.subr.mxu0 %v9808_v25  ;;  %4764 = vmatprep.mubr.f32.mxu0 %v4687_v36  ;;  %v11124_v36 = vld [vmem:[#allocation59_spill] sm:$0xff] }
 0x6ec   :  { %4625 = vmatpush1.xpose.msra.mxu1 %v11110_v27 }
 0x6ed   :  { %4626 = vmatprep.subr.mxu1 %v11111_v22  ;;  %4703 = vmatpush1.xpose.msra.mxu0 %v9827_v44 }
 0x6ee   :  { %4704 = vmatprep.subr.mxu0 %v9831_v61 }
 0x6f0   :  { %4627 = vmatpush1.xpose.msra.mxu1 %v11112_v19 }
 0x6f1   :  { %4628 = vmatprep.subr.mxu1 %v11113_v12  ;;  %4705 = vmatpush1.xpose.msra.mxu0 %v9847_v16 }
 0x6f2   :  { %4706 = vmatprep.subr.mxu0 %v9853_v50 }
 0x6f4   :  { %4629 = vmatpush1.xpose.msra.mxu1 %v11114_v5 }
 0x6f5   :  { %4630 = vmatprep.subr.mxu1 %v11115_v62  ;;  %4707 = vmatpush1.xpose.msra.mxu0 %v9873_v23  ;;  %v11129_v62 = vld [vmem:[#allocation56_spill] sm:$0xff] }
 0x6f6   :  { %4708 = vmatprep.subr.mxu0 %v9857_v6 }
 0x6f8   :  { %4631 = vmatpush1.xpose.msra.mxu1 %v11116_v34  ;;  %v11127_v34 = vld [vmem:[#allocation57_spill] sm:$0xff] }
 0x6f9   :  { %4632 = vmatprep.subr.mxu1 %v11117_v3  ;;  %4709 = vmatpush1.xpose.msra.mxu0 %v9868_v7  ;;  %v11126_v3 = vld [vmem:[#allocation58_spill] sm:$0xff] }
 0x6fa   :  { %4710 = vmatprep.subr.mxu0 %v11118_v18 }
 0x6fc   :  { %4633 = vmatpush1.xpose.msra.mxu1 %v11119_v21 }
 0x6fd   :  { %4634 = vmatprep.subr.mxu1 %v11120_v0  ;;  %4711 = vmatpush1.xpose.msra.mxu0 %v11121_v51  ;;  %v11128_v0 = vld [vmem:[#allocation29_spill] sm:$0xff] }
 0x6fe   :  { %4712 = vmatprep.subr.mxu0 %v11122_v56  ;;  %v4529_v21 = vrot.slane %v9771_v42, %v11128_v0  ;;  %v4683_v42 = vrot.slane %v9985_v29, %v10918_v30 }
 0x700   :  { %4635 = vmatpush1.xpose.msra.mxu1 %v11123_v39  ;;  %v11130_v39 = vld [vmem:[#allocation27_spill] sm:$0xff] }
 0x701   :  { %4636 = vmatprep.subr.mxu1 %v11124_v36  ;;  %4713 = vmatpush1.xpose.msra.mxu0 %v11125_v10  ;;  %v4695_v36 = vrot.slane %v9985_v29, %v11130_v39 }
 0x702   :  { %4714 = vmatprep.subr.mxu0 %v9792_v57 }
 0x704   :  { %4637 = vmatpush1.xpose.msra.mxu1 %v11126_v3 }
 0x705   :  { %4638 = vmatprep.subr.mxu1 %v11127_v34  ;;  %4715 = vmatpush1.xpose.msra.mxu0 %v9797_v15 }
 0x706   :  { %4716 = vmatprep.subr.mxu0 %v9742_v1 }
 0x708   :  { %4639 = vmatpush1.xpose.msra.mxu1 %v11129_v62 }
 0x709   :  { %4770 = vmatprep.subr.mxu1 %v9949_v49  ;;  %4717 = vmatpush1.xpose.msra.mxu0 %v9748_v31 }
 0x70a   :  { %4718 = vmatprep.subr.mxu0 %v9720_v26 }
 0x70b   :  { %4673 = vmatmul.mubr.f32.vlgmr.msra.gmra.mxu1 %v4529_v21  ;;  %v11131_v21 = vmov 0.0  }
 0x70c   :  { %4771 = vmatpush1.xpose.msra.mxu1 %v9945_v4  ;;  %4834 = vmatprep.mubr.f32.mxu1 %v4695_v36 }
 0x70d   :  { %4772 = vmatprep.subr.mxu1 %v9937_v28  ;;  %4719 = vmatpush1.xpose.msra.mxu0 %v9728_v46 }
 0x70e   :  { %4720 = vmatprep.subr.mxu0 %v9702_v40 }
 0x710   :  { %4773 = vmatpush1.xpose.msra.mxu1 %v9931_v32 }
 0x711   :  { %4774 = vmatprep.subr.mxu1 %v9923_v2  ;;  %4721 = vmatpush1.xpose.msra.mxu0 %v9708_v35 }
 0x712   :  { %4722 = vmatprep.subr.mxu0 %v9680_v13 }
 0x714   :  { %4775 = vmatpush1.xpose.msra.mxu1 %v9917_v37 }
 0x715   :  { %4776 = vmatprep.subr.mxu1 %v9909_v47  ;;  %4723 = vmatpush1.xpose.msra.mxu0 %v9688_v58 }
 0x716   :  { %4724 = vmatprep.subr.mxu0 %v9662_v43 }
 0x718   :  { %4777 = vmatpush1.xpose.msra.mxu1 %v9903_v60 }
 0x719   :  { %4778 = vmatprep.subr.mxu1 %v9895_v14  ;;  %4725 = vmatpush1.xpose.msra.mxu0 %v9668_v17 }
 0x71a   :  { %4726 = vmatprep.subr.mxu0 %v9640_v63 }
 0x71c   :  { %4779 = vmatpush1.xpose.msra.mxu1 %v9889_v8 }
 0x71d   :  { %4780 = vmatprep.subr.mxu1 %v9881_v11  ;;  %4727 = vmatpush1.xpose.msra.mxu0 %v9648_v48 }
 0x71e   :  { %4728 = vmatprep.subr.mxu0 %v9619_v24 }
 0x720   :  { %4781 = vmatpush1.xpose.msra.mxu1 %v9875_v53 }
 0x721   :  { %4782 = vmatprep.subr.mxu1 %v9859_v41  ;;  %4729 = vmatpush1.xpose.msra.mxu0 %v9628_v9 }
 0x722   :  { %4730 = vmatprep.subr.mxu0 %v9592_v20 }
 0x724   :  { %4783 = vmatpush1.xpose.msra.mxu1 %v9849_v55 }
 0x725   :  { %4784 = vmatprep.subr.mxu1 %v9833_v38  ;;  %4731 = vmatpush1.xpose.msra.mxu0 %v9601_v33 }
 0x726   :  { %5117 = vmatprep.subr.mxu0 %v9802_v59  ;;  %v11132_v59 = vld [vmem:[#allocation65_spill] sm:$0xff] }
 0x728   :  { %4785 = vmatpush1.xpose.msra.mxu1 %v9819_v45  ;;  %4765 = vmatmul.mubr.f32.vlgmr.msra.gmra.mxu0 %v4683_v42 }
 0x729   :  { %4786 = vmatprep.subr.mxu1 %v11109_v52  ;;  %5118 = vmatpush1.msra.mxu0 %v9806_v54  ;;  %v11133_v54 = vld [vmem:[#allocation64_spill] sm:$0xff] }
 0x72a   :  { %5119 = vmatprep.subr.mxu0 %v9808_v25  ;;  %5181 = vmatprep.mubr.f32.mxu0 %v11131_v21  ;;  %v11134_v25 = vld [vmem:[#allocation63_spill] sm:$0xff] }
 0x72b   :  { %5120 = vmatpush1.msra.mxu0 %v9827_v44  ;;  %v11135_v44 = vld [vmem:[#allocation62_spill] sm:$0xff] }
 0x72c   :  { %4787 = vmatpush1.xpose.msra.mxu1 %v11110_v27  ;;  %5121 = vmatprep.subr.mxu0 %v9831_v61 }
 0x72d   :  { %4788 = vmatprep.subr.mxu1 %v11111_v22  ;;  %5122 = vmatpush1.msra.mxu0 %v9847_v16 }
 0x72e   :  { %5123 = vmatprep.subr.mxu0 %v9853_v50 }
 0x72f   :  { %5124 = vmatpush1.msra.mxu0 %v9873_v23 }
 0x730   :  { %4789 = vmatpush1.xpose.msra.mxu1 %v11112_v19  ;;  %5125 = vmatprep.subr.mxu0 %v9857_v6 }
 0x731   :  { %4790 = vmatprep.subr.mxu1 %v11113_v12  ;;  %5126 = vmatpush1.msra.mxu0 %v9868_v7 }
 0x732   :  { %5127 = vmatprep.subr.mxu0 %v11118_v18 }
 0x733   :  { %5128 = vmatpush1.msra.mxu0 %v11121_v51  ;;  %v11151_v51 = vld [vmem:[#allocation20_spill] sm:$0xff] }
 0x734   :  { %4791 = vmatpush1.xpose.msra.mxu1 %v11114_v5  ;;  %5129 = vmatprep.subr.mxu0 %v11122_v56 }
 0x735   :  { %4792 = vmatprep.subr.mxu1 %v11132_v59  ;;  %5130 = vmatpush1.msra.mxu0 %v11125_v10  ;;  %v11136_v10 = vld [vmem:[#allocation61_spill] sm:$0xff] }
 0x736   :  { %5131 = vmatprep.subr.mxu0 %v9792_v57  ;;  %v11137_v57 = vld [vmem:[#allocation60_spill] sm:$0xff] }
 0x737   :  { %5132 = vmatpush1.msra.mxu0 %v9797_v15  ;;  %v11138_v15 = vld [vmem:[#allocation59_spill] sm:$0xff] }
 0x738   :  { %4793 = vmatpush1.xpose.msra.mxu1 %v11133_v54  ;;  %5133 = vmatprep.subr.mxu0 %v9742_v1 }
 0x739   :  { %4794 = vmatprep.subr.mxu1 %v11134_v25  ;;  %5134 = vmatpush1.msra.mxu0 %v9748_v31  ;;  %v11139_v31 = vld [vmem:[#allocation45_spill] sm:$0xff] }
 0x73a   :  { %5135 = vmatprep.subr.mxu0 %v9720_v26  ;;  %vm11140_vm10 = vcmp.lt.s32.totalorder %v11139_v31, 64 }
 0x73b   :  { %5136 = vmatpush1.msra.mxu0 %v9728_v46 }
 0x73c   :  { %4795 = vmatpush1.xpose.msra.mxu1 %v11135_v44  ;;  %5137 = vmatprep.subr.mxu0 %v9702_v40 }
 0x73d   :  { %4796 = vmatprep.subr.mxu1 %v11136_v10  ;;  %5138 = vmatpush1.msra.mxu0 %v9708_v35 }
 0x73e   :  { %5139 = vmatprep.subr.mxu0 %v9680_v13  ;;  %v4258_v13 = vpop.xlane.xlu1 %4257 }
 0x73f   :  { %5140 = vmatpush1.msra.mxu0 %v9688_v58  ;;  %v4263_v58 = vpop.xlane.xlu0 %4262 }
 0x740   :  { %4797 = vmatpush1.xpose.msra.mxu1 %v11137_v57  ;;  %5141 = vmatprep.subr.mxu0 %v9662_v43  ;;  %v4691_v43 = vrot.slane %v9985_v29, %v11128_v0 }
 0x741   :  { %4798 = vmatprep.subr.mxu1 %v11138_v15  ;;  %5142 = vmatpush1.msra.mxu0 %v9668_v17 }
 0x742   :  { %5143 = vmatprep.subr.mxu0 %v9640_v63  ;;  %v4268_v35 = vpop.xlane.xlu1 %4267 }
 0x743   :  { %5144 = vmatpush1.msra.mxu0 %v9648_v48  ;;  %v4273_v46 = vpop.xlane.xlu0 %4272 }
 0x744   :  { %4799 = vmatpush1.xpose.msra.mxu1 %v11126_v3  ;;  %5145 = vmatprep.subr.mxu0 %v9619_v24 }
 0x745   :  { %4800 = vmatprep.subr.mxu1 %v11127_v34  ;;  %5146 = vmatpush1.msra.mxu0 %v9628_v9 }
 0x746   :  { %5147 = vmatprep.subr.mxu0 %v9592_v20  ;;  %v4278_v61 = vpop.xlane.xlu1 %4277 }
 0x747   :  { %5148 = vmatpush1.msra.mxu0 %v9601_v33  ;;  %v4283_v16 = vpop.xlane.xlu0 %4282 }
 0x748   :  { %4801 = vmatpush1.xpose.msra.mxu1 %v11129_v62 }
 0x749   :  { %5278 = vmatprep.subr.mxu1 %v9949_v49  ;;  %v11145_v49 = vld [vmem:[#allocation18_spill] sm:$0xff] }
 0x74b   :  { %4835 = vmatmul.mubr.f32.vlgmr.msra.gmra.mxu1 %v4691_v43 }
 0x74c   :  { %5279 = vmatpush1.msra.mxu1 %v9945_v4  ;;  %5342 = vmatprep.mubr.f32.mxu1 %v11131_v21 }
 0x74d   :  { %5280 = vmatprep.subr.mxu1 %v9937_v28 }
 0x74e   :  { %5281 = vmatpush1.msra.mxu1 %v9931_v32  ;;  %v11141_v32 = vld [vmem:[#allocation28_spill] sm:$0xff] }
 0x74f   :  { %5282 = vmatprep.subr.mxu1 %v9923_v2  ;;  %vm11142_vm7 = vnez %v11141_v32 }
 0x750   :  { %5283 = vmatpush1.msra.mxu1 %v9917_v37  ;;  %vm11144_vm12 = vmand %vm11142_vm7, %vm8104_vm8 }
 0x751   :  { %5284 = vmatprep.subr.mxu1 %v9909_v47  ;;  %v4293_v47 = vpop.xlane.xlu0 %4292 }
 0x752   :  { %5285 = vmatpush1.msra.mxu1 %v9903_v60 }
 0x753   :  { %5286 = vmatprep.subr.mxu1 %v9895_v14 }
 0x754   :  { %5287 = vmatpush1.msra.mxu1 %v9889_v8  ;;  %v4288_v8 = vpop.xlane.xlu1 %4287 }
 0x755   :  { %5288 = vmatprep.subr.mxu1 %v9881_v11 }
 0x756   :  { %5289 = vmatpush1.msra.mxu1 %v9875_v53 }
 0x757   :  { %5290 = vmatprep.subr.mxu1 %v9859_v41 }
 0x758   :  { %5291 = vmatpush1.msra.mxu1 %v9849_v55 }
 0x759   :  { %5292 = vmatprep.subr.mxu1 %v9833_v38 }
 0x75a   :  { %5293 = vmatpush1.msra.mxu1 %v9819_v45 }
 0x75b   :  { %5294 = vmatprep.subr.mxu1 %v11109_v52 }
 0x75c   :  { %5295 = vmatpush1.msra.mxu1 %v11110_v27 }
 0x75d   :  { %5296 = vmatprep.subr.mxu1 %v11111_v22 }
 0x75e   :  { %5297 = vmatpush1.msra.mxu1 %v11112_v19 }
 0x75f   :  { %5298 = vmatprep.subr.mxu1 %v11113_v12 }
 0x760   :  { %5299 = vmatpush1.msra.mxu1 %v11114_v5  ;;  %v4464_v5 = vpop.xlane.xlu1 %4463 }
 0x761   :  { %5300 = vmatprep.subr.mxu1 %v11132_v59 }
 0x762   :  { %5301 = vmatpush1.msra.mxu1 %v11133_v54 }
 0x763   :  { %5302 = vmatprep.subr.mxu1 %v11134_v25 }
 0x764   :  { %5303 = vmatpush1.msra.mxu1 %v11135_v44 }
 0x765   :  { %5304 = vmatprep.subr.mxu1 %v11136_v10  ;;  %v4474_v10 = vpop.xlane.xlu1 %4473 }
 0x766   :  { %5305 = vmatpush1.msra.mxu1 %v11137_v57 }
 0x767   :  { %5306 = vmatprep.subr.mxu1 %v11138_v15  ;;  %v11154_v15 = vld [vmem:[#allocation25_spill] sm:$0xff] }
 0x768   :  { %5307 = vmatpush1.msra.mxu1 %v11126_v3  ;;  %v11148_v3 = vld [vmem:[#allocation17_spill] sm:$0xff] }
 0x769   :  { %5308 = vmatprep.subr.mxu1 %v11127_v34  ;;  %v4469_v34 = vpop.xlane.xlu0 %4468  ;;  %vm11149_vm7 = vnez %v11148_v3  ;;  %v11186_v3 = vld [vmem:[#allocation22_spill] sm:$0xff] }
 0x76a   :  { %5309 = vmatpush1.msra.mxu1 %v11129_v62 }
 0x76d   :  { %v4479_v57 = vpop.xlane.xlu0 %4478 }
 0x7a8   :  { %v4604_v20 = vpop.f32.mrf.mxu0 }
 0x7aa   :  { %v4606_v33 = vpop.f32.mrf.mxu0 }
 0x7cb   :  { %v4674_v24 = vpop.f32.mrf.mxu1 }
 0x7cc   :  { %v4675_v9 = vadd.f32 %v4674_v24, %v4604_v20  ;;  %v11157_v20 = vld [vmem:[#allocation34_spill] sm:$0xff] }
 0x7cd   :  { %v4676_v63 = vpop.f32.mrf.mxu1 }
 0x7e8   :  { %v4766_v48 = vpop.f32.mrf.mxu0 }
 0x7ea   :  { %v4768_v17 = vpop.f32.mrf.mxu0 }
 0x80b   :  { %v4836_v40 = vpop.f32.mrf.mxu1 }
 0x80c   :  { %v4837_v26 = vadd.f32 %v4836_v40, %v4766_v48  ;;  %v4489_v40 = vpop.xlane.xlu0 %4488 }
 0x80d   :  { %v4838_v1 = vpop.f32.mrf.mxu1 }
 0x80e   :  { %v4840_v38 = vsel %vm11140_vm10, %v4675_v9, %v4837_v26  ;;  %vm11146_vm10 = vnez %v11145_v49  ;;  %v11160_v26 = vld [vmem:[#allocation33_spill] sm:$0xff]  ;;  %v11163_v1 = vld [vmem:[#allocation32_spill] sm:$0xff] }
 0x80f   :  { %v10152_v45 = vrot.slane %v4840_v38, %v10918_v30  ;;  %vm11147_vm11 = vmand %vm11146_vm10, %vm8104_vm8 }
 0x811   :  { %v4845_v55 = vadd.f32 %v10152_v45, %v4258_v13  ;;  %v4846_v50 = vadd.f32 %v10152_v45, %v4263_v58  ;;  %v4847_v6 = vadd.f32 %v10152_v45, %v4268_v35  ;;  %v4848_v41 = vadd.f32 %v10152_v45, %v4273_v46  ;;  %v4484_v58 = vpop.xlane.xlu1 %4483 }
 0x812   :  { %v4849_v7 = vadd.f32 %v10152_v45, %v4278_v61  ;;  %v4850_v23 = vadd.f32 %v10152_v45, %v4283_v16  ;;  %v4851_v27 = vadd.f32 %v10152_v45, %v4288_v8  ;;  %v4852_v12 = vadd.f32 %v10152_v45, %v4293_v47 }
 0x813   :  { %vm4861_vm13 = vcmp.gt.f32.partialorder %v4845_v55, 0.0  ;;  %v4877_v53 = vmul.f32 0.2, %v4845_v55  ;;  %vm4862_vm4 = vcmp.gt.f32.partialorder %v4846_v50, 0.0  ;;  %v4878_v11 = vmul.f32 0.2, %v4846_v50 }
 0x814   :  { %vm4863_vm2 = vcmp.gt.f32.partialorder %v4847_v6, 0.0  ;;  %v4879_v14 = vmul.f32 0.2, %v4847_v6  ;;  %vm4864_vm5 = vcmp.gt.f32.partialorder %v4848_v41, 0.0  ;;  %v4880_v60 = vmul.f32 0.2, %v4848_v41 }
 0x815   :  { %v4893_v37 = vsel %vm4861_vm13, %v4845_v55, %v4877_v53  ;;  %v4894_v2 = vsel %vm4862_vm4, %v4846_v50, %v4878_v11  ;;  %v4881_v52 = vmul.f32 0.2, %v4849_v7  ;;  %vm4865_vm13 = vcmp.gt.f32.partialorder %v4849_v7, 0.0 }
 0x816   :  { %v10165_v4 = vsel %vm11144_vm12, %v4893_v37, -9e+15  ;;  %v10172_v29 = vsel %vm11147_vm11, %v4894_v2, -9e+15  ;;  %v4895_v22 = vsel %vm4863_vm2, %v4847_v6, %v4879_v14  ;;  %v4896_v19 = vsel %vm4864_vm5, %v4848_v41, %v4880_v60  ;;  %vm11150_vm11 = vmand %vm11149_vm7, %vm8104_vm8  ;;  %v4494_v41 = vpop.xlane.xlu1 %4493 }
 0x817   :  { %4925 = vmax.xlane.f32.xlu1 %v10165_v4  ;;  %4927 = vmax.xlane.f32.xlu0 %v10172_v29  ;;  %vm4866_vm4 = vcmp.gt.f32.partialorder %v4850_v23, 0.0  ;;  %v4882_v62 = vmul.f32 0.2, %v4850_v23  ;;  %v10183_v18 = vsel %vm11150_vm11, %v4895_v22, -9e+15  ;;  %vm11152_vm12 = vnez %v11151_v51 }
 0x818   :  { %vm11153_vm2 = vmand %vm11152_vm12, %vm8104_vm8  ;;  %v4897_v36 = vsel %vm4865_vm13, %v4849_v7, %v4881_v52  ;;  %v4883_v42 = vmul.f32 0.2, %v4851_v27  ;;  %v4884_v54 = vmul.f32 0.2, %v4852_v12  ;;  %v4853_v25 = vadd.f32 %v10152_v45, %v4464_v5  ;;  %v4499_v7 = vpop.xlane.xlu0 %4498 }
 0x819   :  { %v10190_v56 = vsel %vm11153_vm2, %v4896_v19, -9e+15  ;;  %v4898_v59 = vsel %vm4866_vm4, %v4850_v23, %v4882_v62  ;;  %v4854_v44 = vadd.f32 %v10152_v45, %v4469_v34  ;;  %vm4867_vm5 = vcmp.gt.f32.partialorder %v4851_v27, 0.0  ;;  %v11166_v23 = vld [vmem:[#allocation30_spill] sm:$0xff] }
 0x81a   :  { %vm4868_vm10 = vcmp.gt.f32.partialorder %v4852_v12, 0.0  ;;  %vm11155_vm7 = vnez %v11154_v15  ;;  %vm11158_vm11 = vnez %v11157_v20  ;;  %v4855_v24 = vadd.f32 %v10152_v45, %v4474_v10 }
 0x81b   :  { %4929 = vmax.xlane.f32.xlu1 %v10183_v18  ;;  %4931 = vmax.xlane.f32.xlu0 %v10190_v56  ;;  %vm11156_vm13 = vmand %vm11155_vm7, %vm8104_vm8  ;;  %v4856_v9 = vadd.f32 %v10152_v45, %v4479_v57  ;;  %v4899_v63 = vsel %vm4867_vm5, %v4851_v27, %v4883_v42  ;;  %v4900_v48 = vsel %vm4868_vm10, %v4852_v12, %v4884_v54  ;;  %v4885_v17 = vmul.f32 0.2, %v4853_v25 }
 0x81c   :  { %v10201_v43 = vsel %vm11156_vm13, %v4897_v36, -9e+15  ;;  %vm11159_vm4 = vmand %vm11158_vm11, %vm8104_vm8  ;;  %v4886_v13 = vmul.f32 0.2, %v4854_v44  ;;  %vm4869_vm12 = vcmp.gt.f32.partialorder %v4853_v25, 0.0  ;;  %vm4870_vm2 = vcmp.gt.f32.partialorder %v4854_v44, 0.0 }
 0x81d   :  { %v10208_v33 = vsel %vm11159_vm4, %v4898_v59, -9e+15  ;;  %v4857_v35 = vadd.f32 %v10152_v45, %v4484_v58  ;;  %vm11161_vm7 = vnez %v11160_v26  ;;  %vm11164_vm11 = vnez %v11163_v1 }
 0x81e   :  { %vm11162_vm13 = vmand %vm11161_vm7, %vm8104_vm8  ;;  %v4887_v61 = vmul.f32 0.2, %v4855_v24  ;;  %v4858_v16 = vadd.f32 %v10152_v45, %v4489_v40  ;;  %v4901_v55 = vsel %vm4869_vm12, %v4853_v25, %v4885_v17  ;;  %v4902_v50 = vsel %vm4870_vm2, %v4854_v44, %v4886_v13 }
 0x81f   :  { %4933 = vmax.xlane.f32.xlu1 %v10201_v43  ;;  %4935 = vmax.xlane.f32.xlu0 %v10208_v33  ;;  %v10220_v46 = vsel %vm11162_vm13, %v4899_v63, -9e+15  ;;  %vm11165_vm5 = vmand %vm11164_vm11, %vm8104_vm8  ;;  %vm4871_vm10 = vcmp.gt.f32.partialorder %v4855_v24, 0.0  ;;  %v4888_v6 = vmul.f32 0.2, %v4856_v9  ;;  %vm4872_vm4 = vcmp.gt.f32.partialorder %v4856_v9, 0.0 }
 0x820   :  { %v10227_v38 = vsel %vm11165_vm5, %v4900_v48, -9e+15  ;;  %vm11167_vm7 = vnez %v11166_v23  ;;  %vm11170_vm11 = vmand %vm8549_vm6, %vm8104_vm8  ;;  %v4903_v14 = vsel %vm4871_vm10, %v4855_v24, %v4887_v61  ;;  %v4889_v60 = vmul.f32 0.2, %v4857_v35 }
 0x821   :  { %vm11168_vm13 = vmand %vm11167_vm7, %vm8104_vm8  ;;  %v10244_v8 = vsel %vm11170_vm11, %v4902_v50, -9e+15  ;;  %v4904_v47 = vsel %vm4872_vm4, %v4856_v9, %v4888_v6  ;;  %v4890_v37 = vmul.f32 0.2, %v4858_v16  ;;  %v4859_v2 = vadd.f32 %v10152_v45, %v4494_v41 }
 0x822   :  { %v10237_v53 = vsel %vm11168_vm13, %v4901_v55, -9e+15  ;;  %v4860_v32 = vadd.f32 %v10152_v45, %v4499_v7  ;;  %vm4873_vm12 = vcmp.gt.f32.partialorder %v4857_v35, 0.0  ;;  %vm4874_vm2 = vcmp.gt.f32.partialorder %v4858_v16, 0.0  ;;  %vm11172_vm6 = vmand %vm8535_vm15, %vm8104_vm8 }
 0x823   :  { %4937 = vmax.xlane.f32.xlu1 %v10220_v46  ;;  %4939 = vmax.xlane.f32.xlu0 %v10227_v38  ;;  %v10255_v52 = vsel %vm11172_vm6, %v4903_v14, -9e+15  ;;  %vm11174_vm5 = vmand %vm8610_vm3, %vm8104_vm8  ;;  %v4905_v45 = vsel %vm4873_vm12, %v4857_v35, %v4889_v60  ;;  %v4906_v19 = vsel %vm4874_vm2, %v4858_v16, %v4890_v37  ;;  %v4891_v12 = vmul.f32 0.2, %v4859_v2  ;;  %v11183_v60 = vld [vmem:[#allocation31_spill] sm:$0xff] }
 0x824   :  { %v10262_v22 = vsel %vm11174_vm5, %v4904_v47, -9e+15  ;;  %v4892_v5 = vmul.f32 0.2, %v4860_v32  ;;  %vm4875_vm10 = vcmp.gt.f32.partialorder %v4859_v2, 0.0  ;;  %vm4876_vm4 = vcmp.gt.f32.partialorder %v4860_v32, 0.0  ;;  %vm11176_vm15 = vmand %vm8675_vm0, %vm8104_vm8 }
 0x825   :  { %v10271_v34 = vsel %vm11176_vm15, %v4905_v45, -9e+15  ;;  %vm11178_vm3 = vmand %vm8663_vm14, %vm8104_vm8  ;;  %v4907_v36 = vsel %vm4875_vm10, %v4859_v2, %v4891_v12  ;;  %v11184_v37 = vld [vmem:[#allocation23_spill] sm:$0xff] }
 0x826   :  { %v10278_v51 = vsel %vm11178_vm3, %v4906_v19, -9e+15  ;;  %v4908_v42 = vsel %vm4876_vm4, %v4860_v32, %v4892_v5  ;;  %vm11180_vm0 = vmand %vm8708_vm1, %vm8104_vm8  ;;  %v11185_v19 = vld [vmem:[#allocation19_spill] sm:$0xff] }
 0x827   :  { %4941 = vmax.xlane.f32.xlu1 %v10237_v53  ;;  %4943 = vmax.xlane.f32.xlu0 %v10244_v8  ;;  %v10287_v54 = vsel %vm11180_vm0, %v4907_v36, -9e+15  ;;  %vm11182_vm14 = vmand %vm8770_vm9, %vm8104_vm8 }
 0x828   :  { %v10294_v44 = vsel %vm11182_vm14, %v4908_v42, -9e+15 }
 0x82b   :  { %4945 = vmax.xlane.f32.xlu1 %v10255_v52  ;;  %4947 = vmax.xlane.f32.xlu0 %v10262_v22 }
 0x82f   :  { %4949 = vmax.xlane.f32.xlu1 %v10271_v34  ;;  %4951 = vmax.xlane.f32.xlu0 %v10278_v51 }
 0x833   :  { %4953 = vmax.xlane.f32.xlu1 %v10287_v54  ;;  %4955 = vmax.xlane.f32.xlu0 %v10294_v44 }
 0x8a0   :  { %v4926_v10 = vpop.xlane.xlu1 %4925  ;;  %v4928_v57 = vpop.xlane.xlu0 %4927 }
 0x8a1   :  { %v4957_v15 = vsub.f32 %v10165_v4, %v4926_v10  ;;  %v4958_v20 = vsub.f32 %v10172_v29, %v4928_v57  ;;  %v11187_v57 = vld [vmem:[#allocation21_spill] sm:$0xff] }
 0x8a3   :  { %v4973_v24 = vmul.f32 1.442695, %v4957_v15  ;;  %v4975_v9 = vmul.f32 1.442695, %v4958_v20 }
 0x8a4   :  { %v4930_v63 = vpop.xlane.xlu1 %4929  ;;  %v4932_v48 = vpop.xlane.xlu0 %4931 }
 0x8a5   :  { %6848 = vpow2.f32 %v4973_v24  ;;  %v4959_v28 = vsub.f32 %v10183_v18, %v4930_v63  ;;  %v4960_v17 = vsub.f32 %v10190_v56, %v4932_v48 }
 0x8a6   :  { %6850 = vpow2.f32 %v4975_v9  ;;  %v11188_v9 = vld [vmem:[#allocation42_spill] sm:$0xff] }
 0x8a7   :  { %v4977_v13 = vmul.f32 1.442695, %v4959_v28  ;;  %v4979_v58 = vmul.f32 1.442695, %v4960_v17 }
 0x8a8   :  { %v4934_v40 = vpop.xlane.xlu1 %4933  ;;  %v4936_v35 = vpop.xlane.xlu0 %4935 }
 0x8a9   :  { %6852 = vpow2.f32 %v4977_v13  ;;  %v4961_v26 = vsub.f32 %v10201_v43, %v4934_v40  ;;  %v4962_v4 = vsub.f32 %v10208_v33, %v4936_v35  ;;  %v11190_v35 = vld [vmem:[#allocation41_spill] sm:$0xff] }
 0x8aa   :  { %6854 = vpow2.f32 %v4979_v58  ;;  %v11189_v58 = vld [vmem:[#allocation43_spill] sm:$0xff] }
 0x8ab   :  { %v4981_v29 = vmul.f32 1.442695, %v4961_v26  ;;  %v4983_v1 = vmul.f32 1.442695, %v4962_v4  ;;  %v11191_v4 = vld [vmem:[#allocation37_spill] sm:$0xff] }
 0x8ac   :  { %v4938_v61 = vpop.xlane.xlu1 %4937  ;;  %v4940_v16 = vpop.xlane.xlu0 %4939 }
 0x8ad   :  { %6856 = vpow2.f32 %v4981_v29  ;;  %v4963_v18 = vsub.f32 %v10220_v46, %v4938_v61  ;;  %v4964_v56 = vsub.f32 %v10227_v38, %v4940_v16 }
 0x8ae   :  { %6858 = vpow2.f32 %v4983_v1  ;;  %v11192_v1 = vld [vmem:[#allocation46_spill] sm:$0xff] }
 0x8af   :  { %v4985_v55 = vmul.f32 1.442695, %v4963_v18  ;;  %v4987_v50 = vmul.f32 1.442695, %v4964_v56  ;;  %v11193_v56 = vld [vmem:[#allocation51_spill] sm:$0xff] }
 0x8b0   :  { %v4942_v6 = vpop.xlane.xlu1 %4941  ;;  %v4944_v41 = vpop.xlane.xlu0 %4943 }
 0x8b1   :  { %6860 = vpow2.f32 %v4985_v55  ;;  %v4965_v43 = vsub.f32 %v10237_v53, %v4942_v6  ;;  %v4966_v33 = vsub.f32 %v10244_v8, %v4944_v41 }
 0x8b2   :  { %v6849_v7 = vpop.eup %6848  ;;  %6862 = vpow2.f32 %v4987_v50  ;;  %v11194_v50 = vld [vmem:[#allocation50_spill] sm:$0xff] }
 0x8b3   :  { %v6851_v23 = vpop.eup %6850  ;;  %v4989_v11 = vmul.f32 1.442695, %v4965_v43  ;;  %v4991_v14 = vmul.f32 1.442695, %v4966_v33  ;;  %v10309_v47 = vmul.f32 %v6849_v7, %v11183_v60  ;;  %v11195_v33 = vld [vmem:[#allocation53_spill] sm:$0xff] }
 0x8b4   :  { %v4946_v46 = vpop.xlane.xlu1 %4945  ;;  %v4948_v38 = vpop.xlane.xlu0 %4947  ;;  %v10312_v2 = vmul.f32 %v6851_v23, %v11184_v37  ;;  %v11196_v23 = vld [vmem:[#allocation52_spill] sm:$0xff]  ;;  %v11198_v37 = vld [vmem:[#allocation55_spill] sm:$0xff] }
 0x8b5   :  { %6864 = vpow2.f32 %v4989_v11  ;;  %v4967_v32 = vsub.f32 %v10255_v52, %v4946_v46  ;;  %v4968_v53 = vsub.f32 %v10262_v22, %v4948_v38  ;;  %5021 = vadd.xlane.f32.xlu1 %v10309_v47  ;;  %v11197_v46 = vld [vmem:[#allocation54_spill] sm:$0xff] }
 0x8b6   :  { %v6853_v8 = vpop.eup %6852  ;;  %6866 = vpow2.f32 %v4991_v14  ;;  %5023 = vadd.xlane.f32.xlu0 %v10312_v2 }
 0x8b7   :  { %v6855_v49 = vpop.eup %6854  ;;  %v4993_v27 = vmul.f32 1.442695, %v4967_v32  ;;  %v4995_v45 = vmul.f32 1.442695, %v4968_v53  ;;  %v10319_v12 = vmul.f32 %v6853_v8, %v11185_v19  ;;  %v5621_v53 = vld [vmem:[%s11199_s6] sm:$0xff]  ;;  %v5622_v8 = vld [vmem:[%s11199_s6 + $0x8] sm:$0xff] }
 0x8b8   :  { %v4950_v5 = vpop.xlane.xlu1 %4949  ;;  %v4952_v62 = vpop.xlane.xlu0 %4951  ;;  %v10322_v36 = vmul.f32 %v6855_v49, %v11186_v3  ;;  %s11213_s6 = sld [smem:[#allocation85_spill]] }
 0x8b9   :  { %6868 = vpow2.f32 %v4993_v27  ;;  %v4969_v52 = vsub.f32 %v10271_v34, %v4950_v5  ;;  %v4970_v22 = vsub.f32 %v10278_v51, %v4952_v62  ;;  %5025 = vadd.xlane.f32.xlu1 %v10319_v12 }
 0x8ba   :  { %v6857_v42 = vpop.eup %6856  ;;  %6870 = vpow2.f32 %v4995_v45  ;;  %5027 = vadd.xlane.f32.xlu0 %v10322_v36 }
 0x8bb   :  { %v6859_v59 = vpop.eup %6858  ;;  %v4997_v25 = vmul.f32 1.442695, %v4969_v52  ;;  %v4999_v10 = vmul.f32 1.442695, %v4970_v22  ;;  %v10329_v15 = vmul.f32 %v6857_v42, %v11187_v57 }
 0x8bc   :  { %v4954_v20 = vpop.xlane.xlu1 %4953  ;;  %v4956_v24 = vpop.xlane.xlu0 %4955  ;;  %v10332_v63 = vmul.f32 %v6859_v59, %v11188_v9 }
 0x8bd   :  { %6872 = vpow2.f32 %v4997_v25  ;;  %v4971_v34 = vsub.f32 %v10287_v54, %v4954_v20  ;;  %v4972_v51 = vsub.f32 %v10294_v44, %v4956_v24  ;;  %5029 = vadd.xlane.f32.xlu1 %v10329_v15 }
 0x8be   :  { %v6861_v48 = vpop.eup %6860  ;;  %6874 = vpow2.f32 %v4999_v10  ;;  %5031 = vadd.xlane.f32.xlu0 %v10332_v63 }
 0x8bf   :  { %v6863_v28 = vpop.eup %6862  ;;  %v5001_v17 = vmul.f32 1.442695, %v4971_v34  ;;  %v5003_v13 = vmul.f32 1.442695, %v4972_v51  ;;  %v10339_v40 = vmul.f32 %v6861_v48, %v11189_v58 }
 0x8c0   :  { %v10342_v26 = vmul.f32 %v6863_v28, %v11190_v35 }
 0x8c1   :  { %6876 = vpow2.f32 %v5001_v17  ;;  %5033 = vadd.xlane.f32.xlu1 %v10339_v40 }
 0x8c2   :  { %v6865_v54 = vpop.eup %6864  ;;  %6878 = vpow2.f32 %v5003_v13  ;;  %5035 = vadd.xlane.f32.xlu0 %v10342_v26 }
 0x8c3   :  { %v6867_v44 = vpop.eup %6866  ;;  %v10347_v29 = vmul.f32 %v6865_v54, %v11191_v4 }
 0x8c4   :  { %v10350_v61 = vmul.f32 %v6867_v44, %v11192_v1 }
 0x8c5   :  { %5037 = vadd.xlane.f32.xlu1 %v10347_v29 }
 0x8c6   :  { %v6869_v16 = vpop.eup %6868  ;;  %5039 = vadd.xlane.f32.xlu0 %v10350_v61 }
 0x8c7   :  { %v6871_v18 = vpop.eup %6870  ;;  %v10355_v55 = vmul.f32 %v6869_v16, %v11193_v56 }
 0x8c8   :  { %v10358_v6 = vmul.f32 %v6871_v18, %v11194_v50 }
 0x8c9   :  { %5041 = vadd.xlane.f32.xlu1 %v10355_v55 }
 0x8ca   :  { %v6873_v41 = vpop.eup %6872  ;;  %5043 = vadd.xlane.f32.xlu0 %v10358_v6 }
 0x8cb   :  { %v6875_v43 = vpop.eup %6874  ;;  %v10363_v7 = vmul.f32 %v6873_v41, %v11195_v33 }
 0x8cc   :  { %v10366_v11 = vmul.f32 %v6875_v43, %v11196_v23 }
 0x8cd   :  { %5045 = vadd.xlane.f32.xlu1 %v10363_v7 }
 0x8ce   :  { %v6877_v14 = vpop.eup %6876  ;;  %5047 = vadd.xlane.f32.xlu0 %v10366_v11 }
 0x8cf   :  { %v6879_v60 = vpop.eup %6878  ;;  %v10371_v38 = vmul.f32 %v6877_v14, %v11197_v46 }
 0x8d0   :  { %v10374_v32 = vmul.f32 %v6879_v60, %v11198_v37 }
 0x8d1   :  { %5049 = vadd.xlane.f32.xlu1 %v10371_v38 }
 0x8d2   :  { %5051 = vadd.xlane.f32.xlu0 %v10374_v32 }
 0x8e2   :  { %5625 = vperm.xlu1 %6655, %v5621_v53  }
 0x8e8   :  { %5630 = vperm.xlu0 %6654, %v5622_v8  }
 0x93e   :  { %v5022_v49 = vpop.xlane.xlu1 %5021 }
 0x93f   :  { %vm5053_vm8 = vcmp.gt.f32.partialorder %v5022_v49, 0.0  ;;  %v5024_v27 = vpop.xlane.xlu0 %5023 }
 0x940   :  { %v5069_v45 = vsel %vm5053_vm8, %v5022_v49, 1.0  ;;  %vm5054_vm1 = vcmp.gt.f32.partialorder %v5024_v27, 0.0 }
 0x941   :  { %6880 = vrcp.f32 %v5069_v45  ;;  %v5070_v19 = vsel %vm5054_vm1, %v5024_v27, 1.0 }
 0x942   :  { %v5026_v5 = vpop.xlane.xlu1 %5025  ;;  %6882 = vrcp.f32 %v5070_v19 }
 0x943   :  { %vm5055_vm9 = vcmp.gt.f32.partialorder %v5026_v5, 0.0  ;;  %v5028_v62 = vpop.xlane.xlu0 %5027 }
 0x944   :  { %v5071_v3 = vsel %vm5055_vm9, %v5026_v5, 1.0  ;;  %vm5056_vm7 = vcmp.gt.f32.partialorder %v5028_v62, 0.0  ;;  %vm5715_vm9 = vcmask 1045504  }
 0x945   :  { %6884 = vrcp.f32 %v5071_v3  ;;  %v5072_v22 = vsel %vm5056_vm7, %v5028_v62, 1.0  ;;  %vm5711_vm7 = vcmask 48128  }
 0x946   :  { %v5030_v52 = vpop.xlane.xlu1 %5029  ;;  %6886 = vrcp.f32 %v5072_v22 }
 0x947   :  { %vm5057_vm13 = vcmp.gt.f32.partialorder %v5030_v52, 0.0  ;;  %v5032_v42 = vpop.xlane.xlu0 %5031 }
 0x948   :  { %v5073_v59 = vsel %vm5057_vm13, %v5030_v52, 1.0  ;;  %vm5058_vm11 = vcmp.gt.f32.partialorder %v5032_v42, 0.0 }
 0x949   :  { %6888 = vrcp.f32 %v5073_v59  ;;  %v5074_v24 = vsel %vm5058_vm11, %v5032_v42, 1.0 }
 0x94a   :  { %v5034_v10 = vpop.xlane.xlu1 %5033  ;;  %6890 = vrcp.f32 %v5074_v24 }
 0x94b   :  { %vm5059_vm12 = vcmp.gt.f32.partialorder %v5034_v10, 0.0  ;;  %v5036_v9 = vpop.xlane.xlu0 %5035 }
 0x94c   :  { %v5075_v48 = vsel %vm5059_vm12, %v5034_v10, 1.0  ;;  %vm5060_vm2 = vcmp.gt.f32.partialorder %v5036_v9, 0.0 }
 0x94d   :  { %6892 = vrcp.f32 %v5075_v48  ;;  %v5076_v13 = vsel %vm5060_vm2, %v5036_v9, 1.0 }
 0x94e   :  { %v6881_v25 = vpop.eup %6880  ;;  %v5038_v28 = vpop.xlane.xlu1 %5037  ;;  %6894 = vrcp.f32 %v5076_v13 }
 0x94f   :  { %v5086_v57 = vmul.f32 %v6881_v25, %v10309_v47  ;;  %v6883_v20 = vpop.eup %6882  ;;  %vm5061_vm6 = vcmp.gt.f32.partialorder %v5038_v28, 0.0  ;;  %v5040_v58 = vpop.xlane.xlu0 %5039 }
 0x950   :  { %v5088_v34 = vmul.f32 %v6883_v20, %v10312_v2  ;;  %v5077_v54 = vsel %vm5061_vm6, %v5038_v28, 1.0  ;;  %vm5062_vm5 = vcmp.gt.f32.partialorder %v5040_v58, 0.0 }
 0x951   :  { %5182 = vmatmul.mubr.f32.vlgmr.msra.gmra.mxu0 %v5086_v57  ;;  %5343 = vmatmul.mubr.f32.vlgmr.msra.gmra.mxu1 %v5086_v57  ;;  %6896 = vrcp.f32 %v5077_v54  ;;  %v5078_v1 = vsel %vm5062_vm5, %v5040_v58, 1.0 }
 0x952   :  { %5187 = vmatprep.mubr.f32.mxu0 %v11131_v21  ;;  %5348 = vmatprep.mubr.f32.mxu1 %v11131_v21  ;;  %v6885_v51 = vpop.eup %6884  ;;  %v5042_v44 = vpop.xlane.xlu1 %5041  ;;  %6898 = vrcp.f32 %v5078_v1 }
 0x953   :  { %v5090_v47 = vmul.f32 %v6885_v51, %v10319_v12  ;;  %v6887_v17 = vpop.eup %6886  ;;  %vm5063_vm10 = vcmp.gt.f32.partialorder %v5042_v44, 0.0  ;;  %v5044_v16 = vpop.xlane.xlu0 %5043 }
 0x954   :  { %v5092_v2 = vmul.f32 %v6887_v17, %v10322_v36  ;;  %v5079_v56 = vsel %vm5063_vm10, %v5042_v44, 1.0  ;;  %vm5064_vm4 = vcmp.gt.f32.partialorder %v5044_v16, 0.0 }
 0x955   :  { %5188 = vmatmul.mubr.f32.gmra.mxu0 %v5088_v34  ;;  %5349 = vmatmul.mubr.f32.gmra.mxu1 %v5088_v34  ;;  %6900 = vrcp.f32 %v5079_v56  ;;  %v5080_v43 = vsel %vm5064_vm4, %v5044_v16, 1.0 }
 0x956   :  { %5193 = vmatprep.mubr.f32.mxu0 %v11131_v21  ;;  %5354 = vmatprep.mubr.f32.mxu1 %v11131_v21  ;;  %v6889_v35 = vpop.eup %6888  ;;  %v5046_v50 = vpop.xlane.xlu1 %5045  ;;  %6902 = vrcp.f32 %v5080_v43 }
 0x957   :  { %v5094_v12 = vmul.f32 %v6889_v35, %v10329_v15  ;;  %v6891_v4 = vpop.eup %6890  ;;  %vm5065_vm15 = vcmp.gt.f32.partialorder %v5046_v50, 0.0  ;;  %v5048_v33 = vpop.xlane.xlu0 %5047 }
 0x958   :  { %v5096_v36 = vmul.f32 %v6891_v4, %v10332_v63  ;;  %v5081_v14 = vsel %vm5065_vm15, %v5046_v50, 1.0  ;;  %vm5066_vm3 = vcmp.gt.f32.partialorder %v5048_v33, 0.0 }
 0x959   :  { %5194 = vmatmul.mubr.f32.gmra.mxu0 %v5090_v47  ;;  %5355 = vmatmul.mubr.f32.gmra.mxu1 %v5090_v47  ;;  %6904 = vrcp.f32 %v5081_v14  ;;  %v5082_v37 = vsel %vm5066_vm3, %v5048_v33, 1.0 }
 0x95a   :  { %5199 = vmatprep.mubr.f32.mxu0 %v11131_v21  ;;  %5360 = vmatprep.mubr.f32.mxu1 %v11131_v21  ;;  %v6893_v18 = vpop.eup %6892  ;;  %v5050_v60 = vpop.xlane.xlu1 %5049  ;;  %6906 = vrcp.f32 %v5082_v37 }
 0x95b   :  { %v5098_v15 = vmul.f32 %v6893_v18, %v10339_v40  ;;  %v6895_v41 = vpop.eup %6894  ;;  %vm5067_vm0 = vcmp.gt.f32.partialorder %v5050_v60, 0.0  ;;  %v5052_v53 = vpop.xlane.xlu0 %5051 }
 0x95c   :  { %v5100_v63 = vmul.f32 %v6895_v41, %v10342_v26  ;;  %v5083_v49 = vsel %vm5067_vm0, %v5050_v60, 1.0  ;;  %vm5068_vm14 = vcmp.gt.f32.partialorder %v5052_v53, 0.0 }
 0x95d   :  { %5200 = vmatmul.mubr.f32.gmra.mxu0 %v5092_v2  ;;  %5361 = vmatmul.mubr.f32.gmra.mxu1 %v5092_v2  ;;  %6908 = vrcp.f32 %v5083_v49  ;;  %v5084_v45 = vsel %vm5068_vm14, %v5052_v53, 1.0 }
 0x95e   :  { %5205 = vmatprep.mubr.f32.mxu0 %v11131_v21  ;;  %5366 = vmatprep.mubr.f32.mxu1 %v11131_v21  ;;  %v6897_v23 = vpop.eup %6896  ;;  %6910 = vrcp.f32 %v5084_v45 }
 0x95f   :  { %v5102_v40 = vmul.f32 %v6897_v23, %v10347_v29  ;;  %v6899_v46 = vpop.eup %6898 }
 0x960   :  { %v5104_v26 = vmul.f32 %v6899_v46, %v10350_v61 }
 0x961   :  { %5206 = vmatmul.mubr.f32.gmra.mxu0 %v5094_v12  ;;  %5367 = vmatmul.mubr.f32.gmra.mxu1 %v5094_v12 }
 0x962   :  { %5211 = vmatprep.mubr.f32.mxu0 %v11131_v21  ;;  %5372 = vmatprep.mubr.f32.mxu1 %v11131_v21  ;;  %v6901_v8 = vpop.eup %6900 }
 0x963   :  { %v5106_v29 = vmul.f32 %v6901_v8, %v10355_v55  ;;  %v6903_v27 = vpop.eup %6902 }
 0x964   :  { %v5108_v61 = vmul.f32 %v6903_v27, %v10358_v6 }
 0x965   :  { %5212 = vmatmul.mubr.f32.gmra.mxu0 %v5096_v36  ;;  %5373 = vmatmul.mubr.f32.gmra.mxu1 %v5096_v36 }
 0x966   :  { %5217 = vmatprep.mubr.f32.mxu0 %v11131_v21  ;;  %5378 = vmatprep.mubr.f32.mxu1 %v11131_v21  ;;  %v6905_v19 = vpop.eup %6904 }
 0x967   :  { %v5110_v55 = vmul.f32 %v6905_v19, %v10363_v7  ;;  %v6907_v5 = vpop.eup %6906 }
 0x968   :  { %v5112_v62 = vmul.f32 %v6907_v5, %v10366_v11 }
 0x969   :  { %5218 = vmatmul.mubr.f32.gmra.mxu0 %v5098_v15  ;;  %5379 = vmatmul.mubr.f32.gmra.mxu1 %v5098_v15 }
 0x96a   :  { %5223 = vmatprep.mubr.f32.mxu0 %v11131_v21  ;;  %5384 = vmatprep.mubr.f32.mxu1 %v11131_v21  ;;  %v6909_v3 = vpop.eup %6908 }
 0x96b   :  { %v5114_v6 = vmul.f32 %v6909_v3, %v10371_v38  ;;  %v6911_v52 = vpop.eup %6910 }
 0x96c   :  { %v5116_v7 = vmul.f32 %v6911_v52, %v10374_v32 }
 0x96d   :  { %5224 = vmatmul.mubr.f32.gmra.mxu0 %v5100_v63  ;;  %5385 = vmatmul.mubr.f32.gmra.mxu1 %v5100_v63 }
 0x96e   :  { %5229 = vmatprep.mubr.f32.mxu0 %v11131_v21  ;;  %5390 = vmatprep.mubr.f32.mxu1 %v11131_v21 }
 0x971   :  { %5230 = vmatmul.mubr.f32.gmra.mxu0 %v5102_v40  ;;  %5391 = vmatmul.mubr.f32.gmra.mxu1 %v5102_v40 }
 0x972   :  { %5235 = vmatprep.mubr.f32.mxu0 %v11131_v21  ;;  %5396 = vmatprep.mubr.f32.mxu1 %v11131_v21 }
 0x975   :  { %5236 = vmatmul.mubr.f32.gmra.mxu0 %v5104_v26  ;;  %5397 = vmatmul.mubr.f32.gmra.mxu1 %v5104_v26 }
 0x976   :  { %5241 = vmatprep.mubr.f32.mxu0 %v11131_v21  ;;  %5402 = vmatprep.mubr.f32.mxu1 %v11131_v21 }
 0x979   :  { %5242 = vmatmul.mubr.f32.gmra.mxu0 %v5106_v29  ;;  %5403 = vmatmul.mubr.f32.gmra.mxu1 %v5106_v29 }
 0x97a   :  { %5247 = vmatprep.mubr.f32.mxu0 %v11131_v21  ;;  %5408 = vmatprep.mubr.f32.mxu1 %v11131_v21 }
 0x97d   :  { %5248 = vmatmul.mubr.f32.gmra.mxu0 %v5108_v61  ;;  %5409 = vmatmul.mubr.f32.gmra.mxu1 %v5108_v61 }
 0x97e   :  { %5253 = vmatprep.mubr.f32.mxu0 %v11131_v21  ;;  %5414 = vmatprep.mubr.f32.mxu1 %v11131_v21 }
 0x981   :  { %5254 = vmatmul.mubr.f32.gmra.mxu0 %v5110_v55  ;;  %5415 = vmatmul.mubr.f32.gmra.mxu1 %v5110_v55 }
 0x982   :  { %5259 = vmatprep.mubr.f32.mxu0 %v11131_v21  ;;  %5420 = vmatprep.mubr.f32.mxu1 %v11131_v21 }
 0x985   :  { %5260 = vmatmul.mubr.f32.gmra.mxu0 %v5112_v62  ;;  %5421 = vmatmul.mubr.f32.gmra.mxu1 %v5112_v62 }
 0x986   :  { %5265 = vmatprep.mubr.f32.mxu0 %v11131_v21  ;;  %5426 = vmatprep.mubr.f32.mxu1 %v11131_v21 }
 0x989   :  { %5266 = vmatmul.mubr.f32.gmra.mxu0 %v5114_v6  ;;  %5427 = vmatmul.mubr.f32.gmra.mxu1 %v5114_v6 }
 0x98a   :  { %5271 = vmatprep.mubr.f32.mxu0 %v11131_v21  ;;  %5432 = vmatprep.mubr.f32.mxu1 %v11131_v21 }
 0x98d   :  { %5272 = vmatmul.mubr.f32.gmra.mxu0 %v5116_v7  ;;  %5433 = vmatmul.mubr.f32.gmra.mxu1 %v5116_v7 }
 0x98e   :  { %5515 = vmatprep.mubr.f32.mxu0 %v11131_v21  ;;  %5592 = vmatprep.mubr.f32.mxu1 %v11131_v21 }
 0xa11   :  { %v10432_v11 = vpop.f32.mrf.mxu0  ;;  %v10434_v22 = vpop.f32.mrf.mxu1 }
 0xa12   :  { %11200 = vst [vmem:[#allocation71_spill] sm:$0xff] %v10432_v11  ;;  %11201 = vst [vmem:[#allocation70_spill] sm:$0xff] %v10434_v22 }
 0xa13   :  { %v10436_v38 = vpop.f32.mrf.mxu0  ;;  %v10438_v42 = vpop.f32.mrf.mxu1 }
 0xa15   :  { %v10440_v59 = vpop.f32.mrf.mxu0  ;;  %v10442_v25 = vpop.f32.mrf.mxu1 }
 0xa17   :  { %v10444_v10 = vpop.f32.mrf.mxu0  ;;  %v10446_v32 = vpop.f32.mrf.mxu1 }
 0xa19   :  { %v10448_v57 = vpop.f32.mrf.mxu0  ;;  %v10450_v20 = vpop.f32.mrf.mxu1 }
 0xa1b   :  { %v10452_v24 = vpop.f32.mrf.mxu0  ;;  %v10454_v9 = vpop.f32.mrf.mxu1 }
 0xa1d   :  { %v10456_v34 = vpop.f32.mrf.mxu0  ;;  %v10458_v51 = vpop.f32.mrf.mxu1 }
 0xa1f   :  { %v10460_v48 = vpop.f32.mrf.mxu0  ;;  %v10462_v28 = vpop.f32.mrf.mxu1 }
 0xa21   :  { %v10464_v47 = vpop.f32.mrf.mxu0  ;;  %v10466_v17 = vpop.f32.mrf.mxu1 }
 0xa23   :  { %v10468_v13 = vpop.f32.mrf.mxu0  ;;  %v10470_v58 = vpop.f32.mrf.mxu1 }
 0xa25   :  { %v10472_v2 = vpop.f32.mrf.mxu0  ;;  %v10474_v35 = vpop.f32.mrf.mxu1 }
 0xa27   :  { %v10476_v54 = vpop.f32.mrf.mxu0  ;;  %v10478_v44 = vpop.f32.mrf.mxu1 }
 0xa29   :  { %v10480_v12 = vpop.f32.mrf.mxu0  ;;  %v10482_v4 = vpop.f32.mrf.mxu1 }
 0xa2b   :  { %v10484_v1 = vpop.f32.mrf.mxu0  ;;  %v10486_v16 = vpop.f32.mrf.mxu1 }
 0xa2d   :  { %v10488_v36 = vpop.f32.mrf.mxu0  ;;  %v10490_v18 = vpop.f32.mrf.mxu1 }
 0xa2f   :  { %v10492_v56 = vpop.f32.mrf.mxu0  ;;  %v10494_v50 = vpop.f32.mrf.mxu1 }
 0xa31   :  { %v5231_v15 = vpop.f32.mrf.mxu0  ;;  %v5392_v41 = vpop.f32.mrf.mxu1 }
 0xa33   :  { %v5233_v43 = vpop.f32.mrf.mxu0  ;;  %v5394_v33 = vpop.f32.mrf.mxu1 }
 0xa35   :  { %v5237_v63 = vpop.f32.mrf.mxu0  ;;  %v5398_v23 = vpop.f32.mrf.mxu1 }
 0xa37   :  { %v5239_v14 = vpop.f32.mrf.mxu0  ;;  %v5400_v60 = vpop.f32.mrf.mxu1 }
 0xa39   :  { %v5243_v40 = vpop.f32.mrf.mxu0  ;;  %v5404_v46 = vpop.f32.mrf.mxu1 }
 0xa3b   :  { %v5245_v37 = vpop.f32.mrf.mxu0  ;;  %v5406_v53 = vpop.f32.mrf.mxu1 }
 0xa3d   :  { %v5249_v26 = vpop.f32.mrf.mxu0  ;;  %v5410_v8 = vpop.f32.mrf.mxu1 }
 0xa3f   :  { %v5251_v49 = vpop.f32.mrf.mxu0  ;;  %v5412_v29 = vpop.f32.mrf.mxu1 }
 0xa41   :  { %v5255_v27 = vpop.f32.mrf.mxu0  ;;  %v5416_v45 = vpop.f32.mrf.mxu1 }
 0xa43   :  { %v5257_v61 = vpop.f32.mrf.mxu0  ;;  %v5418_v19 = vpop.f32.mrf.mxu1 }
 0xa45   :  { %v5261_v55 = vpop.f32.mrf.mxu0  ;;  %v5422_v5 = vpop.f32.mrf.mxu1 }
 0xa47   :  { %v5263_v62 = vpop.f32.mrf.mxu0  ;;  %v5424_v3 = vpop.f32.mrf.mxu1 }
 0xa49   :  { %v5267_v6 = vpop.f32.mrf.mxu0  ;;  %v5428_v52 = vpop.f32.mrf.mxu1 }
 0xa4b   :  { %v5269_v7 = vpop.f32.mrf.mxu0  ;;  %v5430_v31 = vpop.f32.mrf.mxu1 }
 0xa4d   :  { %v5273_v39 = vpop.f32.mrf.mxu0  ;;  %v5434_v0 = vpop.f32.mrf.mxu1 }
 0xa4f   :  { %v5275_v22 = vpop.f32.mrf.mxu0  ;;  %v5436_v11 = vpop.f32.mrf.mxu1 }
 0xa50   :  { %5451 = vmatprep.subr.mxu0 %v5275_v22  ;;  %5528 = vmatprep.subr.mxu1 %v5436_v11  ;;  %v11203_v11 = vld [vmem:[#allocation44_spill] sm:$0xff] }
 0xa51   :  { %5452 = vmatpush1.msra.mxu0 %v5273_v39  ;;  %5529 = vmatpush1.msra.mxu1 %v5434_v0  ;;  %v11202_v0 = vld [vmem:[#allocation24_spill] sm:$0xff] }
 0xa52   :  { %5453 = vmatprep.subr.mxu0 %v5269_v7  ;;  %5530 = vmatprep.subr.mxu1 %v5430_v31  ;;  %v5439_v39 = vcvt.s32.f32 %v11202_v0  ;;  %v538_v31 = vadd.s32 8, %v11202_v0  ;;  %v5891_v7 = vld [vmem:[#allocation4 + $0x88] sm:$0xff] }
 0xa53   :  { %5454 = vmatpush1.msra.mxu0 %v5267_v6  ;;  %5531 = vmatpush1.msra.mxu1 %v5428_v52  ;;  %v5894_v6 = vld [vmem:[#allocation4 + $0xa0] sm:$0xff]  ;;  %v6019_v0 = vld [vmem:[#allocation4 + $0x488] sm:$0xff] }
 0xa54   :  { %5455 = vmatprep.subr.mxu0 %v5263_v62  ;;  %5532 = vmatprep.subr.mxu1 %v5424_v3  ;;  %vm5441_vm8 = vcmp.eq.f32.partialorder %v5439_v39, %v11203_v11  ;;  %v5440_v22 = vcvt.s32.f32 %v538_v31  ;;  %v5895_v62 = vld [vmem:[#allocation4 + $0xa8] sm:$0xff]  ;;  %v6022_v52 = vld [vmem:[#allocation4 + $0x4a0] sm:$0xff] }
 0xa55   :  { %5456 = vmatpush1.msra.mxu0 %v5261_v55  ;;  %5533 = vmatpush1.msra.mxu1 %v5422_v5  ;;  %v5898_v55 = vld [vmem:[#allocation4 + $0xc0] sm:$0xff]  ;;  %v6023_v3 = vld [vmem:[#allocation4 + $0x4a8] sm:$0xff] }
 0xa56   :  { %5457 = vmatprep.subr.mxu0 %v5257_v61  ;;  %5534 = vmatprep.subr.mxu1 %v5418_v19  ;;  %vm5442_vm1 = vcmp.eq.f32.partialorder %v5440_v22, %v11203_v11  ;;  %v5899_v61 = vld [vmem:[#allocation4 + $0xc8] sm:$0xff]  ;;  %v6026_v5 = vld [vmem:[#allocation4 + $0x4c0] sm:$0xff] }
 0xa57   :  { %5458 = vmatpush1.msra.mxu0 %v5255_v27  ;;  %5535 = vmatpush1.msra.mxu1 %v5416_v45  ;;  %v5902_v27 = vld [vmem:[#allocation4 + $0xe0] sm:$0xff]  ;;  %v6027_v19 = vld [vmem:[#allocation4 + $0x4c8] sm:$0xff] }
 0xa58   :  { %5459 = vmatprep.subr.mxu0 %v5251_v49  ;;  %5536 = vmatprep.subr.mxu1 %v5412_v29  ;;  %v5903_v49 = vld [vmem:[#allocation4 + $0xe8] sm:$0xff]  ;;  %v6030_v45 = vld [vmem:[#allocation4 + $0x4e0] sm:$0xff] }
 0xa59   :  { %5460 = vmatpush1.msra.mxu0 %v5249_v26  ;;  %5537 = vmatpush1.msra.mxu1 %v5410_v8  ;;  %v5906_v26 = vld [vmem:[#allocation4 + $0x100] sm:$0xff]  ;;  %v6031_v29 = vld [vmem:[#allocation4 + $0x4e8] sm:$0xff] }
 0xa5a   :  { %5461 = vmatprep.subr.mxu0 %v5245_v37  ;;  %5538 = vmatprep.subr.mxu1 %v5406_v53  ;;  %v5907_v37 = vld [vmem:[#allocation4 + $0x108] sm:$0xff]  ;;  %v6034_v8 = vld [vmem:[#allocation4 + $0x500] sm:$0xff] }
 0xa5b   :  { %5462 = vmatpush1.msra.mxu0 %v5243_v40  ;;  %5539 = vmatpush1.msra.mxu1 %v5404_v46  ;;  %v5910_v40 = vld [vmem:[#allocation4 + $0x120] sm:$0xff]  ;;  %v6035_v53 = vld [vmem:[#allocation4 + $0x508] sm:$0xff] }
 0xa5c   :  { %5463 = vmatprep.subr.mxu0 %v5239_v14  ;;  %5540 = vmatprep.subr.mxu1 %v5400_v60  ;;  %v5911_v14 = vld [vmem:[#allocation4 + $0x128] sm:$0xff]  ;;  %v6038_v46 = vld [vmem:[#allocation4 + $0x520] sm:$0xff] }
 0xa5d   :  { %5464 = vmatpush1.msra.mxu0 %v5237_v63  ;;  %5541 = vmatpush1.msra.mxu1 %v5398_v23  ;;  %v5914_v63 = vld [vmem:[#allocation4 + $0x140] sm:$0xff]  ;;  %v6039_v60 = vld [vmem:[#allocation4 + $0x528] sm:$0xff] }
 0xa5e   :  { %5465 = vmatprep.subr.mxu0 %v5233_v43  ;;  %5542 = vmatprep.subr.mxu1 %v5394_v33  ;;  %v5915_v43 = vld [vmem:[#allocation4 + $0x148] sm:$0xff]  ;;  %v6042_v23 = vld [vmem:[#allocation4 + $0x540] sm:$0xff] }
 0xa5f   :  { %5466 = vmatpush1.msra.mxu0 %v5231_v15  ;;  %5543 = vmatpush1.msra.mxu1 %v5392_v41  ;;  %v5918_v15 = vld [vmem:[#allocation4 + $0x160] sm:$0xff]  ;;  %v6043_v33 = vld [vmem:[#allocation4 + $0x548] sm:$0xff] }
 0xa60   :  { %5467 = vmatprep.subr.mxu0 %v10492_v56  ;;  %5544 = vmatprep.subr.mxu1 %v10494_v50  ;;  %v5919_v56 = vld [vmem:[#allocation4 + $0x168] sm:$0xff]  ;;  %v6046_v41 = vld [vmem:[#allocation4 + $0x560] sm:$0xff] }
 0xa61   :  { %5468 = vmatpush1.msra.mxu0 %v10488_v36  ;;  %5545 = vmatpush1.msra.mxu1 %v10490_v18  ;;  %v5922_v36 = vld [vmem:[#allocation4 + $0x180] sm:$0xff]  ;;  %v6047_v50 = vld [vmem:[#allocation4 + $0x568] sm:$0xff] }
 0xa62   :  { %5469 = vmatprep.subr.mxu0 %v10484_v1  ;;  %5546 = vmatprep.subr.mxu1 %v10486_v16  ;;  %v5923_v1 = vld [vmem:[#allocation4 + $0x188] sm:$0xff]  ;;  %v6050_v18 = vld [vmem:[#allocation4 + $0x580] sm:$0xff] }
 0xa63   :  { %5470 = vmatpush1.msra.mxu0 %v10480_v12  ;;  %5547 = vmatpush1.msra.mxu1 %v10482_v4  ;;  %v6055_v12 = vld [vmem:[#allocation4 + $0x5a8] sm:$0xff]  ;;  %v6054_v4 = vld [vmem:[#allocation4 + $0x5a0] sm:$0xff] }
 0xa64   :  { %5471 = vmatprep.subr.mxu0 %v10476_v54  ;;  %5548 = vmatprep.subr.mxu1 %v10478_v44  ;;  %v6058_v54 = vld [vmem:[#allocation4 + $0x5c0] sm:$0xff]  ;;  %v5927_v44 = vld [vmem:[#allocation4 + $0x1a8] sm:$0xff] }
 0xa65   :  { %5472 = vmatpush1.msra.mxu0 %v10472_v2  ;;  %5549 = vmatpush1.msra.mxu1 %v10474_v35  ;;  %v6912_v2 = vld [vmem:[%s10961_s22] sm:$0xff]  ;;  %v6051_v16 = vld [vmem:[#allocation4 + $0x588] sm:$0xff] }
 0xa66   :  { %5473 = vmatprep.subr.mxu0 %v10468_v13  ;;  %5550 = vmatprep.subr.mxu1 %v10470_v58  ;;  %v5448_v35 = vrot.slane %v6912_v2, %v10918_v30  ;;  %v5443_v13 = vsel %vm5441_vm8, 1.0, %v11131_v21  ;;  %v5930_v58 = vld [vmem:[#allocation4 + $0x1c0] sm:$0xff]  ;;  %v5887_v11 = vld [vmem:[#allocation4 + $0x68] sm:$0xff] }
 0xa67   :  { %5474 = vmatpush1.msra.mxu0 %v10464_v47  ;;  %5551 = vmatpush1.msra.mxu1 %v10466_v17  ;;  %v5931_v47 = vld [vmem:[#allocation4 + $0x1c8] sm:$0xff]  ;;  %v5890_v39 = vld [vmem:[#allocation4 + $0x80] sm:$0xff] }
 0xa68   :  { %5475 = vmatprep.subr.mxu0 %v10460_v48  ;;  %5552 = vmatprep.subr.mxu1 %v10462_v28  ;;  %v5449_v48 = vmul.f32 %v5448_v35, %v5443_v13  ;;  %v6062_v28 = vld [vmem:[#allocation4 + $0x5e0] sm:$0xff]  ;;  %v6059_v17 = vld [vmem:[#allocation4 + $0x5c8] sm:$0xff] }
 0xa69   :  { %5476 = vmatpush1.msra.mxu0 %v10456_v34  ;;  %5553 = vmatpush1.msra.mxu1 %v10458_v51  ;;  %v5444_v34 = vsel %vm5442_vm1, 1.0, %v11131_v21  ;;  %v5934_v51 = vld [vmem:[#allocation4 + $0x1e0] sm:$0xff]  ;;  %v6015_v22 = vld [vmem:[#allocation4 + $0x468] sm:$0xff] }
 0xa6a   :  { %5477 = vmatprep.subr.mxu0 %v10452_v24  ;;  %5554 = vmatprep.subr.mxu1 %v10454_v9  ;;  %v11204_v24 = vld [vmem:[#allocation71_spill] sm:$0xff]  ;;  %v6018_v31 = vld [vmem:[#allocation4 + $0x480] sm:$0xff]  ;;  %v5883_v13 = vld [vmem:[#allocation4 + $0x48] sm:$0xff] }
 0xa6b   :  { %5478 = vmatpush1.msra.mxu0 %v10448_v57  ;;  %5555 = vmatpush1.msra.mxu1 %v10450_v20  ;;  %v11205_v57 = vld [vmem:[#allocation70_spill] sm:$0xff]  ;;  %v6063_v20 = vld [vmem:[#allocation4 + $0x5e8] sm:$0xff]  ;;  %v5684_v9 = vld [vmem:[%s11207_s1] sm:$0xff] }
 0xa6c   :  { %5479 = vmatprep.subr.mxu0 %v10444_v10  ;;  %5556 = vmatprep.subr.mxu1 %v10446_v32  ;;  %v5686_v10 = vld [vmem:[%s11206_s13 + $0x8] sm:$0x3f] }
 0xa6d   :  { %5480 = vmatpush1.msra.mxu0 %v10440_v59  ;;  %5557 = vmatpush1.msra.mxu1 %v10442_v25  ;;  %v5688_v59 = vld [vmem:[%s11206_s13 + $0x18] sm:$0x3f]  ;;  %v5450_v25 = vmul.f32 %v5448_v35, %v5444_v34  ;;  %v5935_v32 = vld [vmem:[#allocation4 + $0x1e8] sm:$0xff]  ;;  %v5886_v2 = vld [vmem:[#allocation4 + $0x60] sm:$0xff] }
 0xa6e   :  { %5481 = vmatprep.subr.mxu0 %v10436_v38  ;;  %5558 = vmatprep.subr.mxu1 %v10438_v42  ;;  %v5685_v38 = vld [vmem:[%s11206_s13] sm:$0x3f]  ;;  %v5687_v42 = vld [vmem:[%s11206_s13 + $0x10] sm:$0x3f] }
 0xa6f   :  { %5482 = vmatpush1.msra.mxu0 %v11204_v24  ;;  %5559 = vmatpush1.msra.mxu1 %v11205_v57  ;;  %v6014_v35 = vld [vmem:[#allocation4 + $0x460] sm:$0xff]  ;;  %v5879_v57 = vld [vmem:[#allocation4 + $0x28] sm:$0xff] }
 0xa70   :  { %5516 = vmatmul.mubr.f32.vlgmr.msra.gmra.mxu0 %v5449_v48  ;;  %5593 = vmatmul.mubr.f32.vlgmr.msra.gmra.mxu1 %v5449_v48  ;;  %v6011_v48 = vld [vmem:[#allocation4 + $0x448] sm:$0xff]  ;;  %v5882_v34 = vld [vmem:[#allocation4 + $0x40] sm:$0xff] }
 0xa71   :  { %5521 = vmatprep.mubr.f32.mxu0 %v11131_v21  ;;  %5598 = vmatprep.mubr.f32.mxu1 %v11131_v21  ;;  %v6010_v24 = vld [vmem:[#allocation4 + $0x440] sm:$0xff] }
 0xa72   :  { %6633 = vmatprep.subr.msk.mxu0 %vm5715_vm9, %v5686_v10  ;;  %6636 = vmatprep.subr.msk.mxu1 %vm5715_vm9, %v5688_v59  ;;  %v6007_v10 = vld [vmem:[#allocation4 + $0x428] sm:$0xff]  ;;  %v5878_v59 = vld [vmem:[#allocation4 + $0x20] sm:$0xff] }
 0xa73   :  { %6634 = vmatpush1.msk.msra.mxu0 %vm5715_vm9, %v5685_v38  ;;  %6637 = vmatpush1.msk.msra.mxu1 %vm5715_vm9, %v5687_v42  ;;  %v5875_v38 = vld [vmem:[#allocation4 + $0x8] sm:$0xff] }
 0xa74   :  { %5522 = vmatmul.mubr.f32.gmra.mxu0 %v5450_v25  ;;  %5599 = vmatmul.mubr.f32.gmra.mxu1 %v5450_v25  ;;  %v6006_v25 = vld [vmem:[#allocation4 + $0x420] sm:$0xff]  ;;  %v6003_v42 = vld [vmem:[#allocation4 + $0x408] sm:$0xff] }
 0xa75   :  { %5792 = vmatprep.mubr.f32.mxu0 %v11131_v21  ;;  %5863 = vmatprep.mubr.f32.mxu1 %v11131_v21  ;;  %v5926_v21 = vld [vmem:[#allocation4 + $0x1a0] sm:$0xff] }
 0xa76   :  { %6152 = vmatprep.subr.mxu0 %v5935_v32  ;;  %6223 = vmatprep.subr.mxu1 %v6063_v20  ;;  %v5874_v32 = vld [vmem:[#allocation4] sm:$0xff] }
 0xa77   :  { %v6002_v20 = vld [vmem:[#allocation4 + $0x400] sm:$0xff] }
 0xa78   :  { %6635 = vmatmul.mubr.msk.f32.vlgmr.msra.gmra.mxu0 %vm5711_vm7, %v5684_v9  ;;  %6638 = vmatmul.mubr.msk.f32.vlgmr.msra.gmra.mxu1 %vm5711_vm7, %v5684_v9  ;;  %v5999_v9 = vld [vmem:[#allocation4 + $0x3e8] sm:$0xff] }
 0xa79   :  { %6153 = vmatpush1.msra.mxu0 %v5934_v51  ;;  %6224 = vmatpush1.msra.mxu1 %v6062_v28  ;;  %v6127_v51 = vld [vmem:[#allocation4 + $0x7e8] sm:$0xff]  ;;  %v5998_v28 = vld [vmem:[#allocation4 + $0x3e0] sm:$0xff] }
 0xa7a   :  { %6154 = vmatprep.subr.mxu0 %v5931_v47  ;;  %6225 = vmatprep.subr.mxu1 %v6059_v17  ;;  %v6126_v47 = vld [vmem:[#allocation4 + $0x7e0] sm:$0xff]  ;;  %v5995_v17 = vld [vmem:[#allocation4 + $0x3c8] sm:$0xff] }
 0xa7b   :  { %6155 = vmatpush1.msra.mxu0 %v5930_v58  ;;  %6226 = vmatpush1.msra.mxu1 %v6058_v54  ;;  %v6123_v58 = vld [vmem:[#allocation4 + $0x7c8] sm:$0xff]  ;;  %v5994_v54 = vld [vmem:[#allocation4 + $0x3c0] sm:$0xff] }
 0xa7c   :  { %6156 = vmatprep.subr.mxu0 %v5927_v44  ;;  %6227 = vmatprep.subr.mxu1 %v6055_v12  ;;  %v6122_v44 = vld [vmem:[#allocation4 + $0x7c0] sm:$0xff]  ;;  %v5991_v12 = vld [vmem:[#allocation4 + $0x3a8] sm:$0xff] }
 0xa7d   :  { %6157 = vmatpush1.msra.mxu0 %v5926_v21  ;;  %6228 = vmatpush1.msra.mxu1 %v6054_v4  ;;  %v6119_v21 = vld [vmem:[#allocation4 + $0x7a8] sm:$0xff]  ;;  %v5990_v4 = vld [vmem:[#allocation4 + $0x3a0] sm:$0xff] }
 0xa7e   :  { %6158 = vmatprep.subr.mxu0 %v5923_v1  ;;  %6229 = vmatprep.subr.mxu1 %v6051_v16  ;;  %v6118_v1 = vld [vmem:[#allocation4 + $0x7a0] sm:$0xff]  ;;  %v5987_v16 = vld [vmem:[#allocation4 + $0x388] sm:$0xff] }
 0xa7f   :  { %6159 = vmatpush1.msra.mxu0 %v5922_v36  ;;  %6230 = vmatpush1.msra.mxu1 %v6050_v18  ;;  %v6115_v36 = vld [vmem:[#allocation4 + $0x788] sm:$0xff]  ;;  %v5986_v18 = vld [vmem:[#allocation4 + $0x380] sm:$0xff] }
 0xa80   :  { %6160 = vmatprep.subr.mxu0 %v5919_v56  ;;  %6231 = vmatprep.subr.mxu1 %v6047_v50  ;;  %v6114_v56 = vld [vmem:[#allocation4 + $0x780] sm:$0xff]  ;;  %v5983_v50 = vld [vmem:[#allocation4 + $0x368] sm:$0xff] }
 0xa81   :  { %6161 = vmatpush1.msra.mxu0 %v5918_v15  ;;  %6232 = vmatpush1.msra.mxu1 %v6046_v41  ;;  %v6111_v15 = vld [vmem:[#allocation4 + $0x768] sm:$0xff]  ;;  %v5982_v41 = vld [vmem:[#allocation4 + $0x360] sm:$0xff] }
 0xa82   :  { %6162 = vmatprep.subr.mxu0 %v5915_v43  ;;  %6233 = vmatprep.subr.mxu1 %v6043_v33  ;;  %v6110_v43 = vld [vmem:[#allocation4 + $0x760] sm:$0xff]  ;;  %v5979_v33 = vld [vmem:[#allocation4 + $0x348] sm:$0xff] }
 0xa83   :  { %6163 = vmatpush1.msra.mxu0 %v5914_v63  ;;  %6234 = vmatpush1.msra.mxu1 %v6042_v23  ;;  %v6107_v63 = vld [vmem:[#allocation4 + $0x748] sm:$0xff]  ;;  %v5978_v23 = vld [vmem:[#allocation4 + $0x340] sm:$0xff] }
 0xa84   :  { %6164 = vmatprep.subr.mxu0 %v5911_v14  ;;  %6235 = vmatprep.subr.mxu1 %v6039_v60  ;;  %v6106_v14 = vld [vmem:[#allocation4 + $0x740] sm:$0xff]  ;;  %v5975_v60 = vld [vmem:[#allocation4 + $0x328] sm:$0xff] }
 0xa85   :  { %6165 = vmatpush1.msra.mxu0 %v5910_v40  ;;  %6236 = vmatpush1.msra.mxu1 %v6038_v46  ;;  %v6103_v40 = vld [vmem:[#allocation4 + $0x728] sm:$0xff]  ;;  %v5974_v46 = vld [vmem:[#allocation4 + $0x320] sm:$0xff] }
 0xa86   :  { %6166 = vmatprep.subr.mxu0 %v5907_v37  ;;  %6237 = vmatprep.subr.mxu1 %v6035_v53  ;;  %v6102_v37 = vld [vmem:[#allocation4 + $0x720] sm:$0xff]  ;;  %v5971_v53 = vld [vmem:[#allocation4 + $0x308] sm:$0xff] }
 0xa87   :  { %6167 = vmatpush1.msra.mxu0 %v5906_v26  ;;  %6238 = vmatpush1.msra.mxu1 %v6034_v8  ;;  %v6099_v26 = vld [vmem:[#allocation4 + $0x708] sm:$0xff]  ;;  %v5970_v8 = vld [vmem:[#allocation4 + $0x300] sm:$0xff] }
 0xa88   :  { %6168 = vmatprep.subr.mxu0 %v5903_v49  ;;  %6239 = vmatprep.subr.mxu1 %v6031_v29  ;;  %v6098_v49 = vld [vmem:[#allocation4 + $0x700] sm:$0xff]  ;;  %v5967_v29 = vld [vmem:[#allocation4 + $0x2e8] sm:$0xff] }
 0xa89   :  { %6169 = vmatpush1.msra.mxu0 %v5902_v27  ;;  %6240 = vmatpush1.msra.mxu1 %v6030_v45  ;;  %v6095_v27 = vld [vmem:[#allocation4 + $0x6e8] sm:$0xff]  ;;  %v5966_v45 = vld [vmem:[#allocation4 + $0x2e0] sm:$0xff] }
 0xa8a   :  { %6170 = vmatprep.subr.mxu0 %v5899_v61  ;;  %6241 = vmatprep.subr.mxu1 %v6027_v19  ;;  %v6094_v61 = vld [vmem:[#allocation4 + $0x6e0] sm:$0xff]  ;;  %v5963_v19 = vld [vmem:[#allocation4 + $0x2c8] sm:$0xff] }
 0xa8b   :  { %6171 = vmatpush1.msra.mxu0 %v5898_v55  ;;  %6242 = vmatpush1.msra.mxu1 %v6026_v5  ;;  %v6091_v55 = vld [vmem:[#allocation4 + $0x6c8] sm:$0xff]  ;;  %v5962_v5 = vld [vmem:[#allocation4 + $0x2c0] sm:$0xff] }
 0xa8c   :  { %6172 = vmatprep.subr.mxu0 %v5895_v62  ;;  %6243 = vmatprep.subr.mxu1 %v6023_v3  ;;  %v6090_v62 = vld [vmem:[#allocation4 + $0x6c0] sm:$0xff]  ;;  %v5959_v3 = vld [vmem:[#allocation4 + $0x2a8] sm:$0xff] }
 0xa8d   :  { %6173 = vmatpush1.msra.mxu0 %v5894_v6  ;;  %6244 = vmatpush1.msra.mxu1 %v6022_v52  ;;  %v6087_v6 = vld [vmem:[#allocation4 + $0x6a8] sm:$0xff]  ;;  %v5958_v52 = vld [vmem:[#allocation4 + $0x2a0] sm:$0xff] }
 0xa8e   :  { %6174 = vmatprep.subr.mxu0 %v5891_v7  ;;  %6245 = vmatprep.subr.mxu1 %v6019_v0  ;;  %v6086_v7 = vld [vmem:[#allocation4 + $0x6a0] sm:$0xff]  ;;  %v5955_v0 = vld [vmem:[#allocation4 + $0x288] sm:$0xff] }
 0xa8f   :  { %6175 = vmatpush1.msra.mxu0 %v5890_v39  ;;  %6246 = vmatpush1.msra.mxu1 %v6018_v31  ;;  %v6083_v39 = vld [vmem:[#allocation4 + $0x688] sm:$0xff]  ;;  %v5954_v31 = vld [vmem:[#allocation4 + $0x280] sm:$0xff] }
 0xa90   :  { %6176 = vmatprep.subr.mxu0 %v5887_v11  ;;  %6247 = vmatprep.subr.mxu1 %v6015_v22  ;;  %v6082_v11 = vld [vmem:[#allocation4 + $0x680] sm:$0xff]  ;;  %v5951_v22 = vld [vmem:[#allocation4 + $0x268] sm:$0xff] }
 0xa91   :  { %6177 = vmatpush1.msra.mxu0 %v5886_v2  ;;  %6248 = vmatpush1.msra.mxu1 %v6014_v35  ;;  %v6079_v2 = vld [vmem:[#allocation4 + $0x668] sm:$0xff]  ;;  %v5950_v35 = vld [vmem:[#allocation4 + $0x260] sm:$0xff] }
 0xa92   :  { %6178 = vmatprep.subr.mxu0 %v5883_v13  ;;  %6249 = vmatprep.subr.mxu1 %v6011_v48  ;;  %v6078_v13 = vld [vmem:[#allocation4 + $0x660] sm:$0xff]  ;;  %v5947_v48 = vld [vmem:[#allocation4 + $0x248] sm:$0xff] }
 0xa93   :  { %6179 = vmatpush1.msra.mxu0 %v5882_v34  ;;  %6250 = vmatpush1.msra.mxu1 %v6010_v24  ;;  %v6075_v34 = vld [vmem:[#allocation4 + $0x648] sm:$0xff]  ;;  %v5946_v24 = vld [vmem:[#allocation4 + $0x240] sm:$0xff] }
 0xa94   :  { %6180 = vmatprep.subr.mxu0 %v5879_v57  ;;  %6251 = vmatprep.subr.mxu1 %v6007_v10  ;;  %v6074_v57 = vld [vmem:[#allocation4 + $0x640] sm:$0xff]  ;;  %v5943_v10 = vld [vmem:[#allocation4 + $0x228] sm:$0xff] }
 0xa95   :  { %6181 = vmatpush1.msra.mxu0 %v5878_v59  ;;  %6252 = vmatpush1.msra.mxu1 %v6006_v25  ;;  %v6071_v59 = vld [vmem:[#allocation4 + $0x628] sm:$0xff]  ;;  %v5942_v25 = vld [vmem:[#allocation4 + $0x220] sm:$0xff] }
 0xa96   :  { %6182 = vmatprep.subr.mxu0 %v5875_v38  ;;  %6253 = vmatprep.subr.mxu1 %v6003_v42  ;;  %v6070_v38 = vld [vmem:[#allocation4 + $0x620] sm:$0xff]  ;;  %v5939_v42 = vld [vmem:[#allocation4 + $0x208] sm:$0xff] }
 0xa97   :  { %6183 = vmatpush1.msra.mxu0 %v5874_v32  ;;  %6254 = vmatpush1.msra.mxu1 %v6002_v20  ;;  %v6067_v32 = vld [vmem:[#allocation4 + $0x608] sm:$0xff]  ;;  %v5938_v20 = vld [vmem:[#allocation4 + $0x200] sm:$0xff] }
 0xa98   :  { %6184 = vmatprep.subr.mxu0 %v5999_v9  ;;  %6255 = vmatprep.subr.mxu1 %v6127_v51  ;;  %v6066_v9 = vld [vmem:[#allocation4 + $0x600] sm:$0xff]  ;;  %v5937_v51 = vld [vmem:[#allocation4 + $0x1f8] sm:$0xff] }
 0xa99   :  { %6185 = vmatpush2.msra.mxu0 %v5998_v28  ;;  %6256 = vmatpush2.msra.mxu1 %v6126_v47  ;;  %v6065_v28 = vld [vmem:[#allocation4 + $0x5f8] sm:$0xff] }
 0xa9a   :  { %6186 = vmatprep.subr.mxu0 %v5995_v17  ;;  %6257 = vmatprep.subr.mxu1 %v6123_v58 }
 0xa9b   :  { %6187 = vmatpush2.msra.mxu0 %v5994_v54  ;;  %6258 = vmatpush2.msra.mxu1 %v6122_v44  ;;  %v10560_v44 = vld [vmem:[%s10642_s11] sm:$0xf] }
 0xa9c   :  { %6188 = vmatprep.subr.mxu0 %v5991_v12  ;;  %6259 = vmatprep.subr.mxu1 %v6119_v21  ;;  %v5689_v12 = vld [vmem:[%s11208_s20] sm:$0xf] }
 0xa9d   :  { %6189 = vmatpush2.msra.mxu0 %v5990_v4  ;;  %6260 = vmatpush2.msra.mxu1 %v6118_v1  ;;  %v5626_v1 = vpop.permute.xlu1 %5625 }
 0xa9e   :  { %6190 = vmatprep.subr.mxu0 %v5987_v16  ;;  %6261 = vmatprep.subr.mxu1 %v6115_v36  ;;  %v5631_v16 = vpop.permute.xlu0 %5630 }
 0xa9f   :  { %6191 = vmatpush2.msra.mxu0 %v5986_v18  ;;  %6262 = vmatpush2.msra.mxu1 %v6114_v56 }
 0xaa0   :  { %6192 = vmatprep.subr.mxu0 %v5983_v50  ;;  %6263 = vmatprep.subr.mxu1 %v6111_v15  ;;  %v5650_v15 = vrot.slane %v10560_v44, %v10918_v30 }
 0xaa1   :  { %6193 = vmatpush2.msra.mxu0 %v5982_v41  ;;  %6264 = vmatpush2.msra.mxu1 %v6110_v43  ;;  %v11209_v43 = vld [vmem:[#allocation26_spill] sm:$0xff] }
 0xaa2   :  { %6194 = vmatprep.subr.mxu0 %v5979_v33  ;;  %6265 = vmatprep.subr.mxu1 %v6107_v63  ;;  %v5654_v33 = vrot.slane %v10560_v44, %v11209_v43  ;;  %v5694_v63 = vrot.slane %v5689_v12, %v10918_v30 }
 0xaa3   :  { %6195 = vmatpush2.msra.mxu0 %v5978_v23  ;;  %6266 = vmatpush2.msra.mxu1 %v6106_v14 }
 0xaa4   :  { %6196 = vmatprep.subr.mxu0 %v5975_v60  ;;  %6267 = vmatprep.subr.mxu1 %v6103_v40 }
 0xaa5   :  { %6197 = vmatpush2.msra.mxu0 %v5974_v46  ;;  %6268 = vmatpush2.msra.mxu1 %v6102_v37 }
 0xaa6   :  { %6198 = vmatprep.subr.mxu0 %v5971_v53  ;;  %6269 = vmatprep.subr.mxu1 %v6099_v26  ;;  %v11210_v26 = vld [vmem:[#allocation29_spill] sm:$0xff] }
 0xaa7   :  { %6199 = vmatpush2.msra.mxu0 %v5970_v8  ;;  %6270 = vmatpush2.msra.mxu1 %v6098_v49  ;;  %v5702_v8 = vrot.slane %v5689_v12, %v11210_v26  ;;  %v5698_v49 = vrot.slane %v5689_v12, %v11209_v43 }
 0xaa8   :  { %6200 = vmatprep.subr.mxu0 %v5967_v29  ;;  %6271 = vmatprep.subr.mxu1 %v6095_v27  ;;  %v11211_v29 = vld [vmem:[#allocation27_spill] sm:$0xff] }
 0xaa9   :  { %6201 = vmatpush2.msra.mxu0 %v5966_v45  ;;  %6272 = vmatpush2.msra.mxu1 %v6094_v61  ;;  %v5706_v27 = vrot.slane %v5689_v12, %v11211_v29  ;;  %v6057_v12 = vld [vmem:[#allocation4 + $0x5b8] sm:$0xff] }
 0xaaa   :  { %6202 = vmatprep.subr.mxu0 %v5963_v19  ;;  %6273 = vmatprep.subr.mxu1 %v6091_v55 }
 0xaab   :  { %6203 = vmatpush2.msra.mxu0 %v5962_v5  ;;  %6274 = vmatpush2.msra.mxu1 %v6090_v62 }
 0xaac   :  { %6204 = vmatprep.subr.mxu0 %v5959_v3  ;;  %6275 = vmatprep.subr.mxu1 %v6087_v6 }
 0xaad   :  { %6205 = vmatpush2.msra.mxu0 %v5958_v52  ;;  %6276 = vmatpush2.msra.mxu1 %v6086_v7 }
 0xaae   :  { %6206 = vmatprep.subr.mxu0 %v5955_v0  ;;  %6277 = vmatprep.subr.mxu1 %v6083_v39  ;;  %v5658_v0 = vrot.slane %v10560_v44, %v11210_v26 }
 0xaaf   :  { %6207 = vmatpush2.msra.mxu0 %v5954_v31  ;;  %6278 = vmatpush2.msra.mxu1 %v6082_v11  ;;  %v5662_v11 = vrot.slane %v10560_v44, %v11211_v29  ;;  %v5929_v44 = vld [vmem:[#allocation4 + $0x1b8] sm:$0xff] }
 0xab0   :  { %6208 = vmatprep.subr.mxu0 %v5951_v22  ;;  %6279 = vmatprep.subr.mxu1 %v6079_v2 }
 0xab1   :  { %6209 = vmatpush2.msra.mxu0 %v5950_v35  ;;  %6280 = vmatpush2.msra.mxu1 %v6078_v13 }
 0xab2   :  { %6210 = vmatprep.subr.mxu0 %v5947_v48  ;;  %6281 = vmatprep.subr.mxu1 %v6075_v34 }
 0xab3   :  { %6211 = vmatpush2.msra.mxu0 %v5946_v24  ;;  %6282 = vmatpush2.msra.mxu1 %v6074_v57 }
 0xab4   :  { %6212 = vmatprep.subr.mxu0 %v5943_v10  ;;  %6283 = vmatprep.subr.mxu1 %v6071_v59 }
 0xab5   :  { %6213 = vmatpush2.msra.mxu0 %v5942_v25  ;;  %6284 = vmatpush2.msra.mxu1 %v6070_v38 }
 0xab6   :  { %6214 = vmatprep.subr.mxu0 %v5939_v42  ;;  %6285 = vmatprep.subr.mxu1 %v6067_v32 }
 0xab7   :  { %6215 = vmatpush2.msra.mxu0 %v5938_v20  ;;  %6286 = vmatpush2.msra.mxu1 %v6066_v9  ;;  %v5936_v20 = vld [vmem:[#allocation4 + $0x1f0] sm:$0xff] }
 0xab8   :  { %6294 = vmatprep.subr.mxu0 %v5937_v51  ;;  %6365 = vmatprep.subr.mxu1 %v6065_v28  ;;  %v6064_v9 = vld [vmem:[#allocation4 + $0x5f0] sm:$0xff]  ;;  %v5933_v28 = vld [vmem:[#allocation4 + $0x1d8] sm:$0xff] }
 0xb30   :  { %v5517_v47 = vpop.f32.mrf.mxu0  ;;  %v5594_v17 = vpop.f32.mrf.mxu1 }
 0xb31   :  { %v5605_v58 = vmul.f32 %v5517_v47, %v5517_v47  ;;  %v5607_v54 = vmul.f32 %v5594_v17, %v5594_v17  ;;  %v5633_v56 = vmul.f32 %v5626_v1, %v5517_v47  ;;  %v5635_v46 = vmul.f32 %v5626_v1, %v5594_v17  ;;  %v6061_v47 = vld [vmem:[#allocation4 + $0x5d8] sm:$0xff] }
 0xb32   :  { %v5519_v21 = vpop.f32.mrf.mxu0  ;;  %v5596_v4 = vpop.f32.mrf.mxu1 }
 0xb33   :  { %5613 = vst [vmem:[#allocation11] sm:$0xff] %v5605_v58  ;;  %5615 = vst [vmem:[#allocation11 + $0x10] sm:$0xff] %v5607_v54  ;;  %v5606_v36 = vmul.f32 %v5519_v21, %v5519_v21  ;;  %v5608_v18 = vmul.f32 %v5596_v4, %v5596_v4  ;;  %v5634_v45 = vmul.f32 %v5626_v1, %v5519_v21  ;;  %v5932_v58 = vld [vmem:[#allocation4 + $0x1d0] sm:$0xff] }
 0xb34   :  { %v5523_v50 = vpop.f32.mrf.mxu0  ;;  %v5600_v41 = vpop.f32.mrf.mxu1  ;;  %v5636_v52 = vmul.f32 %v5626_v1, %v5596_v4  ;;  %v6060_v54 = vld [vmem:[#allocation4 + $0x5d0] sm:$0xff] }
 0xb35   :  { %5614 = vst [vmem:[#allocation11 + $0x8] sm:$0xff] %v5606_v36  ;;  %5616 = vst [vmem:[#allocation11 + $0x18] sm:$0xff] %v5608_v18  ;;  %v5609_v23 = vmul.f32 %v5523_v50, %v5523_v50  ;;  %v5637_v14 = vmul.f32 %v5631_v16, %v5523_v50  ;;  %v5611_v60 = vmul.f32 %v5600_v41, %v5600_v41  ;;  %v5928_v4 = vld [vmem:[#allocation4 + $0x1b0] sm:$0xff]  ;;  %v6053_v36 = vld [vmem:[#allocation4 + $0x598] sm:$0xff] }
 0xb36   :  { %v5639_v40 = vmul.f32 %v5631_v16, %v5600_v41  ;;  %v5525_v37 = vpop.f32.mrf.mxu0  ;;  %v5602_v53 = vpop.f32.mrf.mxu1  ;;  %v6056_v1 = vld [vmem:[#allocation4 + $0x5b0] sm:$0xff]  ;;  %v5921_v50 = vld [vmem:[#allocation4 + $0x178] sm:$0xff] }
 0xb37   :  { %5617 = vst [vmem:[#allocation11 + $0x20] sm:$0xff] %v5609_v23  ;;  %v5641_v61 = vadd.f32 %v5637_v14, %v5633_v56  ;;  %5619 = vst [vmem:[#allocation11 + $0x30] sm:$0xff] %v5611_v60  ;;  %v5610_v19 = vmul.f32 %v5525_v37, %v5525_v37  ;;  %v5638_v55 = vmul.f32 %v5631_v16, %v5525_v37  ;;  %v5924_v18 = vld [vmem:[#allocation4 + $0x190] sm:$0xff]  ;;  %v6045_v23 = vld [vmem:[#allocation4 + $0x558] sm:$0xff] }
 0xb38   :  { %v5612_v5 = vmul.f32 %v5602_v53, %v5602_v53  ;;  %v5640_v62 = vmul.f32 %v5631_v16, %v5602_v53  ;;  %v5794_v3 = vpop.f32.mrf.mxu0  ;;  %v5865_v6 = vpop.f32.mrf.mxu1  ;;  %v5643_v7 = vadd.f32 %v5639_v40, %v5635_v46  ;;  %v5925_v16 = vld [vmem:[#allocation4 + $0x198] sm:$0xff]  ;;  %v6052_v56 = vld [vmem:[#allocation4 + $0x590] sm:$0xff] }
 0xb39   :  { %5618 = vst [vmem:[#allocation11 + $0x28] sm:$0xff] %v5610_v19  ;;  %v5642_v39 = vadd.f32 %v5638_v55, %v5634_v45  ;;  %v5667_v31 = vmul.f32 %v5650_v15, %v5641_v61  ;;  %v10577_v22 = vadd.f32 %v5794_v3, %v5694_v63  ;;  %v10579_v2 = vadd.f32 %v5865_v6, %v5702_v8  ;;  %v6049_v15 = vld [vmem:[#allocation4 + $0x578] sm:$0xff]  ;;  %v5920_v41 = vld [vmem:[#allocation4 + $0x170] sm:$0xff] }
 0xb3a   :  { %5620 = vst [vmem:[#allocation11 + $0x38] sm:$0xff] %v5612_v5  ;;  %v5796_v35 = vpop.f32.mrf.mxu0  ;;  %v5867_v13 = vpop.f32.mrf.mxu1  ;;  %v5644_v34 = vadd.f32 %v5640_v62, %v5636_v52  ;;  %v5669_v59 = vmul.f32 %v5658_v0, %v5643_v7  ;;  %v5917_v63 = vld [vmem:[#allocation4 + $0x158] sm:$0xff]  ;;  %v5916_v14 = vld [vmem:[#allocation4 + $0x150] sm:$0xff] }
 0xb3b   :  { %v5668_v48 = vmul.f32 %v5654_v33, %v5642_v39  ;;  %v10581_v24 = vadd.f32 %v5796_v35, %v5698_v49  ;;  %v10583_v57 = vadd.f32 %v5867_v13, %v5706_v27  ;;  %v5872_v10 = vmax.f32 %v10579_v2, 0.0  ;;  %v6048_v33 = vld [vmem:[#allocation4 + $0x570] sm:$0xff]  ;;  %v5913_v40 = vld [vmem:[#allocation4 + $0x138] sm:$0xff] }
 0xb3c   :  { %v5870_v32 = vmax.f32 %v10577_v22, 0.0  ;;  %v5670_v51 = vmul.f32 %v5662_v11, %v5644_v34  ;;  %v6044_v60 = vld [vmem:[#allocation4 + $0x550] sm:$0xff]  ;;  %v6041_v46 = vld [vmem:[#allocation4 + $0x538] sm:$0xff] }
 0xb3d   :  { %v5671_v25 = vadd.f32 %v5668_v48, %v5667_v31  ;;  %v5871_v38 = vmax.f32 %v10581_v24, 0.0  ;;  %v5873_v42 = vmax.f32 %v10583_v57, 0.0  ;;  %v5912_v37 = vld [vmem:[#allocation4 + $0x130] sm:$0xff]  ;;  %v5909_v8 = vld [vmem:[#allocation4 + $0x118] sm:$0xff] }
 0xb3e   :  { %v6040_v53 = vld [vmem:[#allocation4 + $0x530] sm:$0xff]  ;;  %v6037_v49 = vld [vmem:[#allocation4 + $0x518] sm:$0xff] }
 0xb3f   :  { %6216 = vmatprep.mubr.f32.mxu0 %v5871_v38  ;;  %6287 = vmatprep.mubr.f32.mxu1 %v5873_v42  ;;  %v5672_v17 = vadd.f32 %v5671_v25, %v5669_v59  ;;  %v5908_v27 = vld [vmem:[#allocation4 + $0x110] sm:$0xff]  ;;  %v5905_v61 = vld [vmem:[#allocation4 + $0xf8] sm:$0xff] }
 0xb40   :  { %6217 = vmatmul.mubr.f32.vlgmr.msra.gmra.mxu0 %v5870_v32  ;;  %6288 = vmatmul.mubr.f32.vlgmr.msra.gmra.mxu1 %v5872_v10  ;;  %v6036_v45 = vld [vmem:[#allocation4 + $0x510] sm:$0xff]  ;;  %v6033_v19 = vld [vmem:[#allocation4 + $0x4f8] sm:$0xff] }
 0xb41   :  { %6295 = vmatpush1.msra.mxu0 %v5936_v20  ;;  %6366 = vmatpush1.msra.mxu1 %v6064_v9  ;;  %v5673_v21 = vadd.f32 %v5672_v17, %v5670_v51  ;;  %v5904_v55 = vld [vmem:[#allocation4 + $0xf0] sm:$0xff]  ;;  %v5901_v62 = vld [vmem:[#allocation4 + $0xd8] sm:$0xff] }
 0xb42   :  { %6296 = vmatprep.subr.mxu0 %v5933_v28  ;;  %6367 = vmatprep.subr.mxu1 %v6061_v47  ;;  %v6032_v5 = vld [vmem:[#allocation4 + $0x4f0] sm:$0xff]  ;;  %v6029_v3 = vld [vmem:[#allocation4 + $0x4d8] sm:$0xff] }
 0xb43   :  { %6297 = vmatpush1.msra.mxu0 %v5932_v58  ;;  %6368 = vmatpush1.msra.mxu1 %v6060_v54  ;;  %v5900_v6 = vld [vmem:[#allocation4 + $0xd0] sm:$0xff]  ;;  %v5897_v7 = vld [vmem:[#allocation4 + $0xb8] sm:$0xff] }
 0xb44   :  { %6298 = vmatprep.subr.mxu0 %v5929_v44  ;;  %6369 = vmatprep.subr.mxu1 %v6057_v12  ;;  %v6028_v52 = vld [vmem:[#allocation4 + $0x4d0] sm:$0xff]  ;;  %v6025_v0 = vld [vmem:[#allocation4 + $0x4b8] sm:$0xff] }
 0xb45   :  { %5674 = vadd.xlane.f32.xlu1 %v5673_v21  ;;  %6299 = vmatpush1.msra.mxu0 %v5928_v4  ;;  %v5896_v39 = vld [vmem:[#allocation4 + $0xb0] sm:$0xff]  ;;  %v5893_v11 = vld [vmem:[#allocation4 + $0x98] sm:$0xff] }
 0xb46   :  { %6370 = vmatpush1.msra.mxu1 %v6056_v1  ;;  %6300 = vmatprep.subr.mxu0 %v5925_v16  ;;  %v6024_v31 = vld [vmem:[#allocation4 + $0x4b0] sm:$0xff]  ;;  %v6021_v35 = vld [vmem:[#allocation4 + $0x498] sm:$0xff] }
 0xb47   :  { %6371 = vmatprep.subr.mxu1 %v6053_v36  ;;  %6301 = vmatpush1.msra.mxu0 %v5924_v18  ;;  %v5892_v13 = vld [vmem:[#allocation4 + $0x90] sm:$0xff]  ;;  %v5889_v34 = vld [vmem:[#allocation4 + $0x78] sm:$0xff] }
 0xb48   :  { %6372 = vmatpush1.msra.mxu1 %v6052_v56  ;;  %6302 = vmatprep.subr.mxu0 %v5921_v50  ;;  %v6020_v48 = vld [vmem:[#allocation4 + $0x490] sm:$0xff]  ;;  %v6017_v59 = vld [vmem:[#allocation4 + $0x478] sm:$0xff] }
 0xb49   :  { %6373 = vmatprep.subr.mxu1 %v6049_v15  ;;  %6303 = vmatpush1.msra.mxu0 %v5920_v41  ;;  %v5888_v25 = vld [vmem:[#allocation4 + $0x70] sm:$0xff]  ;;  %v5885_v9 = vld [vmem:[#allocation4 + $0x58] sm:$0xff] }
 0xb4a   :  { %6374 = vmatpush1.msra.mxu1 %v6048_v33  ;;  %6304 = vmatprep.subr.mxu0 %v5917_v63  ;;  %v6016_v20 = vld [vmem:[#allocation4 + $0x470] sm:$0xff]  ;;  %v6013_v51 = vld [vmem:[#allocation4 + $0x458] sm:$0xff] }
 0xb4b   :  { %6375 = vmatprep.subr.mxu1 %v6045_v23  ;;  %6305 = vmatpush1.msra.mxu0 %v5916_v14  ;;  %v5884_v28 = vld [vmem:[#allocation4 + $0x50] sm:$0xff]  ;;  %v5881_v17 = vld [vmem:[#allocation4 + $0x38] sm:$0xff] }
 0xb4c   :  { %6376 = vmatpush1.msra.mxu1 %v6044_v60  ;;  %6306 = vmatprep.subr.mxu0 %v5913_v40  ;;  %v6012_v47 = vld [vmem:[#allocation4 + $0x450] sm:$0xff]  ;;  %v6009_v58 = vld [vmem:[#allocation4 + $0x438] sm:$0xff] }
 0xb4d   :  { %6377 = vmatprep.subr.mxu1 %v6041_v46  ;;  %6307 = vmatpush1.msra.mxu0 %v5912_v37  ;;  %v5880_v54 = vld [vmem:[#allocation4 + $0x30] sm:$0xff]  ;;  %v5877_v12 = vld [vmem:[#allocation4 + $0x18] sm:$0xff] }
 0xb4e   :  { %6378 = vmatpush1.msra.mxu1 %v6040_v53  ;;  %6308 = vmatprep.subr.mxu0 %v5909_v8  ;;  %v6008_v44 = vld [vmem:[#allocation4 + $0x430] sm:$0xff]  ;;  %v6005_v21 = vld [vmem:[#allocation4 + $0x418] sm:$0xff] }
 0xb4f   :  { %6379 = vmatprep.subr.mxu1 %v6037_v49  ;;  %6309 = vmatpush1.msra.mxu0 %v5908_v27  ;;  %v5876_v4 = vld [vmem:[#allocation4 + $0x10] sm:$0xff]  ;;  %v6001_v16 = vld [vmem:[#allocation4 + $0x3f8] sm:$0xff] }
 0xb50   :  { %6380 = vmatpush1.msra.mxu1 %v6036_v45  ;;  %6310 = vmatprep.subr.mxu0 %v5905_v61  ;;  %v6004_v1 = vld [vmem:[#allocation4 + $0x410] sm:$0xff]  ;;  %v6129_v36 = vld [vmem:[#allocation4 + $0x7f8] sm:$0xff] }
 0xb51   :  { %6381 = vmatprep.subr.mxu1 %v6033_v19  ;;  %6311 = vmatpush1.msra.mxu0 %v5904_v55  ;;  %v6000_v18 = vld [vmem:[#allocation4 + $0x3f0] sm:$0xff]  ;;  %v5997_v50 = vld [vmem:[#allocation4 + $0x3d8] sm:$0xff] }
 0xb52   :  { %6382 = vmatpush1.msra.mxu1 %v6032_v5  ;;  %6312 = vmatprep.subr.mxu0 %v5901_v62  ;;  %v6128_v56 = vld [vmem:[#allocation4 + $0x7f0] sm:$0xff]  ;;  %v6125_v15 = vld [vmem:[#allocation4 + $0x7d8] sm:$0xff] }
 0xb53   :  { %6383 = vmatprep.subr.mxu1 %v6029_v3  ;;  %6313 = vmatpush1.msra.mxu0 %v5900_v6  ;;  %v5996_v41 = vld [vmem:[#allocation4 + $0x3d0] sm:$0xff]  ;;  %v5993_v63 = vld [vmem:[#allocation4 + $0x3b8] sm:$0xff] }
 0xb54   :  { %6384 = vmatpush1.msra.mxu1 %v6028_v52  ;;  %6314 = vmatprep.subr.mxu0 %v5897_v7  ;;  %v6124_v33 = vld [vmem:[#allocation4 + $0x7d0] sm:$0xff]  ;;  %v6121_v23 = vld [vmem:[#allocation4 + $0x7b8] sm:$0xff] }
 0xb55   :  { %6385 = vmatprep.subr.mxu1 %v6025_v0  ;;  %6315 = vmatpush1.msra.mxu0 %v5896_v39  ;;  %v5992_v14 = vld [vmem:[#allocation4 + $0x3b0] sm:$0xff]  ;;  %v6117_v60 = vld [vmem:[#allocation4 + $0x798] sm:$0xff] }
 0xb56   :  { %6386 = vmatpush1.msra.mxu1 %v6024_v31  ;;  %6316 = vmatprep.subr.mxu0 %v5893_v11  ;;  %v6120_v24 = vld [vmem:[#allocation4 + $0x7b0] sm:$0xff]  ;;  %v5985_v37 = vld [vmem:[#allocation4 + $0x378] sm:$0xff] }
 0xb57   :  { %6387 = vmatprep.subr.mxu1 %v6021_v35  ;;  %6317 = vmatpush1.msra.mxu0 %v5892_v13  ;;  %v5988_v40 = vld [vmem:[#allocation4 + $0x390] sm:$0xff]  ;;  %v6113_v53 = vld [vmem:[#allocation4 + $0x778] sm:$0xff] }
 0xb58   :  { %6388 = vmatpush1.msra.mxu1 %v6020_v48  ;;  %6318 = vmatprep.subr.mxu0 %v5889_v34  ;;  %v6116_v46 = vld [vmem:[#allocation4 + $0x790] sm:$0xff]  ;;  %v5981_v8 = vld [vmem:[#allocation4 + $0x358] sm:$0xff] }
 0xb59   :  { %6389 = vmatprep.subr.mxu1 %v6017_v59  ;;  %6319 = vmatpush1.msra.mxu0 %v5888_v25  ;;  %v5984_v57 = vld [vmem:[#allocation4 + $0x370] sm:$0xff]  ;;  %v6109_v49 = vld [vmem:[#allocation4 + $0x758] sm:$0xff] }
 0xb5a   :  { %6390 = vmatpush1.msra.mxu1 %v6016_v20  ;;  %6320 = vmatprep.subr.mxu0 %v5885_v9  ;;  %v5980_v27 = vld [vmem:[#allocation4 + $0x350] sm:$0xff]  ;;  %v5977_v61 = vld [vmem:[#allocation4 + $0x338] sm:$0xff] }
 0xb5b   :  { %6391 = vmatprep.subr.mxu1 %v6013_v51  ;;  %6321 = vmatpush1.msra.mxu0 %v5884_v28  ;;  %v6108_v45 = vld [vmem:[#allocation4 + $0x750] sm:$0xff]  ;;  %v6105_v19 = vld [vmem:[#allocation4 + $0x738] sm:$0xff] }
 0xb5c   :  { %6392 = vmatpush1.msra.mxu1 %v6012_v47  ;;  %6322 = vmatprep.subr.mxu0 %v5881_v17  ;;  %v5976_v55 = vld [vmem:[#allocation4 + $0x330] sm:$0xff]  ;;  %v5973_v62 = vld [vmem:[#allocation4 + $0x318] sm:$0xff] }
 0xb5d   :  { %6393 = vmatprep.subr.mxu1 %v6009_v58  ;;  %6323 = vmatpush1.msra.mxu0 %v5880_v54  ;;  %v6104_v5 = vld [vmem:[#allocation4 + $0x730] sm:$0xff]  ;;  %v6101_v3 = vld [vmem:[#allocation4 + $0x718] sm:$0xff] }
 0xb5e   :  { %6394 = vmatpush1.msra.mxu1 %v6008_v44  ;;  %6324 = vmatprep.subr.mxu0 %v5877_v12  ;;  %v5972_v6 = vld [vmem:[#allocation4 + $0x310] sm:$0xff]  ;;  %v5969_v7 = vld [vmem:[#allocation4 + $0x2f8] sm:$0xff] }
 0xb5f   :  { %6395 = vmatprep.subr.mxu1 %v6005_v21  ;;  %6325 = vmatpush1.msra.mxu0 %v5876_v4  ;;  %v6100_v52 = vld [vmem:[#allocation4 + $0x710] sm:$0xff]  ;;  %v6097_v0 = vld [vmem:[#allocation4 + $0x6f8] sm:$0xff] }
 0xb60   :  { %6358 = vmatprep.mubr.f32.mxu0 %v5871_v38  ;;  %6396 = vmatpush1.msra.mxu1 %v6004_v1  ;;  %v5989_v38 = vld [vmem:[#allocation4 + $0x398] sm:$0xff]  ;;  %v5968_v39 = vld [vmem:[#allocation4 + $0x2f0] sm:$0xff] }
 0xb61   :  { %6326 = vmatprep.subr.mxu0 %v6001_v16  ;;  %6397 = vmatprep.subr.mxu1 %v6129_v36  ;;  %v6096_v31 = vld [vmem:[#allocation4 + $0x6f0] sm:$0xff]  ;;  %v5965_v11 = vld [vmem:[#allocation4 + $0x2d8] sm:$0xff] }
 0xb62   :  { %6327 = vmatpush2.msra.mxu0 %v6000_v18  ;;  %6398 = vmatpush2.msra.mxu1 %v6128_v56  ;;  %v6093_v35 = vld [vmem:[#allocation4 + $0x6d8] sm:$0xff]  ;;  %v5964_v13 = vld [vmem:[#allocation4 + $0x2d0] sm:$0xff] }
 0xb63   :  { %6429 = vmatprep.mubr.f32.mxu1 %v5873_v42  ;;  %6328 = vmatprep.subr.mxu0 %v5997_v50  ;;  %v6112_v42 = vld [vmem:[#allocation4 + $0x770] sm:$0xff]  ;;  %v5961_v34 = vld [vmem:[#allocation4 + $0x2b8] sm:$0xff] }
 0xb64   :  { %6399 = vmatprep.subr.mxu1 %v6125_v15  ;;  %6329 = vmatpush2.msra.mxu0 %v5996_v41  ;;  %v6092_v48 = vld [vmem:[#allocation4 + $0x6d0] sm:$0xff]  ;;  %v6089_v59 = vld [vmem:[#allocation4 + $0x6b8] sm:$0xff] }
 0xb65   :  { %6400 = vmatpush2.msra.mxu1 %v6124_v33  ;;  %6330 = vmatprep.subr.mxu0 %v5993_v63  ;;  %v5960_v25 = vld [vmem:[#allocation4 + $0x2b0] sm:$0xff]  ;;  %v5957_v9 = vld [vmem:[#allocation4 + $0x298] sm:$0xff] }
 0xb66   :  { %6401 = vmatprep.subr.mxu1 %v6121_v23  ;;  %6331 = vmatpush2.msra.mxu0 %v5992_v14  ;;  %v6088_v20 = vld [vmem:[#allocation4 + $0x6b0] sm:$0xff]  ;;  %v6085_v51 = vld [vmem:[#allocation4 + $0x698] sm:$0xff] }
 0xb67   :  { %6402 = vmatpush2.msra.mxu1 %v6120_v24  ;;  %6332 = vmatprep.subr.mxu0 %v5989_v38  ;;  %v5956_v28 = vld [vmem:[#allocation4 + $0x290] sm:$0xff]  ;;  %v5953_v17 = vld [vmem:[#allocation4 + $0x278] sm:$0xff] }
 0xb68   :  { %6403 = vmatprep.subr.mxu1 %v6117_v60  ;;  %6333 = vmatpush2.msra.mxu0 %v5988_v40  ;;  %v6084_v47 = vld [vmem:[#allocation4 + $0x690] sm:$0xff]  ;;  %v6081_v58 = vld [vmem:[#allocation4 + $0x678] sm:$0xff] }
 0xb69   :  { %6404 = vmatpush2.msra.mxu1 %v6116_v46  ;;  %6334 = vmatprep.subr.mxu0 %v5985_v37  ;;  %v5952_v54 = vld [vmem:[#allocation4 + $0x270] sm:$0xff]  ;;  %v5949_v12 = vld [vmem:[#allocation4 + $0x258] sm:$0xff] }
 0xb6a   :  { %6405 = vmatprep.subr.mxu1 %v6113_v53  ;;  %6335 = vmatpush2.msra.mxu0 %v5984_v57  ;;  %v6080_v44 = vld [vmem:[#allocation4 + $0x670] sm:$0xff]  ;;  %v6077_v21 = vld [vmem:[#allocation4 + $0x658] sm:$0xff] }
 0xb6b   :  { %6406 = vmatpush2.msra.mxu1 %v6112_v42  ;;  %6336 = vmatprep.subr.mxu0 %v5981_v8  ;;  %v5948_v4 = vld [vmem:[#allocation4 + $0x250] sm:$0xff]  ;;  %v5945_v16 = vld [vmem:[#allocation4 + $0x238] sm:$0xff] }
 0xb6c   :  { %6407 = vmatprep.subr.mxu1 %v6109_v49  ;;  %6337 = vmatpush2.msra.mxu0 %v5980_v27  ;;  %v6076_v1 = vld [vmem:[#allocation4 + $0x650] sm:$0xff]  ;;  %v6073_v36 = vld [vmem:[#allocation4 + $0x638] sm:$0xff] }
 0xb6d   :  { %6408 = vmatpush2.msra.mxu1 %v6108_v45  ;;  %6338 = vmatprep.subr.mxu0 %v5977_v61  ;;  %v5944_v18 = vld [vmem:[#allocation4 + $0x230] sm:$0xff]  ;;  %v5941_v50 = vld [vmem:[#allocation4 + $0x218] sm:$0xff] }
 0xb6e   :  { %6409 = vmatprep.subr.mxu1 %v6105_v19  ;;  %6339 = vmatpush2.msra.mxu0 %v5976_v55  ;;  %v6072_v56 = vld [vmem:[#allocation4 + $0x630] sm:$0xff]  ;;  %v6069_v15 = vld [vmem:[#allocation4 + $0x618] sm:$0xff] }
 0xb6f   :  { %6410 = vmatpush2.msra.mxu1 %v6104_v5  ;;  %6340 = vmatprep.subr.mxu0 %v5973_v62  ;;  %v5940_v41 = vld [vmem:[#allocation4 + $0x210] sm:$0xff]  ;;  %v6632_v63 = vld [vmem:[#allocation3] ss:$0 sm:$0xff] }
 0xb70   :  { %6411 = vmatprep.subr.mxu1 %v6101_v3  ;;  %6341 = vmatpush2.msra.mxu0 %v5972_v6  ;;  %v6068_v33 = vld [vmem:[#allocation4 + $0x610] sm:$0xff]  ;;  %v6130_v38 = vld [vmem:[%s11212_s5] sm:$0xf] }
 0xb71   :  { %6412 = vmatpush2.msra.mxu1 %v6100_v52  ;;  %6342 = vmatprep.subr.mxu0 %v5969_v7  ;;  %v6139_v60 = vrot.slane %v6130_v38, %v11209_v43  ;;  %v6135_v46 = vrot.slane %v6130_v38, %v10918_v30  ;;  %v6143_v57 = vrot.slane %v6130_v38, %v11210_v26  ;;  %v6440_v42 = vld [vmem:[%s11213_s6] sm:$0xf] }
 0xb72   :  { %6413 = vmatprep.subr.mxu1 %v6097_v0  ;;  %6343 = vmatpush2.msra.mxu0 %v5968_v39  ;;  %v6449_v49 = vrot.slane %v6440_v42, %v11209_v43  ;;  %v6147_v27 = vrot.slane %v6130_v38, %v11211_v29  ;;  %v6445_v19 = vrot.slane %v6440_v42, %v10918_v30 }
 0xb73   :  { %6414 = vmatpush2.msra.mxu1 %v6096_v31  ;;  %6344 = vmatprep.subr.mxu0 %v5965_v11  ;;  %v6453_v52 = vrot.slane %v6440_v42, %v11210_v26  ;;  %v6457_v43 = vrot.slane %v6440_v42, %v11211_v29 }
 0xb74   :  { %6415 = vmatprep.subr.mxu1 %v6093_v35  ;;  %6345 = vmatpush2.msra.mxu0 %v5964_v13 }
 0xb75   :  { %6416 = vmatpush2.msra.mxu1 %v6092_v48  ;;  %6346 = vmatprep.subr.mxu0 %v5961_v34 }
 0xb76   :  { %6417 = vmatprep.subr.mxu1 %v6089_v59  ;;  %6347 = vmatpush2.msra.mxu0 %v5960_v25  ;;  %v6639_v25 = vld [vmem:[#allocation2] ss:$0 sm:$0xff] }
 0xb77   :  { %6418 = vmatpush2.msra.mxu1 %v6088_v20  ;;  %6348 = vmatprep.subr.mxu0 %v5957_v9 }
 0xb78   :  { %6419 = vmatprep.subr.mxu1 %v6085_v51  ;;  %6349 = vmatpush2.msra.mxu0 %v5956_v28 }
 0xb79   :  { %6420 = vmatpush2.msra.mxu1 %v6084_v47  ;;  %6350 = vmatprep.subr.mxu0 %v5953_v17 }
 0xb7a   :  { %6421 = vmatprep.subr.mxu1 %v6081_v58  ;;  %6351 = vmatpush2.msra.mxu0 %v5952_v54 }
 0xb7b   :  { %6422 = vmatpush2.msra.mxu1 %v6080_v44  ;;  %6352 = vmatprep.subr.mxu0 %v5949_v12 }
 0xb7c   :  { %6423 = vmatprep.subr.mxu1 %v6077_v21  ;;  %6353 = vmatpush2.msra.mxu0 %v5948_v4 }
 0xb7d   :  { %6424 = vmatpush2.msra.mxu1 %v6076_v1  ;;  %6354 = vmatprep.subr.mxu0 %v5945_v16 }
 0xb7e   :  { %6425 = vmatprep.subr.mxu1 %v6073_v36  ;;  %6355 = vmatpush2.msra.mxu0 %v5944_v18 }
 0xb7f   :  { %6426 = vmatpush2.msra.mxu1 %v6072_v56  ;;  %6356 = vmatprep.subr.mxu0 %v5941_v50 }
 0xb80   :  { %6427 = vmatprep.subr.mxu1 %v6069_v15  ;;  %6357 = vmatpush2.msra.mxu0 %v5940_v41 }
 0xb81   :  { %6428 = vmatpush2.msra.mxu1 %v6068_v33  ;;  %6359 = vmatmul.mubr.f32.vlgmr.msra.gmra.mxu0 %v5870_v32 }
 0xb82   :  { %6430 = vmatmul.mubr.f32.vlgmr.msra.gmra.mxu1 %v5872_v10 }
 0xbce   :  { %v5675_v23 = vpop.xlane.xlu1 %5674 }
 0xbcf   :  { %v5683_v14 = vadd.f32 %v6632_v63, %v5675_v23 }
 0xbd1   :  { %6489 = vperm.xlu1 %6655, %v5683_v14  }
 0xc00   :  { %v6218_v24 = vpop.f32.mrf.mxu0  ;;  %v6289_v37 = vpop.f32.mrf.mxu1 }
 0xc01   :  { %v6219_v32 = vadd.f32 %v6218_v24, %v6135_v46 }
 0xc02   :  { %v6220_v40 = vpop.f32.mrf.mxu0  ;;  %v6291_v53 = vpop.f32.mrf.mxu1 }
 0xc03   :  { %v6221_v22 = vadd.f32 %v6220_v40, %v6139_v60  ;;  %v6290_v10 = vadd.f32 %v6289_v37, %v6219_v32 }
 0xc05   :  { %v6292_v2 = vadd.f32 %v6291_v53, %v6221_v22  ;;  %v6436_v61 = vmax.f32 %v6290_v10, 0.0 }
 0xc07   :  { %v6437_v8 = vmax.f32 %v6292_v2, 0.0  ;;  %v6462_v39 = vmul.f32 %v6445_v19, %v6436_v61 }
 0xc09   :  { %v6463_v3 = vmul.f32 %v6449_v49, %v6437_v8 }
 0xc0b   :  { %v6466_v35 = vadd.f32 %v6463_v3, %v6462_v39 }
 0xc41   :  { %v6360_v45 = vpop.f32.mrf.mxu0 }
 0xc42   :  { %v6361_v55 = vadd.f32 %v6360_v45, %v6143_v57  ;;  %v6431_v5 = vpop.f32.mrf.mxu1 }
 0xc43   :  { %v6362_v62 = vpop.f32.mrf.mxu0 }
 0xc44   :  { %v6432_v6 = vadd.f32 %v6431_v5, %v6361_v55  ;;  %v6363_v7 = vadd.f32 %v6362_v62, %v6147_v27  ;;  %v6433_v0 = vpop.f32.mrf.mxu1 }
 0xc46   :  { %v6438_v31 = vmax.f32 %v6432_v6, 0.0  ;;  %v6434_v11 = vadd.f32 %v6433_v0, %v6363_v7 }
 0xc48   :  { %v6464_v13 = vmul.f32 %v6453_v52, %v6438_v31  ;;  %v6439_v48 = vmax.f32 %v6434_v11, 0.0 }
 0xc4a   :  { %v6467_v34 = vadd.f32 %v6466_v35, %v6464_v13  ;;  %v6465_v59 = vmul.f32 %v6457_v43, %v6439_v48 }
 0xc4c   :  { %v6468_v30 = vadd.f32 %v6467_v34, %v6465_v59 }
 0xc4e   :  { %6469 = vadd.xlane.f32.xlu0 %v6468_v30 }
 0xcd7   :  { %v6470_v20 = vpop.xlane.xlu0 %6469 }
 0xcd8   :  { %v6478_v9 = vadd.f32 %v6639_v25, %v6470_v20 }
 0xcda   :  { %6482 = vperm.xlu1 %6655, %v6478_v9   ;;  %v6495_v51 = vadd.f32 %v6478_v9, %v5683_v14 }
 0xcde   :  { %6498 = vperm.xlu1 %6655, %v6495_v51  }
 0xcdf   :  { %6984 = shalt.err (!%p6981_p5)
}
 0xce0   :  { %6525 = dma.vmem_to_hbm [thread:$0]  %s6520_s27, 1024, %s10656_s26, [#allocation12], %s7023_s12, %s7023_s12, %s7024_s2   ;;  %v6490_v26 = vpop.permute.xlu1 %6489  ;;  %v11214_v29 = vld [vmem:[#allocation45_spill] sm:$0xff] }
 0xce1   :  { %vm6479_vm13 = vcmp.eq.s32.totalorder %v11214_v29, 0  ;;  %vm6486_vm11 = vcmp.eq.s32.totalorder %v11214_v29, 1  ;;  %vm6494_vm12 = vcmp.eq.s32.totalorder %v11214_v29, 2  ;;  %s7030_s8 = smov [#allocation10]  }
 0xce2   :  { %v6492_v17 = vsel %vm6486_vm11, %v6490_v26, 0.0  ;;  %s6510_s13 = sshll.u32 %s7030_s8, 4  ;;  %s6511_s13 = int_to_ptr.vmem [resolvable:$true] %s6510_s13 }
 0xce3   :  { %s6993_s16 = scalar_lea.vmem %s6511_s13, 128  ;;  %p6998_p7 = scmp.lt.s32.totalorder %s6511_s13, %s6511_s13 }
 0xce4   :  { %p6994_p6 = scmp.ne.s32.totalorder %s6511_s13, %s6993_s16  ;;  %p6999_p8 = scmp.lt.s32.totalorder %s6993_s16, %s6993_s16 }
 0xce6   :  { %p7000_p9 = por %p6999_p8, %p6998_p7 }
 0xce8   :  { %p7001_p10 = pnand %p7000_p9, %p6994_p6 }
 0xd55   :  { %v6483_v28 = vpop.permute.xlu1 %6482 }
 0xd56   :  { %v6485_v47 = vsel %vm6479_vm13, %v6483_v28, 0.0 }
 0xd57   :  { %v6493_v58 = vadd.f32 %v6492_v17, %v6485_v47 }
 0xd59   :  { %v6499_v54 = vpop.permute.xlu1 %6498 }
 0xd5a   :  { %v6501_v44 = vsel %vm6494_vm12, %v6499_v54, 0.0 }
 0xd5b   :  { %v6502_v12 = vadd.f32 %v6501_v44, %v6493_v58 }
 0xd5d   :  { %6503 = vst [vmem:[#allocation10] sm:$0xff] %v6502_v12 }
 0xd5e   :  { %7004 = shalt.err (!%p7001_p10)
}
 0xd5f   :  { %6513 = dma.vmem_to_hbm [thread:$0]  %s6511_s13, 128, %s10655_s25, [#allocation6]  }
 0xd60   :  { %7017 = dma.done.wait [#allocation6], 128  }
 0xd61   :  { %7018 = vsyncadd [#allocation6], 4294967168 }
 0xd62   :  { %7019 = dma.done.wait [#allocation12], 1024  }
 0xd63   :  { %7020 = vsyncadd [#allocation12], 4294966272 }
 0xd64   :  { %6532 = vsyncpa [#allocation5], 1 }
 0xd65   :  { %6533 = vsyncpa [#allocation8], 1 }
 0xd66   :  { %6534 = vsyncpa [#allocation6], 1 }
 0xd67   :  { %6535 = vsyncpa [#allocation12], 1 }

</bundles_post_ra>
